<compile_context>
chip_gen: v6e
topology: v6e:2x2x1
jax: 0.10.0
libtpu: 0.0.40
codegen_flags: <defaults>
</compile_context>

<pallas_src>
import functools

import jax
import jax.numpy as jnp
from jax.experimental import pallas as pl
from jax.experimental.pallas import tpu as pltpu

_CPAD = 128                    # lane-dense padded Cout (all chips: 128-lane vregs)
_TILE_M = 512                  # im2col row tile; >85% HBM roofline, fits v7x VMEM
_VMEM_LIMIT = 32 * 1024 * 1024 # explicit scoped-VMEM budget (safe on v5e/v6e/v7x)


def _round_up(v, m):
    return (v + m - 1) // m * m


# --------------------------------------------------------------------------
# Pallas kernels
# --------------------------------------------------------------------------
def _mrf_block_kernel(ch_ref, p_ref, w_ref, b_ref, o_ref):
    """Fused MRF block: one MXU matmul over choice-mixed stacked weights + ReLU.

    ch : (3,) f32 in SMEM           one row of choices_one_hot
    p  : (tile_m, 25*Cin) bf16      5x5 im2col patches (1x1/3x3 taps are a subset)
    w  : (3, 25*Cin, 128) f32       candidate weights; 1x1/3x3 zero-embedded into
                                    the 25-tap layout, Cout zero-padded to 128
    b  : (3, 1, 128) f32            candidate biases (padded)
    o  : (tile_m, 128) f32
    """
    w = ch_ref[0] * w_ref[0] + ch_ref[1] * w_ref[1] + ch_ref[2] * w_ref[2]
    b = ch_ref[0] * b_ref[0] + ch_ref[1] * b_ref[1] + ch_ref[2] * b_ref[2]
    y = jnp.dot(p_ref[...], w.astype(jnp.bfloat16),
                preferred_element_type=jnp.float32)
    o_ref[...] = jnp.maximum(y + b, 0.0)


def _mrf_block_head_kernel(ch_ref, p_ref, w_ref, b_ref, wf_ref, bf_ref, o_ref):
    """Last decoder block with the final 1x1 projection fused in (head=Identity)."""
    w = ch_ref[0] * w_ref[0] + ch_ref[1] * w_ref[1] + ch_ref[2] * w_ref[2]
    b = ch_ref[0] * b_ref[0] + ch_ref[1] * b_ref[1] + ch_ref[2] * b_ref[2]
    h = jnp.maximum(
        jnp.dot(p_ref[...], w.astype(jnp.bfloat16),
                preferred_element_type=jnp.float32) + b, 0.0)
    o_ref[...] = jnp.dot(h.astype(jnp.bfloat16), wf_ref[...],
                         preferred_element_type=jnp.float32) + bf_ref[...]


def _mrf_block_pallas(choice, patches, wst, bst, head=None, tile_m=_TILE_M):
    m, k = patches.shape
    cpad = wst.shape[-1]
    if m < tile_m:
        tile_m = _round_up(m, 8)
    m_pad = _round_up(m, tile_m)
    if m_pad != m:
        patches = jnp.pad(patches, ((0, m_pad - m), (0, 0)))

    in_specs = [
        pl.BlockSpec(memory_space=pltpu.MemorySpace.SMEM),   # choice row (3,)
        pl.BlockSpec((tile_m, k), lambda i: (i, 0)),         # patches, M-tiled
        pl.BlockSpec((3, k, cpad), lambda i: (0, 0, 0)),     # stacked weights
        pl.BlockSpec((3, 1, cpad), lambda i: (0, 0, 0)),     # stacked biases
    ]
    args = [choice, patches, wst, bst]
    kernel = _mrf_block_kernel
    if head is not None:
        wf, bf = head
        in_specs += [pl.BlockSpec((cpad, cpad), lambda i: (0, 0)),
                     pl.BlockSpec((1, cpad), lambda i: (0, 0))]
        args += [wf, bf]
        kernel = _mrf_block_head_kernel

    out = pl.pallas_call(
        kernel,
        out_shape=jax.ShapeDtypeStruct((m_pad, cpad), jnp.float32),
        grid=(m_pad // tile_m,),
        in_specs=in_specs,
        out_specs=pl.BlockSpec((tile_m, cpad), lambda i: (i, 0)),
        compiler_params=pltpu.CompilerParams(
            dimension_semantics=("parallel",),
            vmem_limit_bytes=_VMEM_LIMIT),
    )(*args)
    return out[:m]


# --------------------------------------------------------------------------
# Glue (plain JAX): patches, pooling, upsampling, parameter setup
# --------------------------------------------------------------------------
def _patches5(x):
    """x: (N,H,W,C) -> (N*H*W, 25*C) 'same'-padded 5x5 taps (tap-major, ch-minor)."""
    n, h, w, c = x.shape
    xp = jnp.pad(x, ((0, 0), (2, 2), (2, 2), (0, 0)))
    taps = [xp[:, di:di + h, dj:dj + w, :] for di in range(5) for dj in range(5)]
    return jnp.concatenate(taps, axis=-1).reshape(n * h * w, 25 * c)


def _maxpool2x2(x):
    n, h, w, c = x.shape
    return jnp.max(x.reshape(n, h // 2, 2, w // 2, 2, c), axis=(2, 4))


def _upsample2x(x):
    return jnp.repeat(jnp.repeat(x, 2, axis=1), 2, axis=2)


def _init_branch(key, k, cin, cout):
    w = jax.random.normal(key, (k, k, cin, cout), jnp.float32)
    w = w * (1.0 / jnp.sqrt(float(k * k * cin)))
    b = jnp.zeros((cout,), jnp.float32)
    return w, b


def _embed_stack(branches, cout_pad):
    """Embed 1x1/3x3 weights into the 25-tap layout, stack 3 candidates, pad Cout."""
    (w1, b1), (w3, b3), (w5, b5) = branches
    cin, cout = w5.shape[2], w5.shape[3]
    assert cout <= cout_pad
    w1e = jnp.zeros((5, 5, cin, cout), jnp.float32).at[2, 2].set(w1[0, 0])
    w3e = jnp.zeros((5, 5, cin, cout), jnp.float32).at[1:4, 1:4].set(w3)
    wst = jnp.stack([w1e, w3e, w5], axis=0).reshape(3, 25 * cin, cout)
    wst = jnp.pad(wst, ((0, 0), (0, 0), (0, cout_pad - cout)))
    bst = jnp.stack([b1, b3, b5], axis=0).reshape(3, 1, cout)
    bst = jnp.pad(bst, ((0, 0), (0, 0), (0, cout_pad - cout)))
    return wst, bst


def init_mrf_unet_search_params(key, image_channels, embedding_size,
                                channel_step):
    """Deterministic super-net params: 5 MRF blocks + final 1x1 (pre-Identity head)."""
    c1, c2, c3 = channel_step, 2 * channel_step, 4 * channel_step
    block_io = [
        (image_channels, c1),   # enc1
        (c1, c2),               # enc2
        (c2, c3),               # bottleneck
        (c3 + c2, c2),          # dec2 (skip concat)
        (c2 + c1, c1),          # dec1 (skip concat)
    ]
    keys = jax.random.split(key, 3 * len(block_io) + 1)
    blocks, idx = [], 0
    for cin, cout in block_io:
        branches = []
        for k in (1, 3, 5):
            branches.append(_init_branch(keys[idx], k, cin, cout))
            idx += 1
        wst, bst = _embed_stack(branches, _CPAD)
        blocks.append({"w": wst, "b": bst, "cout": cout})

    wf_full, bf = _init_branch(keys[idx], 1, c1, embedding_size)
    wf_pad = (jnp.zeros((_CPAD, _CPAD), jnp.float32)
              .at[:c1, :embedding_size].set(wf_full[0, 0])).astype(jnp.bfloat16)
    bf_pad = jnp.zeros((1, _CPAD), jnp.float32).at[0, :embedding_size].set(bf)
    return {"blocks": blocks, "final": (wf_pad, bf_pad, embedding_size)}


def _mrf_block(x, blk, choice_row, head=None):
    """One multi-receptive-field block. x: (N,H,W,Cin) -> (N,H,W,Cout) (or emb)."""
    n, h, w, _ = x.shape
    patches = _patches5(x.astype(jnp.bfloat16))          # (M, 25*Cin) bf16
    y = _mrf_block_pallas(choice_row, patches, blk["w"], blk["b"],
                          head=None if head is None else (head[0], head[1]))
    cout = blk["cout"] if head is None else head[2]
    return y[:, :cout].reshape(n, h, w, cout)


def mrf_unet_search_forward(params, x_nchw, choices_one_hot):
    """MRFUNetSearch.forward: returns [out] with out in NCHW like PyTorch."""
    assert choices_one_hot.shape == (len(params["blocks"]), 3), choices_one_hot.shape
    x = jnp.transpose(x_nchw, (0, 2, 3, 1)).astype(jnp.float32)   # -> NHWC
    ch = choices_one_hot.astype(jnp.float32)
    blocks = params["blocks"]

    e1 = _mrf_block(x, blocks[0], ch[0])                           # (N, H,   W,   c1)
    e2 = _mrf_block(_maxpool2x2(e1), blocks[1], ch[1])             # H/2
    bott = _mrf_block(_maxpool2x2(e2), blocks[2], ch[2])           # H/4

    d2 = _mrf_block(jnp.concatenate([_upsample2x(bott), e2], axis=-1),
                    blocks[3], ch[3])                              # H/2
    out = _mrf_block(jnp.concatenate([_upsample2x(d2), e1], axis=-1),
                     blocks[4], ch[4], head=params["final"])       # H, emb (head fused)

    out = jnp.transpose(out, (0, 3, 1, 2))                         # back to NCHW
    return [out]                                                   # head == Identity


# --------------------------------------------------------------------------
# Main
# --------------------------------------------------------------------------
if __name__ == "__main__":
    image_channels = 4
    embedding_size = 8
    channel_step = 8

    key = jax.random.PRNGKey(0)
    k_param, k_x = jax.random.split(key)

    params = init_mrf_unet_search_params(
        k_param, image_channels, embedding_size, channel_step)

    x = jax.random.normal(k_x, (2, image_channels, 16, 16), jnp.float32)
    # One architecture choice per MRF block (5 blocks, 3 candidate ops each).
    choices_one_hot = jax.nn.one_hot(
        jnp.array([0, 1, 2, 1, 0], dtype=jnp.int32), 3, dtype=jnp.float32)

    fwd = jax.jit(functools.partial(mrf_unet_search_forward, params))
    outs = fwd(x, choices_one_hot)
    out = jax.block_until_ready(outs[0])

    assert out.shape == (2, embedding_size, 16, 16), out.shape
    assert jnp.all(jnp.isfinite(out))
    print("KERNEL_OK")
</pallas_src>

<mosaic_0001>
module attributes {stable_mosaic.version = 11 : i64} {
  func.func @_mrf_block_kernel(%arg0: i32, %arg1: memref<3xf32, #tpu.memory_space<smem>>, %arg2: memref<512x100xbf16, #tpu.memory_space<vmem>>, %arg3: memref<3x100x128xf32, #tpu.memory_space<vmem>>, %arg4: memref<3x1x128xf32, #tpu.memory_space<vmem>>, %arg5: memref<512x128xf32, #tpu.memory_space<vmem>>) attributes {dimension_semantics = [#tpu.dimension_semantics<parallel>], iteration_bounds = array<i64: 1>, scalar_prefetch = 0 : i64, scratch_operands = 0 : i64, tpu.core_type = #tpu.core_type<tc>, window_params = [{transform_indices = @transform_0, window_bounds = array<i64: 3>}, {transform_indices = @transform_1, window_bounds = array<i64: 512, 100>}, {pipeline_mode = #tpu.pipeline_mode<synchronous>, transform_indices = @transform_2, window_bounds = array<i64: 3, 100, 128>}, {pipeline_mode = #tpu.pipeline_mode<synchronous>, transform_indices = @transform_3, window_bounds = array<i64: 3, 1, 128>}, {transform_indices = @transform_4, window_bounds = array<i64: 512, 128>}]} {
    %c0 = arith.constant 0 : index
    %0 = memref.load %arg1[%c0] : memref<3xf32, #tpu.memory_space<smem>>
    %c0_0 = arith.constant 0 : index
    %c0_1 = arith.constant 0 : index
    %c0_2 = arith.constant 0 : index
    %1 = vector.load %arg3[%c0_0, %c0_1, %c0_2] : memref<3x100x128xf32, #tpu.memory_space<vmem>>, vector<1x100x128xf32>
    %2 = vector.shape_cast %1 : vector<1x100x128xf32> to vector<100x128xf32>
    %3 = vector.broadcast %0 : f32 to vector<100x128xf32>
    %4 = arith.mulf %3, %2 : vector<100x128xf32>
    %c1 = arith.constant 1 : index
    %5 = memref.load %arg1[%c1] : memref<3xf32, #tpu.memory_space<smem>>
    %c1_3 = arith.constant 1 : index
    %c0_4 = arith.constant 0 : index
    %c0_5 = arith.constant 0 : index
    %6 = vector.load %arg3[%c1_3, %c0_4, %c0_5] : memref<3x100x128xf32, #tpu.memory_space<vmem>>, vector<1x100x128xf32>
    %7 = vector.shape_cast %6 : vector<1x100x128xf32> to vector<100x128xf32>
    %8 = vector.broadcast %5 : f32 to vector<100x128xf32>
    %9 = arith.mulf %8, %7 : vector<100x128xf32>
    %10 = arith.addf %4, %9 : vector<100x128xf32>
    %c2 = arith.constant 2 : index
    %11 = memref.load %arg1[%c2] : memref<3xf32, #tpu.memory_space<smem>>
    %c2_6 = arith.constant 2 : index
    %c0_7 = arith.constant 0 : index
    %c0_8 = arith.constant 0 : index
    %12 = vector.load %arg3[%c2_6, %c0_7, %c0_8] : memref<3x100x128xf32, #tpu.memory_space<vmem>>, vector<1x100x128xf32>
    %13 = vector.shape_cast %12 : vector<1x100x128xf32> to vector<100x128xf32>
    %14 = vector.broadcast %11 : f32 to vector<100x128xf32>
    %15 = arith.mulf %14, %13 : vector<100x128xf32>
    %16 = arith.addf %10, %15 : vector<100x128xf32>
    %c0_9 = arith.constant 0 : index
    %17 = memref.load %arg1[%c0_9] : memref<3xf32, #tpu.memory_space<smem>>
    %c0_10 = arith.constant 0 : index
    %c0_11 = arith.constant 0 : index
    %c0_12 = arith.constant 0 : index
    %18 = vector.load %arg4[%c0_10, %c0_11, %c0_12] : memref<3x1x128xf32, #tpu.memory_space<vmem>>, vector<1x1x128xf32>
    %19 = vector.shape_cast %18 : vector<1x1x128xf32> to vector<1x128xf32>
    %20 = vector.broadcast %17 : f32 to vector<1x128xf32>
    %21 = arith.mulf %20, %19 : vector<1x128xf32>
    %c1_13 = arith.constant 1 : index
    %22 = memref.load %arg1[%c1_13] : memref<3xf32, #tpu.memory_space<smem>>
    %c1_14 = arith.constant 1 : index
    %c0_15 = arith.constant 0 : index
    %c0_16 = arith.constant 0 : index
    %23 = vector.load %arg4[%c1_14, %c0_15, %c0_16] : memref<3x1x128xf32, #tpu.memory_space<vmem>>, vector<1x1x128xf32>
    %24 = vector.shape_cast %23 : vector<1x1x128xf32> to vector<1x128xf32>
    %25 = vector.broadcast %22 : f32 to vector<1x128xf32>
    %26 = arith.mulf %25, %24 : vector<1x128xf32>
    %27 = arith.addf %21, %26 : vector<1x128xf32>
    %c2_17 = arith.constant 2 : index
    %28 = memref.load %arg1[%c2_17] : memref<3xf32, #tpu.memory_space<smem>>
    %c2_18 = arith.constant 2 : index
    %c0_19 = arith.constant 0 : index
    %c0_20 = arith.constant 0 : index
    %29 = vector.load %arg4[%c2_18, %c0_19, %c0_20] : memref<3x1x128xf32, #tpu.memory_space<vmem>>, vector<1x1x128xf32>
    %30 = vector.shape_cast %29 : vector<1x1x128xf32> to vector<1x128xf32>
    %31 = vector.broadcast %28 : f32 to vector<1x128xf32>
    %32 = arith.mulf %31, %30 : vector<1x128xf32>
    %33 = arith.addf %27, %32 : vector<1x128xf32>
    %c0_21 = arith.constant 0 : index
    %c0_22 = arith.constant 0 : index
    %34 = vector.load %arg2[%c0_21, %c0_22] : memref<512x100xbf16, #tpu.memory_space<vmem>>, vector<512x100xbf16>
    %35 = arith.truncf %16 : vector<100x128xf32> to vector<100x128xbf16>
    %cst = arith.constant dense<0.000000e+00> : vector<512x128xf32>
    %36 = tpu.matmul %34, %35, %cst {dimension_numbers = #tpu.dot_dimension_numbers<[1], [0], [0], [1], [0, 0, 1, 1], [], []>} : vector<512x100xbf16>, vector<100x128xbf16>, vector<512x128xf32> -> vector<512x128xf32>
    %37 = vector.broadcast %33 : vector<1x128xf32> to vector<512x128xf32>
    %38 = arith.addf %36, %37 : vector<512x128xf32>
    %cst_23 = arith.constant 0.000000e+00 : f32
    %39 = vector.broadcast %cst_23 : f32 to vector<512x128xf32>
    %40 = arith.maximumf %38, %39 : vector<512x128xf32>
    %c0_24 = arith.constant 0 : index
    %c0_25 = arith.constant 0 : index
    %41 = vector.load %arg5[%c0_24, %c0_25] : memref<512x128xf32, #tpu.memory_space<vmem>>, vector<512x128xf32>
    tpu.vector_store %arg5[%c0_24, %c0_25], %40 {strides = array<i32>} : memref<512x128xf32, #tpu.memory_space<vmem>>, vector<512x128xf32>,
    return
  }
  func.func @transform_0(%arg0: i32) -> i32 {
    %c0_i32 = arith.constant 0 : i32
    %c0_i32_0 = arith.constant 0 : i32
    return %c0_i32 : i32
  }
  func.func @transform_1(%arg0: i32) -> (i32, i32) {
    %c0_i32 = arith.constant 0 : i32
    %c0_i32_0 = arith.constant 0 : i32
    return %arg0, %c0_i32 : i32, i32
  }
  func.func @transform_2(%arg0: i32) -> (i32, i32, i32) {
    %c0_i32 = arith.constant 0 : i32
    %c0_i32_0 = arith.constant 0 : i32
    %c0_i32_1 = arith.constant 0 : i32
    %c0_i32_2 = arith.constant 0 : i32
    return %c0_i32, %c0_i32_0, %c0_i32_1 : i32, i32, i32
  }
  func.func @transform_3(%arg0: i32) -> (i32, i32, i32) {
    %c0_i32 = arith.constant 0 : i32
    %c0_i32_0 = arith.constant 0 : i32
    %c0_i32_1 = arith.constant 0 : i32
    %c0_i32_2 = arith.constant 0 : i32
    return %c0_i32, %c0_i32_0, %c0_i32_1 : i32, i32, i32
  }
  func.func @transform_4(%arg0: i32) -> (i32, i32) {
    %c0_i32 = arith.constant 0 : i32
    %c0_i32_0 = arith.constant 0 : i32
    return %arg0, %c0_i32 : i32, i32
  }
}

module attributes {stable_mosaic.version = 11 : i64} {
  func.func @_mrf_block_kernel(%arg0: i32, %arg1: memref<3xf32, #tpu.memory_space<smem>>, %arg2: memref<128x200xbf16, #tpu.memory_space<vmem>>, %arg3: memref<3x200x128xf32, #tpu.memory_space<vmem>>, %arg4: memref<3x1x128xf32, #tpu.memory_space<vmem>>, %arg5: memref<128x128xf32, #tpu.memory_space<vmem>>) attributes {dimension_semantics = [#tpu.dimension_semantics<parallel>], iteration_bounds = array<i64: 1>, scalar_prefetch = 0 : i64, scratch_operands = 0 : i64, tpu.core_type = #tpu.core_type<tc>, window_params = [{transform_indices = @transform_0, window_bounds = array<i64: 3>}, {transform_indices = @transform_1, window_bounds = array<i64: 128, 200>}, {pipeline_mode = #tpu.pipeline_mode<synchronous>, transform_indices = @transform_2, window_bounds = array<i64: 3, 200, 128>}, {pipeline_mode = #tpu.pipeline_mode<synchronous>, transform_indices = @transform_3, window_bounds = array<i64: 3, 1, 128>}, {transform_indices = @transform_4, window_bounds = array<i64: 128, 128>}]} {
    %c0 = arith.constant 0 : index
    %0 = memref.load %arg1[%c0] : memref<3xf32, #tpu.memory_space<smem>>
    %c0_0 = arith.constant 0 : index
    %c0_1 = arith.constant 0 : index
    %c0_2 = arith.constant 0 : index
    %1 = vector.load %arg3[%c0_0, %c0_1, %c0_2] : memref<3x200x128xf32, #tpu.memory_space<vmem>>, vector<1x200x128xf32>
    %2 = vector.shape_cast %1 : vector<1x200x128xf32> to vector<200x128xf32>
    %3 = vector.broadcast %0 : f32 to vector<200x128xf32>
    %4 = arith.mulf %3, %2 : vector<200x128xf32>
    %c1 = arith.constant 1 : index
    %5 = memref.load %arg1[%c1] : memref<3xf32, #tpu.memory_space<smem>>
    %c1_3 = arith.constant 1 : index
    %c0_4 = arith.constant 0 : index
    %c0_5 = arith.constant 0 : index
    %6 = vector.load %arg3[%c1_3, %c0_4, %c0_5] : memref<3x200x128xf32, #tpu.memory_space<vmem>>, vector<1x200x128xf32>
    %7 = vector.shape_cast %6 : vector<1x200x128xf32> to vector<200x128xf32>
    %8 = vector.broadcast %5 : f32 to vector<200x128xf32>
    %9 = arith.mulf %8, %7 : vector<200x128xf32>
    %10 = arith.addf %4, %9 : vector<200x128xf32>
    %c2 = arith.constant 2 : index
    %11 = memref.load %arg1[%c2] : memref<3xf32, #tpu.memory_space<smem>>
    %c2_6 = arith.constant 2 : index
    %c0_7 = arith.constant 0 : index
    %c0_8 = arith.constant 0 : index
    %12 = vector.load %arg3[%c2_6, %c0_7, %c0_8] : memref<3x200x128xf32, #tpu.memory_space<vmem>>, vector<1x200x128xf32>
    %13 = vector.shape_cast %12 : vector<1x200x128xf32> to vector<200x128xf32>
    %14 = vector.broadcast %11 : f32 to vector<200x128xf32>
    %15 = arith.mulf %14, %13 : vector<200x128xf32>
    %16 = arith.addf %10, %15 : vector<200x128xf32>
    %c0_9 = arith.constant 0 : index
    %17 = memref.load %arg1[%c0_9] : memref<3xf32, #tpu.memory_space<smem>>
    %c0_10 = arith.constant 0 : index
    %c0_11 = arith.constant 0 : index
    %c0_12 = arith.constant 0 : index
    %18 = vector.load %arg4[%c0_10, %c0_11, %c0_12] : memref<3x1x128xf32, #tpu.memory_space<vmem>>, vector<1x1x128xf32>
    %19 = vector.shape_cast %18 : vector<1x1x128xf32> to vector<1x128xf32>
    %20 = vector.broadcast %17 : f32 to vector<1x128xf32>
    %21 = arith.mulf %20, %19 : vector<1x128xf32>
    %c1_13 = arith.constant 1 : index
    %22 = memref.load %arg1[%c1_13] : memref<3xf32, #tpu.memory_space<smem>>
    %c1_14 = arith.constant 1 : index
    %c0_15 = arith.constant 0 : index
    %c0_16 = arith.constant 0 : index
    %23 = vector.load %arg4[%c1_14, %c0_15, %c0_16] : memref<3x1x128xf32, #tpu.memory_space<vmem>>, vector<1x1x128xf32>
    %24 = vector.shape_cast %23 : vector<1x1x128xf32> to vector<1x128xf32>
    %25 = vector.broadcast %22 : f32 to vector<1x128xf32>
    %26 = arith.mulf %25, %24 : vector<1x128xf32>
    %27 = arith.addf %21, %26 : vector<1x128xf32>
    %c2_17 = arith.constant 2 : index
    %28 = memref.load %arg1[%c2_17] : memref<3xf32, #tpu.memory_space<smem>>
    %c2_18 = arith.constant 2 : index
    %c0_19 = arith.constant 0 : index
    %c0_20 = arith.constant 0 : index
    %29 = vector.load %arg4[%c2_18, %c0_19, %c0_20] : memref<3x1x128xf32, #tpu.memory_space<vmem>>, vector<1x1x128xf32>
    %30 = vector.shape_cast %29 : vector<1x1x128xf32> to vector<1x128xf32>
    %31 = vector.broadcast %28 : f32 to vector<1x128xf32>
    %32 = arith.mulf %31, %30 : vector<1x128xf32>
    %33 = arith.addf %27, %32 : vector<1x128xf32>
    %c0_21 = arith.constant 0 : index
    %c0_22 = arith.constant 0 : index
    %34 = vector.load %arg2[%c0_21, %c0_22] : memref<128x200xbf16, #tpu.memory_space<vmem>>, vector<128x200xbf16>
    %35 = arith.truncf %16 : vector<200x128xf32> to vector<200x128xbf16>
    %cst = arith.constant dense<0.000000e+00> : vector<128x128xf32>
    %36 = tpu.matmul %34, %35, %cst {dimension_numbers = #tpu.dot_dimension_numbers<[1], [0], [0], [1], [0, 0, 1, 1], [], []>} : vector<128x200xbf16>, vector<200x128xbf16>, vector<128x128xf32> -> vector<128x128xf32>
    %37 = vector.broadcast %33 : vector<1x128xf32> to vector<128x128xf32>
    %38 = arith.addf %36, %37 : vector<128x128xf32>
    %cst_23 = arith.constant 0.000000e+00 : f32
    %39 = vector.broadcast %cst_23 : f32 to vector<128x128xf32>
    %40 = arith.maximumf %38, %39 : vector<128x128xf32>
    %c0_24 = arith.constant 0 : index
    %c0_25 = arith.constant 0 : index
    %41 = vector.load %arg5[%c0_24, %c0_25] : memref<128x128xf32, #tpu.memory_space<vmem>>, vector<128x128xf32>
    tpu.vector_store %arg5[%c0_24, %c0_25], %40 {strides = array<i32>} : memref<128x128xf32, #tpu.memory_space<vmem>>, vector<128x128xf32>,
    return
  }
  func.func @transform_0(%arg0: i32) -> i32 {
    %c0_i32 = arith.constant 0 : i32
    %c0_i32_0 = arith.constant 0 : i32
    return %c0_i32 : i32
  }
  func.func @transform_1(%arg0: i32) -> (i32, i32) {
    %c0_i32 = arith.constant 0 : i32
    %c0_i32_0 = arith.constant 0 : i32
    return %arg0, %c0_i32 : i32, i32
  }
  func.func @transform_2(%arg0: i32) -> (i32, i32, i32) {
    %c0_i32 = arith.constant 0 : i32
    %c0_i32_0 = arith.constant 0 : i32
    %c0_i32_1 = arith.constant 0 : i32
    %c0_i32_2 = arith.constant 0 : i32
    return %c0_i32, %c0_i32_0, %c0_i32_1 : i32, i32, i32
  }
  func.func @transform_3(%arg0: i32) -> (i32, i32, i32) {
    %c0_i32 = arith.constant 0 : i32
    %c0_i32_0 = arith.constant 0 : i32
    %c0_i32_1 = arith.constant 0 : i32
    %c0_i32_2 = arith.constant 0 : i32
    return %c0_i32, %c0_i32_0, %c0_i32_1 : i32, i32, i32
  }
  func.func @transform_4(%arg0: i32) -> (i32, i32) {
    %c0_i32 = arith.constant 0 : i32
    %c0_i32_0 = arith.constant 0 : i32
    return %arg0, %c0_i32 : i32, i32
  }
}

module attributes {stable_mosaic.version = 11 : i64} {
  func.func @_mrf_block_kernel(%arg0: i32, %arg1: memref<3xf32, #tpu.memory_space<smem>>, %arg2: memref<32x400xbf16, #tpu.memory_space<vmem>>, %arg3: memref<3x400x128xf32, #tpu.memory_space<vmem>>, %arg4: memref<3x1x128xf32, #tpu.memory_space<vmem>>, %arg5: memref<32x128xf32, #tpu.memory_space<vmem>>) attributes {dimension_semantics = [#tpu.dimension_semantics<parallel>], iteration_bounds = array<i64: 1>, scalar_prefetch = 0 : i64, scratch_operands = 0 : i64, tpu.core_type = #tpu.core_type<tc>, window_params = [{transform_indices = @transform_0, window_bounds = array<i64: 3>}, {transform_indices = @transform_1, window_bounds = array<i64: 32, 400>}, {pipeline_mode = #tpu.pipeline_mode<synchronous>, transform_indices = @transform_2, window_bounds = array<i64: 3, 400, 128>}, {pipeline_mode = #tpu.pipeline_mode<synchronous>, transform_indices = @transform_3, window_bounds = array<i64: 3, 1, 128>}, {transform_indices = @transform_4, window_bounds = array<i64: 32, 128>}]} {
    %c0 = arith.constant 0 : index
    %0 = memref.load %arg1[%c0] : memref<3xf32, #tpu.memory_space<smem>>
    %c0_0 = arith.constant 0 : index
    %c0_1 = arith.constant 0 : index
    %c0_2 = arith.constant 0 : index
    %1 = vector.load %arg3[%c0_0, %c0_1, %c0_2] : memref<3x400x128xf32, #tpu.memory_space<vmem>>, vector<1x400x128xf32>
    %2 = vector.shape_cast %1 : vector<1x400x128xf32> to vector<400x128xf32>
    %3 = vector.broadcast %0 : f32 to vector<400x128xf32>
    %4 = arith.mulf %3, %2 : vector<400x128xf32>
    %c1 = arith.constant 1 : index
    %5 = memref.load %arg1[%c1] : memref<3xf32, #tpu.memory_space<smem>>
    %c1_3 = arith.constant 1 : index
    %c0_4 = arith.constant 0 : index
    %c0_5 = arith.constant 0 : index
    %6 = vector.load %arg3[%c1_3, %c0_4, %c0_5] : memref<3x400x128xf32, #tpu.memory_space<vmem>>, vector<1x400x128xf32>
    %7 = vector.shape_cast %6 : vector<1x400x128xf32> to vector<400x128xf32>
    %8 = vector.broadcast %5 : f32 to vector<400x128xf32>
    %9 = arith.mulf %8, %7 : vector<400x128xf32>
    %10 = arith.addf %4, %9 : vector<400x128xf32>
    %c2 = arith.constant 2 : index
    %11 = memref.load %arg1[%c2] : memref<3xf32, #tpu.memory_space<smem>>
    %c2_6 = arith.constant 2 : index
    %c0_7 = arith.constant 0 : index
    %c0_8 = arith.constant 0 : index
    %12 = vector.load %arg3[%c2_6, %c0_7, %c0_8] : memref<3x400x128xf32, #tpu.memory_space<vmem>>, vector<1x400x128xf32>
    %13 = vector.shape_cast %12 : vector<1x400x128xf32> to vector<400x128xf32>
    %14 = vector.broadcast %11 : f32 to vector<400x128xf32>
    %15 = arith.mulf %14, %13 : vector<400x128xf32>
    %16 = arith.addf %10, %15 : vector<400x128xf32>
    %c0_9 = arith.constant 0 : index
    %17 = memref.load %arg1[%c0_9] : memref<3xf32, #tpu.memory_space<smem>>
    %c0_10 = arith.constant 0 : index
    %c0_11 = arith.constant 0 : index
    %c0_12 = arith.constant 0 : index
    %18 = vector.load %arg4[%c0_10, %c0_11, %c0_12] : memref<3x1x128xf32, #tpu.memory_space<vmem>>, vector<1x1x128xf32>
    %19 = vector.shape_cast %18 : vector<1x1x128xf32> to vector<1x128xf32>
    %20 = vector.broadcast %17 : f32 to vector<1x128xf32>
    %21 = arith.mulf %20, %19 : vector<1x128xf32>
    %c1_13 = arith.constant 1 : index
    %22 = memref.load %arg1[%c1_13] : memref<3xf32, #tpu.memory_space<smem>>
    %c1_14 = arith.constant 1 : index
    %c0_15 = arith.constant 0 : index
    %c0_16 = arith.constant 0 : index
    %23 = vector.load %arg4[%c1_14, %c0_15, %c0_16] : memref<3x1x128xf32, #tpu.memory_space<vmem>>, vector<1x1x128xf32>
    %24 = vector.shape_cast %23 : vector<1x1x128xf32> to vector<1x128xf32>
    %25 = vector.broadcast %22 : f32 to vector<1x128xf32>
    %26 = arith.mulf %25, %24 : vector<1x128xf32>
    %27 = arith.addf %21, %26 : vector<1x128xf32>
    %c2_17 = arith.constant 2 : index
    %28 = memref.load %arg1[%c2_17] : memref<3xf32, #tpu.memory_space<smem>>
    %c2_18 = arith.constant 2 : index
    %c0_19 = arith.constant 0 : index
    %c0_20 = arith.constant 0 : index
    %29 = vector.load %arg4[%c2_18, %c0_19, %c0_20] : memref<3x1x128xf32, #tpu.memory_space<vmem>>, vector<1x1x128xf32>
    %30 = vector.shape_cast %29 : vector<1x1x128xf32> to vector<1x128xf32>
    %31 = vector.broadcast %28 : f32 to vector<1x128xf32>
    %32 = arith.mulf %31, %30 : vector<1x128xf32>
    %33 = arith.addf %27, %32 : vector<1x128xf32>
    %c0_21 = arith.constant 0 : index
    %c0_22 = arith.constant 0 : index
    %34 = vector.load %arg2[%c0_21, %c0_22] : memref<32x400xbf16, #tpu.memory_space<vmem>>, vector<32x400xbf16>
    %35 = arith.truncf %16 : vector<400x128xf32> to vector<400x128xbf16>
    %cst = arith.constant dense<0.000000e+00> : vector<32x128xf32>
    %36 = tpu.matmul %34, %35, %cst {dimension_numbers = #tpu.dot_dimension_numbers<[1], [0], [0], [1], [0, 0, 1, 1], [], []>} : vector<32x400xbf16>, vector<400x128xbf16>, vector<32x128xf32> -> vector<32x128xf32>
    %37 = vector.broadcast %33 : vector<1x128xf32> to vector<32x128xf32>
    %38 = arith.addf %36, %37 : vector<32x128xf32>
    %cst_23 = arith.constant 0.000000e+00 : f32
    %39 = vector.broadcast %cst_23 : f32 to vector<32x128xf32>
    %40 = arith.maximumf %38, %39 : vector<32x128xf32>
    %c0_24 = arith.constant 0 : index
    %c0_25 = arith.constant 0 : index
    %41 = vector.load %arg5[%c0_24, %c0_25] : memref<32x128xf32, #tpu.memory_space<vmem>>, vector<32x128xf32>
    tpu.vector_store %arg5[%c0_24, %c0_25], %40 {strides = array<i32>} : memref<32x128xf32, #tpu.memory_space<vmem>>, vector<32x128xf32>,
    return
  }
  func.func @transform_0(%arg0: i32) -> i32 {
    %c0_i32 = arith.constant 0 : i32
    %c0_i32_0 = arith.constant 0 : i32
    return %c0_i32 : i32
  }
  func.func @transform_1(%arg0: i32) -> (i32, i32) {
    %c0_i32 = arith.constant 0 : i32
    %c0_i32_0 = arith.constant 0 : i32
    return %arg0, %c0_i32 : i32, i32
  }
  func.func @transform_2(%arg0: i32) -> (i32, i32, i32) {
    %c0_i32 = arith.constant 0 : i32
    %c0_i32_0 = arith.constant 0 : i32
    %c0_i32_1 = arith.constant 0 : i32
    %c0_i32_2 = arith.constant 0 : i32
    return %c0_i32, %c0_i32_0, %c0_i32_1 : i32, i32, i32
  }
  func.func @transform_3(%arg0: i32) -> (i32, i32, i32) {
    %c0_i32 = arith.constant 0 : i32
    %c0_i32_0 = arith.constant 0 : i32
    %c0_i32_1 = arith.constant 0 : i32
    %c0_i32_2 = arith.constant 0 : i32
    return %c0_i32, %c0_i32_0, %c0_i32_1 : i32, i32, i32
  }
  func.func @transform_4(%arg0: i32) -> (i32, i32) {
    %c0_i32 = arith.constant 0 : i32
    %c0_i32_0 = arith.constant 0 : i32
    return %arg0, %c0_i32 : i32, i32
  }
}

module attributes {stable_mosaic.version = 11 : i64} {
  func.func @_mrf_block_kernel(%arg0: i32, %arg1: memref<3xf32, #tpu.memory_space<smem>>, %arg2: memref<128x1200xbf16, #tpu.memory_space<vmem>>, %arg3: memref<3x1200x128xf32, #tpu.memory_space<vmem>>, %arg4: memref<3x1x128xf32, #tpu.memory_space<vmem>>, %arg5: memref<128x128xf32, #tpu.memory_space<vmem>>) attributes {dimension_semantics = [#tpu.dimension_semantics<parallel>], iteration_bounds = array<i64: 1>, scalar_prefetch = 0 : i64, scratch_operands = 0 : i64, tpu.core_type = #tpu.core_type<tc>, window_params = [{transform_indices = @transform_0, window_bounds = array<i64: 3>}, {transform_indices = @transform_1, window_bounds = array<i64: 128, 1200>}, {pipeline_mode = #tpu.pipeline_mode<synchronous>, transform_indices = @transform_2, window_bounds = array<i64: 3, 1200, 128>}, {pipeline_mode = #tpu.pipeline_mode<synchronous>, transform_indices = @transform_3, window_bounds = array<i64: 3, 1, 128>}, {transform_indices = @transform_4, window_bounds = array<i64: 128, 128>}]} {
    %c0 = arith.constant 0 : index
    %0 = memref.load %arg1[%c0] : memref<3xf32, #tpu.memory_space<smem>>
    %c0_0 = arith.constant 0 : index
    %c0_1 = arith.constant 0 : index
    %c0_2 = arith.constant 0 : index
    %1 = vector.load %arg3[%c0_0, %c0_1, %c0_2] : memref<3x1200x128xf32, #tpu.memory_space<vmem>>, vector<1x1200x128xf32>
    %2 = vector.shape_cast %1 : vector<1x1200x128xf32> to vector<1200x128xf32>
    %3 = vector.broadcast %0 : f32 to vector<1200x128xf32>
    %4 = arith.mulf %3, %2 : vector<1200x128xf32>
    %c1 = arith.constant 1 : index
    %5 = memref.load %arg1[%c1] : memref<3xf32, #tpu.memory_space<smem>>
    %c1_3 = arith.constant 1 : index
    %c0_4 = arith.constant 0 : index
    %c0_5 = arith.constant 0 : index
    %6 = vector.load %arg3[%c1_3, %c0_4, %c0_5] : memref<3x1200x128xf32, #tpu.memory_space<vmem>>, vector<1x1200x128xf32>
    %7 = vector.shape_cast %6 : vector<1x1200x128xf32> to vector<1200x128xf32>
    %8 = vector.broadcast %5 : f32 to vector<1200x128xf32>
    %9 = arith.mulf %8, %7 : vector<1200x128xf32>
    %10 = arith.addf %4, %9 : vector<1200x128xf32>
    %c2 = arith.constant 2 : index
    %11 = memref.load %arg1[%c2] : memref<3xf32, #tpu.memory_space<smem>>
    %c2_6 = arith.constant 2 : index
    %c0_7 = arith.constant 0 : index
    %c0_8 = arith.constant 0 : index
    %12 = vector.load %arg3[%c2_6, %c0_7, %c0_8] : memref<3x1200x128xf32, #tpu.memory_space<vmem>>, vector<1x1200x128xf32>
    %13 = vector.shape_cast %12 : vector<1x1200x128xf32> to vector<1200x128xf32>
    %14 = vector.broadcast %11 : f32 to vector<1200x128xf32>
    %15 = arith.mulf %14, %13 : vector<1200x128xf32>
    %16 = arith.addf %10, %15 : vector<1200x128xf32>
    %c0_9 = arith.constant 0 : index
    %17 = memref.load %arg1[%c0_9] : memref<3xf32, #tpu.memory_space<smem>>
    %c0_10 = arith.constant 0 : index
    %c0_11 = arith.constant 0 : index
    %c0_12 = arith.constant 0 : index
    %18 = vector.load %arg4[%c0_10, %c0_11, %c0_12] : memref<3x1x128xf32, #tpu.memory_space<vmem>>, vector<1x1x128xf32>
    %19 = vector.shape_cast %18 : vector<1x1x128xf32> to vector<1x128xf32>
    %20 = vector.broadcast %17 : f32 to vector<1x128xf32>
    %21 = arith.mulf %20, %19 : vector<1x128xf32>
    %c1_13 = arith.constant 1 : index
    %22 = memref.load %arg1[%c1_13] : memref<3xf32, #tpu.memory_space<smem>>
    %c1_14 = arith.constant 1 : index
    %c0_15 = arith.constant 0 : index
    %c0_16 = arith.constant 0 : index
    %23 = vector.load %arg4[%c1_14, %c0_15, %c0_16] : memref<3x1x128xf32, #tpu.memory_space<vmem>>, vector<1x1x128xf32>
    %24 = vector.shape_cast %23 : vector<1x1x128xf32> to vector<1x128xf32>
    %25 = vector.broadcast %22 : f32 to vector<1x128xf32>
    %26 = arith.mulf %25, %24 : vector<1x128xf32>
    %27 = arith.addf %21, %26 : vector<1x128xf32>
    %c2_17 = arith.constant 2 : index
    %28 = memref.load %arg1[%c2_17] : memref<3xf32, #tpu.memory_space<smem>>
    %c2_18 = arith.constant 2 : index
    %c0_19 = arith.constant 0 : index
    %c0_20 = arith.constant 0 : index
    %29 = vector.load %arg4[%c2_18, %c0_19, %c0_20] : memref<3x1x128xf32, #tpu.memory_space<vmem>>, vector<1x1x128xf32>
    %30 = vector.shape_cast %29 : vector<1x1x128xf32> to vector<1x128xf32>
    %31 = vector.broadcast %28 : f32 to vector<1x128xf32>
    %32 = arith.mulf %31, %30 : vector<1x128xf32>
    %33 = arith.addf %27, %32 : vector<1x128xf32>
    %c0_21 = arith.constant 0 : index
    %c0_22 = arith.constant 0 : index
    %34 = vector.load %arg2[%c0_21, %c0_22] : memref<128x1200xbf16, #tpu.memory_space<vmem>>, vector<128x1200xbf16>
    %35 = arith.truncf %16 : vector<1200x128xf32> to vector<1200x128xbf16>
    %cst = arith.constant dense<0.000000e+00> : vector<128x128xf32>
    %36 = tpu.matmul %34, %35, %cst {dimension_numbers = #tpu.dot_dimension_numbers<[1], [0], [0], [1], [0, 0, 1, 1], [], []>} : vector<128x1200xbf16>, vector<1200x128xbf16>, vector<128x128xf32> -> vector<128x128xf32>
    %37 = vector.broadcast %33 : vector<1x128xf32> to vector<128x128xf32>
    %38 = arith.addf %36, %37 : vector<128x128xf32>
    %cst_23 = arith.constant 0.000000e+00 : f32
    %39 = vector.broadcast %cst_23 : f32 to vector<128x128xf32>
    %40 = arith.maximumf %38, %39 : vector<128x128xf32>
    %c0_24 = arith.constant 0 : index
    %c0_25 = arith.constant 0 : index
    %41 = vector.load %arg5[%c0_24, %c0_25] : memref<128x128xf32, #tpu.memory_space<vmem>>, vector<128x128xf32>
    tpu.vector_store %arg5[%c0_24, %c0_25], %40 {strides = array<i32>} : memref<128x128xf32, #tpu.memory_space<vmem>>, vector<128x128xf32>,
    return
  }
  func.func @transform_0(%arg0: i32) -> i32 {
    %c0_i32 = arith.constant 0 : i32
    %c0_i32_0 = arith.constant 0 : i32
    return %c0_i32 : i32
  }
  func.func @transform_1(%arg0: i32) -> (i32, i32) {
    %c0_i32 = arith.constant 0 : i32
    %c0_i32_0 = arith.constant 0 : i32
    return %arg0, %c0_i32 : i32, i32
  }
  func.func @transform_2(%arg0: i32) -> (i32, i32, i32) {
    %c0_i32 = arith.constant 0 : i32
    %c0_i32_0 = arith.constant 0 : i32
    %c0_i32_1 = arith.constant 0 : i32
    %c0_i32_2 = arith.constant 0 : i32
    return %c0_i32, %c0_i32_0, %c0_i32_1 : i32, i32, i32
  }
  func.func @transform_3(%arg0: i32) -> (i32, i32, i32) {
    %c0_i32 = arith.constant 0 : i32
    %c0_i32_0 = arith.constant 0 : i32
    %c0_i32_1 = arith.constant 0 : i32
    %c0_i32_2 = arith.constant 0 : i32
    return %c0_i32, %c0_i32_0, %c0_i32_1 : i32, i32, i32
  }
  func.func @transform_4(%arg0: i32) -> (i32, i32) {
    %c0_i32 = arith.constant 0 : i32
    %c0_i32_0 = arith.constant 0 : i32
    return %arg0, %c0_i32 : i32, i32
  }
}

module attributes {stable_mosaic.version = 11 : i64} {
  func.func @_mrf_block_head_kernel(%arg0: i32, %arg1: memref<3xf32, #tpu.memory_space<smem>>, %arg2: memref<512x600xbf16, #tpu.memory_space<vmem>>, %arg3: memref<3x600x128xf32, #tpu.memory_space<vmem>>, %arg4: memref<3x1x128xf32, #tpu.memory_space<vmem>>, %arg5: memref<128x128xbf16, #tpu.memory_space<vmem>>, %arg6: memref<1x128xf32, #tpu.memory_space<vmem>>, %arg7: memref<512x128xf32, #tpu.memory_space<vmem>>) attributes {dimension_semantics = [#tpu.dimension_semantics<parallel>], iteration_bounds = array<i64: 1>, scalar_prefetch = 0 : i64, scratch_operands = 0 : i64, tpu.core_type = #tpu.core_type<tc>, window_params = [{transform_indices = @transform_0, window_bounds = array<i64: 3>}, {transform_indices = @transform_1, window_bounds = array<i64: 512, 600>}, {pipeline_mode = #tpu.pipeline_mode<synchronous>, transform_indices = @transform_2, window_bounds = array<i64: 3, 600, 128>}, {pipeline_mode = #tpu.pipeline_mode<synchronous>, transform_indices = @transform_3, window_bounds = array<i64: 3, 1, 128>}, {pipeline_mode = #tpu.pipeline_mode<synchronous>, transform_indices = @transform_4, window_bounds = array<i64: 128, 128>}, {pipeline_mode = #tpu.pipeline_mode<synchronous>, transform_indices = @transform_5, window_bounds = array<i64: 1, 128>}, {transform_indices = @transform_6, window_bounds = array<i64: 512, 128>}]} {
    %c0 = arith.constant 0 : index
    %0 = memref.load %arg1[%c0] : memref<3xf32, #tpu.memory_space<smem>>
    %c0_0 = arith.constant 0 : index
    %c0_1 = arith.constant 0 : index
    %c0_2 = arith.constant 0 : index
    %1 = vector.load %arg3[%c0_0, %c0_1, %c0_2] : memref<3x600x128xf32, #tpu.memory_space<vmem>>, vector<1x600x128xf32>
    %2 = vector.shape_cast %1 : vector<1x600x128xf32> to vector<600x128xf32>
    %3 = vector.broadcast %0 : f32 to vector<600x128xf32>
    %4 = arith.mulf %3, %2 : vector<600x128xf32>
    %c1 = arith.constant 1 : index
    %5 = memref.load %arg1[%c1] : memref<3xf32, #tpu.memory_space<smem>>
    %c1_3 = arith.constant 1 : index
    %c0_4 = arith.constant 0 : index
    %c0_5 = arith.constant 0 : index
    %6 = vector.load %arg3[%c1_3, %c0_4, %c0_5] : memref<3x600x128xf32, #tpu.memory_space<vmem>>, vector<1x600x128xf32>
    %7 = vector.shape_cast %6 : vector<1x600x128xf32> to vector<600x128xf32>
    %8 = vector.broadcast %5 : f32 to vector<600x128xf32>
    %9 = arith.mulf %8, %7 : vector<600x128xf32>
    %10 = arith.addf %4, %9 : vector<600x128xf32>
    %c2 = arith.constant 2 : index
    %11 = memref.load %arg1[%c2] : memref<3xf32, #tpu.memory_space<smem>>
    %c2_6 = arith.constant 2 : index
    %c0_7 = arith.constant 0 : index
    %c0_8 = arith.constant 0 : index
    %12 = vector.load %arg3[%c2_6, %c0_7, %c0_8] : memref<3x600x128xf32, #tpu.memory_space<vmem>>, vector<1x600x128xf32>
    %13 = vector.shape_cast %12 : vector<1x600x128xf32> to vector<600x128xf32>
    %14 = vector.broadcast %11 : f32 to vector<600x128xf32>
    %15 = arith.mulf %14, %13 : vector<600x128xf32>
    %16 = arith.addf %10, %15 : vector<600x128xf32>
    %c0_9 = arith.constant 0 : index
    %17 = memref.load %arg1[%c0_9] : memref<3xf32, #tpu.memory_space<smem>>
    %c0_10 = arith.constant 0 : index
    %c0_11 = arith.constant 0 : index
    %c0_12 = arith.constant 0 : index
    %18 = vector.load %arg4[%c0_10, %c0_11, %c0_12] : memref<3x1x128xf32, #tpu.memory_space<vmem>>, vector<1x1x128xf32>
    %19 = vector.shape_cast %18 : vector<1x1x128xf32> to vector<1x128xf32>
    %20 = vector.broadcast %17 : f32 to vector<1x128xf32>
    %21 = arith.mulf %20, %19 : vector<1x128xf32>
    %c1_13 = arith.constant 1 : index
    %22 = memref.load %arg1[%c1_13] : memref<3xf32, #tpu.memory_space<smem>>
    %c1_14 = arith.constant 1 : index
    %c0_15 = arith.constant 0 : index
    %c0_16 = arith.constant 0 : index
    %23 = vector.load %arg4[%c1_14, %c0_15, %c0_16] : memref<3x1x128xf32, #tpu.memory_space<vmem>>, vector<1x1x128xf32>
    %24 = vector.shape_cast %23 : vector<1x1x128xf32> to vector<1x128xf32>
    %25 = vector.broadcast %22 : f32 to vector<1x128xf32>
    %26 = arith.mulf %25, %24 : vector<1x128xf32>
    %27 = arith.addf %21, %26 : vector<1x128xf32>
    %c2_17 = arith.constant 2 : index
    %28 = memref.load %arg1[%c2_17] : memref<3xf32, #tpu.memory_space<smem>>
    %c2_18 = arith.constant 2 : index
    %c0_19 = arith.constant 0 : index
    %c0_20 = arith.constant 0 : index
    %29 = vector.load %arg4[%c2_18, %c0_19, %c0_20] : memref<3x1x128xf32, #tpu.memory_space<vmem>>, vector<1x1x128xf32>
    %30 = vector.shape_cast %29 : vector<1x1x128xf32> to vector<1x128xf32>
    %31 = vector.broadcast %28 : f32 to vector<1x128xf32>
    %32 = arith.mulf %31, %30 : vector<1x128xf32>
    %33 = arith.addf %27, %32 : vector<1x128xf32>
    %c0_21 = arith.constant 0 : index
    %c0_22 = arith.constant 0 : index
    %34 = vector.load %arg2[%c0_21, %c0_22] : memref<512x600xbf16, #tpu.memory_space<vmem>>, vector<512x600xbf16>
    %35 = arith.truncf %16 : vector<600x128xf32> to vector<600x128xbf16>
    %cst = arith.constant dense<0.000000e+00> : vector<512x128xf32>
    %36 = tpu.matmul %34, %35, %cst {dimension_numbers = #tpu.dot_dimension_numbers<[1], [0], [0], [1], [0, 0, 1, 1], [], []>} : vector<512x600xbf16>, vector<600x128xbf16>, vector<512x128xf32> -> vector<512x128xf32>
    %37 = vector.broadcast %33 : vector<1x128xf32> to vector<512x128xf32>
    %38 = arith.addf %36, %37 : vector<512x128xf32>
    %cst_23 = arith.constant 0.000000e+00 : f32
    %39 = vector.broadcast %cst_23 : f32 to vector<512x128xf32>
    %40 = arith.maximumf %38, %39 : vector<512x128xf32>
    %41 = arith.truncf %40 : vector<512x128xf32> to vector<512x128xbf16>
    %c0_24 = arith.constant 0 : index
    %c0_25 = arith.constant 0 : index
    %42 = vector.load %arg5[%c0_24, %c0_25] : memref<128x128xbf16, #tpu.memory_space<vmem>>, vector<128x128xbf16>
    %cst_26 = arith.constant dense<0.000000e+00> : vector<512x128xf32>
    %43 = tpu.matmul %41, %42, %cst_26 {dimension_numbers = #tpu.dot_dimension_numbers<[1], [0], [0], [1], [0, 0, 1, 1], [], []>} : vector<512x128xbf16>, vector<128x128xbf16>, vector<512x128xf32> -> vector<512x128xf32>
    %c0_27 = arith.constant 0 : index
    %c0_28 = arith.constant 0 : index
    %44 = vector.load %arg6[%c0_27, %c0_28] : memref<1x128xf32, #tpu.memory_space<vmem>>, vector<1x128xf32>
    %45 = vector.broadcast %44 : vector<1x128xf32> to vector<512x128xf32>
    %46 = arith.addf %43, %45 : vector<512x128xf32>
    %c0_29 = arith.constant 0 : index
    %c0_30 = arith.constant 0 : index
    %47 = vector.load %arg7[%c0_29, %c0_30] : memref<512x128xf32, #tpu.memory_space<vmem>>, vector<512x128xf32>
    tpu.vector_store %arg7[%c0_29, %c0_30], %46 {strides = array<i32>} : memref<512x128xf32, #tpu.memory_space<vmem>>, vector<512x128xf32>,
    return
  }
  func.func @transform_0(%arg0: i32) -> i32 {
    %c0_i32 = arith.constant 0 : i32
    %c0_i32_0 = arith.constant 0 : i32
    return %c0_i32 : i32
  }
  func.func @transform_1(%arg0: i32) -> (i32, i32) {
    %c0_i32 = arith.constant 0 : i32
    %c0_i32_0 = arith.constant 0 : i32
    return %arg0, %c0_i32 : i32, i32
  }
  func.func @transform_2(%arg0: i32) -> (i32, i32, i32) {
    %c0_i32 = arith.constant 0 : i32
    %c0_i32_0 = arith.constant 0 : i32
    %c0_i32_1 = arith.constant 0 : i32
    %c0_i32_2 = arith.constant 0 : i32
    return %c0_i32, %c0_i32_0, %c0_i32_1 : i32, i32, i32
  }
  func.func @transform_3(%arg0: i32) -> (i32, i32, i32) {
    %c0_i32 = arith.constant 0 : i32
    %c0_i32_0 = arith.constant 0 : i32
    %c0_i32_1 = arith.constant 0 : i32
    %c0_i32_2 = arith.constant 0 : i32
    return %c0_i32, %c0_i32_0, %c0_i32_1 : i32, i32, i32
  }
  func.func @transform_4(%arg0: i32) -> (i32, i32) {
    %c0_i32 = arith.constant 0 : i32
    %c0_i32_0 = arith.constant 0 : i32
    %c0_i32_1 = arith.constant 0 : i32
    return %c0_i32, %c0_i32_0 : i32, i32
  }
  func.func @transform_5(%arg0: i32) -> (i32, i32) {
    %c0_i32 = arith.constant 0 : i32
    %c0_i32_0 = arith.constant 0 : i32
    %c0_i32_1 = arith.constant 0 : i32
    return %c0_i32, %c0_i32_0 : i32, i32
  }
  func.func @transform_6(%arg0: i32) -> (i32, i32) {
    %c0_i32 = arith.constant 0 : i32
    %c0_i32_0 = arith.constant 0 : i32
    return %arg0, %c0_i32 : i32, i32
  }
}

</mosaic_0001>

<bundles_post_ra>
// kernel: mrf_unet_search_forward.5
= control target key start
LH: loop header
LB: loop body
LE: loop exit
PB: predicated region body
PF: predicated region fallthrough
CT: control target
= control target key end

     0   :  { %9 = vsyncpa [#allocation3], 0  ;;  %s1782_s0 = inlined_call_operand.vmem [shape: f32[3], index: 0, kind: input, shape index: {}]   ;;  %s1783_s1 = inlined_call_operand.vmem [shape: bf16[512,100], index: 1, kind: input, shape index: {}]   ;;  %s1784_s2 = inlined_call_operand.vmem [shape: f32[3,100,128], index: 2, kind: input, shape index: {}]   ;;  %s1785_s3 = inlined_call_operand.vmem [shape: f32[3,1,128], index: 3, kind: input, shape index: {}]   ;;  %s1786_s4 = inlined_call_operand.vmem [shape: f32[512,128], index: 4, kind: output, shape index: {}]  }
   0x1   :  { %s16_s17 = sshll.u32 %s1782_s0, 4  ;;  %s17_s17 = int_to_ptr.vmem [resolvable:$true] %s16_s17 }
   0x2   :  { %s1173_s18 = scalar_lea.vmem %s17_s17, 16  ;;  %p1178_p1 = scmp.lt.s32.totalorder %s17_s17, %s17_s17 }
   0x3   :  { %p1174_p0 = scmp.ne.s32.totalorder %s17_s17, %s1173_s18  ;;  %p1179_p2 = scmp.lt.s32.totalorder %s1173_s18, %s1173_s18 }
   0x5   :  { %p1180_p3 = por %p1179_p2, %p1178_p1 }
   0x7   :  { %p1181_p4 = pnand %p1180_p3, %p1174_p0 }
   0x9   :  { %1184 = shalt.err (!%p1181_p4)
}
   0xa   :  { %s1187_s19 = smov [#allocation2]  }
   0xb   :  { %19 = dma.vmem_to_smem %s17_s17, 16, %s1187_s19, [#allocation3]  }
   0xc   :  { %1185 = dma.done.wait [#allocation3], 16  }
   0xd   :  { %1186 = vsyncadd [#allocation3], 4294967280 }
   0xe   :  { %29 = sfence }
   0xf   :  { %s31_s20 = sld [smem:[#allocation2]]  ;;  %v44_v0 = vld [vmem:[%s1784_s2 + $0x60] sm:$0xf]  ;;  %v926_v1 = vld [vmem:[%s1784_s2 + $0xc8] sm:$0xf]  ;;  %v42_v3 = vld [vmem:[%s1784_s2 + $0x50] sm:$0xff] }
  0x10   :  { %s913_s21 = sld [smem:[#allocation2 + $0x1]]  ;;  %v143_v2 = vld [vmem:[%s1785_s3] sm:$0x1]  ;;  %v940_v4 = vld [vmem:[%s1784_s2 + $0x130] sm:$0xf]  ;;  %v43_v6 = vld [vmem:[%s1784_s2 + $0x58] sm:$0xff] }
  0x11   :  { %s927_s22 = sld [smem:[#allocation2 + $0x2]]  ;;  %v941_v5 = vld [vmem:[%s1785_s3 + $0x1] sm:$0x1]  ;;  %v942_v8 = vld [vmem:[%s1785_s3 + $0x2] sm:$0x1]  ;;  %vm487_vm0 = vcmask 1041408  }
  0x12   :  { %v924_v9 = vld [vmem:[%s1784_s2 + $0xb8] sm:$0xff]  ;;  %v925_v10 = vld [vmem:[%s1784_s2 + $0xc0] sm:$0xff]  ;;  %v939_v16 = vld [vmem:[%s1784_s2 + $0x128] sm:$0xff]  ;;  %vm390_vm1 = vcmask 818176  }
  0x13   :  { %v938_v15 = vld [vmem:[%s1784_s2 + $0x120] sm:$0xff]  ;;  %v41_v22 = vld [vmem:[%s1784_s2 + $0x48] sm:$0xff]  ;;  %v923_v28 = vld [vmem:[%s1784_s2 + $0xb0] sm:$0xff] }
  0x14   :  { %v40_v21 = vld [vmem:[%s1784_s2 + $0x40] sm:$0xff]  ;;  %v922_v27 = vld [vmem:[%s1784_s2 + $0xa8] sm:$0xff]  ;;  %v936_v33 = vld [vmem:[%s1784_s2 + $0x110] sm:$0xff] }
  0x15   :  { %v1237_v7 = vstv %s31_s20  ;;  %v937_v34 = vld [vmem:[%s1784_s2 + $0x118] sm:$0xff]  ;;  %v38_v39 = vld [vmem:[%s1784_s2 + $0x30] sm:$0xff]  ;;  %v921_v46 = vld [vmem:[%s1784_s2 + $0xa0] sm:$0xff] }
  0x16   :  { %v58_v11 = vmul.f32 %v1237_v7, %v44_v0  ;;  %v1249_v12 = vstv %s913_s21  ;;  %v144_v13 = vmul.f32 %v143_v2, %v1237_v7  ;;  %v56_v14 = vmul.f32 %v1237_v7, %v42_v3  ;;  %v39_v44 = vld [vmem:[%s1784_s2 + $0x38] sm:$0xff]  ;;  %v934_v51 = vld [vmem:[%s1784_s2 + $0x100] sm:$0xff]  ;;  %v935_v52 = vld [vmem:[%s1784_s2 + $0x108] sm:$0xff] }
  0x17   :  { %v87_v17 = vmul.f32 %v926_v1, %v1249_v12  ;;  %v1260_v18 = vstv %s927_s22  ;;  %v147_v19 = vmul.f32 %v941_v5, %v1249_v12  ;;  %v57_v20 = vmul.f32 %v1237_v7, %v43_v6  ;;  %v920_v45 = vld [vmem:[%s1784_s2 + $0x98] sm:$0xff]  ;;  %v36_v53 = vld [vmem:[%s1784_s2 + $0x20] sm:$0xff]  ;;  %v37_v57 = vld [vmem:[%s1784_s2 + $0x28] sm:$0xff] }
  0x18   :  { %v129_v23 = vmul.f32 %v940_v4, %v1260_v18  ;;  %v151_v24 = vmul.f32 %v942_v8, %v1260_v18  ;;  %v85_v25 = vmul.f32 %v924_v9, %v1249_v12  ;;  %v86_v26 = vmul.f32 %v925_v10, %v1249_v12  ;;  %v918_v58 = vld [vmem:[%s1784_s2 + $0x88] sm:$0xff]  ;;  %v919_v59 = vld [vmem:[%s1784_s2 + $0x90] sm:$0xff]  ;;  %v933_v1 = vld [vmem:[%s1784_s2 + $0xf8] sm:$0xff] }
  0x19   :  { %v100_v29 = vadd.f32 %v87_v17, %v58_v11  ;;  %v148_v30 = vadd.f32 %v147_v19, %v144_v13  ;;  %v127_v31 = vmul.f32 %v938_v15, %v1260_v18  ;;  %v128_v32 = vmul.f32 %v939_v16, %v1260_v18  ;;  %v932_v0 = vld [vmem:[%s1784_s2 + $0xf0] sm:$0xff]  ;;  %v1141_v3 = vld [vmem:[%s1783_s1] sm:$0xff]   ;;  %v35_v9 = vld [vmem:[%s1784_s2 + $0x18] sm:$0xff] }
  0x1a   :  { %v98_v35 = vadd.f32 %v85_v25, %v56_v14  ;;  %v99_v36 = vadd.f32 %v86_v26, %v57_v20  ;;  %v54_v37 = vmul.f32 %v1237_v7, %v40_v21  ;;  %v55_v38 = vmul.f32 %v1237_v7, %v41_v22  ;;  %v34_v2 = vld [vmem:[%s1784_s2 + $0x10] sm:$0xff]  ;;  %v1142_v10 = vld [vmem:[%s1783_s1 + $0x80] sm:$0xff]   ;;  %v916_v15 = vld [vmem:[%s1784_s2 + $0x78] sm:$0xff]  ;;  %1060 = vmatprep.mubr.msk.bf16.mxu0 %vm390_vm1, %v1141_v3 }
  0x1b   :  { %v142_v40 = vadd.f32 %v129_v23, %v100_v29  ;;  %v1293_v41 = vadd.f32 %v151_v24, %v148_v30  ;;  %v83_v42 = vmul.f32 %v922_v27, %v1249_v12  ;;  %v84_v43 = vmul.f32 %v923_v28, %v1249_v12  ;;  %v917_v16 = vld [vmem:[%s1784_s2 + $0x80] sm:$0xff]  ;;  %v931_v22 = vld [vmem:[%s1784_s2 + $0xe8] sm:$0xff]  ;;  %1092 = vmatprep.mubr.msk.bf16.mxu1 %vm390_vm1, %v1142_v10  ;;  %v1148_v3 = vld [vmem:[%s1783_s1 + $0x98] sm:$0xff]  }
  0x1c   :  { %v140_v47 = vadd.f32 %v127_v31, %v98_v35  ;;  %v141_v48 = vadd.f32 %v128_v32, %v99_v36  ;;  %v125_v49 = vmul.f32 %v936_v33, %v1260_v18  ;;  %v126_v50 = vmul.f32 %v937_v34, %v1260_v18  ;;  %v930_v21 = vld [vmem:[%s1784_s2 + $0xe0] sm:$0xff]  ;;  %v33_v32 = vld [vmem:[%s1784_s2 + $0x8] sm:$0xff]  ;;  %v1154_v10 = vld [vmem:[%s1783_s1 + $0xb0] sm:$0xff]  }
  0x1d   :  { %v223_v54 = vpack.c.bf16 %v142_v40, %v142_v40  ;;  %v96_v55 = vadd.f32 %v83_v42, %v54_v37  ;;  %v97_v56 = vadd.f32 %v84_v43, %v55_v38  ;;  %v52_v61 = vmul.f32 %v1237_v7, %v38_v39  ;;  %v32_v27 = vld [vmem:[%s1784_s2] sm:$0xff]  ;;  %v914_v36 = vld [vmem:[%s1784_s2 + $0x68] sm:$0xff]  ;;  %v915_v40 = vld [vmem:[%s1784_s2 + $0x70] sm:$0xff] }
  0x1e   :  { %v222_v60 = vpack.c.bf16 %v141_v48, %v140_v47  ;;  %v53_v62 = vmul.f32 %v1237_v7, %v39_v44  ;;  %v81_v63 = vmul.f32 %v920_v45, %v1249_v12  ;;  %v82_v8 = vmul.f32 %v921_v46, %v1249_v12  ;;  %v928_v46 = vld [vmem:[%s1784_s2 + $0xd0] sm:$0xff] }
  0x1f   :  { %1138 = vmatprep.subr.msk.bf16.mxu0 %vm487_vm0, %v223_v54  ;;  %1139 = vmatprep.subr.msk.bf16.mxu1 %vm487_vm0, %v223_v54  ;;  %v489_v4 = vsel %vm487_vm0, %v223_v54, 0  ;;  %v138_v5 = vadd.f32 %v125_v49, %v96_v55  ;;  %v139_v6 = vadd.f32 %v126_v50, %v97_v56  ;;  %v123_v13 = vmul.f32 %v934_v51, %v1260_v18  ;;  %v929_v51 = vld [vmem:[%s1784_s2 + $0xd8] sm:$0xff] }
  0x20   :  { %1047 = vmatpush3.bf16.msra.mxu0 %v489_v4  ;;  %1131 = vmatpush3.bf16.msra.mxu1 %v489_v4  ;;  %v94_v11 = vadd.f32 %v81_v63, %v52_v61  ;;  %v124_v14 = vmul.f32 %v935_v52, %v1260_v18  ;;  %v95_v19 = vadd.f32 %v82_v8, %v53_v62  ;;  %v1144_v63 = vld [vmem:[%s1783_s1 + $0x88] sm:$0xff]   ;;  %v1149_v4 = vld [vmem:[%s1783_s1 + $0x20] sm:$0xff]  }
  0x21   :  { %1048 = vmatprep.subr.bf16.mxu0 %v222_v60  ;;  %1125 = vmatprep.subr.bf16.mxu1 %v222_v60  ;;  %v221_v17 = vpack.c.bf16 %v139_v6, %v138_v5  ;;  %v50_v20 = vmul.f32 %v1237_v7, %v36_v53  ;;  %v51_v24 = vmul.f32 %v1237_v7, %v37_v57  ;;  %v1150_v5 = vld [vmem:[%s1783_s1 + $0xa0] sm:$0xff]   ;;  %v1151_v6 = vld [vmem:[%s1783_s1 + $0x28] sm:$0xff]  }
  0x22   :  { %v136_v23 = vadd.f32 %v123_v13, %v94_v11  ;;  %v79_v25 = vmul.f32 %v918_v58, %v1249_v12  ;;  %v80_v26 = vmul.f32 %v919_v59, %v1249_v12  ;;  %v137_v28 = vadd.f32 %v124_v14, %v95_v19  ;;  %v1152_v8 = vld [vmem:[%s1783_s1 + $0xa8] sm:$0xff]   ;;  %v1155_v11 = vld [vmem:[%s1783_s1 + $0x38] sm:$0xff]   ;;  %v1157_v14 = vld [vmem:[%s1783_s1 + $0x40] sm:$0xff]  }
  0x23   :  { %v121_v29 = vmul.f32 %v932_v0, %v1260_v18  ;;  %v122_v30 = vmul.f32 %v933_v1, %v1260_v18  ;;  %v48_v31 = vmul.f32 %v1237_v7, %v34_v2  ;;  %v49_v35 = vmul.f32 %v1237_v7, %v35_v9  ;;  %v1145_v0 = vld [vmem:[%s1783_s1 + $0x10] sm:$0xff]   ;;  %v1147_v2 = vld [vmem:[%s1783_s1 + $0x18] sm:$0xff]  }
  0x24   :  { %1049 = vmatpush3.bf16.msra.mxu0 %v222_v60  ;;  %1132 = vmatpush3.bf16.msra.mxu1 %v222_v60  ;;  %v92_v33 = vadd.f32 %v79_v25, %v50_v20  ;;  %v93_v34 = vadd.f32 %v80_v26, %v51_v24  ;;  %v220_v37 = vpack.c.bf16 %v137_v28, %v136_v23  ;;  %v1146_v1 = vld [vmem:[%s1783_s1 + $0x90] sm:$0xff]   ;;  %v1156_v13 = vld [vmem:[%s1783_s1 + $0xb8] sm:$0xff]   ;;  %v1165_v23 = vld [vmem:[%s1783_s1 + $0x60] sm:$0xff]  }
  0x25   :  { %1050 = vmatprep.subr.bf16.mxu0 %v221_v17  ;;  %1126 = vmatprep.subr.bf16.mxu1 %v221_v17  ;;  %v77_v38 = vmul.f32 %v916_v15, %v1249_v12  ;;  %v78_v39 = vmul.f32 %v917_v16, %v1249_v12  ;;  %v119_v44 = vmul.f32 %v930_v21, %v1260_v18  ;;  %v1153_v9 = vld [vmem:[%s1783_s1 + $0x30] sm:$0xff]   ;;  %v1158_v15 = vld [vmem:[%s1783_s1 + $0xc0] sm:$0xff]   ;;  %v1159_v16 = vld [vmem:[%s1783_s1 + $0x48] sm:$0xff]  }
  0x26   :  { %v134_v42 = vadd.f32 %v121_v29, %v92_v33  ;;  %v135_v43 = vadd.f32 %v122_v30, %v93_v34  ;;  %v120_v45 = vmul.f32 %v931_v22, %v1260_v18  ;;  %v46_v49 = vmul.f32 %v1237_v7, %v32_v27  ;;  %v1161_v19 = vld [vmem:[%s1783_s1 + $0x50] sm:$0xff]   ;;  %v1163_v21 = vld [vmem:[%s1783_s1 + $0x58] sm:$0xff]   ;;  %v1166_v24 = vld [vmem:[%s1783_s1 + $0xe0] sm:$0xff]  }
  0x27   :  { %v90_v47 = vadd.f32 %v77_v38, %v48_v31  ;;  %v91_v48 = vadd.f32 %v78_v39, %v49_v35  ;;  %v47_v50 = vmul.f32 %v1237_v7, %v33_v32  ;;  %v75_v53 = vmul.f32 %v914_v36, %v1249_v12  ;;  %v1162_v20 = vld [vmem:[%s1783_s1 + $0xd0] sm:$0xff]   ;;  %v1164_v22 = vld [vmem:[%s1783_s1 + $0xd8] sm:$0xff]   ;;  %v1167_v25 = vld [vmem:[%s1783_s1 + $0x68] sm:$0xff]  }
  0x28   :  { %1051 = vmatpush3.bf16.msra.mxu0 %v221_v17  ;;  %1133 = vmatpush3.bf16.msra.mxu1 %v221_v17  ;;  %v219_v52 = vpack.c.bf16 %v135_v43, %v134_v42  ;;  %v76_v54 = vmul.f32 %v915_v40, %v1249_v12  ;;  %v117_v57 = vmul.f32 %v928_v46, %v1260_v18  ;;  %v1160_v17 = vld [vmem:[%s1783_s1 + $0xc8] sm:$0xff]   ;;  %v1169_v27 = vld [vmem:[%s1783_s1 + $0x70] sm:$0xff]   ;;  %v1171_v29 = vld [vmem:[%s1783_s1 + $0x78] sm:$0xff]   ;;  %v225_v31 = vlaneseq }
  0x29   :  { %1052 = vmatprep.subr.bf16.mxu0 %v220_v37  ;;  %1127 = vmatprep.subr.bf16.mxu1 %v220_v37  ;;  %v132_v55 = vadd.f32 %v119_v44, %v90_v47  ;;  %v133_v56 = vadd.f32 %v120_v45, %v91_v48  ;;  %v88_v58 = vadd.f32 %v75_v53, %v46_v49  ;;  %v1168_v26 = vld [vmem:[%s1783_s1 + $0xe8] sm:$0xff]   ;;  %v1170_v28 = vld [vmem:[%s1783_s1 + $0xf0] sm:$0xff]   ;;  %v1172_v30 = vld [vmem:[%s1783_s1 + $0xf8] sm:$0xff]  }
  0x2a   :  { %v89_v59 = vadd.f32 %v76_v54, %v47_v50  ;;  %v118_v7 = vmul.f32 %v929_v51, %v1260_v18  ;;  %v1143_v18 = vld [vmem:[%s1783_s1 + $0x8] sm:$0xff]   ;;  %v226_v32 = vshrl.u32 %v225_v31, 7 }
  0x2b   :  { %v218_v60 = vpack.c.bf16 %v133_v56, %v132_v55  ;;  %v130_v61 = vadd.f32 %v117_v57, %v88_v58 }
  0x2c   :  { %1053 = vmatpush3.bf16.msra.mxu0 %v220_v37  ;;  %1134 = vmatpush3.bf16.msra.mxu1 %v220_v37  ;;  %v131_v62 = vadd.f32 %v118_v7, %v89_v59  ;;  %v227_v33 = vsub.s32 0, %v226_v32 }
  0x2d   :  { %1054 = vmatprep.subr.bf16.mxu0 %v219_v52  ;;  %1128 = vmatprep.subr.bf16.mxu1 %v219_v52 }
  0x2e   :  { %v217_v12 = vpack.c.bf16 %v131_v62, %v130_v61  ;;  %v1524_v34 = vrot.slane %v1293_v41, %v227_v33 }
  0x30   :  { %1055 = vmatpush3.bf16.msra.mxu0 %v219_v52  ;;  %1135 = vmatpush3.bf16.msra.mxu1 %v219_v52 }
  0x31   :  { %1056 = vmatprep.subr.bf16.mxu0 %v218_v60  ;;  %1129 = vmatprep.subr.bf16.mxu1 %v218_v60 }
  0x34   :  { %1057 = vmatpush3.bf16.msra.mxu0 %v218_v60  ;;  %1136 = vmatpush3.bf16.msra.mxu1 %v218_v60 }
  0x35   :  { %1058 = vmatprep.subr.bf16.mxu0 %v217_v12  ;;  %1130 = vmatprep.subr.bf16.mxu1 %v217_v12 }
  0x38   :  { %1059 = vmatpush3.bf16.msra.mxu0 %v217_v12  ;;  %1137 = vmatpush3.bf16.msra.mxu1 %v217_v12 }
  0x3b   :  { %1061 = vmatmul.mubr.msk.bf16.vlgmr.msra.gmra.mxu0 %vm390_vm1, %v1143_v18  ;;  %1093 = vmatmul.mubr.msk.bf16.vlgmr.msra.gmra.mxu1 %vm390_vm1, %v1144_v63 }
  0x3c   :  { %1064 = vmatprep.mubr.msk.bf16.mxu0 %vm390_vm1, %v1145_v0  ;;  %1096 = vmatprep.mubr.msk.bf16.mxu1 %vm390_vm1, %v1146_v1 }
  0x43   :  { %1065 = vmatmul.mubr.msk.bf16.gmra.mxu0 %vm390_vm1, %v1147_v2  ;;  %1097 = vmatmul.mubr.msk.bf16.gmra.mxu1 %vm390_vm1, %v1148_v3 }
  0x44   :  { %1068 = vmatprep.mubr.msk.bf16.mxu0 %vm390_vm1, %v1149_v4  ;;  %1100 = vmatprep.mubr.msk.bf16.mxu1 %vm390_vm1, %v1150_v5 }
  0x4b   :  { %1069 = vmatmul.mubr.msk.bf16.gmra.mxu0 %vm390_vm1, %v1151_v6  ;;  %1101 = vmatmul.mubr.msk.bf16.gmra.mxu1 %vm390_vm1, %v1152_v8 }
  0x4c   :  { %1072 = vmatprep.mubr.msk.bf16.mxu0 %vm390_vm1, %v1153_v9  ;;  %1104 = vmatprep.mubr.msk.bf16.mxu1 %vm390_vm1, %v1154_v10 }
  0x53   :  { %1073 = vmatmul.mubr.msk.bf16.gmra.mxu0 %vm390_vm1, %v1155_v11  ;;  %1105 = vmatmul.mubr.msk.bf16.gmra.mxu1 %vm390_vm1, %v1156_v13 }
  0x54   :  { %1076 = vmatprep.mubr.msk.bf16.mxu0 %vm390_vm1, %v1157_v14  ;;  %1108 = vmatprep.mubr.msk.bf16.mxu1 %vm390_vm1, %v1158_v15 }
  0x5b   :  { %1077 = vmatmul.mubr.msk.bf16.gmra.mxu0 %vm390_vm1, %v1159_v16  ;;  %1109 = vmatmul.mubr.msk.bf16.gmra.mxu1 %vm390_vm1, %v1160_v17 }
  0x5c   :  { %1080 = vmatprep.mubr.msk.bf16.mxu0 %vm390_vm1, %v1161_v19  ;;  %1112 = vmatprep.mubr.msk.bf16.mxu1 %vm390_vm1, %v1162_v20 }
  0x63   :  { %1081 = vmatmul.mubr.msk.bf16.gmra.mxu0 %vm390_vm1, %v1163_v21  ;;  %1113 = vmatmul.mubr.msk.bf16.gmra.mxu1 %vm390_vm1, %v1164_v22 }
  0x64   :  { %1084 = vmatprep.mubr.msk.bf16.mxu0 %vm390_vm1, %v1165_v23  ;;  %1116 = vmatprep.mubr.msk.bf16.mxu1 %vm390_vm1, %v1166_v24 }
  0x6b   :  { %1085 = vmatmul.mubr.msk.bf16.gmra.mxu0 %vm390_vm1, %v1167_v25  ;;  %1117 = vmatmul.mubr.msk.bf16.gmra.mxu1 %vm390_vm1, %v1168_v26 }
  0x6c   :  { %1088 = vmatprep.mubr.msk.bf16.mxu0 %vm390_vm1, %v1169_v27  ;;  %1120 = vmatprep.mubr.msk.bf16.mxu1 %vm390_vm1, %v1170_v28 }
  0x73   :  { %1089 = vmatmul.mubr.msk.bf16.gmra.mxu0 %vm390_vm1, %v1171_v29  ;;  %1121 = vmatmul.mubr.msk.bf16.gmra.mxu1 %vm390_vm1, %v1172_v30 }
  0xfb   :  { %v1062_v35 = vpop.f32.mrf.mxu0  ;;  %v1094_v36 = vpop.f32.mrf.mxu1 }
  0xfc   :  { %v534_v37 = vadd.f32 %v1062_v35, %v1524_v34  ;;  %v662_v38 = vadd.f32 %v1094_v36, %v1524_v34 }
  0xfd   :  { %v525_v39 = vpop.f32.mrf.mxu0  ;;  %v653_v40 = vpop.f32.mrf.mxu1 }
  0xfe   :  { %v782_v42 = vmax.f32 %v534_v37, 0.0  ;;  %v814_v43 = vmax.f32 %v662_v38, 0.0  ;;  %v526_v44 = vadd.f32 %v525_v39, %v1524_v34  ;;  %v654_v45 = vadd.f32 %v653_v40, %v1524_v34 }
  0xff   :  { %v1063_v46 = vpop.f32.mrf.mxu0  ;;  %v1095_v47 = vpop.f32.mrf.mxu1 }
 0x100   :  { %846 = vst [vmem:[%s1786_s4 + $0x10] sm:$0xff] %v782_v42  ;;  %878 = vst [vmem:[%s1786_s4 + $0x110] sm:$0xff] %v814_v43  ;;  %v780_v41 = vmax.f32 %v526_v44, 0.0  ;;  %v812_v48 = vmax.f32 %v654_v45, 0.0  ;;  %v537_v49 = vadd.f32 %v1063_v46, %v1524_v34  ;;  %v665_v50 = vadd.f32 %v1095_v47, %v1524_v34 }
 0x101   :  { %v528_v51 = vpop.f32.mrf.mxu0  ;;  %v656_v52 = vpop.f32.mrf.mxu1 }
 0x102   :  { %844 = vst [vmem:[%s1786_s4] sm:$0xff] %v780_v41  ;;  %876 = vst [vmem:[%s1786_s4 + $0x100] sm:$0xff] %v812_v48  ;;  %v783_v53 = vmax.f32 %v537_v49, 0.0  ;;  %v815_v54 = vmax.f32 %v665_v50, 0.0  ;;  %v529_v55 = vadd.f32 %v528_v51, %v1524_v34  ;;  %v657_v56 = vadd.f32 %v656_v52, %v1524_v34 }
 0x103   :  { %v1066_v57 = vpop.f32.mrf.mxu0  ;;  %v1098_v58 = vpop.f32.mrf.mxu1 }
 0x104   :  { %847 = vst [vmem:[%s1786_s4 + $0x18] sm:$0xff] %v783_v53  ;;  %879 = vst [vmem:[%s1786_s4 + $0x118] sm:$0xff] %v815_v54  ;;  %v781_v59 = vmax.f32 %v529_v55, 0.0  ;;  %v813_v7 = vmax.f32 %v657_v56, 0.0  ;;  %v550_v60 = vadd.f32 %v1066_v57, %v1524_v34  ;;  %v678_v61 = vadd.f32 %v1098_v58, %v1524_v34 }
 0x105   :  { %v541_v62 = vpop.f32.mrf.mxu0  ;;  %v669_v12 = vpop.f32.mrf.mxu1 }
 0x106   :  { %845 = vst [vmem:[%s1786_s4 + $0x8] sm:$0xff] %v781_v59  ;;  %877 = vst [vmem:[%s1786_s4 + $0x108] sm:$0xff] %v813_v7  ;;  %v786_v18 = vmax.f32 %v550_v60, 0.0  ;;  %v818_v63 = vmax.f32 %v678_v61, 0.0  ;;  %v542_v0 = vadd.f32 %v541_v62, %v1524_v34  ;;  %v670_v1 = vadd.f32 %v669_v12, %v1524_v34 }
 0x107   :  { %v1067_v2 = vpop.f32.mrf.mxu0  ;;  %v1099_v3 = vpop.f32.mrf.mxu1 }
 0x108   :  { %850 = vst [vmem:[%s1786_s4 + $0x30] sm:$0xff] %v786_v18  ;;  %882 = vst [vmem:[%s1786_s4 + $0x130] sm:$0xff] %v818_v63  ;;  %v784_v4 = vmax.f32 %v542_v0, 0.0  ;;  %v816_v5 = vmax.f32 %v670_v1, 0.0  ;;  %v553_v6 = vadd.f32 %v1067_v2, %v1524_v34  ;;  %v681_v8 = vadd.f32 %v1099_v3, %v1524_v34 }
 0x109   :  { %v544_v9 = vpop.f32.mrf.mxu0  ;;  %v672_v10 = vpop.f32.mrf.mxu1 }
 0x10a   :  { %848 = vst [vmem:[%s1786_s4 + $0x20] sm:$0xff] %v784_v4  ;;  %880 = vst [vmem:[%s1786_s4 + $0x120] sm:$0xff] %v816_v5  ;;  %v787_v11 = vmax.f32 %v553_v6, 0.0  ;;  %v819_v13 = vmax.f32 %v681_v8, 0.0  ;;  %v545_v14 = vadd.f32 %v544_v9, %v1524_v34  ;;  %v673_v15 = vadd.f32 %v672_v10, %v1524_v34 }
 0x10b   :  { %v1070_v16 = vpop.f32.mrf.mxu0  ;;  %v1102_v17 = vpop.f32.mrf.mxu1 }
 0x10c   :  { %851 = vst [vmem:[%s1786_s4 + $0x38] sm:$0xff] %v787_v11  ;;  %883 = vst [vmem:[%s1786_s4 + $0x138] sm:$0xff] %v819_v13  ;;  %v785_v19 = vmax.f32 %v545_v14, 0.0  ;;  %v817_v20 = vmax.f32 %v673_v15, 0.0  ;;  %v566_v21 = vadd.f32 %v1070_v16, %v1524_v34  ;;  %v694_v22 = vadd.f32 %v1102_v17, %v1524_v34 }
 0x10d   :  { %v557_v23 = vpop.f32.mrf.mxu0  ;;  %v685_v24 = vpop.f32.mrf.mxu1 }
 0x10e   :  { %849 = vst [vmem:[%s1786_s4 + $0x28] sm:$0xff] %v785_v19  ;;  %881 = vst [vmem:[%s1786_s4 + $0x128] sm:$0xff] %v817_v20  ;;  %v790_v25 = vmax.f32 %v566_v21, 0.0  ;;  %v822_v26 = vmax.f32 %v694_v22, 0.0  ;;  %v558_v27 = vadd.f32 %v557_v23, %v1524_v34  ;;  %v686_v28 = vadd.f32 %v685_v24, %v1524_v34 }
 0x10f   :  { %v1071_v29 = vpop.f32.mrf.mxu0  ;;  %v1103_v30 = vpop.f32.mrf.mxu1 }
 0x110   :  { %854 = vst [vmem:[%s1786_s4 + $0x50] sm:$0xff] %v790_v25  ;;  %886 = vst [vmem:[%s1786_s4 + $0x150] sm:$0xff] %v822_v26  ;;  %v788_v31 = vmax.f32 %v558_v27, 0.0  ;;  %v820_v32 = vmax.f32 %v686_v28, 0.0  ;;  %v569_v33 = vadd.f32 %v1071_v29, %v1524_v34  ;;  %v697_v35 = vadd.f32 %v1103_v30, %v1524_v34 }
 0x111   :  { %v560_v36 = vpop.f32.mrf.mxu0  ;;  %v688_v37 = vpop.f32.mrf.mxu1 }
 0x112   :  { %852 = vst [vmem:[%s1786_s4 + $0x40] sm:$0xff] %v788_v31  ;;  %884 = vst [vmem:[%s1786_s4 + $0x140] sm:$0xff] %v820_v32  ;;  %v791_v38 = vmax.f32 %v569_v33, 0.0  ;;  %v823_v39 = vmax.f32 %v697_v35, 0.0  ;;  %v561_v40 = vadd.f32 %v560_v36, %v1524_v34  ;;  %v689_v42 = vadd.f32 %v688_v37, %v1524_v34 }
 0x113   :  { %v1074_v43 = vpop.f32.mrf.mxu0  ;;  %v1106_v44 = vpop.f32.mrf.mxu1 }
 0x114   :  { %855 = vst [vmem:[%s1786_s4 + $0x58] sm:$0xff] %v791_v38  ;;  %887 = vst [vmem:[%s1786_s4 + $0x158] sm:$0xff] %v823_v39  ;;  %v789_v45 = vmax.f32 %v561_v40, 0.0  ;;  %v821_v46 = vmax.f32 %v689_v42, 0.0  ;;  %v582_v47 = vadd.f32 %v1074_v43, %v1524_v34  ;;  %v710_v41 = vadd.f32 %v1106_v44, %v1524_v34 }
 0x115   :  { %v573_v48 = vpop.f32.mrf.mxu0  ;;  %v701_v49 = vpop.f32.mrf.mxu1 }
 0x116   :  { %853 = vst [vmem:[%s1786_s4 + $0x48] sm:$0xff] %v789_v45  ;;  %885 = vst [vmem:[%s1786_s4 + $0x148] sm:$0xff] %v821_v46  ;;  %v794_v50 = vmax.f32 %v582_v47, 0.0  ;;  %v826_v51 = vmax.f32 %v710_v41, 0.0  ;;  %v574_v52 = vadd.f32 %v573_v48, %v1524_v34  ;;  %v702_v53 = vadd.f32 %v701_v49, %v1524_v34 }
 0x117   :  { %v1075_v54 = vpop.f32.mrf.mxu0  ;;  %v1107_v55 = vpop.f32.mrf.mxu1 }
 0x118   :  { %858 = vst [vmem:[%s1786_s4 + $0x70] sm:$0xff] %v794_v50  ;;  %890 = vst [vmem:[%s1786_s4 + $0x170] sm:$0xff] %v826_v51  ;;  %v792_v56 = vmax.f32 %v574_v52, 0.0  ;;  %v824_v57 = vmax.f32 %v702_v53, 0.0  ;;  %v585_v58 = vadd.f32 %v1075_v54, %v1524_v34  ;;  %v713_v59 = vadd.f32 %v1107_v55, %v1524_v34 }
 0x119   :  { %v576_v7 = vpop.f32.mrf.mxu0  ;;  %v704_v60 = vpop.f32.mrf.mxu1 }
 0x11a   :  { %856 = vst [vmem:[%s1786_s4 + $0x60] sm:$0xff] %v792_v56  ;;  %888 = vst [vmem:[%s1786_s4 + $0x160] sm:$0xff] %v824_v57  ;;  %v795_v61 = vmax.f32 %v585_v58, 0.0  ;;  %v827_v62 = vmax.f32 %v713_v59, 0.0  ;;  %v577_v12 = vadd.f32 %v576_v7, %v1524_v34  ;;  %v705_v18 = vadd.f32 %v704_v60, %v1524_v34 }
 0x11b   :  { %v1078_v63 = vpop.f32.mrf.mxu0  ;;  %v1110_v0 = vpop.f32.mrf.mxu1 }
 0x11c   :  { %859 = vst [vmem:[%s1786_s4 + $0x78] sm:$0xff] %v795_v61  ;;  %891 = vst [vmem:[%s1786_s4 + $0x178] sm:$0xff] %v827_v62  ;;  %v793_v1 = vmax.f32 %v577_v12, 0.0  ;;  %v825_v2 = vmax.f32 %v705_v18, 0.0  ;;  %v598_v3 = vadd.f32 %v1078_v63, %v1524_v34  ;;  %v726_v4 = vadd.f32 %v1110_v0, %v1524_v34 }
 0x11d   :  { %v589_v5 = vpop.f32.mrf.mxu0  ;;  %v717_v6 = vpop.f32.mrf.mxu1 }
 0x11e   :  { %857 = vst [vmem:[%s1786_s4 + $0x68] sm:$0xff] %v793_v1  ;;  %889 = vst [vmem:[%s1786_s4 + $0x168] sm:$0xff] %v825_v2  ;;  %v798_v8 = vmax.f32 %v598_v3, 0.0  ;;  %v830_v9 = vmax.f32 %v726_v4, 0.0  ;;  %v590_v10 = vadd.f32 %v589_v5, %v1524_v34  ;;  %v718_v11 = vadd.f32 %v717_v6, %v1524_v34 }
 0x11f   :  { %v1079_v13 = vpop.f32.mrf.mxu0  ;;  %v1111_v14 = vpop.f32.mrf.mxu1 }
 0x120   :  { %862 = vst [vmem:[%s1786_s4 + $0x90] sm:$0xff] %v798_v8  ;;  %894 = vst [vmem:[%s1786_s4 + $0x190] sm:$0xff] %v830_v9  ;;  %v796_v15 = vmax.f32 %v590_v10, 0.0  ;;  %v828_v16 = vmax.f32 %v718_v11, 0.0  ;;  %v601_v17 = vadd.f32 %v1079_v13, %v1524_v34  ;;  %v729_v19 = vadd.f32 %v1111_v14, %v1524_v34 }
 0x121   :  { %v592_v20 = vpop.f32.mrf.mxu0  ;;  %v720_v21 = vpop.f32.mrf.mxu1 }
 0x122   :  { %860 = vst [vmem:[%s1786_s4 + $0x80] sm:$0xff] %v796_v15  ;;  %892 = vst [vmem:[%s1786_s4 + $0x180] sm:$0xff] %v828_v16  ;;  %v799_v22 = vmax.f32 %v601_v17, 0.0  ;;  %v831_v23 = vmax.f32 %v729_v19, 0.0  ;;  %v593_v24 = vadd.f32 %v592_v20, %v1524_v34  ;;  %v721_v25 = vadd.f32 %v720_v21, %v1524_v34 }
 0x123   :  { %v1082_v26 = vpop.f32.mrf.mxu0  ;;  %v1114_v27 = vpop.f32.mrf.mxu1 }
 0x124   :  { %863 = vst [vmem:[%s1786_s4 + $0x98] sm:$0xff] %v799_v22  ;;  %895 = vst [vmem:[%s1786_s4 + $0x198] sm:$0xff] %v831_v23  ;;  %v797_v28 = vmax.f32 %v593_v24, 0.0  ;;  %v829_v29 = vmax.f32 %v721_v25, 0.0  ;;  %v614_v30 = vadd.f32 %v1082_v26, %v1524_v34  ;;  %v742_v31 = vadd.f32 %v1114_v27, %v1524_v34 }
 0x125   :  { %v605_v32 = vpop.f32.mrf.mxu0  ;;  %v733_v33 = vpop.f32.mrf.mxu1 }
 0x126   :  { %861 = vst [vmem:[%s1786_s4 + $0x88] sm:$0xff] %v797_v28  ;;  %893 = vst [vmem:[%s1786_s4 + $0x188] sm:$0xff] %v829_v29  ;;  %v802_v35 = vmax.f32 %v614_v30, 0.0  ;;  %v834_v36 = vmax.f32 %v742_v31, 0.0  ;;  %v606_v37 = vadd.f32 %v605_v32, %v1524_v34  ;;  %v734_v38 = vadd.f32 %v733_v33, %v1524_v34 }
 0x127   :  { %v1083_v39 = vpop.f32.mrf.mxu0  ;;  %v1115_v40 = vpop.f32.mrf.mxu1 }
 0x128   :  { %866 = vst [vmem:[%s1786_s4 + $0xb0] sm:$0xff] %v802_v35  ;;  %898 = vst [vmem:[%s1786_s4 + $0x1b0] sm:$0xff] %v834_v36  ;;  %v800_v42 = vmax.f32 %v606_v37, 0.0  ;;  %v832_v43 = vmax.f32 %v734_v38, 0.0  ;;  %v617_v44 = vadd.f32 %v1083_v39, %v1524_v34  ;;  %v745_v45 = vadd.f32 %v1115_v40, %v1524_v34 }
 0x129   :  { %v608_v46 = vpop.f32.mrf.mxu0  ;;  %v736_v47 = vpop.f32.mrf.mxu1 }
 0x12a   :  { %864 = vst [vmem:[%s1786_s4 + $0xa0] sm:$0xff] %v800_v42  ;;  %896 = vst [vmem:[%s1786_s4 + $0x1a0] sm:$0xff] %v832_v43  ;;  %v803_v41 = vmax.f32 %v617_v44, 0.0  ;;  %v835_v48 = vmax.f32 %v745_v45, 0.0  ;;  %v609_v49 = vadd.f32 %v608_v46, %v1524_v34  ;;  %v737_v50 = vadd.f32 %v736_v47, %v1524_v34 }
 0x12b   :  { %v1086_v51 = vpop.f32.mrf.mxu0  ;;  %v1118_v52 = vpop.f32.mrf.mxu1 }
 0x12c   :  { %867 = vst [vmem:[%s1786_s4 + $0xb8] sm:$0xff] %v803_v41  ;;  %899 = vst [vmem:[%s1786_s4 + $0x1b8] sm:$0xff] %v835_v48  ;;  %v801_v53 = vmax.f32 %v609_v49, 0.0  ;;  %v833_v54 = vmax.f32 %v737_v50, 0.0  ;;  %v630_v55 = vadd.f32 %v1086_v51, %v1524_v34  ;;  %v758_v56 = vadd.f32 %v1118_v52, %v1524_v34 }
 0x12d   :  { %v621_v57 = vpop.f32.mrf.mxu0  ;;  %v749_v58 = vpop.f32.mrf.mxu1 }
 0x12e   :  { %865 = vst [vmem:[%s1786_s4 + $0xa8] sm:$0xff] %v801_v53  ;;  %897 = vst [vmem:[%s1786_s4 + $0x1a8] sm:$0xff] %v833_v54  ;;  %v806_v59 = vmax.f32 %v630_v55, 0.0  ;;  %v838_v7 = vmax.f32 %v758_v56, 0.0  ;;  %v622_v60 = vadd.f32 %v621_v57, %v1524_v34  ;;  %v750_v61 = vadd.f32 %v749_v58, %v1524_v34 }
 0x12f   :  { %v1087_v62 = vpop.f32.mrf.mxu0  ;;  %v1119_v12 = vpop.f32.mrf.mxu1 }
 0x130   :  { %870 = vst [vmem:[%s1786_s4 + $0xd0] sm:$0xff] %v806_v59  ;;  %902 = vst [vmem:[%s1786_s4 + $0x1d0] sm:$0xff] %v838_v7  ;;  %v804_v18 = vmax.f32 %v622_v60, 0.0  ;;  %v836_v63 = vmax.f32 %v750_v61, 0.0  ;;  %v633_v0 = vadd.f32 %v1087_v62, %v1524_v34  ;;  %v761_v1 = vadd.f32 %v1119_v12, %v1524_v34 }
 0x131   :  { %v624_v2 = vpop.f32.mrf.mxu0  ;;  %v752_v3 = vpop.f32.mrf.mxu1 }
 0x132   :  { %868 = vst [vmem:[%s1786_s4 + $0xc0] sm:$0xff] %v804_v18  ;;  %900 = vst [vmem:[%s1786_s4 + $0x1c0] sm:$0xff] %v836_v63  ;;  %v807_v4 = vmax.f32 %v633_v0, 0.0  ;;  %v839_v5 = vmax.f32 %v761_v1, 0.0  ;;  %v625_v6 = vadd.f32 %v624_v2, %v1524_v34  ;;  %v753_v8 = vadd.f32 %v752_v3, %v1524_v34 }
 0x133   :  { %v1090_v9 = vpop.f32.mrf.mxu0  ;;  %v1122_v10 = vpop.f32.mrf.mxu1 }
 0x134   :  { %871 = vst [vmem:[%s1786_s4 + $0xd8] sm:$0xff] %v807_v4  ;;  %903 = vst [vmem:[%s1786_s4 + $0x1d8] sm:$0xff] %v839_v5  ;;  %v805_v11 = vmax.f32 %v625_v6, 0.0  ;;  %v837_v13 = vmax.f32 %v753_v8, 0.0  ;;  %v646_v14 = vadd.f32 %v1090_v9, %v1524_v34  ;;  %v774_v15 = vadd.f32 %v1122_v10, %v1524_v34 }
 0x135   :  { %v637_v16 = vpop.f32.mrf.mxu0  ;;  %v765_v17 = vpop.f32.mrf.mxu1 }
 0x136   :  { %869 = vst [vmem:[%s1786_s4 + $0xc8] sm:$0xff] %v805_v11  ;;  %901 = vst [vmem:[%s1786_s4 + $0x1c8] sm:$0xff] %v837_v13  ;;  %v810_v19 = vmax.f32 %v646_v14, 0.0  ;;  %v842_v20 = vmax.f32 %v774_v15, 0.0  ;;  %v638_v21 = vadd.f32 %v637_v16, %v1524_v34  ;;  %v766_v22 = vadd.f32 %v765_v17, %v1524_v34 }
 0x137   :  { %v1091_v23 = vpop.f32.mrf.mxu0  ;;  %v1123_v24 = vpop.f32.mrf.mxu1 }
 0x138   :  { %874 = vst [vmem:[%s1786_s4 + $0xf0] sm:$0xff] %v810_v19  ;;  %906 = vst [vmem:[%s1786_s4 + $0x1f0] sm:$0xff] %v842_v20  ;;  %v808_v25 = vmax.f32 %v638_v21, 0.0  ;;  %v840_v26 = vmax.f32 %v766_v22, 0.0  ;;  %v649_v27 = vadd.f32 %v1091_v23, %v1524_v34  ;;  %v777_v28 = vadd.f32 %v1123_v24, %v1524_v34 }
 0x139   :  { %v640_v29 = vpop.f32.mrf.mxu0  ;;  %v768_v30 = vpop.f32.mrf.mxu1 }
 0x13a   :  { %872 = vst [vmem:[%s1786_s4 + $0xe0] sm:$0xff] %v808_v25  ;;  %904 = vst [vmem:[%s1786_s4 + $0x1e0] sm:$0xff] %v840_v26  ;;  %v811_v31 = vmax.f32 %v649_v27, 0.0  ;;  %v843_v32 = vmax.f32 %v777_v28, 0.0  ;;  %v641_v33 = vadd.f32 %v640_v29, %v1524_v34  ;;  %v769_v35 = vadd.f32 %v768_v30, %v1524_v34 }
 0x13c   :  { %875 = vst [vmem:[%s1786_s4 + $0xf8] sm:$0xff] %v811_v31  ;;  %907 = vst [vmem:[%s1786_s4 + $0x1f8] sm:$0xff] %v843_v32  ;;  %v809_v36 = vmax.f32 %v641_v33, 0.0  ;;  %v841_v37 = vmax.f32 %v769_v35, 0.0 }
 0x13e   :  { %873 = vst [vmem:[%s1786_s4 + $0xe8] sm:$0xff] %v809_v36  ;;  %905 = vst [vmem:[%s1786_s4 + $0x1e8] sm:$0xff] %v841_v37 }
 0x13f   :  { %912 = vsyncpa [#allocation3], 1 }

// kernel: mrf_unet_search_forward.6
= control target key start
LH: loop header
LB: loop body
LE: loop exit
PB: predicated region body
PF: predicated region fallthrough
CT: control target
= control target key end

     0   :  { %9 = vsyncpa [#allocation3], 0  ;;  %s1160_s0 = inlined_call_operand.vmem [shape: f32[3], index: 0, kind: input, shape index: {}]   ;;  %s1161_s1 = inlined_call_operand.vmem [shape: bf16[128,200], index: 1, kind: input, shape index: {}]   ;;  %s1162_s2 = inlined_call_operand.vmem [shape: f32[3,200,128], index: 2, kind: input, shape index: {}]   ;;  %s1163_s3 = inlined_call_operand.vmem [shape: f32[3,1,128], index: 3, kind: input, shape index: {}]   ;;  %s1164_s4 = inlined_call_operand.vmem [shape: f32[128,128], index: 4, kind: output, shape index: {}]  }
   0x1   :  { %s16_s17 = sshll.u32 %s1160_s0, 4  ;;  %s17_s17 = int_to_ptr.vmem [resolvable:$true] %s16_s17 }
   0x2   :  { %s649_s18 = scalar_lea.vmem %s17_s17, 16  ;;  %p654_p1 = scmp.lt.s32.totalorder %s17_s17, %s17_s17 }
   0x3   :  { %p650_p0 = scmp.ne.s32.totalorder %s17_s17, %s649_s18  ;;  %p655_p2 = scmp.lt.s32.totalorder %s649_s18, %s649_s18 }
   0x5   :  { %p656_p3 = por %p655_p2, %p654_p1 }
   0x7   :  { %p657_p4 = pnand %p656_p3, %p650_p0 }
   0x9   :  { %660 = shalt.err (!%p657_p4)
}
   0xa   :  { %s663_s19 = smov [#allocation2]  }
   0xb   :  { %19 = dma.vmem_to_smem %s17_s17, 16, %s663_s19, [#allocation3]  }
   0xc   :  { %661 = dma.done.wait [#allocation3], 16  }
   0xd   :  { %662 = vsyncadd [#allocation3], 4294967280 }
   0xe   :  { %29 = sfence }
   0xf   :  { %s31_s20 = sld [smem:[#allocation2]]  ;;  %v664_v0 = vmov 0   ;;  %v46_v1 = vld [vmem:[%s1162_s2 + $0x70] sm:$0xff]  ;;  %v47_v2 = vld [vmem:[%s1162_s2 + $0x78] sm:$0xff]  ;;  %v44_v4 = vld [vmem:[%s1162_s2 + $0x60] sm:$0xff]  ;;  %vm356_vm0 = vcmask 588800  }
  0x10   :  { %385 = vmatprep.subr.bf16.mxu0 %v664_v0  ;;  %597 = vmatprep.subr.bf16.mxu1 %v664_v0  ;;  %s519_s0 = sld [smem:[#allocation2 + $0x1]]  ;;  %v534_v3 = vld [vmem:[%s1162_s2 + $0x138] sm:$0xff]  ;;  %v535_v5 = vld [vmem:[%s1162_s2 + $0x140] sm:$0xff]  ;;  %v45_v7 = vld [vmem:[%s1162_s2 + $0x68] sm:$0xff]  ;;  %vm381_vm1 = vcmask 1043456  }
  0x11   :  { %s545_s21 = sld [smem:[#allocation2 + $0x2]]  ;;  %v560_v6 = vld [vmem:[%s1162_s2 + $0x200] sm:$0xff]  ;;  %v561_v9 = vld [vmem:[%s1162_s2 + $0x208] sm:$0xff]  ;;  %v533_v11 = vld [vmem:[%s1162_s2 + $0x130] sm:$0xff] }
  0x12   :  { %v532_v10 = vld [vmem:[%s1162_s2 + $0x128] sm:$0xff]  ;;  %v558_v16 = vld [vmem:[%s1162_s2 + $0x1f0] sm:$0xff]  ;;  %v559_v17 = vld [vmem:[%s1162_s2 + $0x1f8] sm:$0xff] }
  0x13   :  { %v42_v22 = vld [vmem:[%s1162_s2 + $0x50] sm:$0xff]  ;;  %v43_v23 = vld [vmem:[%s1162_s2 + $0x58] sm:$0xff]  ;;  %v531_v29 = vld [vmem:[%s1162_s2 + $0x120] sm:$0xff] }
  0x14   :  { %v530_v28 = vld [vmem:[%s1162_s2 + $0x118] sm:$0xff]  ;;  %v556_v34 = vld [vmem:[%s1162_s2 + $0x1e0] sm:$0xff]  ;;  %v557_v35 = vld [vmem:[%s1162_s2 + $0x1e8] sm:$0xff] }
  0x15   :  { %v716_v8 = vstv %s31_s20  ;;  %v40_v40 = vld [vmem:[%s1162_s2 + $0x40] sm:$0xff]  ;;  %v41_v45 = vld [vmem:[%s1162_s2 + $0x48] sm:$0xff]  ;;  %v529_v47 = vld [vmem:[%s1162_s2 + $0x110] sm:$0xff] }
  0x16   :  { %v72_v12 = vmul.f32 %v716_v8, %v46_v1  ;;  %v73_v13 = vmul.f32 %v716_v8, %v47_v2  ;;  %v729_v14 = vstv %s519_s0  ;;  %v70_v15 = vmul.f32 %v716_v8, %v44_v4  ;;  %v528_v46 = vld [vmem:[%s1162_s2 + $0x108] sm:$0xff]  ;;  %v554_v52 = vld [vmem:[%s1162_s2 + $0x1d0] sm:$0xff]  ;;  %v555_v57 = vld [vmem:[%s1162_s2 + $0x1d8] sm:$0xff] }
  0x17   :  { %v125_v18 = vmul.f32 %v534_v3, %v729_v14  ;;  %v126_v19 = vmul.f32 %v535_v5, %v729_v14  ;;  %v740_v20 = vstv %s545_s21  ;;  %v71_v21 = vmul.f32 %v716_v8, %v45_v7  ;;  %v38_v62 = vld [vmem:[%s1162_s2 + $0x30] sm:$0xff]  ;;  %v39_v63 = vld [vmem:[%s1162_s2 + $0x38] sm:$0xff]  ;;  %v527_v5 = vld [vmem:[%s1162_s2 + $0x100] sm:$0xff] }
  0x18   :  { %v203_v24 = vmul.f32 %v560_v6, %v740_v20  ;;  %v204_v25 = vmul.f32 %v561_v9, %v740_v20  ;;  %v123_v26 = vmul.f32 %v532_v10, %v729_v14  ;;  %v124_v27 = vmul.f32 %v533_v11, %v729_v14  ;;  %v526_v1 = vld [vmem:[%s1162_s2 + $0xf8] sm:$0xff]  ;;  %v552_v6 = vld [vmem:[%s1162_s2 + $0x1c0] sm:$0xff]  ;;  %v553_v11 = vld [vmem:[%s1162_s2 + $0x1c8] sm:$0xff] }
  0x19   :  { %v150_v30 = vadd.f32 %v125_v18, %v72_v12  ;;  %v151_v31 = vadd.f32 %v126_v19, %v73_v13  ;;  %v201_v32 = vmul.f32 %v558_v16, %v740_v20  ;;  %v202_v33 = vmul.f32 %v559_v17, %v740_v20  ;;  %v36_v12 = vld [vmem:[%s1162_s2 + $0x20] sm:$0xff]  ;;  %v37_v18 = vld [vmem:[%s1162_s2 + $0x28] sm:$0xff] }
  0x1a   :  { %v148_v36 = vadd.f32 %v123_v26, %v70_v15  ;;  %v149_v37 = vadd.f32 %v124_v27, %v71_v21  ;;  %v68_v38 = vmul.f32 %v716_v8, %v42_v22  ;;  %v69_v39 = vmul.f32 %v716_v8, %v43_v23  ;;  %v550_v26 = vld [vmem:[%s1162_s2 + $0x1b0] sm:$0xff] }
  0x1b   :  { %v228_v41 = vadd.f32 %v203_v24, %v150_v30  ;;  %v229_v42 = vadd.f32 %v204_v25, %v151_v31  ;;  %v121_v43 = vmul.f32 %v530_v28, %v729_v14  ;;  %v122_v44 = vmul.f32 %v531_v29, %v729_v14  ;;  %v524_v24 = vld [vmem:[%s1162_s2 + $0xe8] sm:$0xff]  ;;  %v525_v25 = vld [vmem:[%s1162_s2 + $0xf0] sm:$0xff]  ;;  %v551_v30 = vld [vmem:[%s1162_s2 + $0x1b8] sm:$0xff] }
  0x1c   :  { %v226_v48 = vadd.f32 %v201_v32, %v148_v36  ;;  %v227_v49 = vadd.f32 %v202_v33, %v149_v37  ;;  %v199_v50 = vmul.f32 %v556_v34, %v740_v20  ;;  %v200_v51 = vmul.f32 %v557_v35, %v740_v20  ;;  %v34_v31 = vld [vmem:[%s1162_s2 + $0x10] sm:$0xff]  ;;  %v35_v32 = vld [vmem:[%s1162_s2 + $0x18] sm:$0xff] }
  0x1d   :  { %v272_v53 = vpack.c.bf16 %v229_v42, %v228_v41  ;;  %v146_v54 = vadd.f32 %v121_v43, %v68_v38  ;;  %v147_v55 = vadd.f32 %v122_v44, %v69_v39  ;;  %v66_v56 = vmul.f32 %v716_v8, %v40_v40  ;;  %v522_v36 = vld [vmem:[%s1162_s2 + $0xd8] sm:$0xff]  ;;  %v523_v41 = vld [vmem:[%s1162_s2 + $0xe0] sm:$0xff] }
  0x1e   :  { %v271_v58 = vpack.c.bf16 %v227_v49, %v226_v48  ;;  %v67_v59 = vmul.f32 %v716_v8, %v41_v45  ;;  %v119_v60 = vmul.f32 %v528_v46, %v729_v14  ;;  %v120_v61 = vmul.f32 %v529_v47, %v729_v14  ;;  %v548_v42 = vld [vmem:[%s1162_s2 + $0x1a0] sm:$0xff]  ;;  %v549_v47 = vld [vmem:[%s1162_s2 + $0x1a8] sm:$0xff] }
  0x1f   :  { %386 = vmatpush1.bf16.msra.mxu0 %v272_v53  ;;  %610 = vmatpush1.bf16.msra.mxu1 %v272_v53  ;;  %v224_v2 = vadd.f32 %v199_v50, %v146_v54  ;;  %v225_v3 = vadd.f32 %v200_v51, %v147_v55  ;;  %v197_v4 = vmul.f32 %v554_v52, %v740_v20  ;;  %v32_v48 = vld [vmem:[%s1162_s2] sm:$0xff]  ;;  %v33_v52 = vld [vmem:[%s1162_s2 + $0x8] sm:$0xff]  ;;  %v521_v54 = vld [vmem:[%s1162_s2 + $0xd0] sm:$0xff] }
  0x20   :  { %387 = vmatprep.subr.bf16.mxu0 %v664_v0  ;;  %598 = vmatprep.subr.bf16.mxu1 %v664_v0  ;;  %v144_v7 = vadd.f32 %v119_v60, %v66_v56  ;;  %v145_v9 = vadd.f32 %v120_v61, %v67_v59  ;;  %v198_v10 = vmul.f32 %v555_v57, %v740_v20  ;;  %v520_v53 = vld [vmem:[%s1162_s2 + $0xc8] sm:$0xff]  ;;  %v56_v57 = vld [vmem:[%s1162_s2 + $0xc0] sm:$0xff] }
  0x21   :  { %v270_v13 = vpack.c.bf16 %v225_v3, %v224_v2  ;;  %v64_v15 = vmul.f32 %v716_v8, %v38_v62  ;;  %v65_v16 = vmul.f32 %v716_v8, %v39_v63  ;;  %v117_v17 = vmul.f32 %v526_v1, %v729_v14  ;;  %v546_v63 = vld [vmem:[%s1162_s2 + $0x190] sm:$0xff]  ;;  %v547_v1 = vld [vmem:[%s1162_s2 + $0x198] sm:$0xff]  ;;  %v627_v2 = vld [vmem:[%s1161_s1 + $0x4] ss:$8 sps:$4 sm:$0xff]  }
  0x22   :  { %v222_v19 = vadd.f32 %v197_v4, %v144_v7  ;;  %v223_v21 = vadd.f32 %v198_v10, %v145_v9  ;;  %v118_v22 = vmul.f32 %v527_v5, %v729_v14  ;;  %v195_v23 = vmul.f32 %v552_v6, %v740_v20  ;;  %v570_v7 = vld [vmem:[%s1162_s2 + $0x250] sm:$0xff]  ;;  %v630_v9 = vld [vmem:[%s1161_s1 + $0x44] ss:$8 sps:$4 sm:$0xff]   ;;  %589 = vmatprep.mubr.msk.bf16.mxu0 %vm356_vm0, %v627_v2 }
  0x23   :  { %388 = vmatpush1.bf16.msra.mxu0 %v271_v58  ;;  %611 = vmatpush1.bf16.msra.mxu1 %v271_v58  ;;  %v142_v27 = vadd.f32 %v117_v17, %v64_v15  ;;  %v196_v28 = vmul.f32 %v553_v11, %v740_v20  ;;  %v62_v29 = vmul.f32 %v716_v8, %v36_v12  ;;  %v544_v58 = vld [vmem:[%s1162_s2 + $0x188] sm:$0xff]  ;;  %v54_v12 = vld [vmem:[%s1162_s2 + $0xb0] sm:$0xff]  ;;  %v55_v15 = vld [vmem:[%s1162_s2 + $0xb8] sm:$0xff] }
  0x24   :  { %389 = vmatprep.subr.bf16.mxu0 %v664_v0  ;;  %599 = vmatprep.subr.bf16.mxu1 %v664_v0  ;;  %v269_v33 = vpack.c.bf16 %v223_v21, %v222_v19  ;;  %v143_v34 = vadd.f32 %v118_v22, %v65_v16  ;;  %v63_v35 = vmul.f32 %v716_v8, %v37_v18  ;;  %v542_v16 = vld [vmem:[%s1162_s2 + $0x178] sm:$0xff]  ;;  %v543_v22 = vld [vmem:[%s1162_s2 + $0x180] sm:$0xff] }
  0x25   :  { %v220_v37 = vadd.f32 %v195_v23, %v142_v27  ;;  %v115_v38 = vmul.f32 %v524_v24, %v729_v14  ;;  %v116_v39 = vmul.f32 %v525_v25, %v729_v14  ;;  %v193_v40 = vmul.f32 %v550_v26, %v740_v20  ;;  %593 = vmatprep.mubr.msk.bf16.mxu1 %vm356_vm0, %v630_v9 }
  0x26   :  { %v221_v43 = vadd.f32 %v196_v28, %v143_v34  ;;  %v194_v44 = vmul.f32 %v551_v30, %v740_v20  ;;  %v60_v45 = vmul.f32 %v716_v8, %v34_v31  ;;  %v61_v46 = vmul.f32 %v716_v8, %v35_v32  ;;  %v568_v30 = vld [vmem:[%s1162_s2 + $0x240] sm:$0xff]  ;;  %v569_v31 = vld [vmem:[%s1162_s2 + $0x248] sm:$0xff] }
  0x27   :  { %390 = vmatpush1.bf16.msra.mxu0 %v270_v13  ;;  %612 = vmatpush1.bf16.msra.mxu1 %v270_v13  ;;  %v140_v49 = vadd.f32 %v115_v38, %v62_v29  ;;  %v141_v50 = vadd.f32 %v116_v39, %v63_v35  ;;  %v113_v51 = vmul.f32 %v522_v36, %v729_v14  ;;  %v52_v35 = vld [vmem:[%s1162_s2 + $0xa0] sm:$0xff]  ;;  %v540_v36 = vld [vmem:[%s1162_s2 + $0x168] sm:$0xff] }
  0x28   :  { %391 = vmatprep.subr.bf16.mxu0 %v664_v0  ;;  %600 = vmatprep.subr.bf16.mxu1 %v664_v0  ;;  %v114_v55 = vmul.f32 %v523_v41, %v729_v14  ;;  %v191_v56 = vmul.f32 %v548_v42, %v740_v20  ;;  %v192_v62 = vmul.f32 %v549_v47, %v740_v20  ;;  %v53_v41 = vld [vmem:[%s1162_s2 + $0xa8] sm:$0xff]  ;;  %v541_v42 = vld [vmem:[%s1162_s2 + $0x170] sm:$0xff] }
  0x29   :  { %v218_v59 = vadd.f32 %v193_v40, %v140_v49  ;;  %v219_v60 = vadd.f32 %v194_v44, %v141_v50  ;;  %v138_v61 = vadd.f32 %v113_v51, %v60_v45  ;;  %v58_v4 = vmul.f32 %v716_v8, %v32_v48  ;;  %v566_v49 = vld [vmem:[%s1162_s2 + $0x230] sm:$0xff] }
  0x2a   :  { %v139_v3 = vadd.f32 %v114_v55, %v61_v46  ;;  %v59_v5 = vmul.f32 %v716_v8, %v33_v52  ;;  %v111_v6 = vmul.f32 %v520_v53, %v729_v14  ;;  %v268_v10 = vpack.c.bf16 %v221_v43, %v220_v37  ;;  %v567_v52 = vld [vmem:[%s1162_s2 + $0x238] sm:$0xff]  ;;  %v50_v53 = vld [vmem:[%s1162_s2 + $0x90] sm:$0xff] }
  0x2b   :  { %392 = vmatpush1.bf16.msra.mxu0 %v269_v33  ;;  %613 = vmatpush1.bf16.msra.mxu1 %v269_v33  ;;  %v112_v11 = vmul.f32 %v521_v54, %v729_v14  ;;  %v267_v13 = vpack.c.bf16 %v219_v60, %v218_v59  ;;  %v216_v17 = vadd.f32 %v191_v56, %v138_v61  ;;  %v538_v54 = vld [vmem:[%s1162_s2 + $0x158] sm:$0xff]  ;;  %v539_v59 = vld [vmem:[%s1162_s2 + $0x160] sm:$0xff] }
  0x2c   :  { %393 = vmatprep.subr.bf16.mxu0 %v664_v0  ;;  %601 = vmatprep.subr.bf16.mxu1 %v664_v0  ;;  %v217_v18 = vadd.f32 %v192_v62, %v139_v3  ;;  %v82_v19 = vmul.f32 %v716_v8, %v56_v57  ;;  %v135_v21 = vmul.f32 %v544_v58, %v729_v14  ;;  %v51_v58 = vld [vmem:[%s1162_s2 + $0x98] sm:$0xff] }
  0x2d   :  { %v136_v23 = vadd.f32 %v111_v6, %v58_v4  ;;  %v137_v24 = vadd.f32 %v112_v11, %v59_v5  ;;  %v189_v25 = vmul.f32 %v546_v63, %v740_v20  ;;  %v190_v26 = vmul.f32 %v547_v1, %v740_v20  ;;  %v239_v63 = vld [vmem:[%s1163_s3] sm:$0x1]  ;;  %v571_v5 = vld [vmem:[%s1163_s3 + $0x1] sm:$0x1]  ;;  %v572_v6 = vld [vmem:[%s1163_s3 + $0x2] sm:$0x1] }
  0x2e   :  { %v160_v27 = vadd.f32 %v135_v21, %v82_v19  ;;  %v213_v28 = vmul.f32 %v570_v7, %v740_v20  ;;  %v80_v29 = vmul.f32 %v716_v8, %v54_v12  ;;  %v81_v32 = vmul.f32 %v716_v8, %v55_v15  ;;  %v565_v11 = vld [vmem:[%s1162_s2 + $0x228] sm:$0xff]  ;;  %v48_v12 = vld [vmem:[%s1162_s2 + $0x80] sm:$0xff]  ;;  %v537_v19 = vld [vmem:[%s1162_s2 + $0x150] sm:$0xff] }
  0x2f   :  { %394 = vmatpush1.bf16.msra.mxu0 %v268_v10  ;;  %614 = vmatpush1.bf16.msra.mxu1 %v268_v10  ;;  %v133_v33 = vmul.f32 %v542_v16, %v729_v14  ;;  %v134_v34 = vmul.f32 %v543_v22, %v729_v14  ;;  %v266_v37 = vpack.c.bf16 %v217_v18, %v216_v17  ;;  %v564_v10 = vld [vmem:[%s1162_s2 + $0x220] sm:$0xff]  ;;  %v49_v17 = vld [vmem:[%s1162_s2 + $0x88] sm:$0xff] }
  0x30   :  { %395 = vmatprep.subr.bf16.mxu0 %v664_v0  ;;  %602 = vmatprep.subr.bf16.mxu1 %v664_v0  ;;  %v214_v38 = vadd.f32 %v189_v25, %v136_v23  ;;  %v215_v39 = vadd.f32 %v190_v26, %v137_v24  ;;  %v211_v40 = vmul.f32 %v568_v30, %v740_v20  ;;  %v536_v18 = vld [vmem:[%s1162_s2 + $0x148] sm:$0xff] }
  0x31   :  { %v238_v43 = vadd.f32 %v213_v28, %v160_v27  ;;  %v212_v44 = vmul.f32 %v569_v31, %v740_v20  ;;  %v78_v45 = vmul.f32 %v716_v8, %v52_v35  ;;  %v158_v46 = vadd.f32 %v133_v33, %v80_v29  ;;  %v563_v35 = vld [vmem:[%s1162_s2 + $0x218] sm:$0xff] }
  0x32   :  { %v159_v47 = vadd.f32 %v134_v34, %v81_v32  ;;  %v131_v48 = vmul.f32 %v540_v36, %v729_v14  ;;  %v79_v50 = vmul.f32 %v716_v8, %v53_v41  ;;  %v132_v51 = vmul.f32 %v541_v42, %v729_v14  ;;  %v562_v34 = vld [vmem:[%s1162_s2 + $0x210] sm:$0xff] }
  0x33   :  { %396 = vmatpush1.bf16.msra.mxu0 %v267_v13  ;;  %615 = vmatpush1.bf16.msra.mxu1 %v267_v13  ;;  %v265_v55 = vpack.c.bf16 %v215_v39, %v214_v38  ;;  %v277_v56 = vpack.c.bf16 %v238_v43, %v238_v43  ;;  %v209_v57 = vmul.f32 %v566_v49, %v740_v20  ;;  %v636_v49 = vld [vmem:[%s1161_s1 + $0x50] ss:$8 sps:$4 sm:$0xff]  }
  0x34   :  { %397 = vmatprep.subr.bf16.mxu0 %v664_v0  ;;  %603 = vmatprep.subr.bf16.mxu1 %v664_v0  ;;  %v236_v60 = vadd.f32 %v211_v40, %v158_v46  ;;  %v237_v61 = vadd.f32 %v212_v44, %v159_v47  ;;  %v156_v62 = vadd.f32 %v131_v48, %v78_v45  ;;  %v625_v45 = vld [vmem:[%s1161_s1] ss:$8 sps:$4 sm:$0xff]   ;;  %v631_v47 = vld [vmem:[%s1161_s1 + $0x14] ss:$8 sps:$4 sm:$0xff]  }
  0x35   :  { %v157_v1 = vadd.f32 %v132_v51, %v79_v50  ;;  %v210_v2 = vmul.f32 %v567_v52, %v740_v20  ;;  %v76_v3 = vmul.f32 %v716_v8, %v50_v53  ;;  %v129_v4 = vmul.f32 %v538_v54, %v729_v14  ;;  %v628_v46 = vld [vmem:[%s1161_s1 + $0x40] ss:$8 sps:$4 sm:$0xff]   ;;  %v633_v48 = vld [vmem:[%s1161_s1 + $0x54] ss:$8 sps:$4 sm:$0xff]   ;;  %v637_v50 = vld [vmem:[%s1161_s1 + $0x24] ss:$8 sps:$4 sm:$0xff]  }
  0x36   :  { %v77_v7 = vmul.f32 %v716_v8, %v51_v58  ;;  %v130_v9 = vmul.f32 %v539_v59, %v729_v14  ;;  %v240_v13 = vmul.f32 %v239_v63, %v716_v8  ;;  %v383_v15 = vsel %vm381_vm1, %v277_v56, 0  ;;  %v639_v51 = vld [vmem:[%s1161_s1 + $0x64] ss:$8 sps:$4 sm:$0xff]   ;;  %v641_v52 = vld [vmem:[%s1161_s1 + $0x20] ss:$8 sps:$4 sm:$0xff]  }
  0x37   :  { %398 = vmatpush1.bf16.msra.mxu0 %v266_v37  ;;  %616 = vmatpush1.bf16.msra.mxu1 %v266_v37  ;;  %v276_v16 = vpack.c.bf16 %v237_v61, %v236_v60  ;;  %v243_v21 = vmul.f32 %v571_v5, %v729_v14  ;;  %v247_v22 = vmul.f32 %v572_v6, %v740_v20  ;;  %v642_v53 = vld [vmem:[%s1161_s1 + $0x60] ss:$8 sps:$4 sm:$0xff]   ;;  %v643_v54 = vld [vmem:[%s1161_s1 + $0x34] ss:$8 sps:$4 sm:$0xff]   ;;  %v647_v56 = vld [vmem:[%s1161_s1 + $0x30] ss:$8 sps:$4 sm:$0xff]   ;;  %v279_v58 = vlaneseq }
  0x38   :  { %399 = vmatprep.subr.bf16.mxu0 %v664_v0  ;;  %604 = vmatprep.subr.bf16.mxu1 %v664_v0  ;;  %v234_v23 = vadd.f32 %v209_v57, %v156_v62  ;;  %v235_v24 = vadd.f32 %v210_v2, %v157_v1  ;;  %v154_v25 = vadd.f32 %v129_v4, %v76_v3  ;;  %v648_v57 = vld [vmem:[%s1161_s1 + $0x70] ss:$8 sps:$4 sm:$0xff]  }
  0x39   :  { %v207_v26 = vmul.f32 %v564_v10, %v740_v20  ;;  %v155_v27 = vadd.f32 %v130_v9, %v77_v7  ;;  %v208_v28 = vmul.f32 %v565_v11, %v740_v20  ;;  %v74_v29 = vmul.f32 %v716_v8, %v48_v12 }
  0x3a   :  { %v244_v30 = vadd.f32 %v243_v21, %v240_v13  ;;  %v75_v31 = vmul.f32 %v716_v8, %v49_v17  ;;  %v127_v32 = vmul.f32 %v536_v18, %v729_v14  ;;  %v128_v33 = vmul.f32 %v537_v19, %v729_v14 }
  0x3b   :  { %400 = vmatpush1.bf16.msra.mxu0 %v265_v55  ;;  %617 = vmatpush1.bf16.msra.mxu1 %v265_v55  ;;  %v275_v37 = vpack.c.bf16 %v235_v24, %v234_v23  ;;  %v232_v38 = vadd.f32 %v207_v26, %v154_v25  ;;  %v205_v8 = vmul.f32 %v562_v34, %v740_v20  ;;  %v645_v55 = vld [vmem:[%s1161_s1 + $0x74] ss:$8 sps:$4 sm:$0xff]   ;;  %v280_v59 = vshrl.u32 %v279_v58, 7 }
  0x3c   :  { %407 = vmatprep.subr.bf16.mxu0 %v664_v0  ;;  %605 = vmatprep.subr.bf16.mxu1 %v664_v0  ;;  %v248_v36 = vadd.f32 %v247_v22, %v244_v30  ;;  %v206_v39 = vmul.f32 %v563_v35, %v740_v20  ;;  %v233_v14 = vadd.f32 %v208_v28, %v155_v27 }
  0x3d   :  { %v152_v40 = vadd.f32 %v127_v32, %v74_v29  ;;  %v153_v41 = vadd.f32 %v128_v33, %v75_v31  ;;  %v281_v60 = vsub.s32 0, %v280_v59 }
  0x3e   :  { %v274_v42 = vpack.c.bf16 %v233_v14, %v232_v38 }
  0x3f   :  { %408 = vmatpush2.bf16.msra.mxu0 %v383_v15  ;;  %618 = vmatpush2.bf16.msra.mxu1 %v383_v15  ;;  %v230_v43 = vadd.f32 %v205_v8, %v152_v40  ;;  %v231_v44 = vadd.f32 %v206_v39, %v153_v41  ;;  %v1094_v61 = vrot.slane %v248_v36, %v281_v60 }
  0x40   :  { %409 = vmatprep.subr.bf16.mxu0 %v664_v0  ;;  %606 = vmatprep.subr.bf16.mxu1 %v664_v0 }
  0x41   :  { %v273_v20 = vpack.c.bf16 %v231_v44, %v230_v43 }
  0x43   :  { %410 = vmatpush2.bf16.msra.mxu0 %v276_v16  ;;  %619 = vmatpush2.bf16.msra.mxu1 %v276_v16 }
  0x44   :  { %411 = vmatprep.subr.bf16.mxu0 %v664_v0  ;;  %607 = vmatprep.subr.bf16.mxu1 %v664_v0 }
  0x47   :  { %412 = vmatpush2.bf16.msra.mxu0 %v275_v37  ;;  %620 = vmatpush2.bf16.msra.mxu1 %v275_v37 }
  0x48   :  { %413 = vmatprep.subr.bf16.mxu0 %v664_v0  ;;  %608 = vmatprep.subr.bf16.mxu1 %v664_v0 }
  0x4b   :  { %414 = vmatpush2.bf16.msra.mxu0 %v274_v42  ;;  %621 = vmatpush2.bf16.msra.mxu1 %v274_v42 }
  0x4c   :  { %415 = vmatprep.subr.bf16.mxu0 %v664_v0  ;;  %609 = vmatprep.subr.bf16.mxu1 %v664_v0  ;;  %v635_v0 = vld [vmem:[%s1161_s1 + $0x10] ss:$8 sps:$4 sm:$0xff]  }
  0x4f   :  { %416 = vmatpush2.bf16.msra.mxu0 %v273_v20  ;;  %622 = vmatpush2.bf16.msra.mxu1 %v273_v20 }
  0x52   :  { %418 = vmatmul.mubr.bf16.vlgmr.msra.gmra.mxu0 %v625_v45  ;;  %450 = vmatmul.mubr.bf16.vlgmr.msra.gmra.mxu1 %v628_v46 }
  0x53   :  { %590 = vmatprep.mubr.msk.bf16.mxu0 %vm356_vm0, %v631_v47  ;;  %594 = vmatprep.mubr.msk.bf16.mxu1 %vm356_vm0, %v633_v48 }
  0x5a   :  { %426 = vmatmul.mubr.bf16.gmra.mxu0 %v635_v0  ;;  %458 = vmatmul.mubr.bf16.gmra.mxu1 %v636_v49 }
  0x5b   :  { %591 = vmatprep.mubr.msk.bf16.mxu0 %vm356_vm0, %v637_v50  ;;  %595 = vmatprep.mubr.msk.bf16.mxu1 %vm356_vm0, %v639_v51 }
  0x62   :  { %434 = vmatmul.mubr.bf16.gmra.mxu0 %v641_v52  ;;  %466 = vmatmul.mubr.bf16.gmra.mxu1 %v642_v53 }
  0x63   :  { %592 = vmatprep.mubr.msk.bf16.mxu0 %vm356_vm0, %v643_v54  ;;  %596 = vmatprep.mubr.msk.bf16.mxu1 %vm356_vm0, %v645_v55 }
  0x6a   :  { %442 = vmatmul.mubr.bf16.gmra.mxu0 %v647_v56  ;;  %474 = vmatmul.mubr.bf16.gmra.mxu1 %v648_v57 }
 0x112   :  { %v419_v62 = vpop.f32.mrf.mxu0  ;;  %v451_v63 = vpop.f32.mrf.mxu1 }
 0x113   :  { %v420_v1 = vadd.f32 %v419_v62, %v1094_v61  ;;  %v452_v2 = vadd.f32 %v451_v63, %v1094_v61 }
 0x114   :  { %v421_v3 = vpop.f32.mrf.mxu0  ;;  %v453_v4 = vpop.f32.mrf.mxu1 }
 0x115   :  { %v482_v5 = vmax.f32 %v420_v1, 0.0  ;;  %v490_v6 = vmax.f32 %v452_v2, 0.0 }
 0x116   :  { %v422_v7 = vpop.f32.mrf.mxu0  ;;  %v454_v9 = vpop.f32.mrf.mxu1 }
 0x117   :  { %498 = vst [vmem:[%s1164_s4] sm:$0xff] %v482_v5  ;;  %506 = vst [vmem:[%s1164_s4 + $0x40] sm:$0xff] %v490_v6  ;;  %v423_v10 = vadd.f32 %v422_v7, %v1094_v61  ;;  %v455_v11 = vadd.f32 %v454_v9, %v1094_v61 }
 0x118   :  { %v424_v12 = vpop.f32.mrf.mxu0  ;;  %v456_v13 = vpop.f32.mrf.mxu1 }
 0x119   :  { %v483_v15 = vmax.f32 %v423_v10, 0.0  ;;  %v491_v16 = vmax.f32 %v455_v11, 0.0 }
 0x11a   :  { %v427_v17 = vpop.f32.mrf.mxu0  ;;  %v459_v18 = vpop.f32.mrf.mxu1 }
 0x11b   :  { %499 = vst [vmem:[%s1164_s4 + $0x8] sm:$0xff] %v483_v15  ;;  %507 = vst [vmem:[%s1164_s4 + $0x48] sm:$0xff] %v491_v16  ;;  %v428_v19 = vadd.f32 %v427_v17, %v1094_v61  ;;  %v460_v21 = vadd.f32 %v459_v18, %v1094_v61 }
 0x11c   :  { %v429_v22 = vpop.f32.mrf.mxu0  ;;  %v461_v23 = vpop.f32.mrf.mxu1 }
 0x11d   :  { %v484_v24 = vmax.f32 %v428_v19, 0.0  ;;  %v492_v25 = vmax.f32 %v460_v21, 0.0 }
 0x11e   :  { %v430_v26 = vpop.f32.mrf.mxu0  ;;  %v462_v27 = vpop.f32.mrf.mxu1 }
 0x11f   :  { %500 = vst [vmem:[%s1164_s4 + $0x10] sm:$0xff] %v484_v24  ;;  %508 = vst [vmem:[%s1164_s4 + $0x50] sm:$0xff] %v492_v25  ;;  %v431_v28 = vadd.f32 %v430_v26, %v1094_v61  ;;  %v463_v29 = vadd.f32 %v462_v27, %v1094_v61 }
 0x120   :  { %v432_v30 = vpop.f32.mrf.mxu0  ;;  %v464_v31 = vpop.f32.mrf.mxu1 }
 0x121   :  { %v485_v32 = vmax.f32 %v431_v28, 0.0  ;;  %v493_v33 = vmax.f32 %v463_v29, 0.0 }
 0x122   :  { %v435_v34 = vpop.f32.mrf.mxu0  ;;  %v467_v35 = vpop.f32.mrf.mxu1 }
 0x123   :  { %501 = vst [vmem:[%s1164_s4 + $0x18] sm:$0xff] %v485_v32  ;;  %509 = vst [vmem:[%s1164_s4 + $0x58] sm:$0xff] %v493_v33  ;;  %v436_v36 = vadd.f32 %v435_v34, %v1094_v61  ;;  %v468_v37 = vadd.f32 %v467_v35, %v1094_v61 }
 0x124   :  { %v437_v38 = vpop.f32.mrf.mxu0  ;;  %v469_v8 = vpop.f32.mrf.mxu1 }
 0x125   :  { %v486_v39 = vmax.f32 %v436_v36, 0.0  ;;  %v494_v14 = vmax.f32 %v468_v37, 0.0 }
 0x126   :  { %v438_v40 = vpop.f32.mrf.mxu0  ;;  %v470_v41 = vpop.f32.mrf.mxu1 }
 0x127   :  { %502 = vst [vmem:[%s1164_s4 + $0x20] sm:$0xff] %v486_v39  ;;  %510 = vst [vmem:[%s1164_s4 + $0x60] sm:$0xff] %v494_v14  ;;  %v439_v42 = vadd.f32 %v438_v40, %v1094_v61  ;;  %v471_v43 = vadd.f32 %v470_v41, %v1094_v61 }
 0x128   :  { %v440_v44 = vpop.f32.mrf.mxu0  ;;  %v472_v20 = vpop.f32.mrf.mxu1 }
 0x129   :  { %v487_v45 = vmax.f32 %v439_v42, 0.0  ;;  %v495_v46 = vmax.f32 %v471_v43, 0.0 }
 0x12a   :  { %v443_v47 = vpop.f32.mrf.mxu0  ;;  %v475_v48 = vpop.f32.mrf.mxu1 }
 0x12b   :  { %503 = vst [vmem:[%s1164_s4 + $0x28] sm:$0xff] %v487_v45  ;;  %511 = vst [vmem:[%s1164_s4 + $0x68] sm:$0xff] %v495_v46  ;;  %v444_v0 = vadd.f32 %v443_v47, %v1094_v61  ;;  %v476_v49 = vadd.f32 %v475_v48, %v1094_v61 }
 0x12c   :  { %v445_v50 = vpop.f32.mrf.mxu0  ;;  %v477_v51 = vpop.f32.mrf.mxu1 }
 0x12d   :  { %v488_v52 = vmax.f32 %v444_v0, 0.0  ;;  %v496_v53 = vmax.f32 %v476_v49, 0.0 }
 0x12e   :  { %v446_v54 = vpop.f32.mrf.mxu0  ;;  %v478_v55 = vpop.f32.mrf.mxu1 }
 0x12f   :  { %504 = vst [vmem:[%s1164_s4 + $0x30] sm:$0xff] %v488_v52  ;;  %512 = vst [vmem:[%s1164_s4 + $0x70] sm:$0xff] %v496_v53  ;;  %v447_v56 = vadd.f32 %v446_v54, %v1094_v61  ;;  %v479_v57 = vadd.f32 %v478_v55, %v1094_v61 }
 0x130   :  { %v448_v58 = vpop.f32.mrf.mxu0  ;;  %v480_v59 = vpop.f32.mrf.mxu1 }
 0x131   :  { %v489_v60 = vmax.f32 %v447_v56, 0.0  ;;  %v497_v62 = vmax.f32 %v479_v57, 0.0 }
 0x133   :  { %505 = vst [vmem:[%s1164_s4 + $0x38] sm:$0xff] %v489_v60  ;;  %513 = vst [vmem:[%s1164_s4 + $0x78] sm:$0xff] %v497_v62 }
 0x134   :  { %518 = vsyncpa [#allocation3], 1 }

// kernel: mrf_unet_search_forward.7
= control target key start
LH: loop header
LB: loop body
LE: loop exit
PB: predicated region body
PF: predicated region fallthrough
CT: control target
= control target key end

     0   :  { %9 = vsyncpa [#allocation3], 0  ;;  %s1509_s0 = inlined_call_operand.vmem [shape: f32[3], index: 0, kind: input, shape index: {}]   ;;  %s1510_s1 = inlined_call_operand.vmem [shape: bf16[32,400], index: 1, kind: input, shape index: {}]   ;;  %s1511_s2 = inlined_call_operand.vmem [shape: f32[3,400,128], index: 2, kind: input, shape index: {}]   ;;  %s1512_s3 = inlined_call_operand.vmem [shape: f32[3,1,128], index: 3, kind: input, shape index: {}]   ;;  %s1513_s4 = inlined_call_operand.vmem [shape: f32[32,128], index: 4, kind: output, shape index: {}]  }
   0x1   :  { %s16_s17 = sshll.u32 %s1509_s0, 4  ;;  %s17_s17 = int_to_ptr.vmem [resolvable:$true] %s16_s17 }
   0x2   :  { %s800_s18 = scalar_lea.vmem %s17_s17, 16  ;;  %p805_p1 = scmp.lt.s32.totalorder %s17_s17, %s17_s17 }
   0x3   :  { %p801_p0 = scmp.ne.s32.totalorder %s17_s17, %s800_s18  ;;  %p806_p2 = scmp.lt.s32.totalorder %s800_s18, %s800_s18 }
   0x5   :  { %p807_p3 = por %p806_p2, %p805_p1 }
   0x7   :  { %p808_p4 = pnand %p807_p3, %p801_p0 }
   0x9   :  { %811 = shalt.err (!%p808_p4)
}
   0xa   :  { %s814_s19 = smov [#allocation2]  }
   0xb   :  { %19 = dma.vmem_to_smem %s17_s17, 16, %s814_s19, [#allocation3]  }
   0xc   :  { %812 = dma.done.wait [#allocation3], 16  }
   0xd   :  { %813 = vsyncadd [#allocation3], 4294967280 }
   0xe   :  { %29 = sfence }
   0xf   :  { %s31_s20 = sld [smem:[#allocation2]]  ;;  %v815_v0 = vmov 0   ;;  %v62_v1 = vld [vmem:[%s1511_s2 + $0xf0] sm:$0xff]  ;;  %v63_v2 = vld [vmem:[%s1511_s2 + $0xf8] sm:$0xff]  ;;  %v675_v3 = vld [vmem:[%s1511_s2 + $0x280] sm:$0xff]  ;;  %vm526_vm0 = vcmask 130048  }
  0x10   :  { %582 = vmatprep.subr.bf16.mxu1 %v815_v0  ;;  %s644_s21 = sld [smem:[#allocation2 + $0x1]]  ;;  %v78_v4 = vld [vmem:[%s1511_s2 + $0x170] sm:$0xff]  ;;  %v676_v5 = vld [vmem:[%s1511_s2 + $0x288] sm:$0xff]  ;;  %v79_v7 = vld [vmem:[%s1511_s2 + $0x178] sm:$0xff] }
  0x11   :  { %s695_s22 = sld [smem:[#allocation2 + $0x2]]  ;;  %v726_v6 = vld [vmem:[%s1511_s2 + $0x410] sm:$0xff]  ;;  %v727_v9 = vld [vmem:[%s1511_s2 + $0x418] sm:$0xff]  ;;  %v691_v10 = vld [vmem:[%s1511_s2 + $0x300] sm:$0xff] }
  0x12   :  { %v692_v11 = vld [vmem:[%s1511_s2 + $0x308] sm:$0xff]  ;;  %v742_v16 = vld [vmem:[%s1511_s2 + $0x490] sm:$0xff]  ;;  %v743_v17 = vld [vmem:[%s1511_s2 + $0x498] sm:$0xff] }
  0x13   :  { %v46_v22 = vld [vmem:[%s1511_s2 + $0x70] sm:$0xff]  ;;  %v47_v23 = vld [vmem:[%s1511_s2 + $0x78] sm:$0xff]  ;;  %v659_v28 = vld [vmem:[%s1511_s2 + $0x200] sm:$0xff] }
  0x14   :  { %v660_v29 = vld [vmem:[%s1511_s2 + $0x208] sm:$0xff]  ;;  %v710_v34 = vld [vmem:[%s1511_s2 + $0x390] sm:$0xff]  ;;  %v711_v35 = vld [vmem:[%s1511_s2 + $0x398] sm:$0xff] }
  0x15   :  { %v866_v8 = vstv %s31_s20  ;;  %v60_v40 = vld [vmem:[%s1511_s2 + $0xe0] sm:$0xff]  ;;  %v61_v45 = vld [vmem:[%s1511_s2 + $0xe8] sm:$0xff]  ;;  %v673_v46 = vld [vmem:[%s1511_s2 + $0x270] sm:$0xff] }
  0x16   :  { %v113_v12 = vmul.f32 %v866_v8, %v62_v1  ;;  %v114_v13 = vmul.f32 %v866_v8, %v63_v2  ;;  %v879_v14 = vstv %s644_s21  ;;  %v129_v15 = vmul.f32 %v866_v8, %v78_v4  ;;  %v674_v47 = vld [vmem:[%s1511_s2 + $0x278] sm:$0xff]  ;;  %v724_v52 = vld [vmem:[%s1511_s2 + $0x400] sm:$0xff]  ;;  %v725_v53 = vld [vmem:[%s1511_s2 + $0x408] sm:$0xff] }
  0x17   :  { %v216_v18 = vmul.f32 %v675_v3, %v879_v14  ;;  %v217_v19 = vmul.f32 %v676_v5, %v879_v14  ;;  %v890_v20 = vstv %s695_s22  ;;  %v130_v21 = vmul.f32 %v866_v8, %v79_v7  ;;  %v76_v58 = vld [vmem:[%s1511_s2 + $0x160] sm:$0xff]  ;;  %v77_v59 = vld [vmem:[%s1511_s2 + $0x168] sm:$0xff]  ;;  %v689_v1 = vld [vmem:[%s1511_s2 + $0x2f0] sm:$0xff] }
  0x18   :  { %v369_v24 = vmul.f32 %v726_v6, %v890_v20  ;;  %v370_v25 = vmul.f32 %v727_v9, %v890_v20  ;;  %v232_v26 = vmul.f32 %v691_v10, %v879_v14  ;;  %v233_v27 = vmul.f32 %v692_v11, %v879_v14  ;;  %v690_v2 = vld [vmem:[%s1511_s2 + $0x2f8] sm:$0xff]  ;;  %v740_v3 = vld [vmem:[%s1511_s2 + $0x480] sm:$0xff]  ;;  %v741_v9 = vld [vmem:[%s1511_s2 + $0x488] sm:$0xff] }
  0x19   :  { %v266_v30 = vadd.f32 %v216_v18, %v113_v12  ;;  %v267_v31 = vadd.f32 %v217_v19, %v114_v13  ;;  %v385_v32 = vmul.f32 %v742_v16, %v890_v20  ;;  %v386_v33 = vmul.f32 %v743_v17, %v890_v20  ;;  %v44_v10 = vld [vmem:[%s1511_s2 + $0x60] sm:$0xff]  ;;  %v45_v16 = vld [vmem:[%s1511_s2 + $0x68] sm:$0xff]  ;;  %v657_v17 = vld [vmem:[%s1511_s2 + $0x1f0] sm:$0xff] }
  0x1a   :  { %v282_v36 = vadd.f32 %v232_v26, %v129_v15  ;;  %v283_v37 = vadd.f32 %v233_v27, %v130_v21  ;;  %v97_v38 = vmul.f32 %v866_v8, %v46_v22  ;;  %v98_v39 = vmul.f32 %v866_v8, %v47_v23  ;;  %v658_v23 = vld [vmem:[%s1511_s2 + $0x1f8] sm:$0xff] }
  0x1b   :  { %v419_v41 = vadd.f32 %v369_v24, %v266_v30  ;;  %v420_v42 = vadd.f32 %v370_v25, %v267_v31  ;;  %v200_v43 = vmul.f32 %v659_v28, %v879_v14  ;;  %v201_v44 = vmul.f32 %v660_v29, %v879_v14  ;;  %v708_v24 = vld [vmem:[%s1511_s2 + $0x380] sm:$0xff]  ;;  %v709_v25 = vld [vmem:[%s1511_s2 + $0x388] sm:$0xff]  ;;  %v58_v30 = vld [vmem:[%s1511_s2 + $0xd0] sm:$0xff] }
  0x1c   :  { %v435_v48 = vadd.f32 %v385_v32, %v282_v36  ;;  %v436_v49 = vadd.f32 %v386_v33, %v283_v37  ;;  %v353_v50 = vmul.f32 %v710_v34, %v890_v20  ;;  %v354_v51 = vmul.f32 %v711_v35, %v890_v20  ;;  %v59_v35 = vld [vmem:[%s1511_s2 + $0xd8] sm:$0xff]  ;;  %v671_v36 = vld [vmem:[%s1511_s2 + $0x260] sm:$0xff]  ;;  %v672_v37 = vld [vmem:[%s1511_s2 + $0x268] sm:$0xff] }
  0x1d   :  { %v472_v54 = vpack.c.bf16 %v420_v42, %v419_v41  ;;  %v250_v55 = vadd.f32 %v200_v43, %v97_v38  ;;  %v251_v56 = vadd.f32 %v201_v44, %v98_v39  ;;  %v111_v57 = vmul.f32 %v866_v8, %v60_v40  ;;  %v722_v42 = vld [vmem:[%s1511_s2 + $0x3f0] sm:$0xff]  ;;  %v723_v43 = vld [vmem:[%s1511_s2 + $0x3f8] sm:$0xff] }
  0x1e   :  { %v480_v60 = vpack.c.bf16 %v436_v49, %v435_v48  ;;  %v112_v61 = vmul.f32 %v866_v8, %v61_v45  ;;  %v214_v62 = vmul.f32 %v673_v46, %v879_v14  ;;  %v215_v63 = vmul.f32 %v674_v47, %v879_v14  ;;  %v74_v48 = vld [vmem:[%s1511_s2 + $0x150] sm:$0xff]  ;;  %v75_v49 = vld [vmem:[%s1511_s2 + $0x158] sm:$0xff] }
  0x1f   :  { %758 = vmatprep.subr.bf16.mxu0 %v472_v54  ;;  %v403_v4 = vadd.f32 %v353_v50, %v250_v55  ;;  %v404_v5 = vadd.f32 %v354_v51, %v251_v56  ;;  %v367_v6 = vmul.f32 %v724_v52, %v890_v20  ;;  %v368_v7 = vmul.f32 %v725_v53, %v890_v20  ;;  %v687_v54 = vld [vmem:[%s1511_s2 + $0x2e0] sm:$0xff]  ;;  %v688_v55 = vld [vmem:[%s1511_s2 + $0x2e8] sm:$0xff]  ;;  %v738_v56 = vld [vmem:[%s1511_s2 + $0x470] sm:$0xff] }
  0x20   :  { %583 = vmatpush1.bf16.msra.mxu1 %v480_v60  ;;  %v264_v11 = vadd.f32 %v214_v62, %v111_v57  ;;  %v265_v12 = vadd.f32 %v215_v63, %v112_v61  ;;  %v127_v13 = vmul.f32 %v866_v8, %v76_v58  ;;  %v128_v15 = vmul.f32 %v866_v8, %v77_v59  ;;  %v739_v61 = vld [vmem:[%s1511_s2 + $0x478] sm:$0xff] }
  0x21   :  { %v464_v18 = vpack.c.bf16 %v404_v5, %v403_v4  ;;  %584 = vmatprep.subr.bf16.mxu1 %v815_v0  ;;  %v230_v19 = vmul.f32 %v689_v1, %v879_v14  ;;  %v231_v21 = vmul.f32 %v690_v2, %v879_v14  ;;  %v383_v22 = vmul.f32 %v740_v3, %v890_v20  ;;  %v42_v3 = vld [vmem:[%s1511_s2 + $0x50] sm:$0xff]  ;;  %v43_v4 = vld [vmem:[%s1511_s2 + $0x58] sm:$0xff] }
  0x22   :  { %v417_v26 = vadd.f32 %v367_v6, %v264_v11  ;;  %v418_v27 = vadd.f32 %v368_v7, %v265_v12  ;;  %v384_v28 = vmul.f32 %v741_v9, %v890_v20  ;;  %v95_v29 = vmul.f32 %v866_v8, %v44_v10  ;;  %v655_v10 = vld [vmem:[%s1511_s2 + $0x1e0] sm:$0xff]  ;;  %v656_v11 = vld [vmem:[%s1511_s2 + $0x1e8] sm:$0xff]  ;;  %v706_v12 = vld [vmem:[%s1511_s2 + $0x370] sm:$0xff] }
  0x23   :  { %759 = vmatpush3.bf16.msra.mxu0 %v464_v18  ;;  %v280_v31 = vadd.f32 %v230_v19, %v127_v13  ;;  %v281_v32 = vadd.f32 %v231_v21, %v128_v15  ;;  %v96_v33 = vmul.f32 %v866_v8, %v45_v16  ;;  %v198_v34 = vmul.f32 %v657_v17, %v879_v14  ;;  %v707_v18 = vld [vmem:[%s1511_s2 + $0x378] sm:$0xff]  ;;  %v56_v19 = vld [vmem:[%s1511_s2 + $0xc0] sm:$0xff] }
  0x24   :  { %v471_v38 = vpack.c.bf16 %v418_v27, %v417_v26  ;;  %v199_v39 = vmul.f32 %v658_v23, %v879_v14  ;;  %v351_v40 = vmul.f32 %v708_v24, %v890_v20  ;;  %v352_v41 = vmul.f32 %v709_v25, %v890_v20  ;;  %v57_v25 = vld [vmem:[%s1511_s2 + $0xc8] sm:$0xff]  ;;  %v669_v26 = vld [vmem:[%s1511_s2 + $0x250] sm:$0xff] }
  0x25   :  { %v433_v44 = vadd.f32 %v383_v22, %v280_v31  ;;  %v434_v45 = vadd.f32 %v384_v28, %v281_v32  ;;  %v248_v46 = vadd.f32 %v198_v34, %v95_v29  ;;  %v109_v47 = vmul.f32 %v866_v8, %v58_v30  ;;  %v670_v31 = vld [vmem:[%s1511_s2 + $0x258] sm:$0xff]  ;;  %v720_v32 = vld [vmem:[%s1511_s2 + $0x3e0] sm:$0xff] }
  0x26   :  { %760 = vmatprep.subr.bf16.mxu0 %v471_v38  ;;  %v249_v50 = vadd.f32 %v199_v39, %v96_v33  ;;  %v110_v51 = vmul.f32 %v866_v8, %v59_v35  ;;  %v212_v52 = vmul.f32 %v671_v36, %v879_v14  ;;  %v213_v53 = vmul.f32 %v672_v37, %v879_v14  ;;  %v721_v33 = vld [vmem:[%s1511_s2 + $0x3e8] sm:$0xff]  ;;  %v72_v38 = vld [vmem:[%s1511_s2 + $0x140] sm:$0xff] }
  0x27   :  { %v479_v57 = vpack.c.bf16 %v434_v45, %v433_v44  ;;  %v401_v58 = vadd.f32 %v351_v40, %v248_v46  ;;  %v365_v59 = vmul.f32 %v722_v42, %v890_v20  ;;  %v366_v60 = vmul.f32 %v723_v43, %v890_v20  ;;  %v73_v43 = vld [vmem:[%s1511_s2 + $0x148] sm:$0xff]  ;;  %v685_v44 = vld [vmem:[%s1511_s2 + $0x2d0] sm:$0xff]  ;;  %v686_v45 = vld [vmem:[%s1511_s2 + $0x2d8] sm:$0xff] }
  0x28   :  { %v402_v62 = vadd.f32 %v352_v41, %v249_v50  ;;  %v262_v63 = vadd.f32 %v212_v52, %v109_v47  ;;  %v263_v1 = vadd.f32 %v213_v53, %v110_v51  ;;  %v125_v2 = vmul.f32 %v866_v8, %v74_v48  ;;  %v736_v50 = vld [vmem:[%s1511_s2 + $0x460] sm:$0xff]  ;;  %v737_v51 = vld [vmem:[%s1511_s2 + $0x468] sm:$0xff] }
  0x29   :  { %585 = vmatpush1.bf16.msra.mxu1 %v479_v57  ;;  %v126_v5 = vmul.f32 %v866_v8, %v75_v49  ;;  %v228_v6 = vmul.f32 %v687_v54, %v879_v14  ;;  %v229_v7 = vmul.f32 %v688_v55, %v879_v14  ;;  %v381_v9 = vmul.f32 %v738_v56, %v890_v20  ;;  %v40_v56 = vld [vmem:[%s1511_s2 + $0x40] sm:$0xff]  ;;  %v41_v57 = vld [vmem:[%s1511_s2 + $0x48] sm:$0xff] }
  0x2a   :  { %v463_v13 = vpack.c.bf16 %v402_v62, %v401_v58  ;;  %586 = vmatprep.subr.bf16.mxu1 %v815_v0  ;;  %v415_v15 = vadd.f32 %v365_v59, %v262_v63  ;;  %v416_v16 = vadd.f32 %v366_v60, %v263_v1  ;;  %v382_v17 = vmul.f32 %v739_v61, %v890_v20  ;;  %v653_v62 = vld [vmem:[%s1511_s2 + $0x1d0] sm:$0xff]  ;;  %v654_v63 = vld [vmem:[%s1511_s2 + $0x1d8] sm:$0xff]  ;;  %v704_v1 = vld [vmem:[%s1511_s2 + $0x360] sm:$0xff] }
  0x2b   :  { %v278_v21 = vadd.f32 %v228_v6, %v125_v2  ;;  %v279_v22 = vadd.f32 %v229_v7, %v126_v5  ;;  %v93_v23 = vmul.f32 %v866_v8, %v42_v3  ;;  %v94_v24 = vmul.f32 %v866_v8, %v43_v4  ;;  %v705_v6 = vld [vmem:[%s1511_s2 + $0x368] sm:$0xff] }
  0x2c   :  { %761 = vmatpush3.bf16.msra.mxu0 %v463_v13  ;;  %v470_v27 = vpack.c.bf16 %v416_v16, %v415_v15  ;;  %v196_v28 = vmul.f32 %v655_v10, %v879_v14  ;;  %v197_v29 = vmul.f32 %v656_v11, %v879_v14  ;;  %v349_v30 = vmul.f32 %v706_v12, %v890_v20  ;;  %v54_v12 = vld [vmem:[%s1511_s2 + $0xb0] sm:$0xff]  ;;  %v55_v13 = vld [vmem:[%s1511_s2 + $0xb8] sm:$0xff] }
  0x2d   :  { %v431_v34 = vadd.f32 %v381_v9, %v278_v21  ;;  %v432_v35 = vadd.f32 %v382_v17, %v279_v22  ;;  %v350_v36 = vmul.f32 %v707_v18, %v890_v20  ;;  %v107_v37 = vmul.f32 %v866_v8, %v56_v19  ;;  %v667_v19 = vld [vmem:[%s1511_s2 + $0x240] sm:$0xff]  ;;  %v668_v21 = vld [vmem:[%s1511_s2 + $0x248] sm:$0xff]  ;;  %v718_v22 = vld [vmem:[%s1511_s2 + $0x3d0] sm:$0xff] }
  0x2e   :  { %762 = vmatprep.subr.bf16.mxu0 %v470_v27  ;;  %v246_v39 = vadd.f32 %v196_v28, %v93_v23  ;;  %v247_v40 = vadd.f32 %v197_v29, %v94_v24  ;;  %v108_v41 = vmul.f32 %v866_v8, %v57_v25  ;;  %v210_v42 = vmul.f32 %v669_v26, %v879_v14  ;;  %v719_v27 = vld [vmem:[%s1511_s2 + $0x3d8] sm:$0xff]  ;;  %v70_v28 = vld [vmem:[%s1511_s2 + $0x130] sm:$0xff] }
  0x2f   :  { %v478_v46 = vpack.c.bf16 %v432_v35, %v431_v34  ;;  %v211_v47 = vmul.f32 %v670_v31, %v879_v14  ;;  %v363_v48 = vmul.f32 %v720_v32, %v890_v20  ;;  %v364_v49 = vmul.f32 %v721_v33, %v890_v20  ;;  %v71_v33 = vld [vmem:[%s1511_s2 + $0x138] sm:$0xff]  ;;  %v683_v34 = vld [vmem:[%s1511_s2 + $0x2c0] sm:$0xff] }
  0x30   :  { %v399_v52 = vadd.f32 %v349_v30, %v246_v39  ;;  %v400_v53 = vadd.f32 %v350_v36, %v247_v40  ;;  %v260_v54 = vadd.f32 %v210_v42, %v107_v37  ;;  %v123_v55 = vmul.f32 %v866_v8, %v72_v38  ;;  %v684_v39 = vld [vmem:[%s1511_s2 + $0x2c8] sm:$0xff]  ;;  %v734_v40 = vld [vmem:[%s1511_s2 + $0x450] sm:$0xff] }
  0x31   :  { %587 = vmatpush1.bf16.msra.mxu1 %v478_v46  ;;  %v261_v58 = vadd.f32 %v211_v47, %v108_v41  ;;  %v124_v59 = vmul.f32 %v866_v8, %v73_v43  ;;  %v226_v60 = vmul.f32 %v685_v44, %v879_v14  ;;  %v227_v61 = vmul.f32 %v686_v45, %v879_v14  ;;  %v735_v41 = vld [vmem:[%s1511_s2 + $0x458] sm:$0xff]  ;;  %v38_v46 = vld [vmem:[%s1511_s2 + $0x30] sm:$0xff] }
  0x32   :  { %v462_v2 = vpack.c.bf16 %v400_v53, %v399_v52  ;;  %588 = vmatprep.subr.bf16.mxu1 %v815_v0  ;;  %v413_v3 = vadd.f32 %v363_v48, %v260_v54  ;;  %v379_v4 = vmul.f32 %v736_v50, %v890_v20  ;;  %v380_v5 = vmul.f32 %v737_v51, %v890_v20  ;;  %v39_v51 = vld [vmem:[%s1511_s2 + $0x38] sm:$0xff]  ;;  %v651_v52 = vld [vmem:[%s1511_s2 + $0x1c0] sm:$0xff]  ;;  %v652_v53 = vld [vmem:[%s1511_s2 + $0x1c8] sm:$0xff] }
  0x33   :  { %v414_v7 = vadd.f32 %v364_v49, %v261_v58  ;;  %v276_v9 = vadd.f32 %v226_v60, %v123_v55  ;;  %v277_v10 = vadd.f32 %v227_v61, %v124_v59  ;;  %v91_v11 = vmul.f32 %v866_v8, %v40_v56  ;;  %v702_v58 = vld [vmem:[%s1511_s2 + $0x350] sm:$0xff]  ;;  %v703_v59 = vld [vmem:[%s1511_s2 + $0x358] sm:$0xff]  ;;  %v52_v60 = vld [vmem:[%s1511_s2 + $0xa0] sm:$0xff] }
  0x34   :  { %763 = vmatpush3.bf16.msra.mxu0 %v462_v2  ;;  %v92_v15 = vmul.f32 %v866_v8, %v41_v57  ;;  %v194_v16 = vmul.f32 %v653_v62, %v879_v14  ;;  %v195_v17 = vmul.f32 %v654_v63, %v879_v14  ;;  %v347_v18 = vmul.f32 %v704_v1, %v890_v20  ;;  %v53_v2 = vld [vmem:[%s1511_s2 + $0xa8] sm:$0xff] }
  0x35   :  { %v469_v23 = vpack.c.bf16 %v414_v7, %v413_v3  ;;  %v429_v24 = vadd.f32 %v379_v4, %v276_v9  ;;  %v430_v25 = vadd.f32 %v380_v5, %v277_v10  ;;  %v348_v26 = vmul.f32 %v705_v6, %v890_v20  ;;  %v665_v3 = vld [vmem:[%s1511_s2 + $0x230] sm:$0xff]  ;;  %v666_v4 = vld [vmem:[%s1511_s2 + $0x238] sm:$0xff]  ;;  %v716_v10 = vld [vmem:[%s1511_s2 + $0x3c0] sm:$0xff] }
  0x36   :  { %v244_v29 = vadd.f32 %v194_v16, %v91_v11  ;;  %v245_v30 = vadd.f32 %v195_v17, %v92_v15  ;;  %v105_v31 = vmul.f32 %v866_v8, %v54_v12  ;;  %v106_v32 = vmul.f32 %v866_v8, %v55_v13  ;;  %v717_v11 = vld [vmem:[%s1511_s2 + $0x3c8] sm:$0xff]  ;;  %v68_v12 = vld [vmem:[%s1511_s2 + $0x120] sm:$0xff] }
  0x37   :  { %764 = vmatprep.subr.bf16.mxu0 %v469_v23  ;;  %v477_v35 = vpack.c.bf16 %v430_v25, %v429_v24  ;;  %v208_v36 = vmul.f32 %v667_v19, %v879_v14  ;;  %v209_v37 = vmul.f32 %v668_v21, %v879_v14  ;;  %v361_v38 = vmul.f32 %v718_v22, %v890_v20  ;;  %v681_v19 = vld [vmem:[%s1511_s2 + $0x2b0] sm:$0xff]  ;;  %v682_v21 = vld [vmem:[%s1511_s2 + $0x2b8] sm:$0xff] }
  0x38   :  { %v397_v42 = vadd.f32 %v347_v18, %v244_v29  ;;  %v398_v43 = vadd.f32 %v348_v26, %v245_v30  ;;  %v362_v44 = vmul.f32 %v719_v27, %v890_v20  ;;  %v121_v45 = vmul.f32 %v866_v8, %v70_v28  ;;  %v69_v18 = vld [vmem:[%s1511_s2 + $0x128] sm:$0xff]  ;;  %v732_v26 = vld [vmem:[%s1511_s2 + $0x440] sm:$0xff] }
  0x39   :  { %589 = vmatpush1.bf16.msra.mxu1 %v477_v35  ;;  %v258_v47 = vadd.f32 %v208_v36, %v105_v31  ;;  %v259_v48 = vadd.f32 %v209_v37, %v106_v32  ;;  %v122_v49 = vmul.f32 %v866_v8, %v71_v33  ;;  %v224_v50 = vmul.f32 %v683_v34, %v879_v14  ;;  %v733_v27 = vld [vmem:[%s1511_s2 + $0x448] sm:$0xff]  ;;  %v36_v28 = vld [vmem:[%s1511_s2 + $0x20] sm:$0xff] }
  0x3a   :  { %v461_v54 = vpack.c.bf16 %v398_v43, %v397_v42  ;;  %590 = vmatprep.subr.bf16.mxu1 %v815_v0  ;;  %v225_v55 = vmul.f32 %v684_v39, %v879_v14  ;;  %v377_v56 = vmul.f32 %v734_v40, %v890_v20  ;;  %v378_v57 = vmul.f32 %v735_v41, %v890_v20  ;;  %v37_v33 = vld [vmem:[%s1511_s2 + $0x28] sm:$0xff]  ;;  %v650_v39 = vld [vmem:[%s1511_s2 + $0x1b8] sm:$0xff]  ;;  %v700_v40 = vld [vmem:[%s1511_s2 + $0x340] sm:$0xff] }
  0x3b   :  { %v411_v61 = vadd.f32 %v361_v38, %v258_v47  ;;  %v412_v62 = vadd.f32 %v362_v44, %v259_v48  ;;  %v274_v63 = vadd.f32 %v224_v50, %v121_v45  ;;  %v89_v1 = vmul.f32 %v866_v8, %v38_v46  ;;  %v649_v38 = vld [vmem:[%s1511_s2 + $0x1b0] sm:$0xff]  ;;  %v701_v45 = vld [vmem:[%s1511_s2 + $0x348] sm:$0xff] }
  0x3c   :  { %765 = vmatpush3.bf16.msra.mxu0 %v461_v54  ;;  %v275_v5 = vadd.f32 %v225_v55, %v122_v49  ;;  %v90_v6 = vmul.f32 %v866_v8, %v39_v51  ;;  %v192_v7 = vmul.f32 %v651_v52, %v879_v14  ;;  %v193_v9 = vmul.f32 %v652_v53, %v879_v14  ;;  %v50_v46 = vld [vmem:[%s1511_s2 + $0x90] sm:$0xff]  ;;  %v51_v52 = vld [vmem:[%s1511_s2 + $0x98] sm:$0xff] }
  0x3d   :  { %v468_v13 = vpack.c.bf16 %v412_v62, %v411_v61  ;;  %v427_v15 = vadd.f32 %v377_v56, %v274_v63  ;;  %v345_v16 = vmul.f32 %v702_v58, %v890_v20  ;;  %v346_v17 = vmul.f32 %v703_v59, %v890_v20  ;;  %v790_v47 = vld [vmem:[%s1510_s1 + $0x4] ss:$16 sps:$4 sm:$0xff]   ;;  %v793_v58 = vld [vmem:[%s1510_s1 + $0xc] ss:$16 sps:$4 sm:$0xff]  }
  0x3e   :  { %v428_v22 = vadd.f32 %v378_v57, %v275_v5  ;;  %v242_v23 = vadd.f32 %v192_v7, %v89_v1  ;;  %v243_v24 = vadd.f32 %v193_v9, %v90_v6  ;;  %v103_v25 = vmul.f32 %v866_v8, %v52_v60  ;;  %v663_v57 = vld [vmem:[%s1511_s2 + $0x220] sm:$0xff]  ;;  %v664_v63 = vld [vmem:[%s1511_s2 + $0x228] sm:$0xff]  ;;  %v714_v1 = vld [vmem:[%s1511_s2 + $0x3b0] sm:$0xff]  ;;  %565 = vmatprep.mubr.bf16.mxu0 %v790_v47 }
  0x3f   :  { %766 = vmatprep.subr.bf16.mxu0 %v468_v13  ;;  %v104_v29 = vmul.f32 %v866_v8, %v53_v2  ;;  %v206_v30 = vmul.f32 %v665_v3, %v879_v14  ;;  %v207_v31 = vmul.f32 %v666_v4, %v879_v14  ;;  %v359_v32 = vmul.f32 %v716_v10, %v890_v20  ;;  %v715_v6 = vld [vmem:[%s1511_s2 + $0x3b8] sm:$0xff] }
  0x40   :  { %v476_v34 = vpack.c.bf16 %v428_v22, %v427_v15  ;;  %v395_v35 = vadd.f32 %v345_v16, %v242_v23  ;;  %v396_v36 = vadd.f32 %v346_v17, %v243_v24  ;;  %v360_v37 = vmul.f32 %v717_v11, %v890_v20  ;;  %v67_v13 = vld [vmem:[%s1511_s2 + $0x118] sm:$0xff]  ;;  %756 = vmatprep.mubr.msk.bf16.mxu1 %vm526_vm0, %v793_v58  ;;  %v730_v22 = vld [vmem:[%s1511_s2 + $0x430] sm:$0xff]  ;;  %v712_v58 = vld [vmem:[%s1511_s2 + $0x3a0] sm:$0xff] }
  0x41   :  { %v256_v41 = vadd.f32 %v206_v30, %v103_v25  ;;  %v257_v42 = vadd.f32 %v207_v31, %v104_v29  ;;  %v119_v43 = vmul.f32 %v866_v8, %v68_v12  ;;  %v120_v44 = vmul.f32 %v866_v8, %v69_v18  ;;  %v66_v12 = vld [vmem:[%s1511_s2 + $0x110] sm:$0xff] }
  0x42   :  { %591 = vmatpush1.bf16.msra.mxu1 %v476_v34  ;;  %v460_v48 = vpack.c.bf16 %v396_v36, %v395_v35  ;;  %v222_v49 = vmul.f32 %v681_v19, %v879_v14  ;;  %v223_v50 = vmul.f32 %v682_v21, %v879_v14  ;;  %v375_v51 = vmul.f32 %v732_v26, %v890_v20  ;;  %v679_v19 = vld [vmem:[%s1511_s2 + $0x2a0] sm:$0xff]  ;;  %v680_v21 = vld [vmem:[%s1511_s2 + $0x2a8] sm:$0xff] }
  0x43   :  { %592 = vmatprep.subr.bf16.mxu1 %v815_v0  ;;  %v409_v53 = vadd.f32 %v359_v32, %v256_v41  ;;  %v410_v54 = vadd.f32 %v360_v37, %v257_v42  ;;  %v376_v55 = vmul.f32 %v733_v27, %v890_v20  ;;  %v87_v56 = vmul.f32 %v866_v8, %v36_v28  ;;  %v731_v27 = vld [vmem:[%s1511_s2 + $0x438] sm:$0xff]  ;;  %v34_v32 = vld [vmem:[%s1511_s2 + $0x10] sm:$0xff] }
  0x44   :  { %767 = vmatpush3.bf16.msra.mxu0 %v460_v48  ;;  %v272_v59 = vadd.f32 %v222_v49, %v119_v43  ;;  %v273_v60 = vadd.f32 %v223_v50, %v120_v44  ;;  %v88_v61 = vmul.f32 %v866_v8, %v37_v33  ;;  %v190_v62 = vmul.f32 %v649_v38, %v879_v14  ;;  %v35_v33 = vld [vmem:[%s1511_s2 + $0x18] sm:$0xff]  ;;  %v647_v38 = vld [vmem:[%s1511_s2 + $0x1a0] sm:$0xff] }
  0x45   :  { %v467_v2 = vpack.c.bf16 %v410_v54, %v409_v53  ;;  %v191_v3 = vmul.f32 %v650_v39, %v879_v14  ;;  %v343_v4 = vmul.f32 %v700_v40, %v890_v20  ;;  %v344_v5 = vmul.f32 %v701_v45, %v890_v20  ;;  %v648_v39 = vld [vmem:[%s1511_s2 + $0x1a8] sm:$0xff]  ;;  %v698_v40 = vld [vmem:[%s1511_s2 + $0x330] sm:$0xff]  ;;  %v699_v45 = vld [vmem:[%s1511_s2 + $0x338] sm:$0xff] }
  0x46   :  { %v425_v7 = vadd.f32 %v375_v51, %v272_v59  ;;  %v426_v9 = vadd.f32 %v376_v55, %v273_v60  ;;  %v240_v10 = vadd.f32 %v190_v62, %v87_v56  ;;  %v101_v11 = vmul.f32 %v866_v8, %v50_v46  ;;  %v48_v46 = vld [vmem:[%s1511_s2 + $0x80] sm:$0xff]  ;;  %v49_v51 = vld [vmem:[%s1511_s2 + $0x88] sm:$0xff] }
  0x47   :  { %768 = vmatprep.subr.bf16.mxu0 %v467_v2  ;;  %v241_v15 = vadd.f32 %v191_v3, %v88_v61  ;;  %v102_v16 = vmul.f32 %v866_v8, %v51_v52  ;;  %v204_v17 = vmul.f32 %v663_v57, %v879_v14  ;;  %v205_v18 = vmul.f32 %v664_v63, %v879_v14  ;;  %v661_v52 = vld [vmem:[%s1511_s2 + $0x210] sm:$0xff]  ;;  %v662_v57 = vld [vmem:[%s1511_s2 + $0x218] sm:$0xff]  ;;  %v713_v59 = vld [vmem:[%s1511_s2 + $0x3a8] sm:$0xff] }
  0x48   :  { %v475_v23 = vpack.c.bf16 %v426_v9, %v425_v7  ;;  %v393_v24 = vadd.f32 %v343_v4, %v240_v10  ;;  %v357_v25 = vmul.f32 %v714_v1, %v890_v20  ;;  %v358_v26 = vmul.f32 %v715_v6, %v890_v20  ;;  %v64_v1 = vld [vmem:[%s1511_s2 + $0x100] sm:$0xff]  ;;  %v65_v6 = vld [vmem:[%s1511_s2 + $0x108] sm:$0xff]  ;;  %v677_v7 = vld [vmem:[%s1511_s2 + $0x290] sm:$0xff] }
  0x49   :  { %v394_v28 = vadd.f32 %v344_v5, %v241_v15  ;;  %v254_v29 = vadd.f32 %v204_v17, %v101_v11  ;;  %v255_v30 = vadd.f32 %v205_v18, %v102_v16  ;;  %v117_v31 = vmul.f32 %v866_v8, %v66_v12  ;;  %v678_v9 = vld [vmem:[%s1511_s2 + $0x298] sm:$0xff]  ;;  %v728_v15 = vld [vmem:[%s1511_s2 + $0x420] sm:$0xff]  ;;  %v729_v16 = vld [vmem:[%s1511_s2 + $0x428] sm:$0xff] }
  0x4a   :  { %593 = vmatpush1.bf16.msra.mxu1 %v475_v23  ;;  %v118_v34 = vmul.f32 %v866_v8, %v67_v13  ;;  %v220_v35 = vmul.f32 %v679_v19, %v879_v14  ;;  %v221_v36 = vmul.f32 %v680_v21, %v879_v14  ;;  %v373_v37 = vmul.f32 %v730_v22, %v890_v20  ;;  %v32_v22 = vld [vmem:[%s1511_s2] sm:$0xff]  ;;  %v33_v23 = vld [vmem:[%s1511_s2 + $0x8] sm:$0xff] }
  0x4b   :  { %v459_v41 = vpack.c.bf16 %v394_v28, %v393_v24  ;;  %594 = vmatprep.subr.bf16.mxu1 %v815_v0  ;;  %v407_v42 = vadd.f32 %v357_v25, %v254_v29  ;;  %v408_v43 = vadd.f32 %v358_v26, %v255_v30  ;;  %v374_v44 = vmul.f32 %v731_v27, %v890_v20  ;;  %v645_v28 = vld [vmem:[%s1511_s2 + $0x190] sm:$0xff]  ;;  %v646_v29 = vld [vmem:[%s1511_s2 + $0x198] sm:$0xff]  ;;  %v696_v30 = vld [vmem:[%s1511_s2 + $0x320] sm:$0xff] }
  0x4c   :  { %v270_v47 = vadd.f32 %v220_v35, %v117_v31  ;;  %v271_v48 = vadd.f32 %v221_v36, %v118_v34  ;;  %v85_v49 = vmul.f32 %v866_v8, %v34_v32  ;;  %v86_v50 = vmul.f32 %v866_v8, %v35_v33  ;;  %v697_v35 = vld [vmem:[%s1511_s2 + $0x328] sm:$0xff] }
  0x4d   :  { %769 = vmatpush3.bf16.msra.mxu0 %v459_v41  ;;  %v466_v53 = vpack.c.bf16 %v408_v43, %v407_v42  ;;  %v188_v54 = vmul.f32 %v647_v38, %v879_v14  ;;  %v189_v55 = vmul.f32 %v648_v39, %v879_v14  ;;  %v341_v56 = vmul.f32 %v698_v40, %v890_v20  ;;  %v80_v40 = vld [vmem:[%s1511_s2 + $0x180] sm:$0xff]  ;;  %v81_v41 = vld [vmem:[%s1511_s2 + $0x188] sm:$0xff] }
  0x4e   :  { %v423_v60 = vadd.f32 %v373_v37, %v270_v47  ;;  %v424_v61 = vadd.f32 %v374_v44, %v271_v48  ;;  %v342_v62 = vmul.f32 %v699_v45, %v890_v20  ;;  %v99_v63 = vmul.f32 %v866_v8, %v48_v46  ;;  %v693_v46 = vld [vmem:[%s1511_s2 + $0x310] sm:$0xff]  ;;  %v694_v47 = vld [vmem:[%s1511_s2 + $0x318] sm:$0xff]  ;;  %v744_v48 = vld [vmem:[%s1511_s2 + $0x4a0] sm:$0xff] }
  0x4f   :  { %770 = vmatprep.subr.bf16.mxu0 %v466_v53  ;;  %v238_v2 = vadd.f32 %v188_v54, %v85_v49  ;;  %v239_v3 = vadd.f32 %v189_v55, %v86_v50  ;;  %v100_v4 = vmul.f32 %v866_v8, %v49_v51  ;;  %v202_v5 = vmul.f32 %v661_v52, %v879_v14  ;;  %v745_v53 = vld [vmem:[%s1511_s2 + $0x4a8] sm:$0xff] }
  0x50   :  { %v474_v10 = vpack.c.bf16 %v424_v61, %v423_v60  ;;  %v203_v11 = vmul.f32 %v662_v57, %v879_v14  ;;  %v355_v12 = vmul.f32 %v712_v58, %v890_v20  ;;  %v356_v13 = vmul.f32 %v713_v59, %v890_v20 }
  0x51   :  { %v391_v17 = vadd.f32 %v341_v56, %v238_v2  ;;  %v392_v18 = vadd.f32 %v342_v62, %v239_v3  ;;  %v252_v19 = vadd.f32 %v202_v5, %v99_v63  ;;  %v115_v21 = vmul.f32 %v866_v8, %v64_v1  ;;  %v788_v5 = vld [vmem:[%s1510_s1] ss:$16 sps:$4 sm:$0xff]  }
  0x52   :  { %595 = vmatpush1.bf16.msra.mxu1 %v474_v10  ;;  %v253_v24 = vadd.f32 %v203_v11, %v100_v4  ;;  %v116_v25 = vmul.f32 %v866_v8, %v65_v6  ;;  %v218_v26 = vmul.f32 %v677_v7, %v879_v14  ;;  %v219_v27 = vmul.f32 %v678_v9, %v879_v14  ;;  %v794_v9 = vld [vmem:[%s1510_s1 + $0x24] ss:$16 sps:$4 sm:$0xff]   ;;  %v791_v11 = vld [vmem:[%s1510_s1 + $0x8] ss:$16 sps:$4 sm:$0xff]  }
  0x53   :  { %v458_v31 = vpack.c.bf16 %v392_v18, %v391_v17  ;;  %596 = vmatprep.subr.bf16.mxu1 %v815_v0  ;;  %v405_v32 = vadd.f32 %v355_v12, %v252_v19  ;;  %v371_v33 = vmul.f32 %v728_v15, %v890_v20  ;;  %v372_v34 = vmul.f32 %v729_v16, %v890_v20  ;;  %v796_v12 = vld [vmem:[%s1510_s1 + $0x20] ss:$16 sps:$4 sm:$0xff]  }
  0x54   :  { %v406_v36 = vadd.f32 %v356_v13, %v253_v24  ;;  %v268_v37 = vadd.f32 %v218_v26, %v115_v21  ;;  %v269_v38 = vadd.f32 %v219_v27, %v116_v25  ;;  %v83_v39 = vmul.f32 %v866_v8, %v32_v22  ;;  %v799_v13 = vld [vmem:[%s1510_s1 + $0x28] ss:$16 sps:$4 sm:$0xff]   ;;  %v439_v15 = vld [vmem:[%s1512_s3] sm:$0x1]  ;;  %v746_v16 = vld [vmem:[%s1512_s3 + $0x1] sm:$0x1] }
  0x55   :  { %771 = vmatpush3.bf16.msra.mxu0 %v458_v31  ;;  %v84_v42 = vmul.f32 %v866_v8, %v33_v23  ;;  %v186_v43 = vmul.f32 %v645_v28, %v879_v14  ;;  %v187_v44 = vmul.f32 %v646_v29, %v879_v14  ;;  %v339_v45 = vmul.f32 %v696_v30, %v890_v20  ;;  %v747_v21 = vld [vmem:[%s1512_s3 + $0x2] sm:$0x1] }
  0x56   :  { %v465_v49 = vpack.c.bf16 %v406_v36, %v405_v32  ;;  %v421_v50 = vadd.f32 %v371_v33, %v268_v37  ;;  %v422_v51 = vadd.f32 %v372_v34, %v269_v38  ;;  %v340_v52 = vmul.f32 %v697_v35, %v890_v20 }
  0x57   :  { %v236_v54 = vadd.f32 %v186_v43, %v83_v39  ;;  %v237_v55 = vadd.f32 %v187_v44, %v84_v42  ;;  %v131_v56 = vmul.f32 %v866_v8, %v80_v40  ;;  %v132_v57 = vmul.f32 %v866_v8, %v81_v41 }
  0x58   :  { %772 = vmatprep.subr.bf16.mxu0 %v465_v49  ;;  %v473_v58 = vpack.c.bf16 %v422_v51, %v421_v50  ;;  %v234_v59 = vmul.f32 %v693_v46, %v879_v14  ;;  %v235_v60 = vmul.f32 %v694_v47, %v879_v14  ;;  %v387_v61 = vmul.f32 %v744_v48, %v890_v20 }
  0x59   :  { %v389_v62 = vadd.f32 %v339_v45, %v236_v54  ;;  %v390_v63 = vadd.f32 %v340_v52, %v237_v55  ;;  %v388_v1 = vmul.f32 %v745_v53, %v890_v20  ;;  %v440_v17 = vmul.f32 %v439_v15, %v866_v8 }
  0x5a   :  { %597 = vmatpush1.bf16.msra.mxu1 %v473_v58  ;;  %v284_v2 = vadd.f32 %v234_v59, %v131_v56  ;;  %v285_v3 = vadd.f32 %v235_v60, %v132_v57  ;;  %v443_v18 = vmul.f32 %v746_v16, %v879_v14  ;;  %v483_v19 = vlaneseq }
  0x5b   :  { %v457_v4 = vpack.c.bf16 %v390_v63, %v389_v62  ;;  %612 = vmatprep.subr.bf16.mxu1 %v815_v0  ;;  %v797_v0 = vld [vmem:[%s1510_s1 + $0x2c] ss:$16 sps:$4 sm:$0xff]   ;;  %v447_v23 = vmul.f32 %v747_v21, %v890_v20 }
  0x5c   :  { %v437_v6 = vadd.f32 %v387_v61, %v284_v2  ;;  %v438_v7 = vadd.f32 %v388_v1, %v285_v3  ;;  %v444_v22 = vadd.f32 %v443_v18, %v440_v17  ;;  %v484_v24 = vshrl.u32 %v483_v19, 7 }
  0x5d   :  { %773 = vmatpush3.bf16.msra.mxu0 %v457_v4 }
  0x5e   :  { %v481_v10 = vpack.c.bf16 %v438_v7, %v437_v6  ;;  %v448_v25 = vadd.f32 %v447_v23, %v444_v22  ;;  %v485_v26 = vsub.s32 0, %v484_v24 }
  0x60   :  { %566 = vmatmul.mubr.bf16.vlgmr.msra.gmra.mxu0 %v788_v5  ;;  %613 = vmatpush2.bf16.msra.mxu1 %v481_v10  ;;  %v486_v28 = vrot.slane %v448_v25, %v485_v26 }
  0x61   :  { %573 = vmatprep.mubr.bf16.mxu0 %v794_v9 }
  0x63   :  { %615 = vmatmul.mubr.bf16.vlgmr.msra.gmra.mxu1 %v791_v11 }
  0x64   :  { %757 = vmatprep.mubr.msk.bf16.mxu1 %vm526_vm0, %v797_v0 }
  0x68   :  { %574 = vmatmul.mubr.bf16.gmra.mxu0 %v796_v12 }
  0x6b   :  { %623 = vmatmul.mubr.bf16.gmra.mxu1 %v799_v13 }
 0x120   :  { %v774_v27 = vpop.f32.mrf.mxu0 }
 0x122   :  { %v775_v29 = vpop.f32.mrf.mxu0 }
 0x123   :  { %v776_v30 = vadd.f32 %v775_v29, %v774_v27  ;;  %v616_v31 = vpop.f32.mrf.mxu1 }
 0x124   :  { %v777_v32 = vpop.f32.mrf.mxu0 }
 0x125   :  { %v568_v8 = vadd.f32 %v776_v30, %v486_v28  ;;  %v618_v33 = vpop.f32.mrf.mxu1 }
 0x126   :  { %v778_v14 = vpop.f32.mrf.mxu0 }
 0x127   :  { %v617_v34 = vadd.f32 %v616_v31, %v568_v8  ;;  %v779_v35 = vadd.f32 %v778_v14, %v777_v32  ;;  %v619_v36 = vpop.f32.mrf.mxu1 }
 0x128   :  { %v780_v37 = vpop.f32.mrf.mxu0 }
 0x129   :  { %v631_v38 = vmax.f32 %v617_v34, 0.0  ;;  %v571_v39 = vadd.f32 %v779_v35, %v486_v28  ;;  %v621_v40 = vpop.f32.mrf.mxu1 }
 0x12a   :  { %v781_v20 = vpop.f32.mrf.mxu0 }
 0x12b   :  { %635 = vst [vmem:[%s1513_s4] sm:$0xff] %v631_v38  ;;  %v620_v41 = vadd.f32 %v619_v36, %v571_v39  ;;  %v782_v42 = vadd.f32 %v781_v20, %v780_v37  ;;  %v624_v43 = vpop.f32.mrf.mxu1 }
 0x12c   :  { %v783_v44 = vpop.f32.mrf.mxu0 }
 0x12d   :  { %v632_v45 = vmax.f32 %v620_v41, 0.0  ;;  %v576_v46 = vadd.f32 %v782_v42, %v486_v28  ;;  %v626_v47 = vpop.f32.mrf.mxu1 }
 0x12e   :  { %v784_v48 = vpop.f32.mrf.mxu0 }
 0x12f   :  { %636 = vst [vmem:[%s1513_s4 + $0x8] sm:$0xff] %v632_v45  ;;  %v625_v49 = vadd.f32 %v624_v43, %v576_v46  ;;  %v785_v50 = vadd.f32 %v784_v48, %v783_v44  ;;  %v627_v51 = vpop.f32.mrf.mxu1 }
 0x131   :  { %v633_v52 = vmax.f32 %v625_v49, 0.0  ;;  %v579_v53 = vadd.f32 %v785_v50, %v486_v28  ;;  %v629_v54 = vpop.f32.mrf.mxu1 }
 0x133   :  { %637 = vst [vmem:[%s1513_s4 + $0x10] sm:$0xff] %v633_v52  ;;  %v628_v55 = vadd.f32 %v627_v51, %v579_v53 }
 0x135   :  { %v634_v56 = vmax.f32 %v628_v55, 0.0 }
 0x137   :  { %638 = vst [vmem:[%s1513_s4 + $0x18] sm:$0xff] %v634_v56 }
 0x138   :  { %643 = vsyncpa [#allocation3], 1 }

// kernel: mrf_unet_search_forward.8
= control target key start
LH: loop header
LB: loop body
LE: loop exit
PB: predicated region body
PF: predicated region fallthrough
CT: control target
= control target key end

     0   :  { %9 = vsyncpa [#allocation3], 0  ;;  %s5562_s0 = inlined_call_operand.vmem [shape: f32[3], index: 0, kind: input, shape index: {}]   ;;  %s5563_s1 = inlined_call_operand.vmem [shape: bf16[128,1200], index: 1, kind: input, shape index: {}]   ;;  %s5564_s2 = inlined_call_operand.vmem [shape: f32[3,1200,128], index: 2, kind: input, shape index: {}]   ;;  %s5565_s3 = inlined_call_operand.vmem [shape: f32[3,1,128], index: 3, kind: input, shape index: {}]   ;;  %s5566_s4 = inlined_call_operand.vmem [shape: f32[128,128], index: 4, kind: output, shape index: {}]  }
   0x1   :  { %s16_s17 = sshll.u32 %s5562_s0, 4  ;;  %s17_s17 = int_to_ptr.vmem [resolvable:$true] %s16_s17 }
   0x2   :  { %s3135_s18 = scalar_lea.vmem %s17_s17, 16  ;;  %p3140_p1 = scmp.lt.s32.totalorder %s17_s17, %s17_s17 }
   0x3   :  { %p3136_p0 = scmp.ne.s32.totalorder %s17_s17, %s3135_s18  ;;  %p3141_p2 = scmp.lt.s32.totalorder %s3135_s18, %s3135_s18 }
   0x5   :  { %p3142_p3 = por %p3141_p2, %p3140_p1 }
   0x7   :  { %p3143_p4 = pnand %p3142_p3, %p3136_p0 }
   0x9   :  { %3146 = shalt.err (!%p3143_p4)
}
   0xa   :  { %s3149_s19 = smov [#allocation2]  }
   0xb   :  { %19 = dma.vmem_to_smem %s17_s17, 16, %s3149_s19, [#allocation3]  }
   0xc   :  { %3147 = dma.done.wait [#allocation3], 16  }
   0xd   :  { %3148 = vsyncadd [#allocation3], 4294967280 }
   0xe   :  { %29 = sfence }
   0xf   :  { %s31_s20 = sld [smem:[#allocation2]]  ;;  %v62_v0 = vld [vmem:[%s5564_s2 + $0xf0] sm:$0xff]  ;;  %v63_v1 = vld [vmem:[%s5564_s2 + $0xf8] sm:$0xff]  ;;  %v2380_v2 = vld [vmem:[%s5564_s2 + $0x5a0] sm:$0xff]  ;;  %vm1802_vm0 = vcmask 392192  }
  0x10   :  { %s2349_s21 = sld [smem:[#allocation2 + $0x1]]  ;;  %v46_v3 = vld [vmem:[%s5564_s2 + $0x70] sm:$0xff]  ;;  %v2381_v4 = vld [vmem:[%s5564_s2 + $0x5a8] sm:$0xff]  ;;  %v47_v6 = vld [vmem:[%s5564_s2 + $0x78] sm:$0xff] }
  0x11   :  { %s2500_s22 = sld [smem:[#allocation2 + $0x2]]  ;;  %v2531_v5 = vld [vmem:[%s5564_s2 + $0xa50] sm:$0xff]  ;;  %v2532_v8 = vld [vmem:[%s5564_s2 + $0xa58] sm:$0xff]  ;;  %v2364_v9 = vld [vmem:[%s5564_s2 + $0x520] sm:$0xff] }
  0x12   :  { %v2365_v10 = vld [vmem:[%s5564_s2 + $0x528] sm:$0xff]  ;;  %v2515_v15 = vld [vmem:[%s5564_s2 + $0x9d0] sm:$0xff]  ;;  %v2516_v16 = vld [vmem:[%s5564_s2 + $0x9d8] sm:$0xff] }
  0x13   :  { %v60_v21 = vld [vmem:[%s5564_s2 + $0xe0] sm:$0xff]  ;;  %v61_v22 = vld [vmem:[%s5564_s2 + $0xe8] sm:$0xff]  ;;  %v2378_v27 = vld [vmem:[%s5564_s2 + $0x590] sm:$0xff] }
  0x14   :  { %v2379_v28 = vld [vmem:[%s5564_s2 + $0x598] sm:$0xff]  ;;  %v2529_v33 = vld [vmem:[%s5564_s2 + $0xa40] sm:$0xff]  ;;  %v2530_v34 = vld [vmem:[%s5564_s2 + $0xa48] sm:$0xff] }
  0x15   :  { %v3200_v7 = vstv %s31_s20  ;;  %v44_v39 = vld [vmem:[%s5564_s2 + $0x60] sm:$0xff]  ;;  %v45_v44 = vld [vmem:[%s5564_s2 + $0x68] sm:$0xff]  ;;  %v2362_v45 = vld [vmem:[%s5564_s2 + $0x510] sm:$0xff] }
  0x16   :  { %v213_v11 = vmul.f32 %v3200_v7, %v62_v0  ;;  %v214_v12 = vmul.f32 %v3200_v7, %v63_v1  ;;  %v3213_v13 = vstv %s2349_s21  ;;  %v197_v14 = vmul.f32 %v3200_v7, %v46_v3  ;;  %v2363_v46 = vld [vmem:[%s5564_s2 + $0x518] sm:$0xff]  ;;  %v2513_v51 = vld [vmem:[%s5564_s2 + $0x9c0] sm:$0xff]  ;;  %v2514_v56 = vld [vmem:[%s5564_s2 + $0x9c8] sm:$0xff] }
  0x17   :  { %v516_v17 = vmul.f32 %v2380_v2, %v3213_v13  ;;  %v517_v18 = vmul.f32 %v2381_v4, %v3213_v13  ;;  %v3224_v19 = vstv %s2500_s22  ;;  %v198_v20 = vmul.f32 %v3200_v7, %v47_v6  ;;  %v58_v61 = vld [vmem:[%s5564_s2 + $0xd0] sm:$0xff]  ;;  %v59_v62 = vld [vmem:[%s5564_s2 + $0xd8] sm:$0xff]  ;;  %v2376_v63 = vld [vmem:[%s5564_s2 + $0x580] sm:$0xff] }
  0x18   :  { %v969_v23 = vmul.f32 %v2531_v5, %v3224_v19  ;;  %v970_v24 = vmul.f32 %v2532_v8, %v3224_v19  ;;  %v500_v25 = vmul.f32 %v2364_v9, %v3213_v13  ;;  %v501_v26 = vmul.f32 %v2365_v10, %v3213_v13  ;;  %v2377_v3 = vld [vmem:[%s5564_s2 + $0x588] sm:$0xff]  ;;  %v2527_v4 = vld [vmem:[%s5564_s2 + $0xa30] sm:$0xff]  ;;  %v2528_v9 = vld [vmem:[%s5564_s2 + $0xa38] sm:$0xff] }
  0x19   :  { %v666_v29 = vadd.f32 %v516_v17, %v213_v11  ;;  %v667_v30 = vadd.f32 %v517_v18, %v214_v12  ;;  %v953_v31 = vmul.f32 %v2515_v15, %v3224_v19  ;;  %v954_v32 = vmul.f32 %v2516_v16, %v3224_v19  ;;  %v42_v10 = vld [vmem:[%s5564_s2 + $0x50] sm:$0xff]  ;;  %v43_v16 = vld [vmem:[%s5564_s2 + $0x58] sm:$0xff]  ;;  %v2360_v17 = vld [vmem:[%s5564_s2 + $0x500] sm:$0xff] }
  0x1a   :  { %v650_v35 = vadd.f32 %v500_v25, %v197_v14  ;;  %v651_v36 = vadd.f32 %v501_v26, %v198_v20  ;;  %v211_v37 = vmul.f32 %v3200_v7, %v60_v21  ;;  %v212_v38 = vmul.f32 %v3200_v7, %v61_v22  ;;  %v2512_v25 = vld [vmem:[%s5564_s2 + $0x9b8] sm:$0xff] }
  0x1b   :  { %v1119_v40 = vadd.f32 %v969_v23, %v666_v29  ;;  %v1120_v41 = vadd.f32 %v970_v24, %v667_v30  ;;  %v514_v42 = vmul.f32 %v2378_v27, %v3213_v13  ;;  %v515_v43 = vmul.f32 %v2379_v28, %v3213_v13  ;;  %v2361_v23 = vld [vmem:[%s5564_s2 + $0x508] sm:$0xff]  ;;  %v2511_v24 = vld [vmem:[%s5564_s2 + $0x9b0] sm:$0xff]  ;;  %v56_v29 = vld [vmem:[%s5564_s2 + $0xc0] sm:$0xff] }
  0x1c   :  { %v1103_v47 = vadd.f32 %v953_v31, %v650_v35  ;;  %v1104_v48 = vadd.f32 %v954_v32, %v651_v36  ;;  %v967_v49 = vmul.f32 %v2529_v33, %v3224_v19  ;;  %v968_v50 = vmul.f32 %v2530_v34, %v3224_v19  ;;  %v57_v34 = vld [vmem:[%s5564_s2 + $0xc8] sm:$0xff]  ;;  %v2374_v35 = vld [vmem:[%s5564_s2 + $0x570] sm:$0xff]  ;;  %v2375_v36 = vld [vmem:[%s5564_s2 + $0x578] sm:$0xff] }
  0x1d   :  { %v1344_v52 = vpack.c.bf16 %v1120_v41, %v1119_v40  ;;  %v664_v53 = vadd.f32 %v514_v42, %v211_v37  ;;  %v665_v54 = vadd.f32 %v515_v43, %v212_v38  ;;  %v195_v55 = vmul.f32 %v3200_v7, %v44_v39  ;;  %v2525_v41 = vld [vmem:[%s5564_s2 + $0xa20] sm:$0xff]  ;;  %v2526_v42 = vld [vmem:[%s5564_s2 + $0xa28] sm:$0xff] }
  0x1e   :  { %v1336_v57 = vpack.c.bf16 %v1104_v48, %v1103_v47  ;;  %v196_v58 = vmul.f32 %v3200_v7, %v45_v44  ;;  %v498_v59 = vmul.f32 %v2362_v45, %v3213_v13  ;;  %v499_v60 = vmul.f32 %v2363_v46, %v3213_v13  ;;  %v40_v46 = vld [vmem:[%s5564_s2 + $0x40] sm:$0xff] }
  0x1f   :  { %2997 = vmatprep.subr.bf16.mxu1 %v1344_v52  ;;  %2741 = vmatprep.subr.bf16.mxu0 %v1344_v52  ;;  %v1117_v0 = vadd.f32 %v967_v49, %v664_v53  ;;  %v1118_v1 = vadd.f32 %v968_v50, %v665_v54  ;;  %v951_v2 = vmul.f32 %v2513_v51, %v3224_v19  ;;  %v41_v51 = vld [vmem:[%s5564_s2 + $0x48] sm:$0xff]  ;;  %v2358_v52 = vld [vmem:[%s5564_s2 + $0x4f0] sm:$0xff]  ;;  %v2359_v53 = vld [vmem:[%s5564_s2 + $0x4f8] sm:$0xff] }
  0x20   :  { %3005 = vmatpush3.bf16.msra.mxu1 %v1336_v57  ;;  %2742 = vmatpush3.bf16.msra.mxu0 %v1336_v57  ;;  %v648_v5 = vadd.f32 %v498_v59, %v195_v55  ;;  %v649_v6 = vadd.f32 %v499_v60, %v196_v58  ;;  %v952_v8 = vmul.f32 %v2514_v56, %v3224_v19  ;;  %v2509_v58 = vld [vmem:[%s5564_s2 + $0x9a0] sm:$0xff] }
  0x21   :  { %v1343_v11 = vpack.c.bf16 %v1118_v1, %v1117_v0  ;;  %v209_v12 = vmul.f32 %v3200_v7, %v58_v61  ;;  %v210_v14 = vmul.f32 %v3200_v7, %v59_v62  ;;  %v512_v15 = vmul.f32 %v2376_v63, %v3213_v13  ;;  %v2510_v63 = vld [vmem:[%s5564_s2 + $0x9a8] sm:$0xff]  ;;  %v54_v0 = vld [vmem:[%s5564_s2 + $0xb0] sm:$0xff] }
  0x22   :  { %v1101_v18 = vadd.f32 %v951_v2, %v648_v5  ;;  %v1102_v20 = vadd.f32 %v952_v8, %v649_v6  ;;  %v513_v21 = vmul.f32 %v2377_v3, %v3213_v13  ;;  %v965_v22 = vmul.f32 %v2527_v4, %v3224_v19  ;;  %v55_v4 = vld [vmem:[%s5564_s2 + $0xb8] sm:$0xff]  ;;  %v2372_v5 = vld [vmem:[%s5564_s2 + $0x560] sm:$0xff] }
  0x23   :  { %2998 = vmatprep.subr.bf16.mxu1 %v1343_v11  ;;  %2743 = vmatprep.subr.bf16.mxu0 %v1343_v11  ;;  %v662_v26 = vadd.f32 %v512_v15, %v209_v12  ;;  %v966_v27 = vmul.f32 %v2528_v9, %v3224_v19  ;;  %v193_v28 = vmul.f32 %v3200_v7, %v42_v10  ;;  %v2373_v11 = vld [vmem:[%s5564_s2 + $0x568] sm:$0xff]  ;;  %v2523_v12 = vld [vmem:[%s5564_s2 + $0xa10] sm:$0xff] }
  0x24   :  { %v1335_v30 = vpack.c.bf16 %v1102_v20, %v1101_v18  ;;  %v663_v31 = vadd.f32 %v513_v21, %v210_v14  ;;  %v194_v32 = vmul.f32 %v3200_v7, %v43_v16  ;;  %v496_v33 = vmul.f32 %v2360_v17, %v3213_v13  ;;  %v2524_v14 = vld [vmem:[%s5564_s2 + $0xa18] sm:$0xff]  ;;  %v38_v20 = vld [vmem:[%s5564_s2 + $0x30] sm:$0xff] }
  0x25   :  { %v1115_v37 = vadd.f32 %v965_v22, %v662_v26  ;;  %v497_v38 = vmul.f32 %v2361_v23, %v3213_v13  ;;  %v949_v39 = vmul.f32 %v2511_v24, %v3224_v19  ;;  %v950_v40 = vmul.f32 %v2512_v25, %v3224_v19  ;;  %v39_v21 = vld [vmem:[%s5564_s2 + $0x38] sm:$0xff]  ;;  %v2356_v22 = vld [vmem:[%s5564_s2 + $0x4e0] sm:$0xff]  ;;  %v2357_v26 = vld [vmem:[%s5564_s2 + $0x4e8] sm:$0xff] }
  0x26   :  { %3006 = vmatpush3.bf16.msra.mxu1 %v1335_v30  ;;  %2744 = vmatpush3.bf16.msra.mxu0 %v1335_v30  ;;  %v1116_v43 = vadd.f32 %v966_v27, %v663_v31  ;;  %v646_v44 = vadd.f32 %v496_v33, %v193_v28  ;;  %v207_v45 = vmul.f32 %v3200_v7, %v56_v29  ;;  %v2507_v27 = vld [vmem:[%s5564_s2 + $0x990] sm:$0xff]  ;;  %v2508_v28 = vld [vmem:[%s5564_s2 + $0x998] sm:$0xff]  ;;  %v52_v33 = vld [vmem:[%s5564_s2 + $0xa0] sm:$0xff] }
  0x27   :  { %v647_v47 = vadd.f32 %v497_v38, %v194_v32  ;;  %v208_v48 = vmul.f32 %v3200_v7, %v57_v34  ;;  %v510_v49 = vmul.f32 %v2374_v35, %v3213_v13  ;;  %v511_v50 = vmul.f32 %v2375_v36, %v3213_v13  ;;  %v53_v34 = vld [vmem:[%s5564_s2 + $0xa8] sm:$0xff]  ;;  %v2370_v35 = vld [vmem:[%s5564_s2 + $0x550] sm:$0xff] }
  0x28   :  { %v1342_v54 = vpack.c.bf16 %v1116_v43, %v1115_v37  ;;  %v1099_v55 = vadd.f32 %v949_v39, %v646_v44  ;;  %v963_v56 = vmul.f32 %v2525_v41, %v3224_v19  ;;  %v964_v57 = vmul.f32 %v2526_v42, %v3224_v19  ;;  %v2371_v39 = vld [vmem:[%s5564_s2 + $0x558] sm:$0xff]  ;;  %v3017_v44 = vld [vmem:[%s5563_s1 + $0x144] ss:$40 sps:$4 sm:$0xff]  }
  0x29   :  { %v1100_v59 = vadd.f32 %v950_v40, %v647_v47  ;;  %v660_v60 = vadd.f32 %v510_v49, %v207_v45  ;;  %v661_v61 = vadd.f32 %v511_v50, %v208_v48  ;;  %v191_v62 = vmul.f32 %v3200_v7, %v40_v46  ;;  %v2521_v49 = vld [vmem:[%s5564_s2 + $0xa00] sm:$0xff]  ;;  %v2522_v50 = vld [vmem:[%s5564_s2 + $0xa08] sm:$0xff]  ;;  %1891 = vmatprep.mubr.bf16.mxu1 %v3017_v44 }
  0x2a   :  { %2999 = vmatprep.subr.bf16.mxu1 %v1342_v54  ;;  %2745 = vmatprep.subr.bf16.mxu0 %v1342_v54  ;;  %v192_v1 = vmul.f32 %v3200_v7, %v41_v51  ;;  %v494_v2 = vmul.f32 %v2358_v52, %v3213_v13  ;;  %v495_v3 = vmul.f32 %v2359_v53, %v3213_v13  ;;  %v3020_v51 = vld [vmem:[%s5563_s1 + $0x4] ss:$40 sps:$4 sm:$0xff]  }
  0x2b   :  { %v1334_v6 = vpack.c.bf16 %v1100_v59, %v1099_v55  ;;  %v1113_v8 = vadd.f32 %v963_v56, %v660_v60  ;;  %v1114_v9 = vadd.f32 %v964_v57, %v661_v61  ;;  %v947_v10 = vmul.f32 %v2509_v58, %v3224_v19  ;;  %v36_v55 = vld [vmem:[%s5564_s2 + $0x20] sm:$0xff]  ;;  %v37_v60 = vld [vmem:[%s5564_s2 + $0x28] sm:$0xff]  ;;  %v2354_v61 = vld [vmem:[%s5564_s2 + $0x4d0] sm:$0xff]  ;;  %1859 = vmatprep.mubr.bf16.mxu0 %v3020_v51 }
  0x2c   :  { %v644_v15 = vadd.f32 %v494_v2, %v191_v62  ;;  %v645_v16 = vadd.f32 %v495_v3, %v192_v1  ;;  %v948_v17 = vmul.f32 %v2510_v63, %v3224_v19  ;;  %v205_v18 = vmul.f32 %v3200_v7, %v54_v0  ;;  %v2355_v62 = vld [vmem:[%s5564_s2 + $0x4d8] sm:$0xff]  ;;  %v2505_v3 = vld [vmem:[%s5564_s2 + $0x980] sm:$0xff]  ;;  %v2366_v51 = vld [vmem:[%s5564_s2 + $0x530] sm:$0xff] }
  0x2d   :  { %3007 = vmatpush3.bf16.msra.mxu1 %v1334_v6  ;;  %2746 = vmatpush3.bf16.msra.mxu0 %v1334_v6  ;;  %v1341_v23 = vpack.c.bf16 %v1114_v9, %v1113_v8  ;;  %v206_v24 = vmul.f32 %v3200_v7, %v55_v4  ;;  %v508_v25 = vmul.f32 %v2372_v5, %v3213_v13  ;;  %v2506_v9 = vld [vmem:[%s5564_s2 + $0x988] sm:$0xff] }
  0x2e   :  { %v1097_v29 = vadd.f32 %v947_v10, %v644_v15  ;;  %v1098_v30 = vadd.f32 %v948_v17, %v645_v16  ;;  %v509_v31 = vmul.f32 %v2373_v11, %v3213_v13  ;;  %v961_v32 = vmul.f32 %v2523_v12, %v3224_v19  ;;  %v50_v10 = vld [vmem:[%s5564_s2 + $0x90] sm:$0xff]  ;;  %v51_v15 = vld [vmem:[%s5564_s2 + $0x98] sm:$0xff]  ;;  %v2368_v16 = vld [vmem:[%s5564_s2 + $0x540] sm:$0xff] }
  0x2f   :  { %3000 = vmatprep.subr.bf16.mxu1 %v1341_v23  ;;  %2747 = vmatprep.subr.bf16.mxu0 %v1341_v23  ;;  %v658_v36 = vadd.f32 %v508_v25, %v205_v18  ;;  %v962_v37 = vmul.f32 %v2524_v14, %v3224_v19  ;;  %v189_v38 = vmul.f32 %v3200_v7, %v38_v20  ;;  %v2519_v23 = vld [vmem:[%s5564_s2 + $0x9f0] sm:$0xff] }
  0x30   :  { %v1333_v40 = vpack.c.bf16 %v1098_v30, %v1097_v29  ;;  %v659_v41 = vadd.f32 %v509_v31, %v206_v24  ;;  %v190_v42 = vmul.f32 %v3200_v7, %v39_v21  ;;  %v492_v43 = vmul.f32 %v2356_v22, %v3213_v13  ;;  %v2369_v22 = vld [vmem:[%s5564_s2 + $0x548] sm:$0xff]  ;;  %v34_v29 = vld [vmem:[%s5564_s2 + $0x10] sm:$0xff] }
  0x31   :  { %v1111_v45 = vadd.f32 %v961_v32, %v658_v36  ;;  %v493_v46 = vmul.f32 %v2357_v26, %v3213_v13  ;;  %v945_v47 = vmul.f32 %v2507_v27, %v3224_v19  ;;  %v946_v48 = vmul.f32 %v2508_v28, %v3224_v19  ;;  %v2520_v28 = vld [vmem:[%s5564_s2 + $0x9f8] sm:$0xff] }
  0x32   :  { %3008 = vmatpush3.bf16.msra.mxu1 %v1333_v40  ;;  %2748 = vmatpush3.bf16.msra.mxu0 %v1333_v40  ;;  %v1112_v52 = vadd.f32 %v962_v37, %v659_v41  ;;  %v642_v53 = vadd.f32 %v492_v43, %v189_v38  ;;  %v203_v54 = vmul.f32 %v3200_v7, %v52_v33  ;;  %v35_v33 = vld [vmem:[%s5564_s2 + $0x18] sm:$0xff]  ;;  %v2503_v40 = vld [vmem:[%s5564_s2 + $0x970] sm:$0xff] }
  0x33   :  { %v643_v56 = vadd.f32 %v493_v46, %v190_v42  ;;  %v204_v57 = vmul.f32 %v3200_v7, %v53_v34  ;;  %v506_v58 = vmul.f32 %v2370_v35, %v3213_v13  ;;  %v507_v59 = vmul.f32 %v2371_v39, %v3213_v13  ;;  %v2352_v34 = vld [vmem:[%s5564_s2 + $0x4c0] sm:$0xff]  ;;  %v2353_v39 = vld [vmem:[%s5564_s2 + $0x4c8] sm:$0xff]  ;;  %v2504_v41 = vld [vmem:[%s5564_s2 + $0x978] sm:$0xff] }
  0x34   :  { %v1340_v63 = vpack.c.bf16 %v1112_v52, %v1111_v45  ;;  %v1095_v0 = vadd.f32 %v945_v47, %v642_v53  ;;  %v959_v1 = vmul.f32 %v2521_v49, %v3224_v19  ;;  %v960_v2 = vmul.f32 %v2522_v50, %v3224_v19  ;;  %v48_v45 = vld [vmem:[%s5564_s2 + $0x80] sm:$0xff]  ;;  %v49_v50 = vld [vmem:[%s5564_s2 + $0x88] sm:$0xff]  ;;  %v2367_v52 = vld [vmem:[%s5564_s2 + $0x538] sm:$0xff] }
  0x35   :  { %v1096_v4 = vadd.f32 %v946_v48, %v643_v56  ;;  %v656_v5 = vadd.f32 %v506_v58, %v203_v54  ;;  %v657_v6 = vadd.f32 %v507_v59, %v204_v57  ;;  %v187_v8 = vmul.f32 %v3200_v7, %v36_v55  ;;  %v2517_v57 = vld [vmem:[%s5564_s2 + $0x9e0] sm:$0xff]  ;;  %v2518_v58 = vld [vmem:[%s5564_s2 + $0x9e8] sm:$0xff] }
  0x36   :  { %3001 = vmatprep.subr.bf16.mxu1 %v1340_v63  ;;  %2749 = vmatprep.subr.bf16.mxu0 %v1340_v63  ;;  %v188_v11 = vmul.f32 %v3200_v7, %v37_v60  ;;  %v490_v12 = vmul.f32 %v2354_v61, %v3213_v13  ;;  %v491_v14 = vmul.f32 %v2355_v62, %v3213_v13  ;;  %v32_v62 = vld [vmem:[%s5564_s2] sm:$0xff] }
  0x37   :  { %v1332_v17 = vpack.c.bf16 %v1096_v4, %v1095_v0  ;;  %v1109_v18 = vadd.f32 %v959_v1, %v656_v5  ;;  %v1110_v20 = vadd.f32 %v960_v2, %v657_v6  ;;  %v943_v21 = vmul.f32 %v2505_v3, %v3224_v19  ;;  %v33_v3 = vld [vmem:[%s5564_s2 + $0x8] sm:$0xff]  ;;  %v2350_v4 = vld [vmem:[%s5564_s2 + $0x4b0] sm:$0xff]  ;;  %v2351_v5 = vld [vmem:[%s5564_s2 + $0x4b8] sm:$0xff] }
  0x38   :  { %v640_v24 = vadd.f32 %v490_v12, %v187_v8  ;;  %v641_v25 = vadd.f32 %v491_v14, %v188_v11  ;;  %v944_v26 = vmul.f32 %v2506_v9, %v3224_v19  ;;  %v201_v27 = vmul.f32 %v3200_v7, %v50_v10  ;;  %v2501_v11 = vld [vmem:[%s5564_s2 + $0x960] sm:$0xff]  ;;  %v2502_v12 = vld [vmem:[%s5564_s2 + $0x968] sm:$0xff] }
  0x39   :  { %3009 = vmatpush3.bf16.msra.mxu1 %v1332_v17  ;;  %2750 = vmatpush3.bf16.msra.mxu0 %v1332_v17  ;;  %v1339_v30 = vpack.c.bf16 %v1110_v20, %v1109_v18  ;;  %v202_v31 = vmul.f32 %v3200_v7, %v51_v15  ;;  %v504_v32 = vmul.f32 %v2368_v16, %v3213_v13  ;;  %v94_v18 = vld [vmem:[%s5564_s2 + $0x1f0] sm:$0xff]  ;;  %v95_v20 = vld [vmem:[%s5564_s2 + $0x1f8] sm:$0xff] }
  0x3a   :  { %v1093_v35 = vadd.f32 %v943_v21, %v640_v24  ;;  %v1094_v36 = vadd.f32 %v944_v26, %v641_v25  ;;  %v505_v37 = vmul.f32 %v2369_v22, %v3213_v13  ;;  %v957_v38 = vmul.f32 %v2519_v23, %v3224_v19  ;;  %v2412_v24 = vld [vmem:[%s5564_s2 + $0x6a0] sm:$0xff] }
  0x3b   :  { %3002 = vmatprep.subr.bf16.mxu1 %v1339_v30  ;;  %2751 = vmatprep.subr.bf16.mxu0 %v1339_v30  ;;  %v654_v42 = vadd.f32 %v504_v32, %v201_v27  ;;  %v958_v43 = vmul.f32 %v2520_v28, %v3224_v19  ;;  %v185_v44 = vmul.f32 %v3200_v7, %v34_v29  ;;  %v2413_v29 = vld [vmem:[%s5564_s2 + $0x6a8] sm:$0xff]  ;;  %v2563_v30 = vld [vmem:[%s5564_s2 + $0xb50] sm:$0xff] }
  0x3c   :  { %v1331_v46 = vpack.c.bf16 %v1094_v36, %v1093_v35  ;;  %v655_v47 = vadd.f32 %v505_v37, %v202_v31  ;;  %v186_v48 = vmul.f32 %v3200_v7, %v35_v33  ;;  %v488_v49 = vmul.f32 %v2352_v34, %v3213_v13  ;;  %v2564_v35 = vld [vmem:[%s5564_s2 + $0xb58] sm:$0xff]  ;;  %v78_v36 = vld [vmem:[%s5564_s2 + $0x170] sm:$0xff] }
  0x3d   :  { %v1107_v53 = vadd.f32 %v957_v38, %v654_v42  ;;  %v489_v54 = vmul.f32 %v2353_v39, %v3213_v13  ;;  %v941_v55 = vmul.f32 %v2503_v40, %v3224_v19  ;;  %v942_v56 = vmul.f32 %v2504_v41, %v3224_v19  ;;  %v79_v40 = vld [vmem:[%s5564_s2 + $0x178] sm:$0xff]  ;;  %v2396_v41 = vld [vmem:[%s5564_s2 + $0x620] sm:$0xff] }
  0x3e   :  { %3010 = vmatpush3.bf16.msra.mxu1 %v1331_v46  ;;  %2752 = vmatpush3.bf16.msra.mxu0 %v1331_v46  ;;  %v1108_v59 = vadd.f32 %v958_v43, %v655_v47  ;;  %v638_v60 = vadd.f32 %v488_v49, %v185_v44  ;;  %v199_v61 = vmul.f32 %v3200_v7, %v48_v45  ;;  %v2397_v46 = vld [vmem:[%s5564_s2 + $0x628] sm:$0xff]  ;;  %v2547_v47 = vld [vmem:[%s5564_s2 + $0xad0] sm:$0xff] }
  0x3f   :  { %v639_v63 = vadd.f32 %v489_v54, %v186_v48  ;;  %v200_v0 = vmul.f32 %v3200_v7, %v49_v50  ;;  %v502_v1 = vmul.f32 %v2366_v51, %v3213_v13  ;;  %v503_v2 = vmul.f32 %v2367_v52, %v3213_v13  ;;  %v2548_v48 = vld [vmem:[%s5564_s2 + $0xad8] sm:$0xff]  ;;  %v3015_v49 = vld [vmem:[%s5563_s1 + $0x140] ss:$40 sps:$4 sm:$0xff]  }
  0x40   :  { %v1338_v6 = vpack.c.bf16 %v1108_v59, %v1107_v53  ;;  %v1091_v8 = vadd.f32 %v941_v55, %v638_v60  ;;  %v955_v9 = vmul.f32 %v2517_v57, %v3224_v19  ;;  %v956_v10 = vmul.f32 %v2518_v58, %v3224_v19  ;;  %v126_v53 = vld [vmem:[%s5564_s2 + $0x2f0] sm:$0xff]  ;;  %v127_v58 = vld [vmem:[%s5564_s2 + $0x2f8] sm:$0xff]  ;;  %v2444_v59 = vld [vmem:[%s5564_s2 + $0x7a0] sm:$0xff] }
  0x41   :  { %v1092_v14 = vadd.f32 %v942_v56, %v639_v63  ;;  %v652_v15 = vadd.f32 %v502_v1, %v199_v61  ;;  %v653_v16 = vadd.f32 %v503_v2, %v200_v0  ;;  %v183_v17 = vmul.f32 %v3200_v7, %v32_v62  ;;  %v2445_v60 = vld [vmem:[%s5564_s2 + $0x7a8] sm:$0xff]  ;;  %v2595_v2 = vld [vmem:[%s5564_s2 + $0xc50] sm:$0xff] }
  0x42   :  { %3003 = vmatprep.subr.bf16.mxu1 %v1338_v6  ;;  %2753 = vmatprep.subr.bf16.mxu0 %v1338_v6  ;;  %v184_v21 = vmul.f32 %v3200_v7, %v33_v3  ;;  %v486_v22 = vmul.f32 %v2350_v4, %v3213_v13  ;;  %v487_v23 = vmul.f32 %v2351_v5, %v3213_v13  ;;  %v3018_v61 = vld [vmem:[%s5563_s1] ss:$40 sps:$4 sm:$0xff]   ;;  %v2596_v3 = vld [vmem:[%s5564_s2 + $0xc58] sm:$0xff] }
  0x43   :  { %v1330_v25 = vpack.c.bf16 %v1092_v14, %v1091_v8  ;;  %v1105_v26 = vadd.f32 %v955_v9, %v652_v15  ;;  %v1106_v27 = vadd.f32 %v956_v10, %v653_v16  ;;  %v939_v28 = vmul.f32 %v2501_v11, %v3224_v19  ;;  %v110_v8 = vld [vmem:[%s5564_s2 + $0x270] sm:$0xff]  ;;  %v111_v9 = vld [vmem:[%s5564_s2 + $0x278] sm:$0xff]  ;;  %v2428_v15 = vld [vmem:[%s5564_s2 + $0x720] sm:$0xff] }
  0x44   :  { %v636_v31 = vadd.f32 %v486_v22, %v183_v17  ;;  %v637_v32 = vadd.f32 %v487_v23, %v184_v21  ;;  %v940_v33 = vmul.f32 %v2502_v12, %v3224_v19  ;;  %v245_v34 = vmul.f32 %v3200_v7, %v94_v18  ;;  %v2429_v16 = vld [vmem:[%s5564_s2 + $0x728] sm:$0xff]  ;;  %v3021_v17 = vld [vmem:[%s5563_s1 + $0x194] ss:$40 sps:$4 sm:$0xff]  }
  0x45   :  { %3011 = vmatpush3.bf16.msra.mxu1 %v1330_v25  ;;  %2754 = vmatpush3.bf16.msra.mxu0 %v1330_v25  ;;  %v1337_v37 = vpack.c.bf16 %v1106_v27, %v1105_v26  ;;  %v246_v38 = vmul.f32 %v3200_v7, %v95_v20  ;;  %v548_v39 = vmul.f32 %v2412_v24, %v3213_v13  ;;  %v2579_v23 = vld [vmem:[%s5564_s2 + $0xbd0] sm:$0xff]  ;;  %v2580_v24 = vld [vmem:[%s5564_s2 + $0xbd8] sm:$0xff] }
  0x46   :  { %v1089_v42 = vadd.f32 %v939_v28, %v636_v31  ;;  %v1090_v43 = vadd.f32 %v940_v33, %v637_v32  ;;  %v549_v44 = vmul.f32 %v2413_v29, %v3213_v13  ;;  %v1001_v45 = vmul.f32 %v2563_v30, %v3224_v19  ;;  %v3023_v25 = vld [vmem:[%s5563_s1 + $0x54] ss:$40 sps:$4 sm:$0xff]   ;;  %v92_v29 = vld [vmem:[%s5564_s2 + $0x1e0] sm:$0xff]  ;;  %v93_v30 = vld [vmem:[%s5564_s2 + $0x1e8] sm:$0xff] }
  0x47   :  { %3004 = vmatprep.subr.bf16.mxu1 %v1337_v37  ;;  %2755 = vmatprep.subr.bf16.mxu0 %v1337_v37  ;;  %v698_v50 = vadd.f32 %v548_v39, %v245_v34  ;;  %v1002_v51 = vmul.f32 %v2564_v35, %v3224_v19  ;;  %v229_v52 = vmul.f32 %v3200_v7, %v78_v36  ;;  %v2410_v31 = vld [vmem:[%s5564_s2 + $0x690] sm:$0xff]  ;;  %v2411_v36 = vld [vmem:[%s5564_s2 + $0x698] sm:$0xff]  ;;  %v2561_v37 = vld [vmem:[%s5564_s2 + $0xb40] sm:$0xff] }
  0x48   :  { %v1329_v54 = vpack.c.bf16 %v1090_v43, %v1089_v42  ;;  %v699_v55 = vadd.f32 %v549_v44, %v246_v38  ;;  %v230_v56 = vmul.f32 %v3200_v7, %v79_v40  ;;  %v532_v57 = vmul.f32 %v2396_v41, %v3213_v13  ;;  %v2562_v38 = vld [vmem:[%s5564_s2 + $0xb48] sm:$0xff]  ;;  %v76_v43 = vld [vmem:[%s5564_s2 + $0x160] sm:$0xff] }
  0x49   :  { %v1151_v62 = vadd.f32 %v1001_v45, %v698_v50  ;;  %v533_v63 = vmul.f32 %v2397_v46, %v3213_v13  ;;  %v985_v0 = vmul.f32 %v2547_v47, %v3224_v19  ;;  %v986_v1 = vmul.f32 %v2548_v48, %v3224_v19  ;;  %v77_v44 = vld [vmem:[%s5564_s2 + $0x168] sm:$0xff]  ;;  %v2394_v45 = vld [vmem:[%s5564_s2 + $0x610] sm:$0xff]  ;;  %v2395_v50 = vld [vmem:[%s5564_s2 + $0x618] sm:$0xff] }
  0x4a   :  { %3012 = vmatpush3.bf16.msra.mxu1 %v1329_v54  ;;  %2756 = vmatpush3.bf16.msra.mxu0 %v1329_v54  ;;  %v1152_v4 = vadd.f32 %v1002_v51, %v699_v55  ;;  %v682_v5 = vadd.f32 %v532_v57, %v229_v52  ;;  %v277_v6 = vmul.f32 %v3200_v7, %v126_v53  ;;  %v2545_v51 = vld [vmem:[%s5564_s2 + $0xac0] sm:$0xff]  ;;  %v2546_v52 = vld [vmem:[%s5564_s2 + $0xac8] sm:$0xff] }
  0x4b   :  { %v683_v10 = vadd.f32 %v533_v63, %v230_v56  ;;  %v278_v11 = vmul.f32 %v3200_v7, %v127_v58  ;;  %v580_v12 = vmul.f32 %v2444_v59, %v3213_v13  ;;  %v581_v14 = vmul.f32 %v2445_v60, %v3213_v13  ;;  %v124_v57 = vld [vmem:[%s5564_s2 + $0x2e0] sm:$0xff]  ;;  %v125_v58 = vld [vmem:[%s5564_s2 + $0x2e8] sm:$0xff]  ;;  %v3025_v59 = vld [vmem:[%s5563_s1 + $0x190] ss:$40 sps:$4 sm:$0xff]  }
  0x4c   :  { %v1360_v18 = vpack.c.bf16 %v1152_v4, %v1151_v62  ;;  %v1135_v20 = vadd.f32 %v985_v0, %v682_v5  ;;  %v1033_v21 = vmul.f32 %v2595_v2, %v3224_v19  ;;  %v1034_v22 = vmul.f32 %v2596_v3, %v3224_v19  ;;  %v2442_v0 = vld [vmem:[%s5564_s2 + $0x790] sm:$0xff]  ;;  %v2593_v2 = vld [vmem:[%s5564_s2 + $0xc40] sm:$0xff] }
  0x4d   :  { %1892 = vmatmul.mubr.bf16.vlgmr.msra.gmra.mxu1 %v3015_v49  ;;  %1860 = vmatmul.mubr.bf16.vlgmr.msra.gmra.mxu0 %v3018_v61  ;;  %v1136_v26 = vadd.f32 %v986_v1, %v683_v10  ;;  %v730_v27 = vadd.f32 %v580_v12, %v277_v6  ;;  %v731_v28 = vadd.f32 %v581_v14, %v278_v11  ;;  %v2443_v1 = vld [vmem:[%s5564_s2 + $0x798] sm:$0xff] }
  0x4e   :  { %2805 = vmatprep.subr.bf16.mxu1 %v1360_v18  ;;  %v261_v32 = vmul.f32 %v3200_v7, %v110_v8  ;;  %v262_v33 = vmul.f32 %v3200_v7, %v111_v9  ;;  %v564_v34 = vmul.f32 %v2428_v15, %v3213_v13  ;;  %v565_v35 = vmul.f32 %v2429_v16, %v3213_v13  ;;  %v2594_v8 = vld [vmem:[%s5564_s2 + $0xc48] sm:$0xff]  ;;  %v108_v9 = vld [vmem:[%s5564_s2 + $0x260] sm:$0xff]  ;;  %v3026_v10 = vld [vmem:[%s5563_s1 + $0x50] ss:$40 sps:$4 sm:$0xff]  }
  0x4f   :  { %v1352_v39 = vpack.c.bf16 %v1136_v26, %v1135_v20  ;;  %v1183_v40 = vadd.f32 %v1033_v21, %v730_v27  ;;  %v1184_v41 = vadd.f32 %v1034_v22, %v731_v28  ;;  %v1017_v42 = vmul.f32 %v2579_v23, %v3224_v19  ;;  %1899 = vmatprep.mubr.bf16.mxu1 %v3021_v17  ;;  %v109_v16 = vld [vmem:[%s5564_s2 + $0x268] sm:$0xff]  ;;  %v2426_v27 = vld [vmem:[%s5564_s2 + $0x710] sm:$0xff]  ;;  %v2427_v28 = vld [vmem:[%s5564_s2 + $0x718] sm:$0xff] }
  0x50   :  { %v714_v46 = vadd.f32 %v564_v34, %v261_v32  ;;  %v715_v47 = vadd.f32 %v565_v35, %v262_v33  ;;  %v1018_v48 = vmul.f32 %v2580_v24, %v3224_v19  ;;  %v243_v49 = vmul.f32 %v3200_v7, %v92_v29  ;;  %1867 = vmatprep.mubr.bf16.mxu0 %v3023_v25  ;;  %v3027_v22 = vld [vmem:[%s5563_s1 + $0x1e4] ss:$40 sps:$4 sm:$0xff]  }
  0x51   :  { %2806 = vmatpush3.bf16.msra.mxu1 %v1352_v39  ;;  %v1376_v53 = vpack.c.bf16 %v1184_v41, %v1183_v40  ;;  %v244_v54 = vmul.f32 %v3200_v7, %v93_v30  ;;  %v546_v55 = vmul.f32 %v2410_v31, %v3213_v13  ;;  %v547_v56 = vmul.f32 %v2411_v36, %v3213_v13  ;;  %v3029_v29 = vld [vmem:[%s5563_s1 + $0xa4] ss:$40 sps:$4 sm:$0xff]   ;;  %v90_v40 = vld [vmem:[%s5564_s2 + $0x1d0] sm:$0xff]  ;;  %v91_v41 = vld [vmem:[%s5564_s2 + $0x1d8] sm:$0xff] }
  0x52   :  { %v1167_v60 = vadd.f32 %v1017_v42, %v714_v46  ;;  %v1168_v61 = vadd.f32 %v1018_v48, %v715_v47  ;;  %v999_v62 = vmul.f32 %v2561_v37, %v3224_v19  ;;  %v1000_v63 = vmul.f32 %v2562_v38, %v3224_v19  ;;  %v2577_v34 = vld [vmem:[%s5564_s2 + $0xbc0] sm:$0xff]  ;;  %v2578_v35 = vld [vmem:[%s5564_s2 + $0xbc8] sm:$0xff]  ;;  %v2559_v48 = vld [vmem:[%s5564_s2 + $0xb30] sm:$0xff] }
  0x53   :  { %2869 = vmatprep.subr.bf16.mxu0 %v1376_v53  ;;  %v696_v3 = vadd.f32 %v546_v55, %v243_v49  ;;  %v697_v4 = vadd.f32 %v547_v56, %v244_v54  ;;  %v227_v5 = vmul.f32 %v3200_v7, %v76_v43  ;;  %v228_v6 = vmul.f32 %v3200_v7, %v77_v44  ;;  %v2408_v42 = vld [vmem:[%s5564_s2 + $0x680] sm:$0xff]  ;;  %v2409_v47 = vld [vmem:[%s5564_s2 + $0x688] sm:$0xff]  ;;  %v2560_v54 = vld [vmem:[%s5564_s2 + $0xb38] sm:$0xff] }
  0x54   :  { %v1368_v11 = vpack.c.bf16 %v1168_v61, %v1167_v60  ;;  %v530_v12 = vmul.f32 %v2394_v45, %v3213_v13  ;;  %v531_v14 = vmul.f32 %v2395_v50, %v3213_v13  ;;  %v983_v15 = vmul.f32 %v2545_v51, %v3224_v19  ;;  %v3031_v49 = vld [vmem:[%s5563_s1 + $0x1e0] ss:$40 sps:$4 sm:$0xff]   ;;  %v75_v60 = vld [vmem:[%s5564_s2 + $0x158] sm:$0xff] }
  0x55   :  { %v1149_v17 = vadd.f32 %v999_v62, %v696_v3  ;;  %v1150_v18 = vadd.f32 %v1000_v63, %v697_v4  ;;  %v984_v20 = vmul.f32 %v2546_v52, %v3224_v19  ;;  %v275_v21 = vmul.f32 %v3200_v7, %v124_v57  ;;  %1900 = vmatmul.mubr.bf16.gmra.mxu1 %v3025_v59  ;;  %v74_v59 = vld [vmem:[%s5564_s2 + $0x150] sm:$0xff]  ;;  %v2392_v61 = vld [vmem:[%s5564_s2 + $0x600] sm:$0xff] }
  0x56   :  { %2870 = vmatpush3.bf16.msra.mxu0 %v1368_v11  ;;  %v680_v23 = vadd.f32 %v530_v12, %v227_v5  ;;  %v681_v24 = vadd.f32 %v531_v14, %v228_v6  ;;  %v276_v25 = vmul.f32 %v3200_v7, %v125_v58  ;;  %v578_v26 = vmul.f32 %v2442_v0, %v3213_v13  ;;  %v2543_v3 = vld [vmem:[%s5564_s2 + $0xab0] sm:$0xff]  ;;  %v3032_v4 = vld [vmem:[%s5563_s1 + $0xa0] ss:$40 sps:$4 sm:$0xff]  }
  0x57   :  { %v1359_v30 = vpack.c.bf16 %v1150_v18, %v1149_v17  ;;  %v579_v31 = vmul.f32 %v2443_v1, %v3213_v13  ;;  %v1031_v32 = vmul.f32 %v2593_v2, %v3224_v19  ;;  %v1032_v33 = vmul.f32 %v2594_v8, %v3224_v19  ;;  %1868 = vmatmul.mubr.bf16.gmra.mxu0 %v3026_v10  ;;  %v2393_v2 = vld [vmem:[%s5564_s2 + $0x608] sm:$0xff]  ;;  %v2544_v10 = vld [vmem:[%s5564_s2 + $0xab8] sm:$0xff]  ;;  %v122_v11 = vld [vmem:[%s5564_s2 + $0x2d0] sm:$0xff] }
  0x58   :  { %v1133_v36 = vadd.f32 %v983_v15, %v680_v23  ;;  %v1134_v37 = vadd.f32 %v984_v20, %v681_v24  ;;  %v728_v38 = vadd.f32 %v578_v26, %v275_v21  ;;  %v259_v39 = vmul.f32 %v3200_v7, %v108_v9  ;;  %1907 = vmatprep.mubr.bf16.mxu1 %v3027_v22  ;;  %v123_v17 = vld [vmem:[%s5564_s2 + $0x2d8] sm:$0xff]  ;;  %v2440_v18 = vld [vmem:[%s5564_s2 + $0x780] sm:$0xff]  ;;  %v2441_v24 = vld [vmem:[%s5564_s2 + $0x788] sm:$0xff] }
  0x59   :  { %2807 = vmatprep.subr.bf16.mxu1 %v1359_v30  ;;  %v729_v43 = vadd.f32 %v579_v31, %v276_v25  ;;  %v260_v44 = vmul.f32 %v3200_v7, %v109_v16  ;;  %v562_v45 = vmul.f32 %v2426_v27, %v3213_v13  ;;  %v563_v46 = vmul.f32 %v2427_v28, %v3213_v13  ;;  %v2591_v25 = vld [vmem:[%s5564_s2 + $0xc30] sm:$0xff]  ;;  %v2592_v26 = vld [vmem:[%s5564_s2 + $0xc38] sm:$0xff] }
  0x5a   :  { %v1351_v50 = vpack.c.bf16 %v1134_v37, %v1133_v36  ;;  %v1181_v51 = vadd.f32 %v1031_v32, %v728_v38  ;;  %v1015_v52 = vmul.f32 %v2577_v34, %v3224_v19  ;;  %v1016_v53 = vmul.f32 %v2578_v35, %v3224_v19  ;;  %1875 = vmatprep.mubr.bf16.mxu0 %v3029_v29  ;;  %v106_v31 = vld [vmem:[%s5564_s2 + $0x250] sm:$0xff]  ;;  %v107_v36 = vld [vmem:[%s5564_s2 + $0x258] sm:$0xff]  ;;  %v2424_v37 = vld [vmem:[%s5564_s2 + $0x700] sm:$0xff] }
  0x5b   :  { %v1182_v55 = vadd.f32 %v1032_v33, %v729_v43  ;;  %v712_v56 = vadd.f32 %v562_v45, %v259_v39  ;;  %v713_v57 = vadd.f32 %v563_v46, %v260_v44  ;;  %v241_v58 = vmul.f32 %v3200_v7, %v90_v40  ;;  %v2425_v38 = vld [vmem:[%s5564_s2 + $0x708] sm:$0xff]  ;;  %v2575_v43 = vld [vmem:[%s5564_s2 + $0xbb0] sm:$0xff]  ;;  %v2576_v44 = vld [vmem:[%s5564_s2 + $0xbb8] sm:$0xff] }
  0x5c   :  { %2808 = vmatpush3.bf16.msra.mxu1 %v1351_v50  ;;  %v242_v62 = vmul.f32 %v3200_v7, %v91_v41  ;;  %v544_v63 = vmul.f32 %v2408_v42, %v3213_v13  ;;  %v545_v0 = vmul.f32 %v2409_v47, %v3213_v13  ;;  %v997_v1 = vmul.f32 %v2559_v48, %v3224_v19  ;;  %v88_v45 = vld [vmem:[%s5564_s2 + $0x1c0] sm:$0xff]  ;;  %v89_v50 = vld [vmem:[%s5564_s2 + $0x1c8] sm:$0xff] }
  0x5d   :  { %v1375_v5 = vpack.c.bf16 %v1182_v55, %v1181_v51  ;;  %v1165_v6 = vadd.f32 %v1015_v52, %v712_v56  ;;  %v1166_v8 = vadd.f32 %v1016_v53, %v713_v57  ;;  %v998_v9 = vmul.f32 %v2560_v54, %v3224_v19  ;;  %1908 = vmatmul.mubr.bf16.gmra.mxu1 %v3031_v49  ;;  %v2406_v51 = vld [vmem:[%s5564_s2 + $0x670] sm:$0xff]  ;;  %v2407_v52 = vld [vmem:[%s5564_s2 + $0x678] sm:$0xff]  ;;  %v2557_v57 = vld [vmem:[%s5564_s2 + $0xb20] sm:$0xff] }
  0x5e   :  { %v694_v12 = vadd.f32 %v544_v63, %v241_v58  ;;  %v695_v14 = vadd.f32 %v545_v0, %v242_v62  ;;  %v225_v15 = vmul.f32 %v3200_v7, %v74_v59  ;;  %v226_v16 = vmul.f32 %v3200_v7, %v75_v60  ;;  %v2558_v58 = vld [vmem:[%s5564_s2 + $0xb28] sm:$0xff]  ;;  %v72_v59 = vld [vmem:[%s5564_s2 + $0x140] sm:$0xff] }
  0x5f   :  { %2871 = vmatprep.subr.bf16.mxu0 %v1375_v5  ;;  %v1367_v20 = vpack.c.bf16 %v1166_v8, %v1165_v6  ;;  %v528_v21 = vmul.f32 %v2392_v61, %v3213_v13  ;;  %v529_v22 = vmul.f32 %v2393_v2, %v3213_v13  ;;  %v981_v23 = vmul.f32 %v2543_v3, %v3224_v19  ;;  %v73_v0 = vld [vmem:[%s5564_s2 + $0x148] sm:$0xff]  ;;  %v2391_v2 = vld [vmem:[%s5564_s2 + $0x5f8] sm:$0xff]  ;;  %v2541_v8 = vld [vmem:[%s5564_s2 + $0xaa0] sm:$0xff] }
  0x60   :  { %v1147_v27 = vadd.f32 %v997_v1, %v694_v12  ;;  %v1148_v28 = vadd.f32 %v998_v9, %v695_v14  ;;  %v982_v29 = vmul.f32 %v2544_v10, %v3224_v19  ;;  %v273_v30 = vmul.f32 %v3200_v7, %v122_v11  ;;  %1876 = vmatmul.mubr.bf16.gmra.mxu0 %v3032_v4  ;;  %v2390_v1 = vld [vmem:[%s5564_s2 + $0x5f0] sm:$0xff]  ;;  %v2542_v9 = vld [vmem:[%s5564_s2 + $0xaa8] sm:$0xff]  ;;  %v120_v10 = vld [vmem:[%s5564_s2 + $0x2c0] sm:$0xff] }
  0x61   :  { %2872 = vmatpush3.bf16.msra.mxu0 %v1367_v20  ;;  %v678_v32 = vadd.f32 %v528_v21, %v225_v15  ;;  %v679_v33 = vadd.f32 %v529_v22, %v226_v16  ;;  %v274_v34 = vmul.f32 %v3200_v7, %v123_v17  ;;  %v576_v35 = vmul.f32 %v2440_v18, %v3213_v13  ;;  %v3033_v16 = vld [vmem:[%s5563_s1 + $0x234] ss:$40 sps:$4 sm:$0xff]  }
  0x62   :  { %v1358_v39 = vpack.c.bf16 %v1148_v28, %v1147_v27  ;;  %v577_v40 = vmul.f32 %v2441_v24, %v3213_v13  ;;  %v1029_v41 = vmul.f32 %v2591_v25, %v3224_v19  ;;  %v1030_v42 = vmul.f32 %v2592_v26, %v3224_v19  ;;  %v3035_v22 = vld [vmem:[%s5563_s1 + $0xf4] ss:$40 sps:$4 sm:$0xff]   ;;  %v121_v27 = vld [vmem:[%s5564_s2 + $0x2c8] sm:$0xff]  ;;  %1915 = vmatprep.mubr.bf16.mxu1 %v3033_v16 }
  0x63   :  { %v1131_v46 = vadd.f32 %v981_v23, %v678_v32  ;;  %v1132_v47 = vadd.f32 %v982_v29, %v679_v33  ;;  %v726_v48 = vadd.f32 %v576_v35, %v273_v30  ;;  %v257_v49 = vmul.f32 %v3200_v7, %v106_v31  ;;  %v2438_v28 = vld [vmem:[%s5564_s2 + $0x770] sm:$0xff]  ;;  %v2589_v35 = vld [vmem:[%s5564_s2 + $0xc20] sm:$0xff]  ;;  %1883 = vmatprep.mubr.bf16.mxu0 %v3035_v22 }
  0x64   :  { %2809 = vmatprep.subr.bf16.mxu1 %v1358_v39  ;;  %v727_v53 = vadd.f32 %v577_v40, %v274_v34  ;;  %v258_v54 = vmul.f32 %v3200_v7, %v107_v36  ;;  %v560_v55 = vmul.f32 %v2424_v37, %v3213_v13  ;;  %v561_v56 = vmul.f32 %v2425_v38, %v3213_v13  ;;  %v3037_v29 = vld [vmem:[%s5563_s1 + $0x230] ss:$40 sps:$4 sm:$0xff]   ;;  %v2590_v36 = vld [vmem:[%s5564_s2 + $0xc28] sm:$0xff] }
  0x65   :  { %v1350_v60 = vpack.c.bf16 %v1132_v47, %v1131_v46  ;;  %v1179_v61 = vadd.f32 %v1029_v41, %v726_v48  ;;  %v1013_v62 = vmul.f32 %v2575_v43, %v3224_v19  ;;  %v1014_v63 = vmul.f32 %v2576_v44, %v3224_v19  ;;  %v2439_v34 = vld [vmem:[%s5564_s2 + $0x778] sm:$0xff]  ;;  %v104_v41 = vld [vmem:[%s5564_s2 + $0x240] sm:$0xff]  ;;  %v105_v47 = vld [vmem:[%s5564_s2 + $0x248] sm:$0xff]  ;;  %1916 = vmatmul.mubr.bf16.gmra.mxu1 %v3037_v29 }
  0x66   :  { %v1180_v3 = vadd.f32 %v1030_v42, %v727_v53  ;;  %v710_v4 = vadd.f32 %v560_v55, %v257_v49  ;;  %v711_v5 = vadd.f32 %v561_v56, %v258_v54  ;;  %v239_v6 = vmul.f32 %v3200_v7, %v88_v45  ;;  %v3038_v42 = vld [vmem:[%s5563_s1 + $0xf0] ss:$40 sps:$4 sm:$0xff]   ;;  %v2573_v54 = vld [vmem:[%s5564_s2 + $0xba0] sm:$0xff]  ;;  %v2574_v55 = vld [vmem:[%s5564_s2 + $0xba8] sm:$0xff] }
  0x67   :  { %2810 = vmatpush3.bf16.msra.mxu1 %v1350_v60  ;;  %v240_v11 = vmul.f32 %v3200_v7, %v89_v50  ;;  %v542_v12 = vmul.f32 %v2406_v51, %v3213_v13  ;;  %v543_v14 = vmul.f32 %v2407_v52, %v3213_v13  ;;  %v995_v15 = vmul.f32 %v2557_v57, %v3224_v19  ;;  %v2422_v48 = vld [vmem:[%s5564_s2 + $0x6f0] sm:$0xff]  ;;  %v2423_v49 = vld [vmem:[%s5564_s2 + $0x6f8] sm:$0xff] }
  0x68   :  { %v1374_v17 = vpack.c.bf16 %v1180_v3, %v1179_v61  ;;  %v1163_v18 = vadd.f32 %v1013_v62, %v710_v4  ;;  %v1164_v20 = vadd.f32 %v1014_v63, %v711_v5  ;;  %v996_v21 = vmul.f32 %v2558_v58, %v3224_v19  ;;  %v86_v60 = vld [vmem:[%s5564_s2 + $0x1b0] sm:$0xff]  ;;  %v87_v61 = vld [vmem:[%s5564_s2 + $0x1b8] sm:$0xff]  ;;  %1884 = vmatmul.mubr.bf16.gmra.mxu0 %v3038_v42  ;;  %v2405_v3 = vld [vmem:[%s5564_s2 + $0x668] sm:$0xff] }
  0x69   :  { %v692_v23 = vadd.f32 %v542_v12, %v239_v6  ;;  %v693_v24 = vadd.f32 %v543_v14, %v240_v11  ;;  %v223_v25 = vmul.f32 %v3200_v7, %v72_v59  ;;  %v224_v26 = vmul.f32 %v3200_v7, %v73_v0  ;;  %v2555_v4 = vld [vmem:[%s5564_s2 + $0xb10] sm:$0xff]  ;;  %v2437_v42 = vld [vmem:[%s5564_s2 + $0x768] sm:$0xff] }
  0x6a   :  { %2873 = vmatprep.subr.bf16.mxu0 %v1374_v17  ;;  %v1366_v30 = vpack.c.bf16 %v1164_v20, %v1163_v18  ;;  %v526_v31 = vmul.f32 %v2390_v1, %v3213_v13  ;;  %v527_v32 = vmul.f32 %v2391_v2, %v3213_v13  ;;  %v979_v33 = vmul.f32 %v2541_v8, %v3224_v19  ;;  %v2404_v2 = vld [vmem:[%s5564_s2 + $0x660] sm:$0xff]  ;;  %v70_v16 = vld [vmem:[%s5564_s2 + $0x130] sm:$0xff]  ;;  %v71_v17 = vld [vmem:[%s5564_s2 + $0x138] sm:$0xff] }
  0x6b   :  { %v1145_v37 = vadd.f32 %v995_v15, %v692_v23  ;;  %v1146_v38 = vadd.f32 %v996_v21, %v693_v24  ;;  %v980_v39 = vmul.f32 %v2542_v9, %v3224_v19  ;;  %v271_v40 = vmul.f32 %v3200_v7, %v120_v10  ;;  %v2556_v10 = vld [vmem:[%s5564_s2 + $0xb18] sm:$0xff]  ;;  %v2388_v23 = vld [vmem:[%s5564_s2 + $0x5e0] sm:$0xff]  ;;  %v2389_v24 = vld [vmem:[%s5564_s2 + $0x5e8] sm:$0xff] }
  0x6c   :  { %2874 = vmatpush3.bf16.msra.mxu0 %v1366_v30  ;;  %v676_v43 = vadd.f32 %v526_v31, %v223_v25  ;;  %v677_v44 = vadd.f32 %v527_v32, %v224_v26  ;;  %v272_v45 = vmul.f32 %v3200_v7, %v121_v27  ;;  %v574_v46 = vmul.f32 %v2438_v28, %v3213_v13  ;;  %v2539_v25 = vld [vmem:[%s5564_s2 + $0xa90] sm:$0xff]  ;;  %v2540_v30 = vld [vmem:[%s5564_s2 + $0xa98] sm:$0xff] }
  0x6d   :  { %v1357_v50 = vpack.c.bf16 %v1146_v38, %v1145_v37  ;;  %v575_v51 = vmul.f32 %v2439_v34, %v3213_v13  ;;  %v1027_v52 = vmul.f32 %v2589_v35, %v3224_v19  ;;  %v1028_v53 = vmul.f32 %v2590_v36, %v3224_v19  ;;  %v118_v31 = vld [vmem:[%s5564_s2 + $0x2b0] sm:$0xff]  ;;  %v119_v36 = vld [vmem:[%s5564_s2 + $0x2b8] sm:$0xff]  ;;  %v2436_v37 = vld [vmem:[%s5564_s2 + $0x760] sm:$0xff] }
  0x6e   :  { %v1129_v56 = vadd.f32 %v979_v33, %v676_v43  ;;  %v1130_v57 = vadd.f32 %v980_v39, %v677_v44  ;;  %v724_v58 = vadd.f32 %v574_v46, %v271_v40  ;;  %v255_v59 = vmul.f32 %v3200_v7, %v104_v41  ;;  %v2587_v43 = vld [vmem:[%s5564_s2 + $0xc10] sm:$0xff]  ;;  %v2588_v44 = vld [vmem:[%s5564_s2 + $0xc18] sm:$0xff] }
  0x6f   :  { %2811 = vmatprep.subr.bf16.mxu1 %v1357_v50  ;;  %v725_v62 = vadd.f32 %v575_v51, %v272_v45  ;;  %v256_v63 = vmul.f32 %v3200_v7, %v105_v47  ;;  %v558_v0 = vmul.f32 %v2422_v48, %v3213_v13  ;;  %v559_v1 = vmul.f32 %v2423_v49, %v3213_v13  ;;  %v102_v49 = vld [vmem:[%s5564_s2 + $0x230] sm:$0xff]  ;;  %v103_v50 = vld [vmem:[%s5564_s2 + $0x238] sm:$0xff] }
  0x70   :  { %v1349_v5 = vpack.c.bf16 %v1130_v57, %v1129_v56  ;;  %v1177_v6 = vadd.f32 %v1027_v52, %v724_v58  ;;  %v1011_v8 = vmul.f32 %v2573_v54, %v3224_v19  ;;  %v1012_v9 = vmul.f32 %v2574_v55, %v3224_v19  ;;  %v2420_v55 = vld [vmem:[%s5564_s2 + $0x6e0] sm:$0xff]  ;;  %v2421_v56 = vld [vmem:[%s5564_s2 + $0x6e8] sm:$0xff]  ;;  %v2571_v57 = vld [vmem:[%s5564_s2 + $0xb90] sm:$0xff] }
  0x71   :  { %v1178_v11 = vadd.f32 %v1028_v53, %v725_v62  ;;  %v708_v12 = vadd.f32 %v558_v0, %v255_v59  ;;  %v709_v14 = vadd.f32 %v559_v1, %v256_v63  ;;  %v237_v15 = vmul.f32 %v3200_v7, %v86_v60  ;;  %v2572_v62 = vld [vmem:[%s5564_s2 + $0xb98] sm:$0xff]  ;;  %v84_v63 = vld [vmem:[%s5564_s2 + $0x1a0] sm:$0xff]  ;;  %v85_v0 = vld [vmem:[%s5564_s2 + $0x1a8] sm:$0xff] }
  0x72   :  { %2812 = vmatpush3.bf16.msra.mxu1 %v1349_v5  ;;  %v238_v18 = vmul.f32 %v3200_v7, %v87_v61  ;;  %v540_v20 = vmul.f32 %v2404_v2, %v3213_v13  ;;  %v541_v21 = vmul.f32 %v2405_v3, %v3213_v13  ;;  %v993_v22 = vmul.f32 %v2555_v4, %v3224_v19  ;;  %v2402_v5 = vld [vmem:[%s5564_s2 + $0x650] sm:$0xff] }
  0x73   :  { %v1373_v26 = vpack.c.bf16 %v1178_v11, %v1177_v6  ;;  %v1161_v27 = vadd.f32 %v1011_v8, %v708_v12  ;;  %v1162_v28 = vadd.f32 %v1012_v9, %v709_v14  ;;  %v994_v29 = vmul.f32 %v2556_v10, %v3224_v19  ;;  %v2403_v6 = vld [vmem:[%s5564_s2 + $0x658] sm:$0xff]  ;;  %v2553_v12 = vld [vmem:[%s5564_s2 + $0xb00] sm:$0xff]  ;;  %v3041_v14 = vld [vmem:[%s5563_s1 + $0xc] ss:$40 sps:$4 sm:$0xff]  }
  0x74   :  { %v690_v32 = vadd.f32 %v540_v20, %v237_v15  ;;  %v691_v33 = vadd.f32 %v541_v21, %v238_v18  ;;  %v221_v34 = vmul.f32 %v3200_v7, %v70_v16  ;;  %v222_v35 = vmul.f32 %v3200_v7, %v71_v17  ;;  %v2554_v20 = vld [vmem:[%s5564_s2 + $0xb08] sm:$0xff]  ;;  %1956 = vmatprep.mubr.bf16.mxu1 %v3041_v14  ;;  %v82_v14 = vld [vmem:[%s5564_s2 + $0x190] sm:$0xff] }
  0x75   :  { %2875 = vmatprep.subr.bf16.mxu0 %v1373_v26  ;;  %v1365_v38 = vpack.c.bf16 %v1162_v28, %v1161_v27  ;;  %v524_v39 = vmul.f32 %v2388_v23, %v3213_v13  ;;  %v525_v40 = vmul.f32 %v2389_v24, %v3213_v13  ;;  %v977_v41 = vmul.f32 %v2539_v25, %v3224_v19  ;;  %v68_v25 = vld [vmem:[%s5564_s2 + $0x120] sm:$0xff]  ;;  %v69_v26 = vld [vmem:[%s5564_s2 + $0x128] sm:$0xff]  ;;  %v3044_v27 = vld [vmem:[%s5563_s1 + $0x14] ss:$40 sps:$4 sm:$0xff]  }
  0x76   :  { %v1143_v45 = vadd.f32 %v993_v22, %v690_v32  ;;  %v1144_v46 = vadd.f32 %v994_v29, %v691_v33  ;;  %v978_v47 = vmul.f32 %v2540_v30, %v3224_v19  ;;  %v269_v48 = vmul.f32 %v3200_v7, %v118_v31  ;;  %v2386_v32 = vld [vmem:[%s5564_s2 + $0x5d0] sm:$0xff]  ;;  %v2387_v33 = vld [vmem:[%s5564_s2 + $0x5d8] sm:$0xff]  ;;  %2053 = vmatprep.mubr.bf16.mxu0 %v3044_v27 }
  0x77   :  { %2876 = vmatpush3.bf16.msra.mxu0 %v1365_v38  ;;  %v674_v51 = vadd.f32 %v524_v39, %v221_v34  ;;  %v675_v52 = vadd.f32 %v525_v40, %v222_v35  ;;  %v270_v53 = vmul.f32 %v3200_v7, %v119_v36  ;;  %v572_v54 = vmul.f32 %v2436_v37, %v3213_v13  ;;  %v2537_v34 = vld [vmem:[%s5564_s2 + $0xa80] sm:$0xff]  ;;  %v2538_v39 = vld [vmem:[%s5564_s2 + $0xa88] sm:$0xff] }
  0x78   :  { %v1356_v58 = vpack.c.bf16 %v1144_v46, %v1143_v45  ;;  %v573_v59 = vmul.f32 %v2437_v42, %v3213_v13  ;;  %v1025_v60 = vmul.f32 %v2587_v43, %v3224_v19  ;;  %v1026_v61 = vmul.f32 %v2588_v44, %v3224_v19  ;;  %v116_v40 = vld [vmem:[%s5564_s2 + $0x2a0] sm:$0xff]  ;;  %v2434_v46 = vld [vmem:[%s5564_s2 + $0x750] sm:$0xff] }
  0x79   :  { %v1127_v1 = vadd.f32 %v977_v41, %v674_v51  ;;  %v1128_v2 = vadd.f32 %v978_v47, %v675_v52  ;;  %v722_v3 = vadd.f32 %v572_v54, %v269_v48  ;;  %v253_v4 = vmul.f32 %v3200_v7, %v102_v49  ;;  %v117_v41 = vld [vmem:[%s5564_s2 + $0x2a8] sm:$0xff]  ;;  %v2435_v47 = vld [vmem:[%s5564_s2 + $0x758] sm:$0xff]  ;;  %v2585_v48 = vld [vmem:[%s5564_s2 + $0xc00] sm:$0xff] }
  0x7a   :  { %2813 = vmatprep.subr.bf16.mxu1 %v1356_v58  ;;  %v723_v8 = vadd.f32 %v573_v59, %v270_v53  ;;  %v254_v9 = vmul.f32 %v3200_v7, %v103_v50  ;;  %v556_v10 = vmul.f32 %v2420_v55, %v3213_v13  ;;  %v557_v11 = vmul.f32 %v2421_v56, %v3213_v13  ;;  %v2586_v53 = vld [vmem:[%s5564_s2 + $0xc08] sm:$0xff]  ;;  %v100_v58 = vld [vmem:[%s5564_s2 + $0x220] sm:$0xff] }
  0x7b   :  { %v1348_v15 = vpack.c.bf16 %v1128_v2, %v1127_v1  ;;  %v1175_v16 = vadd.f32 %v1025_v60, %v722_v3  ;;  %v1009_v17 = vmul.f32 %v2571_v57, %v3224_v19  ;;  %v1010_v18 = vmul.f32 %v2572_v62, %v3224_v19  ;;  %v2419_v1 = vld [vmem:[%s5564_s2 + $0x6d8] sm:$0xff] }
  0x7c   :  { %v1176_v21 = vadd.f32 %v1026_v61, %v723_v8  ;;  %v706_v22 = vadd.f32 %v556_v10, %v253_v4  ;;  %v707_v23 = vadd.f32 %v557_v11, %v254_v9  ;;  %v235_v24 = vmul.f32 %v3200_v7, %v84_v63  ;;  %v101_v63 = vld [vmem:[%s5564_s2 + $0x228] sm:$0xff] }
  0x7d   :  { %2814 = vmatpush3.bf16.msra.mxu1 %v1348_v15  ;;  %v236_v28 = vmul.f32 %v3200_v7, %v85_v0  ;;  %v538_v29 = vmul.f32 %v2402_v5, %v3213_v13  ;;  %v539_v30 = vmul.f32 %v2403_v6, %v3213_v13  ;;  %v991_v31 = vmul.f32 %v2553_v12, %v3224_v19  ;;  %v2418_v0 = vld [vmem:[%s5564_s2 + $0x6d0] sm:$0xff]  ;;  %v2569_v6 = vld [vmem:[%s5564_s2 + $0xb80] sm:$0xff]  ;;  %v2570_v8 = vld [vmem:[%s5564_s2 + $0xb88] sm:$0xff] }
  0x7e   :  { %v1372_v35 = vpack.c.bf16 %v1176_v21, %v1175_v16  ;;  %v1159_v36 = vadd.f32 %v1009_v17, %v706_v22  ;;  %v1160_v37 = vadd.f32 %v1010_v18, %v707_v23  ;;  %v992_v38 = vmul.f32 %v2554_v20, %v3224_v19  ;;  %v83_v15 = vld [vmem:[%s5564_s2 + $0x198] sm:$0xff]  ;;  %v2400_v21 = vld [vmem:[%s5564_s2 + $0x640] sm:$0xff]  ;;  %v2401_v22 = vld [vmem:[%s5564_s2 + $0x648] sm:$0xff] }
  0x7f   :  { %v688_v42 = vadd.f32 %v538_v29, %v235_v24  ;;  %v689_v43 = vadd.f32 %v539_v30, %v236_v28  ;;  %v219_v44 = vmul.f32 %v3200_v7, %v68_v25  ;;  %v220_v45 = vmul.f32 %v3200_v7, %v69_v26  ;;  %v2551_v23 = vld [vmem:[%s5564_s2 + $0xaf0] sm:$0xff]  ;;  %v2552_v28 = vld [vmem:[%s5564_s2 + $0xaf8] sm:$0xff] }
  0x80   :  { %2877 = vmatprep.subr.bf16.mxu0 %v1372_v35  ;;  %v1364_v49 = vpack.c.bf16 %v1160_v37, %v1159_v36  ;;  %v522_v50 = vmul.f32 %v2386_v32, %v3213_v13  ;;  %v523_v51 = vmul.f32 %v2387_v33, %v3213_v13  ;;  %v975_v52 = vmul.f32 %v2537_v34, %v3224_v19  ;;  %v66_v33 = vld [vmem:[%s5564_s2 + $0x110] sm:$0xff]  ;;  %v67_v34 = vld [vmem:[%s5564_s2 + $0x118] sm:$0xff] }
  0x81   :  { %v1141_v54 = vadd.f32 %v991_v31, %v688_v42  ;;  %v1142_v55 = vadd.f32 %v992_v38, %v689_v43  ;;  %v976_v56 = vmul.f32 %v2538_v39, %v3224_v19  ;;  %v267_v57 = vmul.f32 %v3200_v7, %v116_v40  ;;  %v2384_v39 = vld [vmem:[%s5564_s2 + $0x5c0] sm:$0xff]  ;;  %v2385_v40 = vld [vmem:[%s5564_s2 + $0x5c8] sm:$0xff] }
  0x82   :  { %2878 = vmatpush3.bf16.msra.mxu0 %v1364_v49  ;;  %v672_v59 = vadd.f32 %v522_v50, %v219_v44  ;;  %v673_v60 = vadd.f32 %v523_v51, %v220_v45  ;;  %v268_v61 = vmul.f32 %v3200_v7, %v117_v41  ;;  %v570_v62 = vmul.f32 %v2434_v46, %v3213_v13  ;;  %v2535_v41 = vld [vmem:[%s5564_s2 + $0xa70] sm:$0xff]  ;;  %v2536_v46 = vld [vmem:[%s5564_s2 + $0xa78] sm:$0xff] }
  0x83   :  { %v1355_v2 = vpack.c.bf16 %v1142_v55, %v1141_v54  ;;  %v571_v3 = vmul.f32 %v2435_v47, %v3213_v13  ;;  %v1023_v4 = vmul.f32 %v2585_v48, %v3224_v19  ;;  %v1024_v5 = vmul.f32 %v2586_v53, %v3224_v19  ;;  %v114_v47 = vld [vmem:[%s5564_s2 + $0x290] sm:$0xff]  ;;  %v115_v48 = vld [vmem:[%s5564_s2 + $0x298] sm:$0xff]  ;;  %v2432_v53 = vld [vmem:[%s5564_s2 + $0x740] sm:$0xff] }
  0x84   :  { %v1125_v9 = vadd.f32 %v975_v52, %v672_v59  ;;  %v1126_v10 = vadd.f32 %v976_v56, %v673_v60  ;;  %v720_v11 = vadd.f32 %v570_v62, %v267_v57  ;;  %v251_v12 = vmul.f32 %v3200_v7, %v100_v58  ;;  %v2433_v54 = vld [vmem:[%s5564_s2 + $0x748] sm:$0xff]  ;;  %v2583_v55 = vld [vmem:[%s5564_s2 + $0xbf0] sm:$0xff]  ;;  %v2584_v60 = vld [vmem:[%s5564_s2 + $0xbf8] sm:$0xff] }
  0x85   :  { %2815 = vmatprep.subr.bf16.mxu1 %v1355_v2  ;;  %v721_v16 = vadd.f32 %v571_v3, %v268_v61  ;;  %v252_v17 = vmul.f32 %v3200_v7, %v101_v63  ;;  %v554_v18 = vmul.f32 %v2418_v0, %v3213_v13  ;;  %v555_v20 = vmul.f32 %v2419_v1, %v3213_v13  ;;  %v98_v1 = vld [vmem:[%s5564_s2 + $0x210] sm:$0xff] }
  0x86   :  { %v1347_v24 = vpack.c.bf16 %v1126_v10, %v1125_v9  ;;  %v1173_v25 = vadd.f32 %v1023_v4, %v720_v11  ;;  %v1007_v26 = vmul.f32 %v2569_v6, %v3224_v19  ;;  %v1008_v27 = vmul.f32 %v2570_v8, %v3224_v19  ;;  %v99_v6 = vld [vmem:[%s5564_s2 + $0x218] sm:$0xff]  ;;  %v2416_v8 = vld [vmem:[%s5564_s2 + $0x6c0] sm:$0xff]  ;;  %v2417_v9 = vld [vmem:[%s5564_s2 + $0x6c8] sm:$0xff] }
  0x87   :  { %v1174_v29 = vadd.f32 %v1024_v5, %v721_v16  ;;  %v704_v30 = vadd.f32 %v554_v18, %v251_v12  ;;  %v705_v31 = vadd.f32 %v555_v20, %v252_v17  ;;  %v233_v32 = vmul.f32 %v3200_v7, %v82_v14  ;;  %v2568_v16 = vld [vmem:[%s5564_s2 + $0xb78] sm:$0xff] }
  0x88   :  { %2816 = vmatpush3.bf16.msra.mxu1 %v1347_v24  ;;  %v234_v35 = vmul.f32 %v3200_v7, %v83_v15  ;;  %v536_v36 = vmul.f32 %v2400_v21, %v3213_v13  ;;  %v537_v37 = vmul.f32 %v2401_v22, %v3213_v13  ;;  %v989_v38 = vmul.f32 %v2551_v23, %v3224_v19  ;;  %v2567_v15 = vld [vmem:[%s5564_s2 + $0xb70] sm:$0xff]  ;;  %v80_v22 = vld [vmem:[%s5564_s2 + $0x180] sm:$0xff]  ;;  %v81_v23 = vld [vmem:[%s5564_s2 + $0x188] sm:$0xff] }
  0x89   :  { %v1371_v42 = vpack.c.bf16 %v1174_v29, %v1173_v25  ;;  %v1157_v43 = vadd.f32 %v1007_v26, %v704_v30  ;;  %v1158_v44 = vadd.f32 %v1008_v27, %v705_v31  ;;  %v990_v45 = vmul.f32 %v2552_v28, %v3224_v19  ;;  %v2398_v28 = vld [vmem:[%s5564_s2 + $0x630] sm:$0xff]  ;;  %v2399_v29 = vld [vmem:[%s5564_s2 + $0x638] sm:$0xff]  ;;  %v2549_v30 = vld [vmem:[%s5564_s2 + $0xae0] sm:$0xff] }
  0x8a   :  { %v686_v49 = vadd.f32 %v536_v36, %v233_v32  ;;  %v687_v50 = vadd.f32 %v537_v37, %v234_v35  ;;  %v217_v51 = vmul.f32 %v3200_v7, %v66_v33  ;;  %v218_v52 = vmul.f32 %v3200_v7, %v67_v34  ;;  %v2550_v35 = vld [vmem:[%s5564_s2 + $0xae8] sm:$0xff]  ;;  %v64_v36 = vld [vmem:[%s5564_s2 + $0x100] sm:$0xff] }
  0x8b   :  { %2879 = vmatprep.subr.bf16.mxu0 %v1371_v42  ;;  %v1363_v56 = vpack.c.bf16 %v1158_v44, %v1157_v43  ;;  %v520_v57 = vmul.f32 %v2384_v39, %v3213_v13  ;;  %v521_v58 = vmul.f32 %v2385_v40, %v3213_v13  ;;  %v973_v59 = vmul.f32 %v2535_v41, %v3224_v19  ;;  %v65_v41 = vld [vmem:[%s5564_s2 + $0x108] sm:$0xff]  ;;  %v2382_v42 = vld [vmem:[%s5564_s2 + $0x5b0] sm:$0xff]  ;;  %v2383_v43 = vld [vmem:[%s5564_s2 + $0x5b8] sm:$0xff] }
  0x8c   :  { %v1139_v61 = vadd.f32 %v989_v38, %v686_v49  ;;  %v1140_v62 = vadd.f32 %v990_v45, %v687_v50  ;;  %v974_v63 = vmul.f32 %v2536_v46, %v3224_v19  ;;  %v265_v0 = vmul.f32 %v3200_v7, %v114_v47  ;;  %v2534_v49 = vld [vmem:[%s5564_s2 + $0xa68] sm:$0xff] }
  0x8d   :  { %2880 = vmatpush3.bf16.msra.mxu0 %v1363_v56  ;;  %v670_v2 = vadd.f32 %v520_v57, %v217_v51  ;;  %v671_v3 = vadd.f32 %v521_v58, %v218_v52  ;;  %v266_v4 = vmul.f32 %v3200_v7, %v115_v48  ;;  %v568_v5 = vmul.f32 %v2432_v53, %v3213_v13  ;;  %v2533_v48 = vld [vmem:[%s5564_s2 + $0xa60] sm:$0xff] }
  0x8e   :  { %v1354_v10 = vpack.c.bf16 %v1140_v62, %v1139_v61  ;;  %v569_v11 = vmul.f32 %v2433_v54, %v3213_v13  ;;  %v1021_v12 = vmul.f32 %v2583_v55, %v3224_v19  ;;  %v1022_v14 = vmul.f32 %v2584_v60, %v3224_v19  ;;  %v112_v54 = vld [vmem:[%s5564_s2 + $0x280] sm:$0xff]  ;;  %v113_v55 = vld [vmem:[%s5564_s2 + $0x288] sm:$0xff]  ;;  %v2430_v60 = vld [vmem:[%s5564_s2 + $0x730] sm:$0xff] }
  0x8f   :  { %v1123_v17 = vadd.f32 %v973_v59, %v670_v2  ;;  %v1124_v18 = vadd.f32 %v974_v63, %v671_v3  ;;  %v718_v20 = vadd.f32 %v568_v5, %v265_v0  ;;  %v249_v21 = vmul.f32 %v3200_v7, %v98_v1  ;;  %v2431_v1 = vld [vmem:[%s5564_s2 + $0x738] sm:$0xff]  ;;  %v2581_v2 = vld [vmem:[%s5564_s2 + $0xbe0] sm:$0xff]  ;;  %v2582_v3 = vld [vmem:[%s5564_s2 + $0xbe8] sm:$0xff] }
  0x90   :  { %2817 = vmatprep.subr.bf16.mxu1 %v1354_v10  ;;  %v719_v24 = vadd.f32 %v569_v11, %v266_v4  ;;  %v250_v25 = vmul.f32 %v3200_v7, %v99_v6  ;;  %v552_v26 = vmul.f32 %v2416_v8, %v3213_v13  ;;  %v553_v27 = vmul.f32 %v2417_v9, %v3213_v13  ;;  %v96_v9 = vld [vmem:[%s5564_s2 + $0x200] sm:$0xff] }
  0x91   :  { %v1346_v31 = vpack.c.bf16 %v1124_v18, %v1123_v17  ;;  %v1171_v32 = vadd.f32 %v1021_v12, %v718_v20  ;;  %v1005_v33 = vmul.f32 %v2567_v15, %v3224_v19  ;;  %v1006_v34 = vmul.f32 %v2568_v16, %v3224_v19  ;;  %v97_v15 = vld [vmem:[%s5564_s2 + $0x208] sm:$0xff]  ;;  %v2414_v16 = vld [vmem:[%s5564_s2 + $0x6b0] sm:$0xff]  ;;  %v2415_v17 = vld [vmem:[%s5564_s2 + $0x6b8] sm:$0xff] }
  0x92   :  { %v1172_v37 = vadd.f32 %v1022_v14, %v719_v24  ;;  %v702_v38 = vadd.f32 %v552_v26, %v249_v21  ;;  %v703_v39 = vadd.f32 %v553_v27, %v250_v25  ;;  %v231_v40 = vmul.f32 %v3200_v7, %v80_v22  ;;  %v2566_v24 = vld [vmem:[%s5564_s2 + $0xb68] sm:$0xff] }
  0x93   :  { %2818 = vmatpush3.bf16.msra.mxu1 %v1346_v31  ;;  %v232_v44 = vmul.f32 %v3200_v7, %v81_v23  ;;  %v534_v45 = vmul.f32 %v2398_v28, %v3213_v13  ;;  %v535_v46 = vmul.f32 %v2399_v29, %v3213_v13  ;;  %v987_v47 = vmul.f32 %v2549_v30, %v3224_v19  ;;  %v2565_v23 = vld [vmem:[%s5564_s2 + $0xb60] sm:$0xff]  ;;  %v158_v29 = vld [vmem:[%s5564_s2 + $0x3f0] sm:$0xff]  ;;  %v159_v30 = vld [vmem:[%s5564_s2 + $0x3f8] sm:$0xff] }
  0x94   :  { %v1370_v50 = vpack.c.bf16 %v1172_v37, %v1171_v32  ;;  %v1155_v51 = vadd.f32 %v1005_v33, %v702_v38  ;;  %v1156_v52 = vadd.f32 %v1006_v34, %v703_v39  ;;  %v988_v53 = vmul.f32 %v2550_v35, %v3224_v19  ;;  %v2476_v35 = vld [vmem:[%s5564_s2 + $0x8a0] sm:$0xff]  ;;  %v2627_v37 = vld [vmem:[%s5564_s2 + $0xd50] sm:$0xff] }
  0x95   :  { %v684_v56 = vadd.f32 %v534_v45, %v231_v40  ;;  %v685_v57 = vadd.f32 %v535_v46, %v232_v44  ;;  %v215_v58 = vmul.f32 %v3200_v7, %v64_v36  ;;  %v216_v59 = vmul.f32 %v3200_v7, %v65_v41  ;;  %v2477_v36 = vld [vmem:[%s5564_s2 + $0x8a8] sm:$0xff] }
  0x96   :  { %2881 = vmatprep.subr.bf16.mxu0 %v1370_v50  ;;  %v1362_v61 = vpack.c.bf16 %v1156_v52, %v1155_v51  ;;  %v518_v62 = vmul.f32 %v2382_v42, %v3213_v13  ;;  %v519_v63 = vmul.f32 %v2383_v43, %v3213_v13  ;;  %v971_v0 = vmul.f32 %v2533_v48, %v3224_v19  ;;  %v2628_v42 = vld [vmem:[%s5564_s2 + $0xd58] sm:$0xff]  ;;  %v3039_v46 = vld [vmem:[%s5563_s1 + $0x8] ss:$40 sps:$4 sm:$0xff]  }
  0x97   :  { %v1137_v4 = vadd.f32 %v987_v47, %v684_v56  ;;  %v1138_v5 = vadd.f32 %v988_v53, %v685_v57  ;;  %v972_v6 = vmul.f32 %v2534_v49, %v3224_v19  ;;  %v263_v8 = vmul.f32 %v3200_v7, %v112_v54  ;;  %v142_v48 = vld [vmem:[%s5564_s2 + $0x370] sm:$0xff]  ;;  %v143_v49 = vld [vmem:[%s5564_s2 + $0x378] sm:$0xff]  ;;  %v2460_v54 = vld [vmem:[%s5564_s2 + $0x820] sm:$0xff] }
  0x98   :  { %2882 = vmatpush3.bf16.msra.mxu0 %v1362_v61  ;;  %v668_v10 = vadd.f32 %v518_v62, %v215_v58  ;;  %v669_v11 = vadd.f32 %v519_v63, %v216_v59  ;;  %v264_v12 = vmul.f32 %v3200_v7, %v113_v55  ;;  %v566_v14 = vmul.f32 %v2430_v60, %v3213_v13  ;;  %v2461_v55 = vld [vmem:[%s5564_s2 + $0x828] sm:$0xff]  ;;  %v3045_v56 = vld [vmem:[%s5563_s1 + $0x5c] ss:$40 sps:$4 sm:$0xff]   ;;  %v2611_v61 = vld [vmem:[%s5564_s2 + $0xcd0] sm:$0xff] }
  0x99   :  { %v1353_v18 = vpack.c.bf16 %v1138_v5, %v1137_v4  ;;  %v567_v20 = vmul.f32 %v2431_v1, %v3213_v13  ;;  %v1019_v21 = vmul.f32 %v2581_v2, %v3224_v19  ;;  %v1020_v22 = vmul.f32 %v2582_v3, %v3224_v19  ;;  %v2612_v62 = vld [vmem:[%s5564_s2 + $0xcd8] sm:$0xff]  ;;  %v174_v3 = vld [vmem:[%s5564_s2 + $0x470] sm:$0xff] }
  0x9a   :  { %v1121_v25 = vadd.f32 %v971_v0, %v668_v10  ;;  %v1122_v26 = vadd.f32 %v972_v6, %v669_v11  ;;  %v716_v27 = vadd.f32 %v566_v14, %v263_v8  ;;  %v247_v28 = vmul.f32 %v3200_v7, %v96_v9  ;;  %v175_v4 = vld [vmem:[%s5564_s2 + $0x478] sm:$0xff]  ;;  %v2492_v9 = vld [vmem:[%s5564_s2 + $0x920] sm:$0xff]  ;;  %v2493_v10 = vld [vmem:[%s5564_s2 + $0x928] sm:$0xff] }
  0x9b   :  { %2819 = vmatprep.subr.bf16.mxu1 %v1353_v18  ;;  %v717_v31 = vadd.f32 %v567_v20, %v264_v12  ;;  %v248_v32 = vmul.f32 %v3200_v7, %v97_v15  ;;  %v550_v33 = vmul.f32 %v2414_v16, %v3213_v13  ;;  %v551_v34 = vmul.f32 %v2415_v17, %v3213_v13  ;;  %v2643_v11 = vld [vmem:[%s5564_s2 + $0xdd0] sm:$0xff]  ;;  %v2644_v18 = vld [vmem:[%s5564_s2 + $0xdd8] sm:$0xff]  ;;  %v156_v20 = vld [vmem:[%s5564_s2 + $0x3e0] sm:$0xff] }
  0x9c   :  { %v1345_v38 = vpack.c.bf16 %v1122_v26, %v1121_v25  ;;  %v1169_v39 = vadd.f32 %v1019_v21, %v716_v27  ;;  %v1003_v40 = vmul.f32 %v2565_v23, %v3224_v19  ;;  %v1004_v41 = vmul.f32 %v2566_v24, %v3224_v19  ;;  %v3042_v12 = vld [vmem:[%s5563_s1 + $0x10] ss:$40 sps:$4 sm:$0xff]   ;;  %v3048_v25 = vld [vmem:[%s5563_s1 + $0x64] ss:$40 sps:$4 sm:$0xff]  }
  0x9d   :  { %v1170_v43 = vadd.f32 %v1020_v22, %v717_v31  ;;  %v700_v44 = vadd.f32 %v550_v33, %v247_v28  ;;  %v701_v45 = vadd.f32 %v551_v34, %v248_v32  ;;  %v309_v47 = vmul.f32 %v3200_v7, %v158_v29  ;;  %v157_v26 = vld [vmem:[%s5564_s2 + $0x3e8] sm:$0xff]  ;;  %v2474_v27 = vld [vmem:[%s5564_s2 + $0x890] sm:$0xff]  ;;  %v3047_v33 = vld [vmem:[%s5563_s1 + $0x58] ss:$40 sps:$4 sm:$0xff]  }
  0x9e   :  { %2820 = vmatpush3.bf16.msra.mxu1 %v1345_v38  ;;  %v310_v50 = vmul.f32 %v3200_v7, %v159_v30  ;;  %v612_v51 = vmul.f32 %v2476_v35, %v3213_v13  ;;  %v613_v52 = vmul.f32 %v2477_v36, %v3213_v13  ;;  %v1065_v53 = vmul.f32 %v2627_v37, %v3224_v19  ;;  %v2475_v34 = vld [vmem:[%s5564_s2 + $0x898] sm:$0xff]  ;;  %v2625_v35 = vld [vmem:[%s5564_s2 + $0xd40] sm:$0xff]  ;;  %v2626_v36 = vld [vmem:[%s5564_s2 + $0xd48] sm:$0xff] }
  0x9f   :  { %v1369_v57 = vpack.c.bf16 %v1170_v43, %v1169_v39  ;;  %v1153_v58 = vadd.f32 %v1003_v40, %v700_v44  ;;  %v1154_v59 = vadd.f32 %v1004_v41, %v701_v45  ;;  %v1066_v60 = vmul.f32 %v2628_v42, %v3224_v19  ;;  %v140_v41 = vld [vmem:[%s5564_s2 + $0x360] sm:$0xff]  ;;  %v141_v42 = vld [vmem:[%s5564_s2 + $0x368] sm:$0xff]  ;;  %v2458_v43 = vld [vmem:[%s5564_s2 + $0x810] sm:$0xff] }
  0xa0   :  { %v762_v63 = vadd.f32 %v612_v51, %v309_v47  ;;  %v763_v0 = vadd.f32 %v613_v52, %v310_v50  ;;  %v293_v1 = vmul.f32 %v3200_v7, %v142_v48  ;;  %v294_v2 = vmul.f32 %v3200_v7, %v143_v49  ;;  %v2459_v47 = vld [vmem:[%s5564_s2 + $0x818] sm:$0xff]  ;;  %v2609_v48 = vld [vmem:[%s5564_s2 + $0xcc0] sm:$0xff]  ;;  %v2610_v49 = vld [vmem:[%s5564_s2 + $0xcc8] sm:$0xff] }
  0xa1   :  { %2883 = vmatprep.subr.bf16.mxu0 %v1369_v57  ;;  %v1361_v5 = vpack.c.bf16 %v1154_v59, %v1153_v58  ;;  %1957 = vmatmul.mubr.bf16.vlgmr.msra.gmra.mxu1 %v3039_v46  ;;  %v596_v6 = vmul.f32 %v2460_v54, %v3213_v13  ;;  %v597_v8 = vmul.f32 %v2461_v55, %v3213_v13  ;;  %v3150_v29 = vmov 0   ;;  %v3051_v54 = vld [vmem:[%s5563_s1 + $0xac] ss:$40 sps:$4 sm:$0xff]   ;;  %v172_v59 = vld [vmem:[%s5564_s2 + $0x460] sm:$0xff] }
  0xa2   :  { %v1215_v14 = vadd.f32 %v1065_v53, %v762_v63  ;;  %v1216_v15 = vadd.f32 %v1066_v60, %v763_v0  ;;  %v1049_v16 = vmul.f32 %v2611_v61, %v3224_v19  ;;  %v1050_v17 = vmul.f32 %v2612_v62, %v3224_v19  ;;  %1964 = vmatprep.mubr.bf16.mxu1 %v3045_v56  ;;  %v173_v0 = vld [vmem:[%s5564_s2 + $0x468] sm:$0xff] }
  0xa3   :  { %2884 = vmatpush3.bf16.msra.mxu0 %v1361_v5  ;;  %v746_v21 = vadd.f32 %v596_v6, %v293_v1  ;;  %v747_v22 = vadd.f32 %v597_v8, %v294_v2  ;;  %v325_v23 = vmul.f32 %v3200_v7, %v174_v3  ;;  %v326_v24 = vmul.f32 %v3200_v7, %v175_v4  ;;  %v2490_v1 = vld [vmem:[%s5564_s2 + $0x910] sm:$0xff]  ;;  %v2491_v2 = vld [vmem:[%s5564_s2 + $0x918] sm:$0xff]  ;;  %v3050_v4 = vld [vmem:[%s5563_s1 + $0x60] ss:$40 sps:$4 sm:$0xff]  }
  0xa4   :  { %v1392_v28 = vpack.c.bf16 %v1216_v15, %v1215_v14  ;;  %2215 = vmatprep.subr.bf16.mxu0 %v3150_v29  ;;  %v628_v30 = vmul.f32 %v2492_v9, %v3213_v13  ;;  %v629_v31 = vmul.f32 %v2493_v10, %v3213_v13  ;;  %v1081_v32 = vmul.f32 %v2643_v11, %v3224_v19  ;;  %v2641_v9 = vld [vmem:[%s5564_s2 + $0xdc0] sm:$0xff]  ;;  %v2642_v10 = vld [vmem:[%s5564_s2 + $0xdc8] sm:$0xff] }
  0xa5   :  { %v1199_v37 = vadd.f32 %v1049_v16, %v746_v21  ;;  %v1200_v38 = vadd.f32 %v1050_v17, %v747_v22  ;;  %v1082_v39 = vmul.f32 %v2644_v18, %v3224_v19  ;;  %v307_v40 = vmul.f32 %v3200_v7, %v156_v20  ;;  %v3054_v16 = vld [vmem:[%s5563_s1 + $0xb4] ss:$40 sps:$4 sm:$0xff]  }
  0xa6   :  { %2933 = vmatprep.subr.bf16.mxu1 %v1392_v28  ;;  %2054 = vmatmul.mubr.bf16.vlgmr.msra.gmra.mxu0 %v3042_v12  ;;  %v778_v44 = vadd.f32 %v628_v30, %v325_v23  ;;  %v779_v45 = vadd.f32 %v629_v31, %v326_v24  ;;  %v308_v46 = vmul.f32 %v3200_v7, %v157_v26  ;;  %v154_v17 = vld [vmem:[%s5564_s2 + $0x3d0] sm:$0xff]  ;;  %v155_v23 = vld [vmem:[%s5564_s2 + $0x3d8] sm:$0xff]  ;;  %v2472_v24 = vld [vmem:[%s5564_s2 + $0x880] sm:$0xff] }
  0xa7   :  { %v1384_v50 = vpack.c.bf16 %v1200_v38, %v1199_v37  ;;  %2061 = vmatprep.mubr.bf16.mxu0 %v3048_v25  ;;  %v610_v51 = vmul.f32 %v2474_v27, %v3213_v13  ;;  %v611_v52 = vmul.f32 %v2475_v34, %v3213_v13  ;;  %v1063_v53 = vmul.f32 %v2625_v35, %v3224_v19  ;;  %v2473_v25 = vld [vmem:[%s5564_s2 + $0x888] sm:$0xff]  ;;  %v138_v34 = vld [vmem:[%s5564_s2 + $0x350] sm:$0xff] }
  0xa8   :  { %v1231_v55 = vadd.f32 %v1081_v32, %v778_v44  ;;  %v1232_v56 = vadd.f32 %v1082_v39, %v779_v45  ;;  %v1064_v57 = vmul.f32 %v2626_v36, %v3224_v19  ;;  %v291_v58 = vmul.f32 %v3200_v7, %v140_v41  ;;  %v3053_v31 = vld [vmem:[%s5563_s1 + $0xa8] ss:$40 sps:$4 sm:$0xff]   ;;  %v139_v39 = vld [vmem:[%s5564_s2 + $0x358] sm:$0xff] }
  0xa9   :  { %2934 = vmatpush3.bf16.msra.mxu1 %v1384_v50  ;;  %v760_v60 = vadd.f32 %v610_v51, %v307_v40  ;;  %v761_v61 = vadd.f32 %v611_v52, %v308_v46  ;;  %v292_v62 = vmul.f32 %v3200_v7, %v141_v42  ;;  %v594_v63 = vmul.f32 %v2458_v43, %v3213_v13  ;;  %v2623_v32 = vld [vmem:[%s5564_s2 + $0xd30] sm:$0xff]  ;;  %v2456_v40 = vld [vmem:[%s5564_s2 + $0x800] sm:$0xff]  ;;  %v2457_v41 = vld [vmem:[%s5564_s2 + $0x808] sm:$0xff] }
  0xaa   :  { %v1400_v3 = vpack.c.bf16 %v1232_v56, %v1231_v55  ;;  %1965 = vmatmul.mubr.bf16.gmra.mxu1 %v3047_v33  ;;  %v595_v5 = vmul.f32 %v2459_v47, %v3213_v13  ;;  %v1047_v6 = vmul.f32 %v2609_v48, %v3224_v19  ;;  %v1048_v8 = vmul.f32 %v2610_v49, %v3224_v19  ;;  %v2624_v33 = vld [vmem:[%s5564_s2 + $0xd38] sm:$0xff]  ;;  %v2607_v45 = vld [vmem:[%s5564_s2 + $0xcb0] sm:$0xff] }
  0xab   :  { %v1213_v11 = vadd.f32 %v1063_v53, %v760_v60  ;;  %v1214_v12 = vadd.f32 %v1064_v57, %v761_v61  ;;  %v744_v14 = vadd.f32 %v594_v63, %v291_v58  ;;  %v323_v15 = vmul.f32 %v3200_v7, %v172_v59  ;;  %1972 = vmatprep.mubr.bf16.mxu1 %v3051_v54  ;;  %v2608_v46 = vld [vmem:[%s5564_s2 + $0xcb8] sm:$0xff]  ;;  %v170_v52 = vld [vmem:[%s5564_s2 + $0x450] sm:$0xff]  ;;  %v2488_v58 = vld [vmem:[%s5564_s2 + $0x900] sm:$0xff] }
  0xac   :  { %2216 = vmatpush1.bf16.msra.mxu0 %v1400_v3  ;;  %v745_v18 = vadd.f32 %v595_v5, %v292_v62  ;;  %v324_v20 = vmul.f32 %v3200_v7, %v173_v0  ;;  %v626_v21 = vmul.f32 %v2490_v1, %v3213_v13  ;;  %v627_v22 = vmul.f32 %v2491_v2, %v3213_v13  ;;  %v3056_v51 = vld [vmem:[%s5563_s1 + $0xb0] ss:$40 sps:$4 sm:$0xff]   ;;  %v2489_v63 = vld [vmem:[%s5564_s2 + $0x908] sm:$0xff]  ;;  %v3057_v1 = vld [vmem:[%s5563_s1 + $0xfc] ss:$40 sps:$4 sm:$0xff]  }
  0xad   :  { %v1391_v26 = vpack.c.bf16 %v1214_v12, %v1213_v11  ;;  %v1197_v27 = vadd.f32 %v1047_v6, %v744_v14  ;;  %2217 = vmatprep.subr.bf16.mxu0 %v3150_v29  ;;  %v1079_v28 = vmul.f32 %v2641_v9, %v3224_v19  ;;  %v1080_v30 = vmul.f32 %v2642_v10, %v3224_v19  ;;  %v171_v53 = vld [vmem:[%s5564_s2 + $0x458] sm:$0xff]  ;;  %v2639_v0 = vld [vmem:[%s5564_s2 + $0xdb0] sm:$0xff]  ;;  %v152_v14 = vld [vmem:[%s5564_s2 + $0x3c0] sm:$0xff] }
  0xae   :  { %2062 = vmatmul.mubr.bf16.gmra.mxu0 %v3050_v4  ;;  %v1198_v35 = vadd.f32 %v1048_v8, %v745_v18  ;;  %v776_v36 = vadd.f32 %v626_v21, %v323_v15  ;;  %v777_v37 = vadd.f32 %v627_v22, %v324_v20  ;;  %v305_v38 = vmul.f32 %v3200_v7, %v154_v17  ;;  %v2640_v6 = vld [vmem:[%s5564_s2 + $0xdb8] sm:$0xff]  ;;  %v3060_v8 = vld [vmem:[%s5563_s1 + $0x104] ss:$40 sps:$4 sm:$0xff]   ;;  %v2470_v22 = vld [vmem:[%s5564_s2 + $0x870] sm:$0xff] }
  0xaf   :  { %2935 = vmatprep.subr.bf16.mxu1 %v1391_v26  ;;  %2069 = vmatprep.mubr.bf16.mxu0 %v3054_v16  ;;  %v306_v42 = vmul.f32 %v3200_v7, %v155_v23  ;;  %v608_v43 = vmul.f32 %v2472_v24, %v3213_v13  ;;  %v609_v44 = vmul.f32 %v2473_v25, %v3213_v13  ;;  %v3059_v20 = vld [vmem:[%s5563_s1 + $0xf8] ss:$40 sps:$4 sm:$0xff]   ;;  %v153_v21 = vld [vmem:[%s5564_s2 + $0x3c8] sm:$0xff] }
  0xb0   :  { %v1383_v47 = vpack.c.bf16 %v1198_v35, %v1197_v27  ;;  %v1229_v48 = vadd.f32 %v1079_v28, %v776_v36  ;;  %v1230_v49 = vadd.f32 %v1080_v30, %v777_v37  ;;  %v1061_v50 = vmul.f32 %v2623_v32, %v3224_v19  ;;  %v2471_v23 = vld [vmem:[%s5564_s2 + $0x878] sm:$0xff]  ;;  %v2621_v27 = vld [vmem:[%s5564_s2 + $0xd20] sm:$0xff]  ;;  %v2622_v28 = vld [vmem:[%s5564_s2 + $0xd28] sm:$0xff] }
  0xb1   :  { %v758_v54 = vadd.f32 %v608_v43, %v305_v38  ;;  %v759_v55 = vadd.f32 %v609_v44, %v306_v42  ;;  %v1062_v56 = vmul.f32 %v2624_v33, %v3224_v19  ;;  %v289_v57 = vmul.f32 %v3200_v7, %v138_v34  ;;  %v136_v30 = vld [vmem:[%s5564_s2 + $0x340] sm:$0xff]  ;;  %v137_v34 = vld [vmem:[%s5564_s2 + $0x348] sm:$0xff]  ;;  %v2454_v35 = vld [vmem:[%s5564_s2 + $0x7f0] sm:$0xff] }
  0xb2   :  { %2936 = vmatpush3.bf16.msra.mxu1 %v1383_v47  ;;  %v1399_v59 = vpack.c.bf16 %v1230_v49, %v1229_v48  ;;  %v290_v60 = vmul.f32 %v3200_v7, %v139_v39  ;;  %v592_v61 = vmul.f32 %v2456_v40, %v3213_v13  ;;  %v593_v62 = vmul.f32 %v2457_v41, %v3213_v13  ;;  %v2455_v36 = vld [vmem:[%s5564_s2 + $0x7f8] sm:$0xff]  ;;  %v3062_v41 = vld [vmem:[%s5563_s1 + $0x100] ss:$40 sps:$4 sm:$0xff]   ;;  %v3063_v44 = vld [vmem:[%s5563_s1 + $0x14c] ss:$40 sps:$4 sm:$0xff]  }
  0xb3   :  { %1973 = vmatmul.mubr.bf16.gmra.mxu1 %v3053_v31  ;;  %v1211_v2 = vadd.f32 %v1061_v50, %v758_v54  ;;  %v1212_v3 = vadd.f32 %v1062_v56, %v759_v55  ;;  %v1045_v4 = vmul.f32 %v2607_v45, %v3224_v19  ;;  %v1046_v5 = vmul.f32 %v2608_v46, %v3224_v19  ;;  %v2605_v42 = vld [vmem:[%s5564_s2 + $0xca0] sm:$0xff]  ;;  %v2606_v43 = vld [vmem:[%s5564_s2 + $0xca8] sm:$0xff]  ;;  %v2487_v56 = vld [vmem:[%s5564_s2 + $0x8f8] sm:$0xff] }
  0xb4   :  { %2218 = vmatpush1.bf16.msra.mxu0 %v1399_v59  ;;  %v742_v9 = vadd.f32 %v592_v61, %v289_v57  ;;  %v743_v10 = vadd.f32 %v593_v62, %v290_v60  ;;  %v321_v11 = vmul.f32 %v3200_v7, %v170_v52  ;;  %v322_v12 = vmul.f32 %v3200_v7, %v171_v53  ;;  %v168_v49 = vld [vmem:[%s5564_s2 + $0x440] sm:$0xff]  ;;  %v169_v50 = vld [vmem:[%s5564_s2 + $0x448] sm:$0xff]  ;;  %v3066_v62 = vld [vmem:[%s5563_s1 + $0x154] ss:$40 sps:$4 sm:$0xff]  }
  0xb5   :  { %v1390_v15 = vpack.c.bf16 %v1212_v3, %v1211_v2  ;;  %2219 = vmatprep.subr.bf16.mxu0 %v3150_v29  ;;  %v624_v16 = vmul.f32 %v2488_v58, %v3213_v13  ;;  %v625_v17 = vmul.f32 %v2489_v63, %v3213_v13  ;;  %v1077_v18 = vmul.f32 %v2639_v0, %v3224_v19  ;;  %v2637_v61 = vld [vmem:[%s5564_s2 + $0xda0] sm:$0xff]  ;;  %v2638_v3 = vld [vmem:[%s5564_s2 + $0xda8] sm:$0xff] }
  0xb6   :  { %2070 = vmatmul.mubr.bf16.gmra.mxu0 %v3056_v51  ;;  %v1195_v24 = vadd.f32 %v1045_v4, %v742_v9  ;;  %v1196_v25 = vadd.f32 %v1046_v5, %v743_v10  ;;  %v1078_v26 = vmul.f32 %v2640_v6, %v3224_v19  ;;  %1980 = vmatprep.mubr.bf16.mxu1 %v3057_v1  ;;  %v2486_v51 = vld [vmem:[%s5564_s2 + $0x8f0] sm:$0xff]  ;;  %v167_v10 = vld [vmem:[%s5564_s2 + $0x438] sm:$0xff] }
  0xb7   :  { %2937 = vmatprep.subr.bf16.mxu1 %v1390_v15  ;;  %v774_v31 = vadd.f32 %v624_v16, %v321_v11  ;;  %v775_v32 = vadd.f32 %v625_v17, %v322_v12  ;;  %2077 = vmatprep.mubr.bf16.mxu0 %v3060_v8  ;;  %v303_v33 = vmul.f32 %v3200_v7, %v152_v14  ;;  %v166_v4 = vld [vmem:[%s5564_s2 + $0x430] sm:$0xff]  ;;  %v2484_v11 = vld [vmem:[%s5564_s2 + $0x8e0] sm:$0xff]  ;;  %v2485_v12 = vld [vmem:[%s5564_s2 + $0x8e8] sm:$0xff] }
  0xb8   :  { %v1382_v37 = vpack.c.bf16 %v1196_v25, %v1195_v24  ;;  %v304_v38 = vmul.f32 %v3200_v7, %v153_v21  ;;  %v606_v39 = vmul.f32 %v2470_v22, %v3213_v13  ;;  %v607_v40 = vmul.f32 %v2471_v23, %v3213_v13  ;;  %v2635_v17 = vld [vmem:[%s5564_s2 + $0xd90] sm:$0xff] }
  0xb9   :  { %v1227_v45 = vadd.f32 %v1077_v18, %v774_v31  ;;  %v1228_v46 = vadd.f32 %v1078_v26, %v775_v32  ;;  %v1059_v47 = vmul.f32 %v2621_v27, %v3224_v19  ;;  %v1060_v48 = vmul.f32 %v2622_v28, %v3224_v19  ;;  %v2636_v18 = vld [vmem:[%s5564_s2 + $0xd98] sm:$0xff]  ;;  %v150_v25 = vld [vmem:[%s5564_s2 + $0x3b0] sm:$0xff]  ;;  %v2468_v27 = vld [vmem:[%s5564_s2 + $0x860] sm:$0xff] }
  0xba   :  { %2938 = vmatpush3.bf16.msra.mxu1 %v1382_v37  ;;  %v756_v52 = vadd.f32 %v606_v39, %v303_v33  ;;  %v757_v53 = vadd.f32 %v607_v40, %v304_v38  ;;  %v287_v54 = vmul.f32 %v3200_v7, %v136_v30  ;;  %v288_v55 = vmul.f32 %v3200_v7, %v137_v34  ;;  %v151_v26 = vld [vmem:[%s5564_s2 + $0x3b8] sm:$0xff]  ;;  %v2469_v33 = vld [vmem:[%s5564_s2 + $0x868] sm:$0xff]  ;;  %v2619_v34 = vld [vmem:[%s5564_s2 + $0xd10] sm:$0xff] }
  0xbb   :  { %v1398_v57 = vpack.c.bf16 %v1228_v46, %v1227_v45  ;;  %1981 = vmatmul.mubr.bf16.gmra.mxu1 %v3059_v20  ;;  %v590_v58 = vmul.f32 %v2454_v35, %v3213_v13  ;;  %v591_v59 = vmul.f32 %v2455_v36, %v3213_v13  ;;  %v1043_v60 = vmul.f32 %v2605_v42, %v3224_v19  ;;  %v3065_v20 = vld [vmem:[%s5563_s1 + $0x148] ss:$40 sps:$4 sm:$0xff]   ;;  %v2620_v35 = vld [vmem:[%s5564_s2 + $0xd18] sm:$0xff] }
  0xbc   :  { %v1209_v63 = vadd.f32 %v1059_v47, %v756_v52  ;;  %v1210_v0 = vadd.f32 %v1060_v48, %v757_v53  ;;  %v1044_v1 = vmul.f32 %v2606_v43, %v3224_v19  ;;  %v319_v2 = vmul.f32 %v3200_v7, %v168_v49  ;;  %1988 = vmatprep.mubr.bf16.mxu1 %v3063_v44  ;;  %v3068_v40 = vld [vmem:[%s5563_s1 + $0x150] ss:$40 sps:$4 sm:$0xff]   ;;  %v3069_v42 = vld [vmem:[%s5563_s1 + $0x19c] ss:$40 sps:$4 sm:$0xff]   ;;  %v2453_v49 = vld [vmem:[%s5564_s2 + $0x7e8] sm:$0xff] }
  0xbd   :  { %2220 = vmatpush1.bf16.msra.mxu0 %v1398_v57  ;;  %v740_v5 = vadd.f32 %v590_v58, %v287_v54  ;;  %v741_v6 = vadd.f32 %v591_v59, %v288_v55  ;;  %v320_v8 = vmul.f32 %v3200_v7, %v169_v50  ;;  %v622_v9 = vmul.f32 %v2486_v51, %v3213_v13  ;;  %v135_v47 = vld [vmem:[%s5564_s2 + $0x338] sm:$0xff]  ;;  %v2452_v48 = vld [vmem:[%s5564_s2 + $0x7e0] sm:$0xff]  ;;  %v2603_v54 = vld [vmem:[%s5564_s2 + $0xc90] sm:$0xff] }
  0xbe   :  { %v1389_v14 = vpack.c.bf16 %v1210_v0, %v1209_v63  ;;  %2221 = vmatprep.subr.bf16.mxu0 %v3150_v29  ;;  %2078 = vmatmul.mubr.bf16.gmra.mxu0 %v3062_v41  ;;  %v623_v15 = vmul.f32 %v2487_v56, %v3213_v13  ;;  %v1075_v16 = vmul.f32 %v2637_v61, %v3224_v19  ;;  %v134_v41 = vld [vmem:[%s5564_s2 + $0x330] sm:$0xff]  ;;  %v2604_v55 = vld [vmem:[%s5564_s2 + $0xc98] sm:$0xff]  ;;  %v164_v56 = vld [vmem:[%s5564_s2 + $0x420] sm:$0xff] }
  0xbf   :  { %v1193_v21 = vadd.f32 %v1043_v60, %v740_v5  ;;  %v1194_v22 = vadd.f32 %v1044_v1, %v741_v6  ;;  %v772_v23 = vadd.f32 %v622_v9, %v319_v2  ;;  %v1076_v24 = vmul.f32 %v2638_v3, %v3224_v19  ;;  %2085 = vmatprep.mubr.bf16.mxu0 %v3066_v62  ;;  %v165_v61 = vld [vmem:[%s5564_s2 + $0x428] sm:$0xff]  ;;  %v2482_v62 = vld [vmem:[%s5564_s2 + $0x8d0] sm:$0xff]  ;;  %v2483_v63 = vld [vmem:[%s5564_s2 + $0x8d8] sm:$0xff] }
  0xc0   :  { %2939 = vmatprep.subr.bf16.mxu1 %v1389_v14  ;;  %v773_v28 = vadd.f32 %v623_v15, %v320_v8  ;;  %v317_v30 = vmul.f32 %v3200_v7, %v166_v4  ;;  %v318_v31 = vmul.f32 %v3200_v7, %v167_v10  ;;  %v620_v32 = vmul.f32 %v2484_v11, %v3213_v13  ;;  %v3072_v0 = vld [vmem:[%s5563_s1 + $0x1a4] ss:$40 sps:$4 sm:$0xff]  }
  0xc1   :  { %v1381_v36 = vpack.c.bf16 %v1194_v22, %v1193_v21  ;;  %v1225_v37 = vadd.f32 %v1075_v16, %v772_v23  ;;  %v621_v38 = vmul.f32 %v2485_v12, %v3213_v13  ;;  %v1073_v39 = vmul.f32 %v2635_v17, %v3224_v19  ;;  %v2633_v5 = vld [vmem:[%s5564_s2 + $0xd80] sm:$0xff]  ;;  %v2634_v6 = vld [vmem:[%s5564_s2 + $0xd88] sm:$0xff]  ;;  %v2467_v21 = vld [vmem:[%s5564_s2 + $0x858] sm:$0xff] }
  0xc2   :  { %v1226_v43 = vadd.f32 %v1076_v24, %v773_v28  ;;  %v770_v44 = vadd.f32 %v620_v32, %v317_v30  ;;  %v1074_v45 = vmul.f32 %v2636_v18, %v3224_v19  ;;  %v301_v46 = vmul.f32 %v3200_v7, %v150_v25  ;;  %v3071_v12 = vld [vmem:[%s5563_s1 + $0x198] ss:$40 sps:$4 sm:$0xff]   ;;  %v149_v18 = vld [vmem:[%s5564_s2 + $0x3a8] sm:$0xff] }
  0xc3   :  { %2940 = vmatpush3.bf16.msra.mxu1 %v1381_v36  ;;  %v771_v50 = vadd.f32 %v621_v38, %v318_v31  ;;  %v302_v51 = vmul.f32 %v3200_v7, %v151_v26  ;;  %v604_v52 = vmul.f32 %v2468_v27, %v3213_v13  ;;  %v605_v53 = vmul.f32 %v2469_v33, %v3213_v13  ;;  %v148_v14 = vld [vmem:[%s5564_s2 + $0x3a0] sm:$0xff]  ;;  %v2618_v27 = vld [vmem:[%s5564_s2 + $0xd08] sm:$0xff] }
  0xc4   :  { %v1397_v57 = vpack.c.bf16 %v1226_v43, %v1225_v37  ;;  %v1223_v58 = vadd.f32 %v1073_v39, %v770_v44  ;;  %1989 = vmatmul.mubr.bf16.gmra.mxu1 %v3065_v20  ;;  %v1057_v59 = vmul.f32 %v2619_v34, %v3224_v19  ;;  %v1058_v60 = vmul.f32 %v2620_v35, %v3224_v19  ;;  %v2466_v20 = vld [vmem:[%s5564_s2 + $0x850] sm:$0xff]  ;;  %v2617_v26 = vld [vmem:[%s5564_s2 + $0xd00] sm:$0xff]  ;;  %v133_v35 = vld [vmem:[%s5564_s2 + $0x328] sm:$0xff] }
  0xc5   :  { %v1224_v1 = vadd.f32 %v1074_v45, %v771_v50  ;;  %v754_v2 = vadd.f32 %v604_v52, %v301_v46  ;;  %v755_v3 = vadd.f32 %v605_v53, %v302_v51  ;;  %v285_v4 = vmul.f32 %v3200_v7, %v134_v41  ;;  %1996 = vmatprep.mubr.bf16.mxu1 %v3069_v42  ;;  %v3074_v33 = vld [vmem:[%s5563_s1 + $0x1a0] ss:$40 sps:$4 sm:$0xff]   ;;  %v3075_v36 = vld [vmem:[%s5563_s1 + $0x1ec] ss:$40 sps:$4 sm:$0xff]   ;;  %v2451_v42 = vld [vmem:[%s5564_s2 + $0x7d8] sm:$0xff] }
  0xc6   :  { %2222 = vmatpush1.bf16.msra.mxu0 %v1397_v57  ;;  %v286_v8 = vmul.f32 %v3200_v7, %v135_v47  ;;  %v588_v9 = vmul.f32 %v2452_v48, %v3213_v13  ;;  %v589_v10 = vmul.f32 %v2453_v49, %v3213_v13  ;;  %v1041_v11 = vmul.f32 %v2603_v54, %v3224_v19  ;;  %v132_v34 = vld [vmem:[%s5564_s2 + $0x320] sm:$0xff]  ;;  %v2450_v41 = vld [vmem:[%s5564_s2 + $0x7d0] sm:$0xff]  ;;  %v2602_v47 = vld [vmem:[%s5564_s2 + $0xc88] sm:$0xff] }
  0xc7   :  { %2223 = vmatprep.subr.bf16.mxu0 %v3150_v29  ;;  %v1396_v15 = vpack.c.bf16 %v1224_v1, %v1223_v58  ;;  %v1207_v16 = vadd.f32 %v1057_v59, %v754_v2  ;;  %v1208_v17 = vadd.f32 %v1058_v60, %v755_v3  ;;  %2086 = vmatmul.mubr.bf16.gmra.mxu0 %v3068_v40  ;;  %v2601_v43 = vld [vmem:[%s5564_s2 + $0xc80] sm:$0xff]  ;;  %v162_v48 = vld [vmem:[%s5564_s2 + $0x410] sm:$0xff]  ;;  %v163_v53 = vld [vmem:[%s5564_s2 + $0x418] sm:$0xff] }
  0xc8   :  { %v738_v22 = vadd.f32 %v588_v9, %v285_v4  ;;  %v739_v23 = vadd.f32 %v589_v10, %v286_v8  ;;  %v1042_v24 = vmul.f32 %v2604_v55, %v3224_v19  ;;  %v315_v25 = vmul.f32 %v3200_v7, %v164_v56  ;;  %2093 = vmatprep.mubr.bf16.mxu0 %v3072_v0  ;;  %v2480_v54 = vld [vmem:[%s5564_s2 + $0x8c0] sm:$0xff]  ;;  %v3078_v55 = vld [vmem:[%s5563_s1 + $0x1f4] ss:$40 sps:$4 sm:$0xff]   ;;  %v2481_v60 = vld [vmem:[%s5564_s2 + $0x8c8] sm:$0xff] }
  0xc9   :  { %v1388_v28 = vpack.c.bf16 %v1208_v17, %v1207_v16  ;;  %v316_v30 = vmul.f32 %v3200_v7, %v165_v61  ;;  %v618_v31 = vmul.f32 %v2482_v62, %v3213_v13  ;;  %v619_v32 = vmul.f32 %v2483_v63, %v3213_v13  ;;  %v2631_v61 = vld [vmem:[%s5564_s2 + $0xd70] sm:$0xff]  ;;  %v2632_v62 = vld [vmem:[%s5564_s2 + $0xd78] sm:$0xff]  ;;  %v2465_v17 = vld [vmem:[%s5564_s2 + $0x848] sm:$0xff] }
  0xca   :  { %2224 = vmatpush1.bf16.msra.mxu0 %v1396_v15  ;;  %v1191_v37 = vadd.f32 %v1041_v11, %v738_v22  ;;  %v1192_v38 = vadd.f32 %v1042_v24, %v739_v23  ;;  %v1071_v39 = vmul.f32 %v2633_v5, %v3224_v19  ;;  %v1072_v40 = vmul.f32 %v2634_v6, %v3224_v19  ;;  %v3077_v3 = vld [vmem:[%s5563_s1 + $0x1e8] ss:$40 sps:$4 sm:$0xff]   ;;  %v147_v10 = vld [vmem:[%s5564_s2 + $0x398] sm:$0xff]  ;;  %v2464_v11 = vld [vmem:[%s5564_s2 + $0x840] sm:$0xff] }
  0xcb   :  { %2941 = vmatprep.subr.bf16.mxu1 %v1388_v28  ;;  %2225 = vmatprep.subr.bf16.mxu0 %v3150_v29  ;;  %v768_v44 = vadd.f32 %v618_v31, %v315_v25  ;;  %v769_v45 = vadd.f32 %v619_v32, %v316_v30  ;;  %v299_v46 = vmul.f32 %v3200_v7, %v148_v14  ;;  %v146_v4 = vld [vmem:[%s5564_s2 + $0x390] sm:$0xff]  ;;  %v2616_v24 = vld [vmem:[%s5564_s2 + $0xcf8] sm:$0xff]  ;;  %v160_v25 = vld [vmem:[%s5564_s2 + $0x400] sm:$0xff] }
  0xcc   :  { %v1380_v49 = vpack.c.bf16 %v1192_v38, %v1191_v37  ;;  %1997 = vmatmul.mubr.bf16.gmra.mxu1 %v3071_v12  ;;  %v300_v50 = vmul.f32 %v3200_v7, %v149_v18  ;;  %v602_v51 = vmul.f32 %v2466_v20, %v3213_v13  ;;  %v603_v52 = vmul.f32 %v2467_v21, %v3213_v13  ;;  %v2615_v18 = vld [vmem:[%s5564_s2 + $0xcf0] sm:$0xff]  ;;  %v161_v32 = vld [vmem:[%s5564_s2 + $0x408] sm:$0xff] }
  0xcd   :  { %v1221_v56 = vadd.f32 %v1071_v39, %v768_v44  ;;  %v1222_v57 = vadd.f32 %v1072_v40, %v769_v45  ;;  %v1055_v58 = vmul.f32 %v2617_v26, %v3224_v19  ;;  %v1056_v59 = vmul.f32 %v2618_v27, %v3224_v19  ;;  %2004 = vmatprep.mubr.bf16.mxu1 %v3075_v36  ;;  %v3081_v26 = vld [vmem:[%s5563_s1 + $0x23c] ss:$40 sps:$4 sm:$0xff]   ;;  %v2630_v40 = vld [vmem:[%s5564_s2 + $0xd68] sm:$0xff]  ;;  %v3080_v44 = vld [vmem:[%s5563_s1 + $0x1f0] ss:$40 sps:$4 sm:$0xff]  }
  0xce   :  { %2942 = vmatpush3.bf16.msra.mxu1 %v1380_v49  ;;  %v752_v63 = vadd.f32 %v602_v51, %v299_v46  ;;  %v753_v0 = vadd.f32 %v603_v52, %v300_v50  ;;  %v283_v1 = vmul.f32 %v3200_v7, %v132_v34  ;;  %v284_v2 = vmul.f32 %v3200_v7, %v133_v35  ;;  %v2479_v34 = vld [vmem:[%s5564_s2 + $0x8b8] sm:$0xff]  ;;  %v2629_v39 = vld [vmem:[%s5564_s2 + $0xd60] sm:$0xff]  ;;  %v130_v45 = vld [vmem:[%s5564_s2 + $0x310] sm:$0xff] }
  0xcf   :  { %v1395_v5 = vpack.c.bf16 %v1222_v57, %v1221_v56  ;;  %2094 = vmatmul.mubr.bf16.gmra.mxu0 %v3074_v33  ;;  %v586_v6 = vmul.f32 %v2450_v41, %v3213_v13  ;;  %v587_v8 = vmul.f32 %v2451_v42, %v3213_v13  ;;  %v1039_v9 = vmul.f32 %v2601_v43, %v3224_v19  ;;  %v2478_v33 = vld [vmem:[%s5564_s2 + $0x8b0] sm:$0xff]  ;;  %v131_v50 = vld [vmem:[%s5564_s2 + $0x318] sm:$0xff]  ;;  %v2448_v51 = vld [vmem:[%s5564_s2 + $0x7c0] sm:$0xff] }
  0xd0   :  { %v1205_v12 = vadd.f32 %v1055_v58, %v752_v63  ;;  %v1206_v14 = vadd.f32 %v1056_v59, %v753_v0  ;;  %v1040_v15 = vmul.f32 %v2602_v47, %v3224_v19  ;;  %v313_v16 = vmul.f32 %v3200_v7, %v162_v48  ;;  %2101 = vmatprep.mubr.bf16.mxu0 %v3078_v55  ;;  %v2449_v52 = vld [vmem:[%s5564_s2 + $0x7c8] sm:$0xff]  ;;  %v2599_v58 = vld [vmem:[%s5564_s2 + $0xc70] sm:$0xff]  ;;  %v2600_v63 = vld [vmem:[%s5564_s2 + $0xc78] sm:$0xff] }
  0xd1   :  { %2226 = vmatpush1.bf16.msra.mxu0 %v1395_v5  ;;  %v736_v20 = vadd.f32 %v586_v6, %v283_v1  ;;  %v737_v21 = vadd.f32 %v587_v8, %v284_v2  ;;  %v314_v22 = vmul.f32 %v3200_v7, %v163_v53  ;;  %v616_v23 = vmul.f32 %v2480_v54, %v3213_v13  ;;  %v3084_v53 = vld [vmem:[%s5563_s1 + $0x244] ss:$40 sps:$4 sm:$0xff]   ;;  %v3083_v6 = vld [vmem:[%s5563_s1 + $0x238] ss:$40 sps:$4 sm:$0xff]  }
  0xd2   :  { %v1387_v27 = vpack.c.bf16 %v1206_v14, %v1205_v12  ;;  %2227 = vmatprep.subr.bf16.mxu0 %v3150_v29  ;;  %v617_v28 = vmul.f32 %v2481_v60, %v3213_v13  ;;  %v1069_v30 = vmul.f32 %v2631_v61, %v3224_v19  ;;  %v1070_v31 = vmul.f32 %v2632_v62, %v3224_v19  ;;  %v180_v0 = vld [vmem:[%s5564_s2 + $0x4a0] sm:$0xff]  ;;  %v181_v5 = vld [vmem:[%s5564_s2 + $0x4a8] sm:$0xff]  ;;  %v2498_v12 = vld [vmem:[%s5564_s2 + $0x950] sm:$0xff] }
  0xd3   :  { %v1189_v35 = vadd.f32 %v1039_v9, %v736_v20  ;;  %v1190_v36 = vadd.f32 %v1040_v15, %v737_v21  ;;  %v766_v37 = vadd.f32 %v616_v23, %v313_v16  ;;  %v297_v38 = vmul.f32 %v3200_v7, %v146_v4  ;;  %v2649_v20 = vld [vmem:[%s5564_s2 + $0xe00] sm:$0xff] }
  0xd4   :  { %2943 = vmatprep.subr.bf16.mxu1 %v1387_v27  ;;  %v767_v41 = vadd.f32 %v617_v28, %v314_v22  ;;  %2005 = vmatmul.mubr.bf16.gmra.mxu1 %v3077_v3  ;;  %v298_v42 = vmul.f32 %v3200_v7, %v147_v10  ;;  %v600_v43 = vmul.f32 %v2464_v11, %v3213_v13  ;;  %v3089_v21 = vld [vmem:[%s5563_s1 + $0x1c] ss:$40 sps:$4 sm:$0xff]  }
  0xd5   :  { %v1379_v46 = vpack.c.bf16 %v1190_v36, %v1189_v35  ;;  %v1219_v47 = vadd.f32 %v1069_v30, %v766_v37  ;;  %v601_v48 = vmul.f32 %v2465_v17, %v3213_v13  ;;  %v1053_v49 = vmul.f32 %v2615_v18, %v3224_v19  ;;  %2012 = vmatprep.mubr.bf16.mxu1 %v3081_v26  ;;  %v2499_v18 = vld [vmem:[%s5564_s2 + $0x958] sm:$0xff]  ;;  %v2650_v26 = vld [vmem:[%s5564_s2 + $0xe08] sm:$0xff]  ;;  %v144_v27 = vld [vmem:[%s5564_s2 + $0x380] sm:$0xff] }
  0xd6   :  { %v1220_v54 = vadd.f32 %v1070_v31, %v767_v41  ;;  %v750_v55 = vadd.f32 %v600_v43, %v297_v38  ;;  %v1054_v56 = vmul.f32 %v2616_v24, %v3224_v19  ;;  %v311_v57 = vmul.f32 %v3200_v7, %v160_v25  ;;  %v2463_v35 = vld [vmem:[%s5564_s2 + $0x838] sm:$0xff]  ;;  %v2614_v41 = vld [vmem:[%s5564_s2 + $0xce8] sm:$0xff] }
  0xd7   :  { %2944 = vmatpush3.bf16.msra.mxu1 %v1379_v46  ;;  %v751_v59 = vadd.f32 %v601_v48, %v298_v42  ;;  %v312_v60 = vmul.f32 %v3200_v7, %v161_v32  ;;  %v614_v61 = vmul.f32 %v2478_v33, %v3213_v13  ;;  %v615_v62 = vmul.f32 %v2479_v34, %v3213_v13  ;;  %v145_v33 = vld [vmem:[%s5564_s2 + $0x388] sm:$0xff]  ;;  %v2462_v34 = vld [vmem:[%s5564_s2 + $0x830] sm:$0xff] }
  0xd8   :  { %v1394_v1 = vpack.c.bf16 %v1220_v54, %v1219_v47  ;;  %v1203_v2 = vadd.f32 %v1053_v49, %v750_v55  ;;  %v1067_v3 = vmul.f32 %v2629_v39, %v3224_v19  ;;  %v1068_v4 = vmul.f32 %v2630_v40, %v3224_v19  ;;  %2102 = vmatmul.mubr.bf16.gmra.mxu0 %v3080_v44  ;;  %v2613_v40 = vld [vmem:[%s5564_s2 + $0xce0] sm:$0xff]  ;;  %v129_v48 = vld [vmem:[%s5564_s2 + $0x308] sm:$0xff]  ;;  %v2447_v54 = vld [vmem:[%s5564_s2 + $0x7b8] sm:$0xff] }
  0xd9   :  { %v1204_v8 = vadd.f32 %v1054_v56, %v751_v59  ;;  %v764_v9 = vadd.f32 %v614_v61, %v311_v57  ;;  %v765_v10 = vadd.f32 %v615_v62, %v312_v60  ;;  %v281_v11 = vmul.f32 %v3200_v7, %v130_v45  ;;  %2109 = vmatprep.mubr.bf16.mxu0 %v3084_v53  ;;  %v3086_v42 = vld [vmem:[%s5563_s1 + $0x240] ss:$40 sps:$4 sm:$0xff]   ;;  %v2446_v53 = vld [vmem:[%s5564_s2 + $0x7b0] sm:$0xff]  ;;  %v3092_v55 = vld [vmem:[%s5563_s1 + $0x24] ss:$40 sps:$4 sm:$0xff]  }
  0xda   :  { %2228 = vmatpush1.bf16.msra.mxu0 %v1394_v1  ;;  %v282_v14 = vmul.f32 %v3200_v7, %v131_v50  ;;  %v584_v15 = vmul.f32 %v2448_v51, %v3213_v13  ;;  %v585_v16 = vmul.f32 %v2449_v52, %v3213_v13  ;;  %v1037_v17 = vmul.f32 %v2599_v58, %v3224_v19  ;;  %v128_v47 = vld [vmem:[%s5564_s2 + $0x300] sm:$0xff]  ;;  %v2598_v61 = vld [vmem:[%s5564_s2 + $0xc68] sm:$0xff] }
  0xdb   :  { %2229 = vmatprep.subr.bf16.mxu0 %v3150_v29  ;;  %v1386_v22 = vpack.c.bf16 %v1204_v8, %v1203_v2  ;;  %v1217_v23 = vadd.f32 %v1067_v3, %v764_v9  ;;  %v1218_v24 = vadd.f32 %v1068_v4, %v765_v10  ;;  %v1038_v25 = vmul.f32 %v2600_v63, %v3224_v19  ;;  %v2597_v60 = vld [vmem:[%s5564_s2 + $0xc60] sm:$0xff]  ;;  %v178_v2 = vld [vmem:[%s5564_s2 + $0x490] sm:$0xff]  ;;  %v179_v3 = vld [vmem:[%s5564_s2 + $0x498] sm:$0xff] }
  0xdc   :  { %v734_v28 = vadd.f32 %v584_v15, %v281_v11  ;;  %v735_v30 = vadd.f32 %v585_v16, %v282_v14  ;;  %v331_v31 = vmul.f32 %v3200_v7, %v180_v0  ;;  %v332_v32 = vmul.f32 %v3200_v7, %v181_v5  ;;  %2013 = vmatmul.mubr.bf16.gmra.mxu1 %v3083_v6  ;;  %v2496_v9 = vld [vmem:[%s5564_s2 + $0x940] sm:$0xff]  ;;  %v2497_v10 = vld [vmem:[%s5564_s2 + $0x948] sm:$0xff]  ;;  %v2647_v11 = vld [vmem:[%s5564_s2 + $0xdf0] sm:$0xff] }
  0xdd   :  { %2945 = vmatprep.subr.bf16.mxu1 %v1386_v22  ;;  %v1393_v36 = vpack.c.bf16 %v1218_v24, %v1217_v23  ;;  %v634_v37 = vmul.f32 %v2498_v12, %v3213_v13  ;;  %v635_v38 = vmul.f32 %v2499_v18, %v3213_v13  ;;  %v1087_v39 = vmul.f32 %v2649_v20, %v3224_v19  ;;  %v176_v23 = vld [vmem:[%s5564_s2 + $0x480] sm:$0xff]  ;;  %v177_v24 = vld [vmem:[%s5564_s2 + $0x488] sm:$0xff] }
  0xde   :  { %v1187_v43 = vadd.f32 %v1037_v17, %v734_v28  ;;  %v1188_v44 = vadd.f32 %v1038_v25, %v735_v30  ;;  %v1088_v45 = vmul.f32 %v2650_v26, %v3224_v19  ;;  %v295_v46 = vmul.f32 %v3200_v7, %v144_v27  ;;  %2150 = vmatprep.mubr.bf16.mxu1 %v3089_v21  ;;  %v2648_v17 = vld [vmem:[%s5564_s2 + $0xdf8] sm:$0xff]  ;;  %v2494_v30 = vld [vmem:[%s5564_s2 + $0x930] sm:$0xff] }
  0xdf   :  { %2230 = vmatpush1.bf16.msra.mxu0 %v1393_v36  ;;  %v784_v49 = vadd.f32 %v634_v37, %v331_v31  ;;  %v785_v50 = vadd.f32 %v635_v38, %v332_v32  ;;  %v296_v51 = vmul.f32 %v3200_v7, %v145_v33  ;;  %v598_v52 = vmul.f32 %v2462_v34, %v3213_v13  ;;  %v2495_v31 = vld [vmem:[%s5564_s2 + $0x938] sm:$0xff]  ;;  %v2645_v32 = vld [vmem:[%s5564_s2 + $0xde0] sm:$0xff]  ;;  %v2646_v37 = vld [vmem:[%s5564_s2 + $0xde8] sm:$0xff] }
  0xe0   :  { %v1378_v56 = vpack.c.bf16 %v1188_v44, %v1187_v43  ;;  %2241 = vmatprep.subr.bf16.mxu0 %v3150_v29  ;;  %v599_v57 = vmul.f32 %v2463_v35, %v3213_v13  ;;  %v1051_v58 = vmul.f32 %v2613_v40, %v3224_v19  ;;  %v1052_v59 = vmul.f32 %v2614_v41, %v3224_v19 }
  0xe1   :  { %v1237_v62 = vadd.f32 %v1087_v39, %v784_v49  ;;  %v1238_v63 = vadd.f32 %v1088_v45, %v785_v50  ;;  %v748_v0 = vadd.f32 %v598_v52, %v295_v46  ;;  %2110 = vmatmul.mubr.bf16.gmra.mxu0 %v3086_v42  ;;  %v279_v1 = vmul.f32 %v3200_v7, %v128_v47  ;;  %v3087_v49 = vld [vmem:[%s5563_s1 + $0x18] ss:$40 sps:$4 sm:$0xff]   ;;  %v3093_v52 = vld [vmem:[%s5563_s1 + $0x6c] ss:$40 sps:$4 sm:$0xff]  }
  0xe2   :  { %2946 = vmatpush3.bf16.msra.mxu1 %v1378_v56  ;;  %v749_v4 = vadd.f32 %v599_v57, %v296_v51  ;;  %v280_v5 = vmul.f32 %v3200_v7, %v129_v48  ;;  %v582_v6 = vmul.f32 %v2446_v53, %v3213_v13  ;;  %v583_v8 = vmul.f32 %v2447_v54, %v3213_v13  ;;  %v3090_v57 = vld [vmem:[%s5563_s1 + $0x20] ss:$40 sps:$4 sm:$0xff]  }
  0xe3   :  { %v1403_v12 = vpack.c.bf16 %v1238_v63, %v1237_v62  ;;  %v1201_v14 = vadd.f32 %v1051_v58, %v748_v0  ;;  %v1035_v15 = vmul.f32 %v2597_v60, %v3224_v19  ;;  %v1036_v16 = vmul.f32 %v2598_v61, %v3224_v19  ;;  %2733 = vmatprep.mubr.msk.bf16.mxu0 %vm1802_vm0, %v3092_v55  ;;  %v3095_v58 = vld [vmem:[%s5563_s1 + $0x68] ss:$40 sps:$4 sm:$0xff]   ;;  %v3099_v60 = vld [vmem:[%s5563_s1 + $0xbc] ss:$40 sps:$4 sm:$0xff]   ;;  %v3101_v61 = vld [vmem:[%s5563_s1 + $0xb8] ss:$40 sps:$4 sm:$0xff]  }
  0xe4   :  { %v1202_v18 = vadd.f32 %v1052_v59, %v749_v4  ;;  %v732_v20 = vadd.f32 %v582_v6, %v279_v1  ;;  %v733_v21 = vadd.f32 %v583_v8, %v280_v5  ;;  %v329_v22 = vmul.f32 %v3200_v7, %v178_v2  ;;  %v3096_v59 = vld [vmem:[%s5563_s1 + $0x74] ss:$40 sps:$4 sm:$0xff]   ;;  %v3102_v62 = vld [vmem:[%s5563_s1 + $0xc4] ss:$40 sps:$4 sm:$0xff]   ;;  %v3104_v0 = vld [vmem:[%s5563_s1 + $0xc0] ss:$40 sps:$4 sm:$0xff]  }
  0xe5   :  { %2242 = vmatpush2.bf16.msra.mxu0 %v1403_v12  ;;  %v330_v25 = vmul.f32 %v3200_v7, %v179_v3  ;;  %v632_v26 = vmul.f32 %v2496_v9, %v3213_v13  ;;  %v633_v27 = vmul.f32 %v2497_v10, %v3213_v13  ;;  %v1085_v28 = vmul.f32 %v2647_v11, %v3224_v19  ;;  %v3105_v63 = vld [vmem:[%s5563_s1 + $0x10c] ss:$40 sps:$4 sm:$0xff]   ;;  %v3107_v1 = vld [vmem:[%s5563_s1 + $0x108] ss:$40 sps:$4 sm:$0xff]   ;;  %v3111_v3 = vld [vmem:[%s5563_s1 + $0x15c] ss:$40 sps:$4 sm:$0xff]  }
  0xe6   :  { %v1385_v33 = vpack.c.bf16 %v1202_v18, %v1201_v14  ;;  %v1185_v34 = vadd.f32 %v1035_v15, %v732_v20  ;;  %v1186_v35 = vadd.f32 %v1036_v16, %v733_v21  ;;  %2243 = vmatprep.subr.bf16.mxu0 %v3150_v29  ;;  %v1086_v36 = vmul.f32 %v2648_v17, %v3224_v19  ;;  %v3108_v2 = vld [vmem:[%s5563_s1 + $0x114] ss:$40 sps:$4 sm:$0xff]   ;;  %v3110_v4 = vld [vmem:[%s5563_s1 + $0x110] ss:$40 sps:$4 sm:$0xff]   ;;  %v3114_v6 = vld [vmem:[%s5563_s1 + $0x164] ss:$40 sps:$4 sm:$0xff]  }
  0xe7   :  { %v782_v38 = vadd.f32 %v632_v26, %v329_v22  ;;  %v783_v39 = vadd.f32 %v633_v27, %v330_v25  ;;  %v327_v40 = vmul.f32 %v3200_v7, %v176_v23  ;;  %v328_v41 = vmul.f32 %v3200_v7, %v177_v24  ;;  %v3113_v5 = vld [vmem:[%s5563_s1 + $0x158] ss:$40 sps:$4 sm:$0xff]   ;;  %v3117_v8 = vld [vmem:[%s5563_s1 + $0x1ac] ss:$40 sps:$4 sm:$0xff]   ;;  %v3119_v17 = vld [vmem:[%s5563_s1 + $0x1a8] ss:$40 sps:$4 sm:$0xff]  }
  0xe8   :  { %2947 = vmatprep.subr.bf16.mxu1 %v1385_v33  ;;  %v1377_v42 = vpack.c.bf16 %v1186_v35, %v1185_v34  ;;  %v630_v43 = vmul.f32 %v2494_v30, %v3213_v13  ;;  %v631_v44 = vmul.f32 %v2495_v31, %v3213_v13  ;;  %v1083_v45 = vmul.f32 %v2645_v32, %v3224_v19  ;;  %v3116_v14 = vld [vmem:[%s5563_s1 + $0x160] ss:$40 sps:$4 sm:$0xff]   ;;  %v3120_v18 = vld [vmem:[%s5563_s1 + $0x1b4] ss:$40 sps:$4 sm:$0xff]   ;;  %v3122_v31 = vld [vmem:[%s5563_s1 + $0x1b0] ss:$40 sps:$4 sm:$0xff]  }
  0xe9   :  { %v1235_v46 = vadd.f32 %v1085_v28, %v782_v38  ;;  %v1236_v47 = vadd.f32 %v1086_v36, %v783_v39  ;;  %v1084_v48 = vmul.f32 %v2646_v37, %v3224_v19  ;;  %v3123_v22 = vld [vmem:[%s5563_s1 + $0x1fc] ss:$40 sps:$4 sm:$0xff]   ;;  %v3125_v33 = vld [vmem:[%s5563_s1 + $0x1f8] ss:$40 sps:$4 sm:$0xff]   ;;  %v3129_v37 = vld [vmem:[%s5563_s1 + $0x24c] ss:$40 sps:$4 sm:$0xff]  }
  0xea   :  { %2948 = vmatpush3.bf16.msra.mxu1 %v1377_v42  ;;  %v780_v50 = vadd.f32 %v630_v43, %v327_v40  ;;  %v781_v51 = vadd.f32 %v631_v44, %v328_v41  ;;  %v3126_v34 = vld [vmem:[%s5563_s1 + $0x204] ss:$40 sps:$4 sm:$0xff]  }
  0xeb   :  { %v1402_v53 = vpack.c.bf16 %v1236_v47, %v1235_v46  ;;  %v3128_v46 = vld [vmem:[%s5563_s1 + $0x200] ss:$40 sps:$4 sm:$0xff]  }
  0xec   :  { %v1233_v54 = vadd.f32 %v1083_v45, %v780_v50  ;;  %v1234_v55 = vadd.f32 %v1084_v48, %v781_v51  ;;  %v3132_v50 = vld [vmem:[%s5563_s1 + $0x254] ss:$40 sps:$4 sm:$0xff]  }
  0xed   :  { %2244 = vmatpush2.bf16.msra.mxu0 %v1402_v53  ;;  %2151 = vmatmul.mubr.bf16.vlgmr.msra.gmra.mxu1 %v3087_v49  ;;  %v3131_v49 = vld [vmem:[%s5563_s1 + $0x248] ss:$40 sps:$4 sm:$0xff]  }
  0xee   :  { %2245 = vmatprep.subr.bf16.mxu0 %v3150_v29  ;;  %v1401_v56 = vpack.c.bf16 %v1234_v55, %v1233_v54  ;;  %2158 = vmatprep.mubr.bf16.mxu1 %v3093_v52  ;;  %v3098_v29 = vld [vmem:[%s5563_s1 + $0x70] ss:$40 sps:$4 sm:$0xff]  }
  0xf1   :  { %2246 = vmatpush2.bf16.msra.mxu0 %v1401_v56 }
  0xf4   :  { %2248 = vmatmul.mubr.bf16.vlgmr.msra.gmra.mxu0 %v3090_v57 }
  0xf5   :  { %2159 = vmatmul.mubr.bf16.gmra.mxu1 %v3095_v58  ;;  %2734 = vmatprep.mubr.msk.bf16.mxu0 %vm1802_vm0, %v3096_v59  ;;  %v3134_v59 = vld [vmem:[%s5563_s1 + $0x250] ss:$40 sps:$4 sm:$0xff]  }
  0xf6   :  { %2166 = vmatprep.mubr.bf16.mxu1 %v3099_v60 }
  0xfc   :  { %2256 = vmatmul.mubr.bf16.gmra.mxu0 %v3098_v29 }
  0xfd   :  { %2167 = vmatmul.mubr.bf16.gmra.mxu1 %v3101_v61  ;;  %2735 = vmatprep.mubr.msk.bf16.mxu0 %vm1802_vm0, %v3102_v62 }
  0xfe   :  { %2174 = vmatprep.mubr.bf16.mxu1 %v3105_v63 }
 0x104   :  { %2264 = vmatmul.mubr.bf16.gmra.mxu0 %v3104_v0 }
 0x105   :  { %2175 = vmatmul.mubr.bf16.gmra.mxu1 %v3107_v1  ;;  %2736 = vmatprep.mubr.msk.bf16.mxu0 %vm1802_vm0, %v3108_v2 }
 0x106   :  { %2182 = vmatprep.mubr.bf16.mxu1 %v3111_v3 }
 0x10c   :  { %2272 = vmatmul.mubr.bf16.gmra.mxu0 %v3110_v4 }
 0x10d   :  { %2183 = vmatmul.mubr.bf16.gmra.mxu1 %v3113_v5  ;;  %2737 = vmatprep.mubr.msk.bf16.mxu0 %vm1802_vm0, %v3114_v6  ;;  %v2781_v9 = vpop.f32.mrf.mxu1  ;;  %v2757_v10 = vpop.f32.mrf.mxu0 }
 0x10e   :  { %2190 = vmatprep.mubr.bf16.mxu1 %v3117_v8 }
 0x10f   :  { %v2782_v11 = vpop.f32.mrf.mxu1  ;;  %v2758_v12 = vpop.f32.mrf.mxu0 }
 0x110   :  { %v5208_v15 = vadd.f32 %v2782_v11, %v2781_v9  ;;  %v5210_v16 = vadd.f32 %v2758_v12, %v2757_v10 }
 0x111   :  { %v2784_v20 = vpop.f32.mrf.mxu1  ;;  %v2760_v21 = vpop.f32.mrf.mxu0 }
 0x113   :  { %v2785_v23 = vpop.f32.mrf.mxu1  ;;  %v2761_v24 = vpop.f32.mrf.mxu0 }
 0x114   :  { %2280 = vmatmul.mubr.bf16.gmra.mxu0 %v3116_v14  ;;  %v5221_v25 = vadd.f32 %v2785_v23, %v2784_v20  ;;  %v5223_v26 = vadd.f32 %v2761_v24, %v2760_v21 }
 0x115   :  { %2191 = vmatmul.mubr.bf16.gmra.mxu1 %v3119_v17  ;;  %2738 = vmatprep.mubr.msk.bf16.mxu0 %vm1802_vm0, %v3120_v18  ;;  %v2787_v27 = vpop.f32.mrf.mxu1 }
 0x116   :  { %5567 = vst [vmem:[#allocation5_spill] sm:$0xff] %v5221_v25  ;;  %2198 = vmatprep.mubr.bf16.mxu1 %v3123_v22 }
 0x117   :  { %v2763_v28 = vpop.f32.mrf.mxu0  ;;  %v2788_v30 = vpop.f32.mrf.mxu1 }
 0x118   :  { %v5229_v32 = vadd.f32 %v2788_v30, %v2787_v27 }
 0x119   :  { %v2764_v35 = vpop.f32.mrf.mxu0  ;;  %v2790_v36 = vpop.f32.mrf.mxu1 }
 0x11a   :  { %5568 = vst [vmem:[#allocation6_spill] sm:$0xff] %v5229_v32  ;;  %v5240_v38 = vadd.f32 %v2764_v35, %v2763_v28 }
 0x11b   :  { %v2766_v39 = vpop.f32.mrf.mxu0  ;;  %v2791_v40 = vpop.f32.mrf.mxu1 }
 0x11c   :  { %2288 = vmatmul.mubr.bf16.gmra.mxu0 %v3122_v31  ;;  %v5242_v41 = vadd.f32 %v2791_v40, %v2790_v36 }
 0x11d   :  { %2199 = vmatmul.mubr.bf16.gmra.mxu1 %v3125_v33  ;;  %2739 = vmatprep.mubr.msk.bf16.mxu0 %vm1802_vm0, %v3126_v34  ;;  %v2767_v42 = vpop.f32.mrf.mxu0  ;;  %v2793_v43 = vpop.f32.mrf.mxu1 }
 0x11e   :  { %5569 = vst [vmem:[#allocation7_spill] sm:$0xff] %v5242_v41  ;;  %2206 = vmatprep.mubr.bf16.mxu1 %v3129_v37  ;;  %v5245_v44 = vadd.f32 %v2767_v42, %v2766_v39 }
 0x11f   :  { %v2794_v45 = vpop.f32.mrf.mxu1 }
 0x120   :  { %v2769_v47 = vpop.f32.mrf.mxu0  ;;  %v5250_v48 = vadd.f32 %v2794_v45, %v2793_v43 }
 0x121   :  { %v2796_v51 = vpop.f32.mrf.mxu1 }
 0x122   :  { %5570 = vst [vmem:[#allocation8_spill] sm:$0xff] %v5250_v48  ;;  %v2770_v52 = vpop.f32.mrf.mxu0 }
 0x123   :  { %v5258_v53 = vadd.f32 %v2770_v52, %v2769_v47  ;;  %v2797_v54 = vpop.f32.mrf.mxu1 }
 0x124   :  { %2296 = vmatmul.mubr.bf16.gmra.mxu0 %v3128_v46  ;;  %v2772_v55 = vpop.f32.mrf.mxu0  ;;  %v5260_v56 = vadd.f32 %v2797_v54, %v2796_v51 }
 0x125   :  { %2207 = vmatmul.mubr.bf16.gmra.mxu1 %v3131_v49  ;;  %2740 = vmatprep.mubr.msk.bf16.mxu0 %vm1802_vm0, %v3132_v50  ;;  %v2799_v60 = vpop.f32.mrf.mxu1 }
 0x126   :  { %5571 = vst [vmem:[#allocation9_spill] sm:$0xff] %v5260_v56  ;;  %v2773_v57 = vpop.f32.mrf.mxu0 }
 0x127   :  { %v5263_v58 = vadd.f32 %v2773_v57, %v2772_v55  ;;  %v2800_v61 = vpop.f32.mrf.mxu1 }
 0x128   :  { %v2775_v29 = vpop.f32.mrf.mxu0  ;;  %v5268_v62 = vadd.f32 %v2800_v61, %v2799_v60 }
 0x129   :  { %v2802_v1 = vpop.f32.mrf.mxu1 }
 0x12a   :  { %5572 = vst [vmem:[#allocation10_spill] sm:$0xff] %v5268_v62  ;;  %v2776_v63 = vpop.f32.mrf.mxu0 }
 0x12b   :  { %v5270_v0 = vadd.f32 %v2776_v63, %v2775_v29  ;;  %v2803_v3 = vpop.f32.mrf.mxu1 }
 0x12c   :  { %2304 = vmatmul.mubr.bf16.gmra.mxu0 %v3134_v59  ;;  %v2778_v2 = vpop.f32.mrf.mxu0  ;;  %v5272_v4 = vadd.f32 %v2803_v3, %v2802_v1 }
 0x12e   :  { %5573 = vst [vmem:[#allocation11_spill] sm:$0xff] %v5272_v4  ;;  %v2779_v5 = vpop.f32.mrf.mxu0 }
 0x12f   :  { %v5274_v6 = vadd.f32 %v2779_v5, %v2778_v2 }
 0x161   :  { %v5276_v8 = vpop.f32.mrf.mxu1 }
 0x163   :  { %v5278_v9 = vpop.f32.mrf.mxu1 }
 0x164   :  { %v2823_v25 = vadd.f32 %v5278_v9, %v5276_v8 }
 0x165   :  { %v5280_v10 = vpop.f32.mrf.mxu1 }
 0x166   :  { %v5282_v11 = vpop.f32.mrf.mxu0 }
 0x167   :  { %v5284_v12 = vpop.f32.mrf.mxu1 }
 0x168   :  { %v5286_v14 = vpop.f32.mrf.mxu0 }
 0x16a   :  { %v5288_v17 = vpop.f32.mrf.mxu0  ;;  %v5290_v18 = vpop.f32.mrf.mxu1 }
 0x16c   :  { %v5292_v20 = vpop.f32.mrf.mxu0  ;;  %v5294_v21 = vpop.f32.mrf.mxu1 }
 0x16e   :  { %v5296_v22 = vpop.f32.mrf.mxu0  ;;  %v5298_v23 = vpop.f32.mrf.mxu1 }
 0x170   :  { %v5300_v24 = vpop.f32.mrf.mxu0  ;;  %v5302_v27 = vpop.f32.mrf.mxu1 }
 0x172   :  { %v5304_v28 = vpop.f32.mrf.mxu0 }
 0x173   :  { %v5306_v30 = vpop.f32.mrf.mxu1 }
 0x174   :  { %v5308_v31 = vpop.f32.mrf.mxu0 }
 0x175   :  { %v5310_v33 = vpop.f32.mrf.mxu1 }
 0x176   :  { %v5312_v34 = vpop.f32.mrf.mxu0 }
 0x177   :  { %v5314_v35 = vpop.f32.mrf.mxu1 }
 0x178   :  { %v5316_v36 = vpop.f32.mrf.mxu0 }
 0x179   :  { %v5318_v37 = vpop.f32.mrf.mxu1 }
 0x17a   :  { %v5320_v39 = vpop.f32.mrf.mxu0 }
 0x17b   :  { %v5322_v40 = vpop.f32.mrf.mxu1 }
 0x17c   :  { %v5324_v42 = vpop.f32.mrf.mxu0 }
 0x17d   :  { %v5326_v43 = vpop.f32.mrf.mxu1 }
 0x17e   :  { %v5328_v45 = vpop.f32.mrf.mxu0 }
 0x17f   :  { %v5330_v46 = vpop.f32.mrf.mxu1 }
 0x180   :  { %v5332_v47 = vpop.f32.mrf.mxu0 }
 0x181   :  { %v5334_v49 = vpop.f32.mrf.mxu1 }
 0x182   :  { %v5336_v50 = vpop.f32.mrf.mxu0 }
 0x184   :  { %v5338_v51 = vpop.f32.mrf.mxu0  ;;  %v5340_v52 = vpop.f32.mrf.mxu1 }
 0x186   :  { %v5342_v54 = vpop.f32.mrf.mxu1 }
 0x187   :  { %v5344_v55 = vpop.f32.mrf.mxu0 }
 0x188   :  { %v5346_v57 = vpop.f32.mrf.mxu1 }
 0x189   :  { %v5348_v59 = vpop.f32.mrf.mxu0 }
 0x18a   :  { %v5350_v60 = vpop.f32.mrf.mxu1 }
 0x18b   :  { %v5352_v29 = vpop.f32.mrf.mxu0 }
 0x18c   :  { %5574 = vst [vmem:[#allocation12_spill] sm:$0xff] %v5352_v29  ;;  %v5354_v61 = vpop.f32.mrf.mxu1 }
 0x18d   :  { %5575 = vst [vmem:[#allocation13_spill] sm:$0xff] %v5354_v61  ;;  %v5356_v63 = vpop.f32.mrf.mxu0 }
 0x18e   :  { %5576 = vst [vmem:[#allocation14_spill] sm:$0xff] %v5356_v63  ;;  %v5358_v1 = vpop.f32.mrf.mxu1 }
 0x18f   :  { %5577 = vst [vmem:[#allocation15_spill] sm:$0xff] %v5358_v1  ;;  %v5360_v2 = vpop.f32.mrf.mxu0 }
 0x190   :  { %5578 = vst [vmem:[#allocation16_spill] sm:$0xff] %v5360_v2  ;;  %v5362_v3 = vpop.f32.mrf.mxu1 }
 0x191   :  { %5579 = vst [vmem:[#allocation17_spill] sm:$0xff] %v5362_v3  ;;  %v5364_v5 = vpop.f32.mrf.mxu0  ;;  %v1239_v3 = vld [vmem:[%s5565_s3] sm:$0x1] }
 0x192   :  { %5580 = vst [vmem:[#allocation18_spill] sm:$0xff] %v5364_v5  ;;  %v5366_v4 = vpop.f32.mrf.mxu1 }
 0x193   :  { %5581 = vst [vmem:[#allocation19_spill] sm:$0xff] %v5366_v4  ;;  %v5368_v62 = vpop.f32.mrf.mxu0  ;;  %v2651_v4 = vld [vmem:[%s5565_s3 + $0x1] sm:$0x1] }
 0x194   :  { %5582 = vst [vmem:[#allocation20_spill] sm:$0xff] %v5368_v62  ;;  %v5370_v56 = vpop.f32.mrf.mxu1 }
 0x195   :  { %5583 = vst [vmem:[#allocation21_spill] sm:$0xff] %v5370_v56  ;;  %v5372_v48 = vpop.f32.mrf.mxu0  ;;  %v1405_v56 = vlaneseq }
 0x196   :  { %5584 = vst [vmem:[#allocation22_spill] sm:$0xff] %v5372_v48  ;;  %v5374_v41 = vpop.f32.mrf.mxu1  ;;  %v1240_v48 = vmul.f32 %v1239_v3, %v3200_v7 }
 0x197   :  { %5585 = vst [vmem:[#allocation23_spill] sm:$0xff] %v5374_v41  ;;  %v1243_v41 = vmul.f32 %v2651_v4, %v3213_v13  ;;  %v1406_v61 = vshrl.u32 %v1405_v56, 7 }
 0x198   :  { %v5376_v32 = vpop.f32.mrf.mxu0  ;;  %v5378_v63 = vpop.f32.mrf.mxu1 }
 0x199   :  { %5586 = vst [vmem:[#allocation24_spill] sm:$0xff] %v5376_v32  ;;  %5587 = vst [vmem:[#allocation25_spill] sm:$0xff] %v5378_v63  ;;  %v2652_v63 = vld [vmem:[%s5565_s3 + $0x2] sm:$0x1]  ;;  %v1244_v29 = vadd.f32 %v1243_v41, %v1240_v48  ;;  %v1407_v3 = vsub.s32 0, %v1406_v61  ;;  %v2826_v48 = vadd.f32 %v5284_v12, %v5280_v10 }
 0x19a   :  { %v5386_v5 = vpop.f32.mrf.mxu0  ;;  %v5388_v62 = vpop.f32.mrf.mxu1  ;;  %v1247_v1 = vmul.f32 %v2652_v63, %v3224_v19 }
 0x19b   :  { %5588 = vst [vmem:[#allocation26_spill] sm:$0xff] %v5386_v5  ;;  %5589 = vst [vmem:[#allocation27_spill] sm:$0xff] %v5388_v62 }
 0x19c   :  { %v5392_v32 = vpop.f32.mrf.mxu0  ;;  %v5397_v2 = vpop.f32.mrf.mxu1  ;;  %v1248_v7 = vadd.f32 %v1247_v1, %v1244_v29  ;;  %v2887_v29 = vadd.f32 %v5286_v14, %v5282_v11 }
 0x19d   :  { %5590 = vst [vmem:[#allocation28_spill] sm:$0xff] %v5392_v32  ;;  %5591 = vst [vmem:[#allocation29_spill] sm:$0xff] %v5397_v2 }
 0x19e   :  { %v5400_v5 = vpop.f32.mrf.mxu0  ;;  %v5402_v62 = vpop.f32.mrf.mxu1  ;;  %v5408_v32 = vrot.slane %v1248_v7, %v1407_v3  ;;  %v2829_v3 = vadd.f32 %v5294_v21, %v5290_v18  ;;  %v2832_v18 = vadd.f32 %v5302_v27, %v5298_v23 }
 0x1a0   :  { %v5406_v4 = vpop.f32.mrf.mxu1  ;;  %v1862_v19 = vadd.f32 %v5210_v16, %v5408_v32  ;;  %v1865_v63 = vadd.f32 %v5223_v26, %v5408_v32  ;;  %v1870_v11 = vadd.f32 %v5240_v38, %v5408_v32 }
 0x1a1   :  { %v5404_v13 = vpop.f32.mrf.mxu0 }
 0x1a2   :  { %v5414_v41 = vpop.f32.mrf.mxu1  ;;  %v1959_v56 = vadd.f32 %v2823_v25, %v1862_v19  ;;  %v1962_v9 = vadd.f32 %v2826_v48, %v1865_v63  ;;  %v2890_v25 = vadd.f32 %v5292_v20, %v5288_v17  ;;  %v1967_v19 = vadd.f32 %v2829_v3, %v1870_v11 }
 0x1a3   :  { %v5412_v2 = vpop.f32.mrf.mxu0  ;;  %5592 = vst [vmem:[#allocation30_spill] sm:$0xff] %v5414_v41  ;;  %v2893_v48 = vadd.f32 %v5300_v24, %v5296_v22  ;;  %v1873_v17 = vadd.f32 %v5245_v44, %v5408_v32  ;;  %v1878_v44 = vadd.f32 %v5258_v53, %v5408_v32  ;;  %v2896_v3 = vadd.f32 %v5308_v31, %v5304_v28 }
 0x1a4   :  { %v2056_v7 = vadd.f32 %v2887_v29, %v1959_v56  ;;  %v2059_v14 = vadd.f32 %v2890_v25, %v1962_v9  ;;  %v2838_v11 = vadd.f32 %v5318_v37, %v5314_v35  ;;  %v1881_v53 = vadd.f32 %v5263_v58, %v5408_v32 }
 0x1a5   :  { %v5422_v61 = vpop.f32.mrf.mxu0  ;;  %v2064_v9 = vadd.f32 %v2893_v48, %v1967_v19  ;;  %v2902_v58 = vadd.f32 %v5324_v42, %v5320_v39  ;;  %v2844_v39 = vadd.f32 %v5334_v49, %v5330_v46  ;;  %v2847_v46 = vadd.f32 %v5342_v54, %v5340_v52 }
 0x1a6   :  { %v1978_v37 = vadd.f32 %v2838_v11, %v1881_v53  ;;  %v2911_v53 = vadd.f32 %v5348_v59, %v5344_v55 }
 0x1a7   :  { %v5428_v16 = vpop.f32.mrf.mxu0 }
 0x1ad   :  { %v2949_v8 = vpop.f32.mrf.mxu1 }
 0x1af   :  { %v2950_v1 = vpop.f32.mrf.mxu1 }
 0x1b0   :  { %v2951_v41 = vadd.f32 %v2950_v1, %v2949_v8  ;;  %v1970_v1 = vadd.f32 %v2832_v18, %v1873_v17 }
 0x1b1   :  { %v2952_v10 = vpop.f32.mrf.mxu1 }
 0x1b2   :  { %v2153_v12 = vadd.f32 %v2951_v41, %v2056_v7  ;;  %v2835_v7 = vadd.f32 %v5310_v33, %v5306_v30 }
 0x1b3   :  { %v2953_v26 = vpop.f32.mrf.mxu1 }
 0x1b4   :  { %v2249_v21 = vpop.f32.mrf.mxu0  ;;  %v2954_v56 = vadd.f32 %v2953_v26, %v2952_v10  ;;  %v2899_v26 = vadd.f32 %v5316_v36, %v5312_v34  ;;  %v2841_v34 = vadd.f32 %v5326_v43, %v5322_v40  ;;  %v2905_v43 = vadd.f32 %v5332_v47, %v5328_v45 }
 0x1b5   :  { %v2250_v29 = vadd.f32 %v2249_v21, %v2153_v12  ;;  %v2955_v63 = vpop.f32.mrf.mxu1  ;;  %v2067_v12 = vadd.f32 %v2896_v3, %v1970_v1 }
 0x1b6   :  { %v2251_v20 = vpop.f32.mrf.mxu0  ;;  %v2156_v8 = vadd.f32 %v2954_v56, %v2059_v14  ;;  %v1975_v14 = vadd.f32 %v2835_v7, %v1878_v44 }
 0x1b7   :  { %v2312_v38 = vmax.f32 %v2250_v29, 0.0  ;;  %v2956_v41 = vpop.f32.mrf.mxu1 }
 0x1b8   :  { %v2252_v22 = vpop.f32.mrf.mxu0  ;;  %v2957_v24 = vadd.f32 %v2956_v41, %v2955_v63  ;;  %v2072_v29 = vadd.f32 %v2899_v26, %v1975_v14  ;;  %v2850_v26 = vadd.f32 %v5350_v60, %v5346_v57 }
 0x1b9   :  { %2328 = vst [vmem:[%s5566_s4] sm:$0xff] %v2312_v38  ;;  %v2253_v23 = vadd.f32 %v2252_v22, %v2156_v8  ;;  %v2958_v27 = vpop.f32.mrf.mxu1  ;;  %v1886_v8 = vadd.f32 %v5270_v0, %v5408_v32 }
 0x1ba   :  { %v2254_v25 = vpop.f32.mrf.mxu0  ;;  %v2161_v10 = vadd.f32 %v2957_v24, %v2064_v9  ;;  %v2075_v9 = vadd.f32 %v2902_v58, %v1978_v37  ;;  %v5597_v58 = vld [vmem:[#allocation14_spill] sm:$0xff] }
 0x1bb   :  { %v2313_v30 = vmax.f32 %v2253_v23, 0.0  ;;  %v2959_v33 = vpop.f32.mrf.mxu1  ;;  %v1983_v40 = vadd.f32 %v2841_v34, %v1886_v8  ;;  %v1889_v23 = vadd.f32 %v5274_v6, %v5408_v32  ;;  %v1894_v6 = vadd.f32 %v5208_v15, %v5408_v32  ;;  %v5595_v34 = vld [vmem:[#allocation15_spill] sm:$0xff] }
 0x1bc   :  { %v2257_v19 = vpop.f32.mrf.mxu0  ;;  %v2960_v48 = vadd.f32 %v2959_v33, %v2958_v27  ;;  %v2908_v33 = vadd.f32 %v5338_v51, %v5336_v50 }
 0x1bd   :  { %2329 = vst [vmem:[%s5566_s4 + $0x8] sm:$0xff] %v2313_v30  ;;  %v2258_v28 = vadd.f32 %v2257_v19, %v2161_v10  ;;  %v2961_v31 = vpop.f32.mrf.mxu1  ;;  %v2080_v10 = vadd.f32 %v2905_v43, %v1983_v40  ;;  %v1986_v45 = vadd.f32 %v2844_v39, %v1889_v23  ;;  %v5602_v23 = vld [vmem:[#allocation19_spill] sm:$0xff] }
 0x1be   :  { %v2259_v18 = vpop.f32.mrf.mxu0  ;;  %v2164_v35 = vadd.f32 %v2960_v48, %v2067_v12  ;;  %v1991_v48 = vadd.f32 %v2847_v46, %v1894_v6 }
 0x1bf   :  { %v2314_v21 = vmax.f32 %v2258_v28, 0.0  ;;  %v2962_v56 = vpop.f32.mrf.mxu1  ;;  %v2083_v19 = vadd.f32 %v2908_v33, %v1986_v45  ;;  %v5593_v18 = vld [vmem:[#allocation5_spill] sm:$0xff]  ;;  %v5603_v45 = vld [vmem:[#allocation7_spill] sm:$0xff] }
 0x1c0   :  { %v2260_v36 = vpop.f32.mrf.mxu0  ;;  %v2963_v63 = vadd.f32 %v2962_v56, %v2961_v31  ;;  %v1897_v15 = vadd.f32 %v5593_v18, %v5408_v32  ;;  %v2088_v56 = vadd.f32 %v2911_v53, %v1991_v48  ;;  %v1905_v46 = vadd.f32 %v5603_v45, %v5408_v32  ;;  %v5606_v53 = vld [vmem:[#allocation8_spill] sm:$0xff]  ;;  %v5608_v18 = vld [vmem:[#allocation22_spill] sm:$0xff] }
 0x1c1   :  { %2330 = vst [vmem:[%s5566_s4 + $0x10] sm:$0xff] %v2314_v21  ;;  %v2261_v17 = vadd.f32 %v2260_v36, %v2164_v35  ;;  %v2964_v20 = vpop.f32.mrf.mxu1 }
 0x1c2   :  { %v2262_v38 = vpop.f32.mrf.mxu0  ;;  %v2169_v41 = vadd.f32 %v2963_v63, %v2072_v29  ;;  %v1994_v60 = vadd.f32 %v2850_v26, %v1897_v15  ;;  %v5594_v29 = vld [vmem:[#allocation13_spill] sm:$0xff]  ;;  %v5596_v63 = vld [vmem:[#allocation12_spill] sm:$0xff] }
 0x1c3   :  { %v2315_v1 = vmax.f32 %v2261_v17, 0.0  ;;  %v2965_v7 = vpop.f32.mrf.mxu1  ;;  %v2853_v55 = vadd.f32 %v5595_v34, %v5594_v29  ;;  %v2914_v17 = vadd.f32 %v5597_v58, %v5596_v63  ;;  %v5598_v38 = vld [vmem:[#allocation6_spill] sm:$0xff]  ;;  %v5611_v34 = vld [vmem:[#allocation24_spill] sm:$0xff]  ;;  %v5613_v58 = vld [vmem:[#allocation9_spill] sm:$0xff] }
 0x1c4   :  { %v2265_v42 = vpop.f32.mrf.mxu0  ;;  %v2966_v22 = vadd.f32 %v2965_v7, %v2964_v20 }
 0x1c5   :  { %2331 = vst [vmem:[%s5566_s4 + $0x18] sm:$0xff] %v2315_v1  ;;  %v2266_v24 = vadd.f32 %v2265_v42, %v2169_v41  ;;  %v2967_v0 = vpop.f32.mrf.mxu1  ;;  %v1902_v41 = vadd.f32 %v5598_v38, %v5408_v32  ;;  %v2091_v7 = vadd.f32 %v2914_v17, %v1994_v60  ;;  %v5599_v42 = vld [vmem:[#allocation16_spill] sm:$0xff]  ;;  %v1913_v17 = vadd.f32 %v5613_v58, %v5408_v32 }
 0x1c6   :  { %v2267_v27 = vpop.f32.mrf.mxu0  ;;  %v2172_v44 = vadd.f32 %v2966_v22, %v2075_v9  ;;  %v5600_v22 = vld [vmem:[#allocation18_spill] sm:$0xff] }
 0x1c7   :  { %v2316_v3 = vmax.f32 %v2266_v24, 0.0  ;;  %v2968_v25 = vpop.f32.mrf.mxu1  ;;  %v1999_v39 = vadd.f32 %v2853_v55, %v1902_v41  ;;  %v2917_v24 = vadd.f32 %v5600_v22, %v5599_v42  ;;  %v5612_v55 = vld [vmem:[#allocation26_spill] sm:$0xff] }
 0x1c8   :  { %v2268_v47 = vpop.f32.mrf.mxu0  ;;  %v2969_v49 = vadd.f32 %v2968_v25, %v2967_v0  ;;  %v5601_v0 = vld [vmem:[#allocation17_spill] sm:$0xff] }
 0x1c9   :  { %2332 = vst [vmem:[%s5566_s4 + $0x20] sm:$0xff] %v2316_v3  ;;  %v2269_v11 = vadd.f32 %v2268_v47, %v2172_v44  ;;  %v2970_v30 = vpop.f32.mrf.mxu1  ;;  %v2856_v27 = vadd.f32 %v5602_v23, %v5601_v0  ;;  %v2096_v6 = vadd.f32 %v2917_v24, %v1999_v39  ;;  %v5615_v24 = vld [vmem:[#allocation28_spill] sm:$0xff] }
 0x1ca   :  { %v2270_v12 = vpop.f32.mrf.mxu0  ;;  %v2177_v14 = vadd.f32 %v2969_v49, %v2080_v10  ;;  %v2926_v0 = vadd.f32 %v5400_v5, %v5615_v24  ;;  %v5617_v5 = vld [vmem:[#allocation30_spill] sm:$0xff] }
 0x1cb   :  { %v2317_v52 = vmax.f32 %v2269_v11, 0.0  ;;  %v2971_v54 = vpop.f32.mrf.mxu1  ;;  %v2002_v33 = vadd.f32 %v2856_v27, %v1905_v46  ;;  %v5604_v12 = vld [vmem:[#allocation21_spill] sm:$0xff] }
 0x1cc   :  { %v2273_v28 = vpop.f32.mrf.mxu0  ;;  %v2972_v31 = vadd.f32 %v2971_v54, %v2970_v30 }
 0x1cd   :  { %2333 = vst [vmem:[%s5566_s4 + $0x28] sm:$0xff] %v2317_v52  ;;  %v2274_v50 = vadd.f32 %v2273_v28, %v2177_v14  ;;  %v2973_v51 = vpop.f32.mrf.mxu1  ;;  %v5605_v14 = vld [vmem:[#allocation23_spill] sm:$0xff]  ;;  %v1910_v28 = vadd.f32 %v5606_v53, %v5408_v32 }
 0x1ce   :  { %v2275_v35 = vpop.f32.mrf.mxu0  ;;  %v2180_v57 = vadd.f32 %v2972_v31, %v2083_v19  ;;  %v2859_v26 = vadd.f32 %v5605_v14, %v5604_v12  ;;  %v5607_v31 = vld [vmem:[#allocation20_spill] sm:$0xff]  ;;  %v5618_v14 = vld [vmem:[#allocation11_spill] sm:$0xff] }
 0x1cf   :  { %v2318_v37 = vmax.f32 %v2274_v50, 0.0  ;;  %v2974_v21 = vpop.f32.mrf.mxu1  ;;  %v2920_v15 = vadd.f32 %v5608_v18, %v5607_v31  ;;  %v5609_v35 = vld [vmem:[#allocation25_spill] sm:$0xff]  ;;  %v2932_v18 = vadd.f32 %v5428_v16, %v5422_v61 }
 0x1d0   :  { %v2276_v59 = vpop.f32.mrf.mxu0  ;;  %v2975_v36 = vadd.f32 %v2974_v21, %v2973_v51  ;;  %v2007_v29 = vadd.f32 %v2859_v26, %v1910_v28  ;;  %v1921_v26 = vadd.f32 %v5618_v14, %v5408_v32 }
 0x1d1   :  { %2334 = vst [vmem:[%s5566_s4 + $0x30] sm:$0xff] %v2318_v37  ;;  %v2277_v20 = vadd.f32 %v2276_v59, %v2180_v57  ;;  %v2976_v8 = vpop.f32.mrf.mxu1  ;;  %v5610_v57 = vld [vmem:[#allocation27_spill] sm:$0xff]  ;;  %v2923_v59 = vadd.f32 %v5612_v55, %v5611_v34 }
 0x1d2   :  { %v2278_v9 = vpop.f32.mrf.mxu0  ;;  %v2185_v1 = vadd.f32 %v2975_v36, %v2088_v56  ;;  %v2862_v60 = vadd.f32 %v5610_v57, %v5609_v35  ;;  %v2099_v56 = vadd.f32 %v2920_v15, %v2002_v33 }
 0x1d3   :  { %v2319_v40 = vmax.f32 %v2277_v20, 0.0  ;;  %v2977_v43 = vpop.f32.mrf.mxu1 }
 0x1d4   :  { %v2281_v44 = vpop.f32.mrf.mxu0  ;;  %v2978_v3 = vadd.f32 %v2977_v43, %v2976_v8  ;;  %v2010_v9 = vadd.f32 %v2862_v60, %v1913_v17  ;;  %v5614_v43 = vld [vmem:[#allocation29_spill] sm:$0xff] }
 0x1d5   :  { %2335 = vst [vmem:[%s5566_s4 + $0x38] sm:$0xff] %v2319_v40  ;;  %v2282_v25 = vadd.f32 %v2281_v44, %v2185_v1  ;;  %v2979_v10 = vpop.f32.mrf.mxu1  ;;  %v2104_v40 = vadd.f32 %v2923_v59, %v2007_v29  ;;  %v2865_v39 = vadd.f32 %v5402_v62, %v5614_v43  ;;  %v5616_v44 = vld [vmem:[#allocation10_spill] sm:$0xff] }
 0x1d6   :  { %v2283_v47 = vpop.f32.mrf.mxu0  ;;  %v2188_v49 = vadd.f32 %v2978_v3, %v2091_v7  ;;  %v1918_v3 = vadd.f32 %v5616_v44, %v5408_v32  ;;  %v2107_v45 = vadd.f32 %v2926_v0, %v2010_v9 }
 0x1d7   :  { %v2320_v11 = vmax.f32 %v2282_v25, 0.0  ;;  %v2980_v30 = vpop.f32.mrf.mxu1 }
 0x1d8   :  { %v2284_v52 = vpop.f32.mrf.mxu0  ;;  %v2981_v54 = vadd.f32 %v2980_v30, %v2979_v10  ;;  %v2015_v62 = vadd.f32 %v2865_v39, %v1918_v3 }
 0x1d9   :  { %2336 = vst [vmem:[%s5566_s4 + $0x40] sm:$0xff] %v2320_v11  ;;  %v2285_v19 = vadd.f32 %v2284_v52, %v2188_v49  ;;  %v2982_v48 = vpop.f32.mrf.mxu1  ;;  %v2929_v49 = vadd.f32 %v5412_v2, %v5404_v13  ;;  %v2868_v11 = vadd.f32 %v5617_v5, %v5406_v4 }
 0x1da   :  { %v2286_v50 = vpop.f32.mrf.mxu0  ;;  %v2193_v51 = vadd.f32 %v2981_v54, %v2096_v6 }
 0x1db   :  { %v2321_v37 = vmax.f32 %v2285_v19, 0.0  ;;  %v2983_v21 = vpop.f32.mrf.mxu1  ;;  %v2112_v53 = vadd.f32 %v2929_v49, %v2015_v62  ;;  %v2018_v2 = vadd.f32 %v2868_v11, %v1921_v26 }
 0x1dc   :  { %v2289_v36 = vpop.f32.mrf.mxu0  ;;  %v2984_v63 = vadd.f32 %v2983_v21, %v2982_v48 }
 0x1dd   :  { %2337 = vst [vmem:[%s5566_s4 + $0x48] sm:$0xff] %v2321_v37  ;;  %v2290_v20 = vadd.f32 %v2289_v36, %v2193_v51  ;;  %v2985_v8 = vpop.f32.mrf.mxu1  ;;  %v2115_v35 = vadd.f32 %v2932_v18, %v2018_v2 }
 0x1de   :  { %v2291_v38 = vpop.f32.mrf.mxu0  ;;  %v2196_v41 = vadd.f32 %v2984_v63, %v2099_v56 }
 0x1df   :  { %v2322_v1 = vmax.f32 %v2290_v20, 0.0  ;;  %v2986_v7 = vpop.f32.mrf.mxu1 }
 0x1e0   :  { %v2292_v42 = vpop.f32.mrf.mxu0  ;;  %v2987_v22 = vadd.f32 %v2986_v7, %v2985_v8 }
 0x1e1   :  { %2338 = vst [vmem:[%s5566_s4 + $0x50] sm:$0xff] %v2322_v1  ;;  %v2293_v23 = vadd.f32 %v2292_v42, %v2196_v41  ;;  %v2988_v27 = vpop.f32.mrf.mxu1 }
 0x1e2   :  { %v2294_v25 = vpop.f32.mrf.mxu0  ;;  %v2201_v10 = vadd.f32 %v2987_v22, %v2104_v40 }
 0x1e3   :  { %v2323_v46 = vmax.f32 %v2293_v23, 0.0  ;;  %v2989_v47 = vpop.f32.mrf.mxu1 }
 0x1e4   :  { %v2297_v30 = vpop.f32.mrf.mxu0  ;;  %v2990_v6 = vadd.f32 %v2989_v47, %v2988_v27 }
 0x1e5   :  { %2339 = vst [vmem:[%s5566_s4 + $0x58] sm:$0xff] %v2323_v46  ;;  %v2298_v33 = vadd.f32 %v2297_v30, %v2201_v10  ;;  %v2991_v12 = vpop.f32.mrf.mxu1 }
 0x1e6   :  { %v2299_v52 = vpop.f32.mrf.mxu0  ;;  %v2204_v54 = vadd.f32 %v2990_v6, %v2107_v45 }
 0x1e7   :  { %v2324_v19 = vmax.f32 %v2298_v33, 0.0  ;;  %v2992_v48 = vpop.f32.mrf.mxu1 }
 0x1e8   :  { %v2300_v13 = vpop.f32.mrf.mxu0  ;;  %v2993_v28 = vadd.f32 %v2992_v48, %v2991_v12 }
 0x1e9   :  { %2340 = vst [vmem:[%s5566_s4 + $0x60] sm:$0xff] %v2324_v19  ;;  %v2301_v4 = vadd.f32 %v2300_v13, %v2204_v54  ;;  %v2994_v31 = vpop.f32.mrf.mxu1 }
 0x1ea   :  { %v2302_v15 = vpop.f32.mrf.mxu0  ;;  %v2209_v50 = vadd.f32 %v2993_v28, %v2112_v53 }
 0x1eb   :  { %v2325_v32 = vmax.f32 %v2301_v4, 0.0  ;;  %v2995_v51 = vpop.f32.mrf.mxu1 }
 0x1ec   :  { %v2305_v57 = vpop.f32.mrf.mxu0  ;;  %v2996_v60 = vadd.f32 %v2995_v51, %v2994_v31 }
 0x1ed   :  { %2341 = vst [vmem:[%s5566_s4 + $0x68] sm:$0xff] %v2325_v32  ;;  %v2306_v37 = vadd.f32 %v2305_v57, %v2209_v50 }
 0x1ee   :  { %v2307_v21 = vpop.f32.mrf.mxu0  ;;  %v2212_v56 = vadd.f32 %v2996_v60, %v2115_v35 }
 0x1ef   :  { %v2326_v29 = vmax.f32 %v2306_v37, 0.0 }
 0x1f0   :  { %v2308_v34 = vpop.f32.mrf.mxu0 }
 0x1f1   :  { %2342 = vst [vmem:[%s5566_s4 + $0x70] sm:$0xff] %v2326_v29  ;;  %v2309_v61 = vadd.f32 %v2308_v34, %v2212_v56 }
 0x1f2   :  { %v2310_v16 = vpop.f32.mrf.mxu0 }
 0x1f3   :  { %v2327_v55 = vmax.f32 %v2309_v61, 0.0 }
 0x1f5   :  { %2343 = vst [vmem:[%s5566_s4 + $0x78] sm:$0xff] %v2327_v55 }
 0x1f6   :  { %2348 = vsyncpa [#allocation3], 1 }

// kernel: mrf_unet_search_forward.9
= control target key start
LH: loop header
LB: loop body
LE: loop exit
PB: predicated region body
PF: predicated region fallthrough
CT: control target
= control target key end

     0   :  { %11 = vsyncpa [#allocation3], 0  ;;  %s6067_s0 = inlined_call_operand.vmem [shape: f32[3], index: 0, kind: input, shape index: {}]   ;;  %s6068_s1 = inlined_call_operand.vmem [shape: bf16[512,600], index: 1, kind: input, shape index: {}]   ;;  %s6069_s2 = inlined_call_operand.vmem [shape: f32[3,600,128], index: 2, kind: input, shape index: {}]   ;;  %s6070_s3 = inlined_call_operand.vmem [shape: f32[3,1,128], index: 3, kind: input, shape index: {}]   ;;  %s6071_s4 = inlined_call_operand.vmem [shape: bf16[128,128], index: 4, kind: input, shape index: {}]   ;;  %s6072_s5 = inlined_call_operand.vmem [shape: f32[1,128], index: 5, kind: input, shape index: {}]   ;;  %s6073_s6 = inlined_call_operand.vmem [shape: f32[512,128], index: 6, kind: output, shape index: {}]  }
   0x1   :  { %s18_s23 = sshll.u32 %s6067_s0, 4  ;;  %s19_s23 = int_to_ptr.vmem [resolvable:$true] %s18_s23 }
   0x2   :  { %s4008_s24 = scalar_lea.vmem %s19_s23, 16  ;;  %p4013_p1 = scmp.lt.s32.totalorder %s19_s23, %s19_s23 }
   0x3   :  { %p4009_p0 = scmp.ne.s32.totalorder %s19_s23, %s4008_s24  ;;  %p4014_p2 = scmp.lt.s32.totalorder %s4008_s24, %s4008_s24 }
   0x5   :  { %p4015_p3 = por %p4014_p2, %p4013_p1 }
   0x7   :  { %p4016_p4 = pnand %p4015_p3, %p4009_p0 }
   0x9   :  { %4019 = shalt.err (!%p4016_p4)
}
   0xa   :  { %s4022_s25 = smov [#allocation2]  }
   0xb   :  { %21 = dma.vmem_to_smem %s19_s23, 16, %s4022_s25, [#allocation3]  }
   0xc   :  { %4020 = dma.done.wait [#allocation3], 16  }
   0xd   :  { %4021 = vsyncadd [#allocation3], 4294967280 }
   0xe   :  { %35 = sfence }
   0xf   :  { %s37_s26 = sld [smem:[#allocation2]]  ;;  %v4023_v0 = vmov 0   ;;  %v52_v1 = vld [vmem:[%s6069_s2 + $0x70] sm:$0xff]  ;;  %v53_v2 = vld [vmem:[%s6069_s2 + $0x78] sm:$0xff]  ;;  %v3199_v3 = vld [vmem:[%s6069_s2 + $0x2c8] sm:$0xff]  ;;  %vm1788_vm0 = vcmask 1043456  }
  0x10   :  { %1792 = vmatprep.subr.bf16.mxu0 %v4023_v0  ;;  %s3184_s27 = sld [smem:[#allocation2 + $0x1]]  ;;  %2081 = vmatprep.subr.bf16.mxu1 %v4023_v0  ;;  %v84_v4 = vld [vmem:[%s6069_s2 + $0x170] sm:$0xff]  ;;  %v3275_v6 = vld [vmem:[%s6069_s2 + $0x520] sm:$0xff]  ;;  %v85_v7 = vld [vmem:[%s6069_s2 + $0x178] sm:$0xff]  ;;  %vm1691_vm1 = vcmask 719872  }
  0x11   :  { %s3260_s0 = sld [smem:[#allocation2 + $0x2]]  ;;  %v3200_v5 = vld [vmem:[%s6069_s2 + $0x2d0] sm:$0xff]  ;;  %v3276_v9 = vld [vmem:[%s6069_s2 + $0x528] sm:$0xff]  ;;  %v3307_v16 = vld [vmem:[%s6069_s2 + $0x620] sm:$0xff] }
  0x12   :  { %v3231_v10 = vld [vmem:[%s6069_s2 + $0x3c8] sm:$0xff]  ;;  %v3232_v11 = vld [vmem:[%s6069_s2 + $0x3d0] sm:$0xff]  ;;  %v50_v22 = vld [vmem:[%s6069_s2 + $0x60] sm:$0xff] }
  0x13   :  { %v3308_v17 = vld [vmem:[%s6069_s2 + $0x628] sm:$0xff]  ;;  %v3197_v28 = vld [vmem:[%s6069_s2 + $0x2b8] sm:$0xff]  ;;  %v3198_v29 = vld [vmem:[%s6069_s2 + $0x2c0] sm:$0xff] }
  0x14   :  { %v51_v23 = vld [vmem:[%s6069_s2 + $0x68] sm:$0xff]  ;;  %v3273_v34 = vld [vmem:[%s6069_s2 + $0x510] sm:$0xff]  ;;  %v3274_v35 = vld [vmem:[%s6069_s2 + $0x518] sm:$0xff] }
  0x15   :  { %v4085_v8 = vstv %s37_s26  ;;  %v82_v40 = vld [vmem:[%s6069_s2 + $0x160] sm:$0xff]  ;;  %v83_v45 = vld [vmem:[%s6069_s2 + $0x168] sm:$0xff]  ;;  %v3229_v46 = vld [vmem:[%s6069_s2 + $0x3b8] sm:$0xff] }
  0x16   :  { %v128_v12 = vmul.f32 %v4085_v8, %v52_v1  ;;  %v129_v13 = vmul.f32 %v4085_v8, %v53_v2  ;;  %v4098_v14 = vstv %s3184_s27  ;;  %v160_v15 = vmul.f32 %v4085_v8, %v84_v4  ;;  %v3230_v47 = vld [vmem:[%s6069_s2 + $0x3c0] sm:$0xff]  ;;  %v3305_v52 = vld [vmem:[%s6069_s2 + $0x610] sm:$0xff]  ;;  %v3306_v53 = vld [vmem:[%s6069_s2 + $0x618] sm:$0xff] }
  0x17   :  { %v281_v18 = vmul.f32 %v3199_v3, %v4098_v14  ;;  %v282_v19 = vmul.f32 %v3200_v5, %v4098_v14  ;;  %v4109_v20 = vstv %s3260_s0  ;;  %v161_v21 = vmul.f32 %v4085_v8, %v85_v7  ;;  %v48_v58 = vld [vmem:[%s6069_s2 + $0x50] sm:$0xff]  ;;  %v49_v63 = vld [vmem:[%s6069_s2 + $0x58] sm:$0xff]  ;;  %v3195_v1 = vld [vmem:[%s6069_s2 + $0x2a8] sm:$0xff] }
  0x18   :  { %v509_v24 = vmul.f32 %v3275_v6, %v4109_v20  ;;  %v510_v25 = vmul.f32 %v3276_v9, %v4109_v20  ;;  %v313_v26 = vmul.f32 %v3231_v10, %v4098_v14  ;;  %v314_v27 = vmul.f32 %v3232_v11, %v4098_v14  ;;  %v3196_v2 = vld [vmem:[%s6069_s2 + $0x2b0] sm:$0xff]  ;;  %v3271_v7 = vld [vmem:[%s6069_s2 + $0x500] sm:$0xff]  ;;  %v3272_v9 = vld [vmem:[%s6069_s2 + $0x508] sm:$0xff] }
  0x19   :  { %v356_v30 = vadd.f32 %v281_v18, %v128_v12  ;;  %v357_v31 = vadd.f32 %v282_v19, %v129_v13  ;;  %v541_v32 = vmul.f32 %v3307_v16, %v4109_v20  ;;  %v542_v33 = vmul.f32 %v3308_v17, %v4109_v20  ;;  %v80_v13 = vld [vmem:[%s6069_s2 + $0x150] sm:$0xff] }
  0x1a   :  { %v388_v36 = vadd.f32 %v313_v26, %v160_v15  ;;  %v389_v37 = vadd.f32 %v314_v27, %v161_v21  ;;  %v126_v38 = vmul.f32 %v4085_v8, %v50_v22  ;;  %v127_v39 = vmul.f32 %v4085_v8, %v51_v23  ;;  %v81_v15 = vld [vmem:[%s6069_s2 + $0x158] sm:$0xff]  ;;  %v3227_v21 = vld [vmem:[%s6069_s2 + $0x3a8] sm:$0xff]  ;;  %v3228_v22 = vld [vmem:[%s6069_s2 + $0x3b0] sm:$0xff] }
  0x1b   :  { %v584_v41 = vadd.f32 %v509_v24, %v356_v30  ;;  %v585_v42 = vadd.f32 %v510_v25, %v357_v31  ;;  %v279_v43 = vmul.f32 %v3197_v28, %v4098_v14  ;;  %v280_v44 = vmul.f32 %v3198_v29, %v4098_v14  ;;  %v3303_v23 = vld [vmem:[%s6069_s2 + $0x600] sm:$0xff]  ;;  %v3304_v28 = vld [vmem:[%s6069_s2 + $0x608] sm:$0xff] }
  0x1c   :  { %v616_v48 = vadd.f32 %v541_v32, %v388_v36  ;;  %v617_v49 = vadd.f32 %v542_v33, %v389_v37  ;;  %v507_v50 = vmul.f32 %v3273_v34, %v4109_v20  ;;  %v508_v51 = vmul.f32 %v3274_v35, %v4109_v20  ;;  %v46_v29 = vld [vmem:[%s6069_s2 + $0x40] sm:$0xff]  ;;  %v47_v34 = vld [vmem:[%s6069_s2 + $0x48] sm:$0xff]  ;;  %v3193_v35 = vld [vmem:[%s6069_s2 + $0x298] sm:$0xff] }
  0x1d   :  { %v854_v54 = vpack.c.bf16 %v585_v42, %v584_v41  ;;  %v354_v55 = vadd.f32 %v279_v43, %v126_v38  ;;  %v355_v56 = vadd.f32 %v280_v44, %v127_v39  ;;  %v158_v57 = vmul.f32 %v4085_v8, %v82_v40  ;;  %v3194_v40 = vld [vmem:[%s6069_s2 + $0x2a0] sm:$0xff]  ;;  %v3269_v41 = vld [vmem:[%s6069_s2 + $0x4f0] sm:$0xff]  ;;  %v3270_v42 = vld [vmem:[%s6069_s2 + $0x4f8] sm:$0xff] }
  0x1e   :  { %v870_v59 = vpack.c.bf16 %v617_v49, %v616_v48  ;;  %v159_v60 = vmul.f32 %v4085_v8, %v83_v45  ;;  %v311_v61 = vmul.f32 %v3229_v46, %v4098_v14  ;;  %v312_v62 = vmul.f32 %v3230_v47, %v4098_v14  ;;  %v78_v47 = vld [vmem:[%s6069_s2 + $0x140] sm:$0xff] }
  0x1f   :  { %1793 = vmatpush1.bf16.msra.mxu0 %v854_v54  ;;  %v582_v3 = vadd.f32 %v507_v50, %v354_v55  ;;  %v583_v4 = vadd.f32 %v508_v51, %v355_v56  ;;  %v539_v5 = vmul.f32 %v3305_v52, %v4109_v20  ;;  %v540_v6 = vmul.f32 %v3306_v53, %v4109_v20  ;;  %v79_v52 = vld [vmem:[%s6069_s2 + $0x148] sm:$0xff]  ;;  %v3225_v53 = vld [vmem:[%s6069_s2 + $0x398] sm:$0xff]  ;;  %v3226_v54 = vld [vmem:[%s6069_s2 + $0x3a0] sm:$0xff] }
  0x20   :  { %2082 = vmatpush1.bf16.msra.mxu1 %v870_v59  ;;  %1794 = vmatprep.subr.bf16.mxu0 %v4023_v0  ;;  %v386_v10 = vadd.f32 %v311_v61, %v158_v57  ;;  %v387_v11 = vadd.f32 %v312_v62, %v159_v60  ;;  %v124_v12 = vmul.f32 %v4085_v8, %v48_v58  ;;  %v3301_v59 = vld [vmem:[%s6069_s2 + $0x5f0] sm:$0xff]  ;;  %v3302_v60 = vld [vmem:[%s6069_s2 + $0x5f8] sm:$0xff] }
  0x21   :  { %v853_v16 = vpack.c.bf16 %v583_v4, %v582_v3  ;;  %2083 = vmatprep.subr.bf16.mxu1 %v4023_v0  ;;  %v125_v17 = vmul.f32 %v4085_v8, %v49_v63  ;;  %v277_v18 = vmul.f32 %v3195_v1, %v4098_v14  ;;  %v278_v19 = vmul.f32 %v3196_v2, %v4098_v14  ;;  %v44_v2 = vld [vmem:[%s6069_s2 + $0x30] sm:$0xff]  ;;  %v45_v3 = vld [vmem:[%s6069_s2 + $0x38] sm:$0xff] }
  0x22   :  { %v614_v24 = vadd.f32 %v539_v5, %v386_v10  ;;  %v615_v25 = vadd.f32 %v540_v6, %v387_v11  ;;  %v505_v26 = vmul.f32 %v3271_v7, %v4109_v20  ;;  %v506_v27 = vmul.f32 %v3272_v9, %v4109_v20  ;;  %v3191_v9 = vld [vmem:[%s6069_s2 + $0x288] sm:$0xff]  ;;  %v3192_v10 = vld [vmem:[%s6069_s2 + $0x290] sm:$0xff]  ;;  %v3267_v11 = vld [vmem:[%s6069_s2 + $0x4e0] sm:$0xff] }
  0x23   :  { %1795 = vmatpush1.bf16.msra.mxu0 %v853_v16  ;;  %v352_v30 = vadd.f32 %v277_v18, %v124_v12  ;;  %v353_v31 = vadd.f32 %v278_v19, %v125_v17  ;;  %v156_v32 = vmul.f32 %v4085_v8, %v80_v13  ;;  %v157_v33 = vmul.f32 %v4085_v8, %v81_v15  ;;  %v3268_v17 = vld [vmem:[%s6069_s2 + $0x4e8] sm:$0xff] }
  0x24   :  { %v869_v36 = vpack.c.bf16 %v615_v25, %v614_v24  ;;  %1796 = vmatprep.subr.bf16.mxu0 %v4023_v0  ;;  %v309_v37 = vmul.f32 %v3227_v21, %v4098_v14  ;;  %v310_v38 = vmul.f32 %v3228_v22, %v4098_v14  ;;  %v537_v39 = vmul.f32 %v3303_v23, %v4109_v20  ;;  %v76_v23 = vld [vmem:[%s6069_s2 + $0x130] sm:$0xff]  ;;  %v77_v24 = vld [vmem:[%s6069_s2 + $0x138] sm:$0xff] }
  0x25   :  { %v580_v43 = vadd.f32 %v505_v26, %v352_v30  ;;  %v581_v44 = vadd.f32 %v506_v27, %v353_v31  ;;  %v538_v45 = vmul.f32 %v3304_v28, %v4109_v20  ;;  %v122_v46 = vmul.f32 %v4085_v8, %v46_v29  ;;  %v3223_v29 = vld [vmem:[%s6069_s2 + $0x388] sm:$0xff]  ;;  %v3224_v30 = vld [vmem:[%s6069_s2 + $0x390] sm:$0xff]  ;;  %v3299_v31 = vld [vmem:[%s6069_s2 + $0x5e0] sm:$0xff] }
  0x26   :  { %2084 = vmatpush1.bf16.msra.mxu1 %v869_v36  ;;  %v384_v48 = vadd.f32 %v309_v37, %v156_v32  ;;  %v385_v49 = vadd.f32 %v310_v38, %v157_v33  ;;  %v123_v50 = vmul.f32 %v4085_v8, %v47_v34  ;;  %v275_v51 = vmul.f32 %v3193_v35, %v4098_v14  ;;  %v3300_v36 = vld [vmem:[%s6069_s2 + $0x5e8] sm:$0xff]  ;;  %v42_v37 = vld [vmem:[%s6069_s2 + $0x20] sm:$0xff] }
  0x27   :  { %v852_v55 = vpack.c.bf16 %v581_v44, %v580_v43  ;;  %2085 = vmatprep.subr.bf16.mxu1 %v4023_v0  ;;  %v276_v56 = vmul.f32 %v3194_v40, %v4098_v14  ;;  %v503_v57 = vmul.f32 %v3269_v41, %v4109_v20  ;;  %v504_v58 = vmul.f32 %v3270_v42, %v4109_v20  ;;  %v43_v42 = vld [vmem:[%s6069_s2 + $0x28] sm:$0xff]  ;;  %v3189_v43 = vld [vmem:[%s6069_s2 + $0x278] sm:$0xff] }
  0x28   :  { %v612_v61 = vadd.f32 %v537_v39, %v384_v48  ;;  %v613_v62 = vadd.f32 %v538_v45, %v385_v49  ;;  %v350_v63 = vadd.f32 %v275_v51, %v122_v46  ;;  %v154_v1 = vmul.f32 %v4085_v8, %v78_v47  ;;  %v3190_v48 = vld [vmem:[%s6069_s2 + $0x280] sm:$0xff]  ;;  %v3265_v49 = vld [vmem:[%s6069_s2 + $0x4d0] sm:$0xff] }
  0x29   :  { %1797 = vmatpush1.bf16.msra.mxu0 %v852_v55  ;;  %v351_v4 = vadd.f32 %v276_v56, %v123_v50  ;;  %v155_v5 = vmul.f32 %v4085_v8, %v79_v52  ;;  %v307_v6 = vmul.f32 %v3225_v53, %v4098_v14  ;;  %v308_v7 = vmul.f32 %v3226_v54, %v4098_v14  ;;  %v3266_v50 = vld [vmem:[%s6069_s2 + $0x4d8] sm:$0xff]  ;;  %v74_v55 = vld [vmem:[%s6069_s2 + $0x120] sm:$0xff] }
  0x2a   :  { %v868_v12 = vpack.c.bf16 %v613_v62, %v612_v61  ;;  %1798 = vmatprep.subr.bf16.mxu0 %v4023_v0  ;;  %v578_v13 = vadd.f32 %v503_v57, %v350_v63  ;;  %v535_v15 = vmul.f32 %v3301_v59, %v4109_v20  ;;  %v536_v16 = vmul.f32 %v3302_v60, %v4109_v20  ;;  %v75_v60 = vld [vmem:[%s6069_s2 + $0x128] sm:$0xff]  ;;  %v3221_v61 = vld [vmem:[%s6069_s2 + $0x378] sm:$0xff]  ;;  %v3222_v62 = vld [vmem:[%s6069_s2 + $0x380] sm:$0xff] }
  0x2b   :  { %v579_v18 = vadd.f32 %v504_v58, %v351_v4  ;;  %v382_v19 = vadd.f32 %v307_v6, %v154_v1  ;;  %v383_v21 = vadd.f32 %v308_v7, %v155_v5  ;;  %v120_v22 = vmul.f32 %v4085_v8, %v44_v2  ;;  %v3297_v4 = vld [vmem:[%s6069_s2 + $0x5d0] sm:$0xff]  ;;  %v3298_v5 = vld [vmem:[%s6069_s2 + $0x5d8] sm:$0xff] }
  0x2c   :  { %2086 = vmatpush1.bf16.msra.mxu1 %v868_v12  ;;  %v121_v25 = vmul.f32 %v4085_v8, %v45_v3  ;;  %v273_v26 = vmul.f32 %v3191_v9, %v4098_v14  ;;  %v274_v27 = vmul.f32 %v3192_v10, %v4098_v14  ;;  %v501_v28 = vmul.f32 %v3267_v11, %v4109_v20  ;;  %v40_v11 = vld [vmem:[%s6069_s2 + $0x10] sm:$0xff]  ;;  %v41_v12 = vld [vmem:[%s6069_s2 + $0x18] sm:$0xff] }
  0x2d   :  { %v851_v32 = vpack.c.bf16 %v579_v18, %v578_v13  ;;  %2087 = vmatprep.subr.bf16.mxu1 %v4023_v0  ;;  %v610_v33 = vadd.f32 %v535_v15, %v382_v19  ;;  %v611_v34 = vadd.f32 %v536_v16, %v383_v21  ;;  %v502_v35 = vmul.f32 %v3268_v17, %v4109_v20  ;;  %v3187_v18 = vld [vmem:[%s6069_s2 + $0x268] sm:$0xff]  ;;  %v3188_v19 = vld [vmem:[%s6069_s2 + $0x270] sm:$0xff]  ;;  %v3263_v21 = vld [vmem:[%s6069_s2 + $0x4c0] sm:$0xff] }
  0x2e   :  { %v348_v38 = vadd.f32 %v273_v26, %v120_v22  ;;  %v349_v39 = vadd.f32 %v274_v27, %v121_v25  ;;  %v152_v40 = vmul.f32 %v4085_v8, %v76_v23  ;;  %v153_v41 = vmul.f32 %v4085_v8, %v77_v24  ;;  %v3264_v26 = vld [vmem:[%s6069_s2 + $0x4c8] sm:$0xff] }
  0x2f   :  { %1799 = vmatpush1.bf16.msra.mxu0 %v851_v32  ;;  %v867_v44 = vpack.c.bf16 %v611_v34, %v610_v33  ;;  %v305_v45 = vmul.f32 %v3223_v29, %v4098_v14  ;;  %v306_v46 = vmul.f32 %v3224_v30, %v4098_v14  ;;  %v533_v47 = vmul.f32 %v3299_v31, %v4109_v20  ;;  %v72_v31 = vld [vmem:[%s6069_s2 + $0x110] sm:$0xff]  ;;  %v73_v32 = vld [vmem:[%s6069_s2 + $0x118] sm:$0xff] }
  0x30   :  { %1800 = vmatprep.subr.bf16.mxu0 %v4023_v0  ;;  %v576_v51 = vadd.f32 %v501_v28, %v348_v38  ;;  %v577_v52 = vadd.f32 %v502_v35, %v349_v39  ;;  %v534_v53 = vmul.f32 %v3300_v36, %v4109_v20  ;;  %v118_v54 = vmul.f32 %v4085_v8, %v42_v37  ;;  %v3219_v37 = vld [vmem:[%s6069_s2 + $0x368] sm:$0xff]  ;;  %v3220_v38 = vld [vmem:[%s6069_s2 + $0x370] sm:$0xff]  ;;  %v3295_v39 = vld [vmem:[%s6069_s2 + $0x5c0] sm:$0xff] }
  0x31   :  { %2088 = vmatpush1.bf16.msra.mxu1 %v867_v44  ;;  %v380_v56 = vadd.f32 %v305_v45, %v152_v40  ;;  %v381_v57 = vadd.f32 %v306_v46, %v153_v41  ;;  %v119_v58 = vmul.f32 %v4085_v8, %v43_v42  ;;  %v271_v59 = vmul.f32 %v3189_v43, %v4098_v14  ;;  %v3296_v44 = vld [vmem:[%s6069_s2 + $0x5c8] sm:$0xff]  ;;  %v38_v45 = vld [vmem:[%s6069_s2] sm:$0xff] }
  0x32   :  { %v850_v63 = vpack.c.bf16 %v577_v52, %v576_v51  ;;  %2089 = vmatprep.subr.bf16.mxu1 %v4023_v0  ;;  %v272_v1 = vmul.f32 %v3190_v48, %v4098_v14  ;;  %v499_v2 = vmul.f32 %v3265_v49, %v4109_v20  ;;  %v500_v3 = vmul.f32 %v3266_v50, %v4109_v20  ;;  %v39_v50 = vld [vmem:[%s6069_s2 + $0x8] sm:$0xff]  ;;  %v3185_v51 = vld [vmem:[%s6069_s2 + $0x258] sm:$0xff] }
  0x33   :  { %v608_v6 = vadd.f32 %v533_v47, %v380_v56  ;;  %v609_v7 = vadd.f32 %v534_v53, %v381_v57  ;;  %v346_v9 = vadd.f32 %v271_v59, %v118_v54  ;;  %v150_v10 = vmul.f32 %v4085_v8, %v74_v55  ;;  %v3186_v56 = vld [vmem:[%s6069_s2 + $0x260] sm:$0xff]  ;;  %v3261_v57 = vld [vmem:[%s6069_s2 + $0x4b0] sm:$0xff] }
  0x34   :  { %1801 = vmatpush1.bf16.msra.mxu0 %v850_v63  ;;  %v347_v13 = vadd.f32 %v272_v1, %v119_v58  ;;  %v151_v15 = vmul.f32 %v4085_v8, %v75_v60  ;;  %v303_v16 = vmul.f32 %v3221_v61, %v4098_v14  ;;  %v304_v17 = vmul.f32 %v3222_v62, %v4098_v14  ;;  %v3262_v58 = vld [vmem:[%s6069_s2 + $0x4b8] sm:$0xff]  ;;  %v70_v63 = vld [vmem:[%s6069_s2 + $0x100] sm:$0xff] }
  0x35   :  { %v866_v22 = vpack.c.bf16 %v609_v7, %v608_v6  ;;  %1802 = vmatprep.subr.bf16.mxu0 %v4023_v0  ;;  %v574_v23 = vadd.f32 %v499_v2, %v346_v9  ;;  %v531_v24 = vmul.f32 %v3297_v4, %v4109_v20  ;;  %v532_v25 = vmul.f32 %v3298_v5, %v4109_v20  ;;  %v71_v5 = vld [vmem:[%s6069_s2 + $0x108] sm:$0xff]  ;;  %v3217_v6 = vld [vmem:[%s6069_s2 + $0x358] sm:$0xff]  ;;  %v3218_v7 = vld [vmem:[%s6069_s2 + $0x360] sm:$0xff] }
  0x36   :  { %v575_v27 = vadd.f32 %v500_v3, %v347_v13  ;;  %v378_v28 = vadd.f32 %v303_v16, %v150_v10  ;;  %v379_v29 = vadd.f32 %v304_v17, %v151_v15  ;;  %v116_v30 = vmul.f32 %v4085_v8, %v40_v11  ;;  %v3293_v13 = vld [vmem:[%s6069_s2 + $0x5b0] sm:$0xff]  ;;  %v3294_v15 = vld [vmem:[%s6069_s2 + $0x5b8] sm:$0xff] }
  0x37   :  { %2090 = vmatpush1.bf16.msra.mxu1 %v866_v22  ;;  %v117_v33 = vmul.f32 %v4085_v8, %v41_v12  ;;  %v269_v34 = vmul.f32 %v3187_v18, %v4098_v14  ;;  %v270_v35 = vmul.f32 %v3188_v19, %v4098_v14  ;;  %v497_v36 = vmul.f32 %v3263_v21, %v4109_v20  ;;  %v68_v21 = vld [vmem:[%s6069_s2 + $0xf0] sm:$0xff]  ;;  %v69_v22 = vld [vmem:[%s6069_s2 + $0xf8] sm:$0xff] }
  0x38   :  { %v849_v40 = vpack.c.bf16 %v575_v27, %v574_v23  ;;  %2091 = vmatprep.subr.bf16.mxu1 %v4023_v0  ;;  %v606_v41 = vadd.f32 %v531_v24, %v378_v28  ;;  %v607_v42 = vadd.f32 %v532_v25, %v379_v29  ;;  %v498_v43 = vmul.f32 %v3264_v26, %v4109_v20  ;;  %v3215_v27 = vld [vmem:[%s6069_s2 + $0x348] sm:$0xff]  ;;  %v3216_v28 = vld [vmem:[%s6069_s2 + $0x350] sm:$0xff]  ;;  %v3291_v29 = vld [vmem:[%s6069_s2 + $0x5a0] sm:$0xff] }
  0x39   :  { %v344_v46 = vadd.f32 %v269_v34, %v116_v30  ;;  %v345_v47 = vadd.f32 %v270_v35, %v117_v33  ;;  %v148_v48 = vmul.f32 %v4085_v8, %v72_v31  ;;  %v149_v49 = vmul.f32 %v4085_v8, %v73_v32  ;;  %v3292_v34 = vld [vmem:[%s6069_s2 + $0x5a8] sm:$0xff] }
  0x3a   :  { %1803 = vmatpush1.bf16.msra.mxu0 %v849_v40  ;;  %v865_v52 = vpack.c.bf16 %v607_v42, %v606_v41  ;;  %v301_v53 = vmul.f32 %v3219_v37, %v4098_v14  ;;  %v302_v54 = vmul.f32 %v3220_v38, %v4098_v14  ;;  %v529_v55 = vmul.f32 %v3295_v39, %v4109_v20  ;;  %v100_v39 = vld [vmem:[%s6069_s2 + $0x1f0] sm:$0xff]  ;;  %v101_v40 = vld [vmem:[%s6069_s2 + $0x1f8] sm:$0xff] }
  0x3b   :  { %1804 = vmatprep.subr.bf16.mxu0 %v4023_v0  ;;  %v572_v59 = vadd.f32 %v497_v36, %v344_v46  ;;  %v573_v60 = vadd.f32 %v498_v43, %v345_v47  ;;  %v530_v61 = vmul.f32 %v3296_v44, %v4109_v20  ;;  %v114_v62 = vmul.f32 %v4085_v8, %v38_v45  ;;  %v3247_v45 = vld [vmem:[%s6069_s2 + $0x448] sm:$0xff]  ;;  %v3248_v46 = vld [vmem:[%s6069_s2 + $0x450] sm:$0xff]  ;;  %v3323_v47 = vld [vmem:[%s6069_s2 + $0x6a0] sm:$0xff] }
  0x3c   :  { %2092 = vmatpush1.bf16.msra.mxu1 %v865_v52  ;;  %v376_v1 = vadd.f32 %v301_v53, %v148_v48  ;;  %v377_v2 = vadd.f32 %v302_v54, %v149_v49  ;;  %v115_v3 = vmul.f32 %v4085_v8, %v39_v50  ;;  %v267_v4 = vmul.f32 %v3185_v51, %v4098_v14  ;;  %v3324_v52 = vld [vmem:[%s6069_s2 + $0x6a8] sm:$0xff]  ;;  %v66_v53 = vld [vmem:[%s6069_s2 + $0xe0] sm:$0xff] }
  0x3d   :  { %v848_v9 = vpack.c.bf16 %v573_v60, %v572_v59  ;;  %2093 = vmatprep.subr.bf16.mxu1 %v4023_v0  ;;  %v268_v10 = vmul.f32 %v3186_v56, %v4098_v14  ;;  %v495_v11 = vmul.f32 %v3261_v57, %v4109_v20  ;;  %v496_v12 = vmul.f32 %v3262_v58, %v4109_v20  ;;  %v67_v58 = vld [vmem:[%s6069_s2 + $0xe8] sm:$0xff]  ;;  %v3213_v59 = vld [vmem:[%s6069_s2 + $0x338] sm:$0xff] }
  0x3e   :  { %v604_v16 = vadd.f32 %v529_v55, %v376_v1  ;;  %v605_v17 = vadd.f32 %v530_v61, %v377_v2  ;;  %v342_v18 = vadd.f32 %v267_v4, %v114_v62  ;;  %v146_v19 = vmul.f32 %v4085_v8, %v70_v63  ;;  %v3214_v1 = vld [vmem:[%s6069_s2 + $0x340] sm:$0xff]  ;;  %v3289_v2 = vld [vmem:[%s6069_s2 + $0x590] sm:$0xff] }
  0x3f   :  { %1805 = vmatpush1.bf16.msra.mxu0 %v848_v9  ;;  %v343_v23 = vadd.f32 %v268_v10, %v115_v3  ;;  %v147_v24 = vmul.f32 %v4085_v8, %v71_v5  ;;  %v299_v25 = vmul.f32 %v3217_v6, %v4098_v14  ;;  %v300_v26 = vmul.f32 %v3218_v7, %v4098_v14  ;;  %v3290_v3 = vld [vmem:[%s6069_s2 + $0x598] sm:$0xff]  ;;  %v98_v9 = vld [vmem:[%s6069_s2 + $0x1e0] sm:$0xff] }
  0x40   :  { %v864_v30 = vpack.c.bf16 %v605_v17, %v604_v16  ;;  %1806 = vmatprep.subr.bf16.mxu0 %v4023_v0  ;;  %v570_v31 = vadd.f32 %v495_v11, %v342_v18  ;;  %v527_v32 = vmul.f32 %v3293_v13, %v4109_v20  ;;  %v528_v33 = vmul.f32 %v3294_v15, %v4109_v20  ;;  %v99_v15 = vld [vmem:[%s6069_s2 + $0x1e8] sm:$0xff]  ;;  %v3245_v16 = vld [vmem:[%s6069_s2 + $0x438] sm:$0xff]  ;;  %v3246_v17 = vld [vmem:[%s6069_s2 + $0x440] sm:$0xff] }
  0x41   :  { %v571_v35 = vadd.f32 %v496_v12, %v343_v23  ;;  %v374_v36 = vadd.f32 %v299_v25, %v146_v19  ;;  %v375_v37 = vadd.f32 %v300_v26, %v147_v24  ;;  %v144_v38 = vmul.f32 %v4085_v8, %v68_v21  ;;  %v3321_v23 = vld [vmem:[%s6069_s2 + $0x690] sm:$0xff]  ;;  %v3322_v24 = vld [vmem:[%s6069_s2 + $0x698] sm:$0xff] }
  0x42   :  { %2094 = vmatpush1.bf16.msra.mxu1 %v864_v30  ;;  %v145_v41 = vmul.f32 %v4085_v8, %v69_v22  ;;  %v297_v42 = vmul.f32 %v3215_v27, %v4098_v14  ;;  %v298_v43 = vmul.f32 %v3216_v28, %v4098_v14  ;;  %v525_v44 = vmul.f32 %v3291_v29, %v4109_v20  ;;  %v64_v29 = vld [vmem:[%s6069_s2 + $0xd0] sm:$0xff]  ;;  %v65_v30 = vld [vmem:[%s6069_s2 + $0xd8] sm:$0xff] }
  0x43   :  { %v847_v48 = vpack.c.bf16 %v571_v35, %v570_v31  ;;  %2095 = vmatprep.subr.bf16.mxu1 %v4023_v0  ;;  %v602_v49 = vadd.f32 %v527_v32, %v374_v36  ;;  %v603_v50 = vadd.f32 %v528_v33, %v375_v37  ;;  %v526_v51 = vmul.f32 %v3292_v34, %v4109_v20  ;;  %v3211_v31 = vld [vmem:[%s6069_s2 + $0x328] sm:$0xff]  ;;  %v3212_v36 = vld [vmem:[%s6069_s2 + $0x330] sm:$0xff]  ;;  %v3287_v37 = vld [vmem:[%s6069_s2 + $0x580] sm:$0xff] }
  0x44   :  { %v372_v54 = vadd.f32 %v297_v42, %v144_v38  ;;  %v373_v55 = vadd.f32 %v298_v43, %v145_v41  ;;  %v176_v56 = vmul.f32 %v4085_v8, %v100_v39  ;;  %v177_v57 = vmul.f32 %v4085_v8, %v101_v40  ;;  %v3288_v38 = vld [vmem:[%s6069_s2 + $0x588] sm:$0xff]  ;;  %v96_v43 = vld [vmem:[%s6069_s2 + $0x1d0] sm:$0xff] }
  0x45   :  { %1807 = vmatpush1.bf16.msra.mxu0 %v847_v48  ;;  %v863_v60 = vpack.c.bf16 %v603_v50, %v602_v49  ;;  %v329_v61 = vmul.f32 %v3247_v45, %v4098_v14  ;;  %v330_v62 = vmul.f32 %v3248_v46, %v4098_v14  ;;  %v557_v63 = vmul.f32 %v3323_v47, %v4109_v20  ;;  %v3243_v45 = vld [vmem:[%s6069_s2 + $0x428] sm:$0xff]  ;;  %v3244_v50 = vld [vmem:[%s6069_s2 + $0x430] sm:$0xff] }
  0x46   :  { %1808 = vmatprep.subr.bf16.mxu0 %v4023_v0  ;;  %v600_v4 = vadd.f32 %v525_v44, %v372_v54  ;;  %v601_v5 = vadd.f32 %v526_v51, %v373_v55  ;;  %v558_v6 = vmul.f32 %v3324_v52, %v4109_v20  ;;  %v142_v7 = vmul.f32 %v4085_v8, %v66_v53  ;;  %v97_v44 = vld [vmem:[%s6069_s2 + $0x1d8] sm:$0xff]  ;;  %v3319_v51 = vld [vmem:[%s6069_s2 + $0x680] sm:$0xff]  ;;  %v3320_v52 = vld [vmem:[%s6069_s2 + $0x688] sm:$0xff] }
  0x47   :  { %2096 = vmatpush1.bf16.msra.mxu1 %v863_v60  ;;  %v404_v10 = vadd.f32 %v329_v61, %v176_v56  ;;  %v405_v11 = vadd.f32 %v330_v62, %v177_v57  ;;  %v143_v12 = vmul.f32 %v4085_v8, %v67_v58  ;;  %v295_v13 = vmul.f32 %v3213_v59, %v4098_v14  ;;  %v62_v57 = vld [vmem:[%s6069_s2 + $0xc0] sm:$0xff]  ;;  %v63_v62 = vld [vmem:[%s6069_s2 + $0xc8] sm:$0xff] }
  0x48   :  { %v862_v18 = vpack.c.bf16 %v601_v5, %v600_v4  ;;  %2097 = vmatprep.subr.bf16.mxu1 %v4023_v0  ;;  %v296_v19 = vmul.f32 %v3214_v1, %v4098_v14  ;;  %v523_v21 = vmul.f32 %v3289_v2, %v4109_v20  ;;  %v524_v22 = vmul.f32 %v3290_v3, %v4109_v20  ;;  %v3210_v1 = vld [vmem:[%s6069_s2 + $0x320] sm:$0xff] }
  0x49   :  { %v632_v25 = vadd.f32 %v557_v63, %v404_v10  ;;  %v633_v26 = vadd.f32 %v558_v6, %v405_v11  ;;  %v370_v27 = vadd.f32 %v295_v13, %v142_v7  ;;  %v174_v28 = vmul.f32 %v4085_v8, %v98_v9  ;;  %v3209_v63 = vld [vmem:[%s6069_s2 + $0x318] sm:$0xff]  ;;  %v3285_v6 = vld [vmem:[%s6069_s2 + $0x570] sm:$0xff]  ;;  %v94_v9 = vld [vmem:[%s6069_s2 + $0x1c0] sm:$0xff] }
  0x4a   :  { %1809 = vmatpush2.bf16.msra.mxu0 %v862_v18  ;;  %v371_v32 = vadd.f32 %v296_v19, %v143_v12  ;;  %v175_v33 = vmul.f32 %v4085_v8, %v99_v15  ;;  %v327_v34 = vmul.f32 %v3245_v16, %v4098_v14  ;;  %v328_v35 = vmul.f32 %v3246_v17, %v4098_v14  ;;  %v3286_v7 = vld [vmem:[%s6069_s2 + $0x578] sm:$0xff]  ;;  %v95_v15 = vld [vmem:[%s6069_s2 + $0x1c8] sm:$0xff]  ;;  %v3242_v17 = vld [vmem:[%s6069_s2 + $0x420] sm:$0xff] }
  0x4b   :  { %v878_v39 = vpack.c.bf16 %v633_v26, %v632_v25  ;;  %1810 = vmatprep.subr.bf16.mxu0 %v4023_v0  ;;  %v598_v40 = vadd.f32 %v523_v21, %v370_v27  ;;  %v555_v41 = vmul.f32 %v3321_v23, %v4109_v20  ;;  %v556_v42 = vmul.f32 %v3322_v24, %v4109_v20  ;;  %v3241_v16 = vld [vmem:[%s6069_s2 + $0x418] sm:$0xff]  ;;  %v3317_v24 = vld [vmem:[%s6069_s2 + $0x670] sm:$0xff] }
  0x4c   :  { %v599_v46 = vadd.f32 %v524_v22, %v371_v32  ;;  %v402_v47 = vadd.f32 %v327_v34, %v174_v28  ;;  %v403_v48 = vadd.f32 %v328_v35, %v175_v33  ;;  %v140_v49 = vmul.f32 %v4085_v8, %v64_v29  ;;  %v3778_v18 = vld [vmem:[%s6068_s1 + $0x4] ss:$20 sps:$4 sm:$0xff]  }
  0x4d   :  { %2098 = vmatpush2.bf16.msra.mxu1 %v878_v39  ;;  %v141_v53 = vmul.f32 %v4085_v8, %v65_v30  ;;  %v293_v54 = vmul.f32 %v3211_v31, %v4098_v14  ;;  %v294_v55 = vmul.f32 %v3212_v36, %v4098_v14  ;;  %v521_v56 = vmul.f32 %v3287_v37, %v4109_v20  ;;  %v3318_v29 = vld [vmem:[%s6069_s2 + $0x678] sm:$0xff]  ;;  %v60_v30 = vld [vmem:[%s6069_s2 + $0xb0] sm:$0xff]  ;;  %v3207_v36 = vld [vmem:[%s6069_s2 + $0x308] sm:$0xff] }
  0x4e   :  { %v861_v58 = vpack.c.bf16 %v599_v46, %v598_v40  ;;  %2099 = vmatprep.subr.bf16.mxu1 %v4023_v0  ;;  %v630_v59 = vadd.f32 %v555_v41, %v402_v47  ;;  %v631_v60 = vadd.f32 %v556_v42, %v403_v48  ;;  %v522_v61 = vmul.f32 %v3288_v38, %v4109_v20  ;;  %v61_v35 = vld [vmem:[%s6069_s2 + $0xb8] sm:$0xff]  ;;  %v3208_v37 = vld [vmem:[%s6069_s2 + $0x310] sm:$0xff]  ;;  %v3283_v38 = vld [vmem:[%s6069_s2 + $0x560] sm:$0xff] }
  0x4f   :  { %v368_v2 = vadd.f32 %v293_v54, %v140_v49  ;;  %v369_v3 = vadd.f32 %v294_v55, %v141_v53  ;;  %v172_v4 = vmul.f32 %v4085_v8, %v96_v43  ;;  %v173_v5 = vmul.f32 %v4085_v8, %v97_v44  ;;  %v3781_v39 = vld [vmem:[%s6068_s1 + $0xc] ss:$20 sps:$4 sm:$0xff]   ;;  %1824 = vmatprep.mubr.bf16.mxu0 %v3778_v18  ;;  %v92_v49 = vld [vmem:[%s6069_s2 + $0x1b0] sm:$0xff] }
  0x50   :  { %1811 = vmatpush2.bf16.msra.mxu0 %v861_v58  ;;  %v877_v10 = vpack.c.bf16 %v631_v60, %v630_v59  ;;  %v325_v11 = vmul.f32 %v3243_v45, %v4098_v14  ;;  %v326_v12 = vmul.f32 %v3244_v50, %v4098_v14  ;;  %v553_v13 = vmul.f32 %v3319_v51, %v4109_v20  ;;  %v3284_v44 = vld [vmem:[%s6069_s2 + $0x568] sm:$0xff]  ;;  %v93_v50 = vld [vmem:[%s6069_s2 + $0x1b8] sm:$0xff] }
  0x51   :  { %1812 = vmatprep.subr.bf16.mxu0 %v4023_v0  ;;  %v596_v19 = vadd.f32 %v521_v56, %v368_v2  ;;  %v597_v21 = vadd.f32 %v522_v61, %v369_v3  ;;  %v554_v22 = vmul.f32 %v3320_v52, %v4109_v20  ;;  %v138_v23 = vmul.f32 %v4085_v8, %v62_v57  ;;  %v3239_v55 = vld [vmem:[%s6069_s2 + $0x408] sm:$0xff]  ;;  %v3240_v56 = vld [vmem:[%s6069_s2 + $0x410] sm:$0xff]  ;;  %v3315_v57 = vld [vmem:[%s6069_s2 + $0x660] sm:$0xff] }
  0x52   :  { %2100 = vmatpush2.bf16.msra.mxu1 %v877_v10  ;;  %v400_v25 = vadd.f32 %v325_v11, %v172_v4  ;;  %v401_v26 = vadd.f32 %v326_v12, %v173_v5  ;;  %v139_v27 = vmul.f32 %v4085_v8, %v63_v62  ;;  %v291_v28 = vmul.f32 %v3209_v63, %v4098_v14  ;;  %v3316_v62 = vld [vmem:[%s6069_s2 + $0x668] sm:$0xff]  ;;  %v58_v63 = vld [vmem:[%s6069_s2 + $0xa0] sm:$0xff] }
  0x53   :  { %v860_v31 = vpack.c.bf16 %v597_v21, %v596_v19  ;;  %2101 = vmatprep.subr.bf16.mxu1 %v4023_v0  ;;  %v292_v32 = vmul.f32 %v3210_v1, %v4098_v14  ;;  %v519_v33 = vmul.f32 %v3285_v6, %v4109_v20  ;;  %v520_v34 = vmul.f32 %v3286_v7, %v4109_v20  ;;  %v59_v5 = vld [vmem:[%s6069_s2 + $0xa8] sm:$0xff]  ;;  %v3205_v6 = vld [vmem:[%s6069_s2 + $0x2f8] sm:$0xff]  ;;  %v3206_v12 = vld [vmem:[%s6069_s2 + $0x300] sm:$0xff] }
  0x54   :  { %v628_v40 = vadd.f32 %v553_v13, %v400_v25  ;;  %v629_v41 = vadd.f32 %v554_v22, %v401_v26  ;;  %v366_v42 = vadd.f32 %v291_v28, %v138_v23  ;;  %v170_v43 = vmul.f32 %v4085_v8, %v94_v9  ;;  %2113 = vmatprep.mubr.bf16.mxu1 %v3781_v39  ;;  %v3281_v13 = vld [vmem:[%s6069_s2 + $0x550] sm:$0xff]  ;;  %v3282_v19 = vld [vmem:[%s6069_s2 + $0x558] sm:$0xff]  ;;  %v90_v21 = vld [vmem:[%s6069_s2 + $0x1a0] sm:$0xff] }
  0x55   :  { %1813 = vmatpush2.bf16.msra.mxu0 %v860_v31  ;;  %v367_v45 = vadd.f32 %v292_v32, %v139_v27  ;;  %v171_v46 = vmul.f32 %v4085_v8, %v95_v15  ;;  %v323_v47 = vmul.f32 %v3241_v16, %v4098_v14  ;;  %v324_v48 = vmul.f32 %v3242_v17, %v4098_v14  ;;  %v91_v26 = vld [vmem:[%s6069_s2 + $0x1a8] sm:$0xff]  ;;  %v3237_v27 = vld [vmem:[%s6069_s2 + $0x3f8] sm:$0xff]  ;;  %v3238_v28 = vld [vmem:[%s6069_s2 + $0x400] sm:$0xff] }
  0x56   :  { %v876_v51 = vpack.c.bf16 %v629_v41, %v628_v40  ;;  %1814 = vmatprep.subr.bf16.mxu0 %v4023_v0  ;;  %v594_v52 = vadd.f32 %v519_v33, %v366_v42  ;;  %v551_v53 = vmul.f32 %v3317_v24, %v4109_v20  ;;  %v552_v54 = vmul.f32 %v3318_v29, %v4109_v20  ;;  %v3313_v33 = vld [vmem:[%s6069_s2 + $0x650] sm:$0xff] }
  0x57   :  { %v595_v58 = vadd.f32 %v520_v34, %v367_v45  ;;  %v398_v59 = vadd.f32 %v323_v47, %v170_v43  ;;  %v399_v60 = vadd.f32 %v324_v48, %v171_v46  ;;  %v136_v61 = vmul.f32 %v4085_v8, %v60_v30  ;;  %v3314_v34 = vld [vmem:[%s6069_s2 + $0x658] sm:$0xff]  ;;  %v56_v39 = vld [vmem:[%s6069_s2 + $0x90] sm:$0xff]  ;;  %v3203_v45 = vld [vmem:[%s6069_s2 + $0x2e8] sm:$0xff] }
  0x58   :  { %2102 = vmatpush2.bf16.msra.mxu1 %v876_v51  ;;  %v137_v1 = vmul.f32 %v4085_v8, %v61_v35  ;;  %v289_v2 = vmul.f32 %v3207_v36, %v4098_v14  ;;  %v290_v3 = vmul.f32 %v3208_v37, %v4098_v14  ;;  %v517_v4 = vmul.f32 %v3283_v38, %v4109_v20  ;;  %v3279_v51 = vld [vmem:[%s6069_s2 + $0x540] sm:$0xff] }
  0x59   :  { %v859_v7 = vpack.c.bf16 %v595_v58, %v594_v52  ;;  %2103 = vmatprep.subr.bf16.mxu1 %v4023_v0  ;;  %v626_v9 = vadd.f32 %v551_v53, %v398_v59  ;;  %v627_v10 = vadd.f32 %v552_v54, %v399_v60  ;;  %v518_v11 = vmul.f32 %v3284_v44, %v4109_v20  ;;  %v57_v44 = vld [vmem:[%s6069_s2 + $0x98] sm:$0xff] }
  0x5a   :  { %v364_v15 = vadd.f32 %v289_v2, %v136_v61  ;;  %v365_v16 = vadd.f32 %v290_v3, %v137_v1  ;;  %v168_v17 = vmul.f32 %v4085_v8, %v92_v49  ;;  %v169_v18 = vmul.f32 %v4085_v8, %v93_v50  ;;  %v3204_v50 = vld [vmem:[%s6069_s2 + $0x2f0] sm:$0xff]  ;;  %v89_v58 = vld [vmem:[%s6069_s2 + $0x198] sm:$0xff]  ;;  %v3311_v2 = vld [vmem:[%s6069_s2 + $0x640] sm:$0xff] }
  0x5b   :  { %1815 = vmatpush2.bf16.msra.mxu0 %v859_v7  ;;  %v875_v22 = vpack.c.bf16 %v627_v10, %v626_v9  ;;  %v321_v23 = vmul.f32 %v3239_v55, %v4098_v14  ;;  %v322_v24 = vmul.f32 %v3240_v56, %v4098_v14  ;;  %v549_v25 = vmul.f32 %v3315_v57, %v4109_v20  ;;  %v3280_v56 = vld [vmem:[%s6069_s2 + $0x548] sm:$0xff]  ;;  %v88_v57 = vld [vmem:[%s6069_s2 + $0x190] sm:$0xff]  ;;  %v54_v9 = vld [vmem:[%s6069_s2 + $0x80] sm:$0xff] }
  0x5c   :  { %1816 = vmatprep.subr.bf16.mxu0 %v4023_v0  ;;  %v592_v29 = vadd.f32 %v517_v4, %v364_v15  ;;  %v593_v30 = vadd.f32 %v518_v11, %v365_v16  ;;  %v550_v31 = vmul.f32 %v3316_v62, %v4109_v20  ;;  %v134_v32 = vmul.f32 %v4085_v8, %v58_v63  ;;  %v3235_v63 = vld [vmem:[%s6069_s2 + $0x3e8] sm:$0xff]  ;;  %v3236_v1 = vld [vmem:[%s6069_s2 + $0x3f0] sm:$0xff]  ;;  %v3201_v16 = vld [vmem:[%s6069_s2 + $0x2d8] sm:$0xff] }
  0x5d   :  { %2104 = vmatpush2.bf16.msra.mxu1 %v875_v22  ;;  %v396_v35 = vadd.f32 %v321_v23, %v168_v17  ;;  %v397_v36 = vadd.f32 %v322_v24, %v169_v18  ;;  %v135_v37 = vmul.f32 %v4085_v8, %v59_v5  ;;  %v287_v38 = vmul.f32 %v3205_v6, %v4098_v14  ;;  %v3312_v7 = vld [vmem:[%s6069_s2 + $0x648] sm:$0xff]  ;;  %v3202_v22 = vld [vmem:[%s6069_s2 + $0x2e0] sm:$0xff]  ;;  %v3277_v23 = vld [vmem:[%s6069_s2 + $0x530] sm:$0xff] }
  0x5e   :  { %v858_v40 = vpack.c.bf16 %v593_v30, %v592_v29  ;;  %2105 = vmatprep.subr.bf16.mxu1 %v4023_v0  ;;  %v288_v41 = vmul.f32 %v3206_v12, %v4098_v14  ;;  %v515_v42 = vmul.f32 %v3281_v13, %v4109_v20  ;;  %v516_v43 = vmul.f32 %v3282_v19, %v4109_v20  ;;  %v55_v15 = vld [vmem:[%s6069_s2 + $0x88] sm:$0xff]  ;;  %v86_v29 = vld [vmem:[%s6069_s2 + $0x180] sm:$0xff] }
  0x5f   :  { %v624_v46 = vadd.f32 %v549_v25, %v396_v35  ;;  %v625_v47 = vadd.f32 %v550_v31, %v397_v36  ;;  %v362_v48 = vadd.f32 %v287_v38, %v134_v32  ;;  %v166_v49 = vmul.f32 %v4085_v8, %v90_v21  ;;  %v3233_v35 = vld [vmem:[%s6069_s2 + $0x3d8] sm:$0xff]  ;;  %v3234_v36 = vld [vmem:[%s6069_s2 + $0x3e0] sm:$0xff] }
  0x60   :  { %1817 = vmatpush2.bf16.msra.mxu0 %v858_v40  ;;  %v363_v52 = vadd.f32 %v288_v41, %v135_v37  ;;  %v167_v53 = vmul.f32 %v4085_v8, %v91_v26  ;;  %v319_v54 = vmul.f32 %v3237_v27, %v4098_v14  ;;  %v320_v55 = vmul.f32 %v3238_v28, %v4098_v14  ;;  %v3278_v28 = vld [vmem:[%s6069_s2 + $0x538] sm:$0xff]  ;;  %v3309_v41 = vld [vmem:[%s6069_s2 + $0x630] sm:$0xff] }
  0x61   :  { %v874_v59 = vpack.c.bf16 %v625_v47, %v624_v46  ;;  %1818 = vmatprep.subr.bf16.mxu0 %v4023_v0  ;;  %v590_v60 = vadd.f32 %v515_v42, %v362_v48  ;;  %v547_v61 = vmul.f32 %v3313_v33, %v4109_v20  ;;  %v548_v62 = vmul.f32 %v3314_v34, %v4109_v20  ;;  %v87_v34 = vld [vmem:[%s6069_s2 + $0x188] sm:$0xff]  ;;  %v3310_v46 = vld [vmem:[%s6069_s2 + $0x638] sm:$0xff]  ;;  %v112_v47 = vld [vmem:[%s6069_s2 + $0x250] sm:$0xff] }
  0x62   :  { %v591_v3 = vadd.f32 %v516_v43, %v363_v52  ;;  %v394_v4 = vadd.f32 %v319_v54, %v166_v49  ;;  %v395_v5 = vadd.f32 %v320_v55, %v167_v53  ;;  %v132_v6 = vmul.f32 %v4085_v8, %v56_v39  ;;  %v3259_v52 = vld [vmem:[%s6069_s2 + $0x4a8] sm:$0xff]  ;;  %v3335_v53 = vld [vmem:[%s6069_s2 + $0x700] sm:$0xff] }
  0x63   :  { %2106 = vmatpush2.bf16.msra.mxu1 %v874_v59  ;;  %v133_v10 = vmul.f32 %v4085_v8, %v57_v44  ;;  %v285_v11 = vmul.f32 %v3203_v45, %v4098_v14  ;;  %v286_v12 = vmul.f32 %v3204_v50, %v4098_v14  ;;  %v513_v13 = vmul.f32 %v3279_v51, %v4109_v20 }
  0x64   :  { %v857_v17 = vpack.c.bf16 %v591_v3, %v590_v60  ;;  %2107 = vmatprep.subr.bf16.mxu1 %v4023_v0  ;;  %v622_v18 = vadd.f32 %v547_v61, %v394_v4  ;;  %v623_v19 = vadd.f32 %v548_v62, %v395_v5  ;;  %v514_v21 = vmul.f32 %v3280_v56, %v4109_v20  ;;  %v3257_v5 = vld [vmem:[%s6069_s2 + $0x498] sm:$0xff] }
  0x65   :  { %v360_v24 = vadd.f32 %v285_v11, %v132_v6  ;;  %v361_v25 = vadd.f32 %v286_v12, %v133_v10  ;;  %v164_v26 = vmul.f32 %v4085_v8, %v88_v57  ;;  %v165_v27 = vmul.f32 %v4085_v8, %v89_v58  ;;  %v110_v58 = vld [vmem:[%s6069_s2 + $0x240] sm:$0xff]  ;;  %v3333_v12 = vld [vmem:[%s6069_s2 + $0x6f0] sm:$0xff] }
  0x66   :  { %1819 = vmatpush2.bf16.msra.mxu0 %v857_v17  ;;  %v873_v30 = vpack.c.bf16 %v623_v19, %v622_v18  ;;  %v317_v31 = vmul.f32 %v3235_v63, %v4098_v14  ;;  %v318_v32 = vmul.f32 %v3236_v1, %v4098_v14  ;;  %v545_v33 = vmul.f32 %v3311_v2, %v4109_v20  ;;  %v111_v63 = vld [vmem:[%s6069_s2 + $0x248] sm:$0xff]  ;;  %v3258_v6 = vld [vmem:[%s6069_s2 + $0x4a0] sm:$0xff] }
  0x67   :  { %1820 = vmatprep.subr.bf16.mxu0 %v4023_v0  ;;  %v588_v37 = vadd.f32 %v513_v13, %v360_v24  ;;  %v589_v38 = vadd.f32 %v514_v21, %v361_v25  ;;  %v546_v39 = vmul.f32 %v3312_v7, %v4109_v20  ;;  %v130_v40 = vmul.f32 %v4085_v8, %v54_v9  ;;  %v3334_v13 = vld [vmem:[%s6069_s2 + $0x6f8] sm:$0xff]  ;;  %v3782_v24 = vld [vmem:[%s6068_s1 + $0x2c] ss:$20 sps:$4 sm:$0xff]  }
  0x68   :  { %2108 = vmatpush2.bf16.msra.mxu1 %v873_v30  ;;  %v392_v42 = vadd.f32 %v317_v31, %v164_v26  ;;  %v393_v43 = vadd.f32 %v318_v32, %v165_v27  ;;  %v131_v44 = vmul.f32 %v4085_v8, %v55_v15  ;;  %v283_v45 = vmul.f32 %v3201_v16, %v4098_v14  ;;  %v3776_v15 = vld [vmem:[%s6068_s1] ss:$20 sps:$4 sm:$0xff]   ;;  %v109_v27 = vld [vmem:[%s6069_s2 + $0x238] sm:$0xff]  ;;  %v3255_v31 = vld [vmem:[%s6069_s2 + $0x488] sm:$0xff] }
  0x69   :  { %v856_v48 = vpack.c.bf16 %v589_v38, %v588_v37  ;;  %2109 = vmatprep.subr.bf16.mxu1 %v4023_v0  ;;  %v284_v49 = vmul.f32 %v3202_v22, %v4098_v14  ;;  %v511_v50 = vmul.f32 %v3277_v23, %v4109_v20  ;;  %v512_v51 = vmul.f32 %v3278_v28, %v4109_v20  ;;  %v108_v26 = vld [vmem:[%s6069_s2 + $0x230] sm:$0xff]  ;;  %v3332_v38 = vld [vmem:[%s6069_s2 + $0x6e8] sm:$0xff] }
  0x6a   :  { %v620_v54 = vadd.f32 %v545_v33, %v392_v42  ;;  %v621_v55 = vadd.f32 %v546_v39, %v393_v43  ;;  %v358_v56 = vadd.f32 %v283_v45, %v130_v40  ;;  %v162_v57 = vmul.f32 %v4085_v8, %v86_v29  ;;  %v3256_v32 = vld [vmem:[%s6069_s2 + $0x490] sm:$0xff]  ;;  %v3331_v33 = vld [vmem:[%s6069_s2 + $0x6e0] sm:$0xff]  ;;  %v3779_v40 = vld [vmem:[%s6068_s1 + $0x8] ss:$20 sps:$4 sm:$0xff]  }
  0x6b   :  { %1821 = vmatpush2.bf16.msra.mxu0 %v856_v48  ;;  %v359_v59 = vadd.f32 %v284_v49, %v131_v44  ;;  %v163_v60 = vmul.f32 %v4085_v8, %v87_v34  ;;  %v315_v61 = vmul.f32 %v3233_v35, %v4098_v14  ;;  %v316_v62 = vmul.f32 %v3234_v36, %v4098_v14  ;;  %v3785_v44 = vld [vmem:[%s6068_s1 + $0x34] ss:$20 sps:$4 sm:$0xff]  }
  0x6c   :  { %v872_v1 = vpack.c.bf16 %v621_v55, %v620_v54  ;;  %1822 = vmatprep.subr.bf16.mxu0 %v4023_v0  ;;  %v586_v2 = vadd.f32 %v511_v50, %v358_v56  ;;  %v543_v3 = vmul.f32 %v3309_v41, %v4109_v20  ;;  %v544_v4 = vmul.f32 %v3310_v46, %v4109_v20  ;;  %v3784_v56 = vld [vmem:[%s6068_s1 + $0x28] ss:$20 sps:$4 sm:$0xff]  }
  0x6d   :  { %v587_v7 = vadd.f32 %v512_v51, %v359_v59  ;;  %v390_v9 = vadd.f32 %v315_v61, %v162_v57  ;;  %v391_v10 = vadd.f32 %v316_v62, %v163_v60  ;;  %v188_v11 = vmul.f32 %v4085_v8, %v112_v47  ;;  %v3787_v59 = vld [vmem:[%s6068_s1 + $0x30] ss:$20 sps:$4 sm:$0xff]  }
  0x6e   :  { %2110 = vmatpush2.bf16.msra.mxu1 %v872_v1  ;;  %v341_v16 = vmul.f32 %v3259_v52, %v4098_v14  ;;  %v569_v17 = vmul.f32 %v3335_v53, %v4109_v20  ;;  %v186_v18 = vmul.f32 %v4085_v8, %v110_v58  ;;  %v187_v19 = vmul.f32 %v4085_v8, %v111_v63  ;;  %v3788_v58 = vld [vmem:[%s6068_s1 + $0x54] ss:$20 sps:$4 sm:$0xff]   ;;  %v3791_v60 = vld [vmem:[%s6068_s1 + $0x5c] ss:$20 sps:$4 sm:$0xff]   ;;  %v106_v63 = vld [vmem:[%s6069_s2 + $0x220] sm:$0xff] }
  0x6f   :  { %v855_v21 = vpack.c.bf16 %v587_v7, %v586_v2  ;;  %2111 = vmatprep.subr.bf16.mxu1 %v4023_v0  ;;  %v618_v22 = vadd.f32 %v543_v3, %v390_v9  ;;  %v619_v23 = vadd.f32 %v544_v4, %v391_v10  ;;  %v339_v25 = vmul.f32 %v3257_v5, %v4098_v14  ;;  %v3790_v61 = vld [vmem:[%s6068_s1 + $0x50] ss:$20 sps:$4 sm:$0xff]   ;;  %v107_v1 = vld [vmem:[%s6069_s2 + $0x228] sm:$0xff]  ;;  %v3253_v2 = vld [vmem:[%s6069_s2 + $0x478] sm:$0xff] }
  0x70   :  { %v416_v28 = vadd.f32 %v341_v16, %v188_v11  ;;  %v340_v29 = vmul.f32 %v3258_v6, %v4098_v14  ;;  %v567_v0 = vmul.f32 %v3333_v12, %v4109_v20  ;;  %v568_v30 = vmul.f32 %v3334_v13, %v4109_v20  ;;  %v3794_v62 = vld [vmem:[%s6068_s1 + $0x7c] ss:$20 sps:$4 sm:$0xff]   ;;  %v3254_v5 = vld [vmem:[%s6069_s2 + $0x480] sm:$0xff]  ;;  %v3793_v10 = vld [vmem:[%s6068_s1 + $0x58] ss:$20 sps:$4 sm:$0xff]  }
  0x71   :  { %1823 = vmatpush2.bf16.msra.mxu0 %v855_v21  ;;  %v871_v34 = vpack.c.bf16 %v619_v23, %v618_v22  ;;  %v414_v35 = vadd.f32 %v339_v25, %v186_v18  ;;  %v184_v36 = vmul.f32 %v4085_v8, %v108_v26  ;;  %v185_v37 = vmul.f32 %v4085_v8, %v109_v27  ;;  %v3329_v7 = vld [vmem:[%s6069_s2 + $0x6d0] sm:$0xff]  ;;  %v3330_v9 = vld [vmem:[%s6069_s2 + $0x6d8] sm:$0xff]  ;;  %v3803_v25 = vld [vmem:[%s6068_s1 + $0xac] ss:$20 sps:$4 sm:$0xff]  }
  0x72   :  { %v644_v39 = vadd.f32 %v569_v17, %v416_v28  ;;  %v415_v41 = vadd.f32 %v340_v29, %v187_v19  ;;  %v337_v42 = vmul.f32 %v3255_v31, %v4098_v14  ;;  %v338_v43 = vmul.f32 %v3256_v32, %v4098_v14  ;;  %v3796_v21 = vld [vmem:[%s6068_s1 + $0x78] ss:$20 sps:$4 sm:$0xff]   ;;  %v3799_v23 = vld [vmem:[%s6068_s1 + $0x80] ss:$20 sps:$4 sm:$0xff]   ;;  %v3805_v28 = vld [vmem:[%s6068_s1 + $0xa8] ss:$20 sps:$4 sm:$0xff]  }
  0x73   :  { %2112 = vmatpush2.bf16.msra.mxu1 %v871_v34  ;;  %v642_v45 = vadd.f32 %v567_v0, %v414_v35  ;;  %v565_v46 = vmul.f32 %v3331_v33, %v4109_v20  ;;  %v566_v47 = vmul.f32 %v3332_v38, %v4109_v20  ;;  %v182_v3 = vmul.f32 %v4085_v8, %v106_v63  ;;  %v3802_v26 = vld [vmem:[%s6068_s1 + $0xa0] ss:$20 sps:$4 sm:$0xff]   ;;  %v3808_v0 = vld [vmem:[%s6068_s1 + $0xc8] ss:$20 sps:$4 sm:$0xff]   ;;  %v3811_v31 = vld [vmem:[%s6068_s1 + $0xd0] ss:$20 sps:$4 sm:$0xff]  }
  0x74   :  { %1825 = vmatmul.mubr.bf16.vlgmr.msra.gmra.mxu0 %v3776_v15  ;;  %v884_v48 = vpack.c.bf16 %v644_v39, %v644_v39  ;;  %v643_v49 = vadd.f32 %v568_v30, %v415_v41  ;;  %v412_v50 = vadd.f32 %v337_v42, %v184_v36  ;;  %v413_v51 = vadd.f32 %v338_v43, %v185_v37  ;;  %v3797_v15 = vld [vmem:[%s6068_s1 + $0x84] ss:$20 sps:$4 sm:$0xff]   ;;  %v3806_v27 = vld [vmem:[%s6068_s1 + $0xcc] ss:$20 sps:$4 sm:$0xff]   ;;  %v3809_v29 = vld [vmem:[%s6068_s1 + $0xd4] ss:$20 sps:$4 sm:$0xff]  }
  0x75   :  { %1832 = vmatprep.mubr.bf16.mxu0 %v3782_v24  ;;  %v183_v4 = vmul.f32 %v4085_v8, %v107_v1  ;;  %v335_v6 = vmul.f32 %v3253_v2, %v4098_v14  ;;  %v336_v11 = vmul.f32 %v3254_v5, %v4098_v14  ;;  %v563_v12 = vmul.f32 %v3329_v7, %v4109_v20  ;;  %v3800_v24 = vld [vmem:[%s6068_s1 + $0xa4] ss:$20 sps:$4 sm:$0xff]   ;;  %v3812_v30 = vld [vmem:[%s6068_s1 + $0xf4] ss:$20 sps:$4 sm:$0xff]   ;;  %v3815_v32 = vld [vmem:[%s6068_s1 + $0xfc] ss:$20 sps:$4 sm:$0xff]  }
  0x76   :  { %3773 = vmatprep.subr.msk.bf16.mxu0 %vm1788_vm0, %v884_v48  ;;  %v1790_v52 = vsel %vm1788_vm0, %v884_v48, 0  ;;  %2114 = vmatmul.mubr.bf16.vlgmr.msra.gmra.mxu1 %v3779_v40  ;;  %v883_v53 = vpack.c.bf16 %v643_v49, %v642_v45  ;;  %v640_v54 = vadd.f32 %v565_v46, %v412_v50  ;;  %v641_v55 = vadd.f32 %v566_v47, %v413_v51  ;;  %v3814_v33 = vld [vmem:[%s6068_s1 + $0xf0] ss:$20 sps:$4 sm:$0xff]   ;;  %v105_v35 = vld [vmem:[%s6069_s2 + $0x218] sm:$0xff]  ;;  %v3251_v36 = vld [vmem:[%s6069_s2 + $0x468] sm:$0xff] }
  0x77   :  { %3618 = vmatpush3.bf16.msra.mxu0 %v1790_v52  ;;  %2121 = vmatprep.mubr.bf16.mxu1 %v3785_v44  ;;  %v564_v13 = vmul.f32 %v3330_v9, %v4109_v20  ;;  %v410_v16 = vadd.f32 %v335_v6, %v182_v3  ;;  %v411_v17 = vadd.f32 %v336_v11, %v183_v4  ;;  %v104_v34 = vld [vmem:[%s6069_s2 + $0x210] sm:$0xff]  ;;  %v3327_v41 = vld [vmem:[%s6069_s2 + $0x6c0] sm:$0xff]  ;;  %v3328_v42 = vld [vmem:[%s6069_s2 + $0x6c8] sm:$0xff] }
  0x78   :  { %3619 = vmatprep.subr.bf16.mxu0 %v883_v53  ;;  %v882_v57 = vpack.c.bf16 %v641_v55, %v640_v54  ;;  %v180_v37 = vmul.f32 %v4085_v8, %v104_v34  ;;  %v181_v38 = vmul.f32 %v4085_v8, %v105_v35  ;;  %v3252_v39 = vld [vmem:[%s6069_s2 + $0x470] sm:$0xff]  ;;  %v333_v40 = vmul.f32 %v3251_v36, %v4098_v14  ;;  %v3817_v43 = vld [vmem:[%s6068_s1 + $0xf8] ss:$20 sps:$4 sm:$0xff]   ;;  %v3856_v35 = vld [vmem:[%s6068_s1 + $0x208] ss:$20 sps:$4 sm:$0xff]  }
  0x79   :  { %v638_v18 = vadd.f32 %v563_v12, %v410_v16  ;;  %v639_v19 = vadd.f32 %v564_v13, %v411_v17  ;;  %v3818_v44 = vld [vmem:[%s6068_s1 + $0x11c] ss:$20 sps:$4 sm:$0xff]   ;;  %v334_v45 = vmul.f32 %v3252_v39, %v4098_v14  ;;  %v561_v46 = vmul.f32 %v3327_v41, %v4109_v20  ;;  %v3821_v50 = vld [vmem:[%s6068_s1 + $0x124] ss:$20 sps:$4 sm:$0xff]   ;;  %v3836_v63 = vld [vmem:[%s6068_s1 + $0x194] ss:$20 sps:$4 sm:$0xff]  }
  0x7a   :  { %v562_v47 = vmul.f32 %v3328_v42, %v4109_v20  ;;  %v408_v48 = vadd.f32 %v333_v40, %v180_v37  ;;  %v3824_v55 = vld [vmem:[%s6068_s1 + $0x144] ss:$20 sps:$4 sm:$0xff]   ;;  %v3839_v2 = vld [vmem:[%s6068_s1 + $0x19c] ss:$20 sps:$4 sm:$0xff]   ;;  %v3847_v11 = vld [vmem:[%s6068_s1 + $0x1c0] ss:$20 sps:$4 sm:$0xff]  }
  0x7b   :  { %3620 = vmatpush3.bf16.msra.mxu0 %v883_v53  ;;  %v881_v22 = vpack.c.bf16 %v639_v19, %v638_v18  ;;  %v409_v49 = vadd.f32 %v334_v45, %v181_v38  ;;  %v3820_v53 = vld [vmem:[%s6068_s1 + $0x118] ss:$20 sps:$4 sm:$0xff]   ;;  %v3835_v1 = vld [vmem:[%s6068_s1 + $0x170] ss:$20 sps:$4 sm:$0xff]   ;;  %v3860_v36 = vld [vmem:[%s6068_s1 + $0x234] ss:$20 sps:$4 sm:$0xff]  }
  0x7c   :  { %1833 = vmatmul.mubr.bf16.gmra.mxu0 %v3784_v56  ;;  %3621 = vmatprep.subr.bf16.mxu0 %v882_v57  ;;  %v636_v51 = vadd.f32 %v561_v46, %v408_v48  ;;  %v3823_v56 = vld [vmem:[%s6068_s1 + $0x120] ss:$20 sps:$4 sm:$0xff]   ;;  %v3838_v3 = vld [vmem:[%s6068_s1 + $0x190] ss:$20 sps:$4 sm:$0xff]   ;;  %v3841_v5 = vld [vmem:[%s6068_s1 + $0x198] ss:$20 sps:$4 sm:$0xff]  }
  0x7d   :  { %1840 = vmatprep.mubr.bf16.mxu0 %v3788_v58  ;;  %v637_v52 = vadd.f32 %v562_v47, %v409_v49  ;;  %v3826_v58 = vld [vmem:[%s6068_s1 + $0x140] ss:$20 sps:$4 sm:$0xff]   ;;  %v3842_v4 = vld [vmem:[%s6068_s1 + $0x1bc] ss:$20 sps:$4 sm:$0xff]   ;;  %v3845_v6 = vld [vmem:[%s6068_s1 + $0x1c4] ss:$20 sps:$4 sm:$0xff]  }
  0x7e   :  { %2122 = vmatmul.mubr.bf16.gmra.mxu1 %v3787_v59  ;;  %v3830_v59 = vld [vmem:[%s6068_s1 + $0x16c] ss:$20 sps:$4 sm:$0xff]   ;;  %v3932_v7 = vld [vmem:[%s6071_s4 + $0x38] sm:$0xff]   ;;  %v3859_v37 = vld [vmem:[%s6068_s1 + $0x210] ss:$20 sps:$4 sm:$0xff]  }
  0x7f   :  { %2129 = vmatprep.mubr.bf16.mxu1 %v3791_v60  ;;  %3622 = vmatpush3.bf16.msra.mxu0 %v882_v57  ;;  %v880_v54 = vpack.c.bf16 %v637_v52, %v636_v51  ;;  %v3827_v57 = vld [vmem:[%s6068_s1 + $0x14c] ss:$20 sps:$4 sm:$0xff]   ;;  %v3829_v60 = vld [vmem:[%s6068_s1 + $0x148] ss:$20 sps:$4 sm:$0xff]   ;;  %v3862_v39 = vld [vmem:[%s6068_s1 + $0x230] ss:$20 sps:$4 sm:$0xff]  }
  0x80   :  { %3623 = vmatprep.subr.bf16.mxu0 %v881_v22  ;;  %3693 = vmatprep.subr.bf16.mxu1 %v3932_v7  ;;  %v3844_v9 = vld [vmem:[%s6068_s1 + $0x1b8] ss:$20 sps:$4 sm:$0xff]   ;;  %v102_v13 = vld [vmem:[%s6069_s2 + $0x200] sm:$0xff]  ;;  %v3863_v38 = vld [vmem:[%s6068_s1 + $0x23c] ss:$20 sps:$4 sm:$0xff]  }
  0x81   :  { %3694 = vmatpush3.bf16.msra.mxu1 %v3932_v7  ;;  %v3851_v12 = vld [vmem:[%s6068_s1 + $0x1ec] ss:$20 sps:$4 sm:$0xff]   ;;  %v3249_v16 = vld [vmem:[%s6069_s2 + $0x458] sm:$0xff]  ;;  %v178_v17 = vmul.f32 %v4085_v8, %v102_v13  ;;  %v3881_v51 = vld [vmem:[%s6068_s1 + $0x2b4] ss:$20 sps:$4 sm:$0xff]  }
  0x82   :  { %v3250_v19 = vld [vmem:[%s6069_s2 + $0x460] sm:$0xff]  ;;  %v3866_v40 = vld [vmem:[%s6068_s1 + $0x25c] ss:$20 sps:$4 sm:$0xff]   ;;  %v3865_v41 = vld [vmem:[%s6068_s1 + $0x238] ss:$20 sps:$4 sm:$0xff]  }
  0x83   :  { %3624 = vmatpush3.bf16.msra.mxu0 %v881_v22  ;;  %v3325_v22 = vld [vmem:[%s6069_s2 + $0x6b0] sm:$0xff]  ;;  %v3869_v42 = vld [vmem:[%s6068_s1 + $0x264] ss:$20 sps:$4 sm:$0xff]   ;;  %v3875_v47 = vld [vmem:[%s6068_s1 + $0x28c] ss:$20 sps:$4 sm:$0xff]  }
  0x84   :  { %1841 = vmatmul.mubr.bf16.gmra.mxu0 %v3790_v61  ;;  %3625 = vmatprep.subr.bf16.mxu0 %v880_v54  ;;  %v3833_v61 = vld [vmem:[%s6068_s1 + $0x174] ss:$20 sps:$4 sm:$0xff]   ;;  %v3872_v45 = vld [vmem:[%s6068_s1 + $0x284] ss:$20 sps:$4 sm:$0xff]   ;;  %v3878_v49 = vld [vmem:[%s6068_s1 + $0x2ac] ss:$20 sps:$4 sm:$0xff]  }
  0x85   :  { %1848 = vmatprep.mubr.bf16.mxu0 %v3794_v62  ;;  %v3832_v62 = vld [vmem:[%s6068_s1 + $0x168] ss:$20 sps:$4 sm:$0xff]   ;;  %v3871_v46 = vld [vmem:[%s6068_s1 + $0x260] ss:$20 sps:$4 sm:$0xff]   ;;  %v3913_v13 = vld [vmem:[%s6068_s1 + $0x378] ss:$20 sps:$4 sm:$0xff]  }
  0x86   :  { %2130 = vmatmul.mubr.bf16.gmra.mxu1 %v3793_v10  ;;  %v3848_v10 = vld [vmem:[%s6068_s1 + $0x1e4] ss:$20 sps:$4 sm:$0xff]   ;;  %v3874_v48 = vld [vmem:[%s6068_s1 + $0x280] ss:$20 sps:$4 sm:$0xff]   ;;  %v3880_v52 = vld [vmem:[%s6068_s1 + $0x2a8] ss:$20 sps:$4 sm:$0xff]  }
  0x87   :  { %2137 = vmatprep.mubr.bf16.mxu1 %v3797_v15  ;;  %3626 = vmatpush3.bf16.msra.mxu0 %v880_v54  ;;  %v103_v15 = vld [vmem:[%s6069_s2 + $0x208] sm:$0xff]  ;;  %v3883_v54 = vld [vmem:[%s6068_s1 + $0x2b0] ss:$20 sps:$4 sm:$0xff]  }
  0x88   :  { %v179_v18 = vmul.f32 %v4085_v8, %v103_v15  ;;  %v3908_v7 = vld [vmem:[%s6068_s1 + $0x374] ss:$20 sps:$4 sm:$0xff]   ;;  %v645_v15 = vld [vmem:[%s6070_s3] sm:$0x1] }
  0x8c   :  { %1849 = vmatmul.mubr.bf16.gmra.mxu0 %v3796_v21  ;;  %v331_v21 = vmul.f32 %v3249_v16, %v4098_v14  ;;  %v3336_v16 = vld [vmem:[%s6070_s3 + $0x1] sm:$0x1] }
  0x8d   :  { %1856 = vmatprep.mubr.bf16.mxu0 %v3800_v24  ;;  %v332_v24 = vmul.f32 %v3250_v19, %v4098_v14  ;;  %v646_v19 = vmul.f32 %v645_v15, %v4085_v8  ;;  %v3947_v15 = vld [vmem:[%s6068_s1 + $0x464] ss:$20 sps:$4 sm:$0xff]  }
  0x8e   :  { %2138 = vmatmul.mubr.bf16.gmra.mxu1 %v3799_v23  ;;  %v3326_v23 = vld [vmem:[%s6069_s2 + $0x6b8] sm:$0xff] }
  0x8f   :  { %2145 = vmatprep.mubr.bf16.mxu1 %v3803_v25  ;;  %v559_v25 = vmul.f32 %v3325_v22, %v4109_v20  ;;  %v886_v22 = vlaneseq }
  0x94   :  { %1857 = vmatmul.mubr.bf16.gmra.mxu0 %v3802_v26  ;;  %v560_v26 = vmul.f32 %v3326_v23, %v4109_v20  ;;  %v3337_v23 = vld [vmem:[%s6070_s3 + $0x2] sm:$0x1] }
  0x95   :  { %1864 = vmatprep.mubr.bf16.mxu0 %v3806_v27  ;;  %v406_v27 = vadd.f32 %v331_v21, %v178_v17  ;;  %v3917_v17 = vld [vmem:[%s6068_s1 + $0x3a4] ss:$20 sps:$4 sm:$0xff]   ;;  %v649_v21 = vmul.f32 %v3336_v16, %v4098_v14  ;;  %v653_v14 = vmul.f32 %v3337_v23, %v4109_v20 }
  0x96   :  { %2146 = vmatmul.mubr.bf16.gmra.mxu1 %v3805_v28  ;;  %v407_v28 = vadd.f32 %v332_v24, %v179_v18  ;;  %v3983_v18 = vld [vmem:[%s6071_s4 + $0x20] sm:$0xff]   ;;  %v3916_v24 = vld [vmem:[%s6068_s1 + $0x398] ss:$20 sps:$4 sm:$0xff]  }
  0x97   :  { %2153 = vmatprep.mubr.bf16.mxu1 %v3809_v29  ;;  %v3850_v29 = vld [vmem:[%s6068_s1 + $0x1e0] ss:$20 sps:$4 sm:$0xff]   ;;  %v650_v8 = vadd.f32 %v649_v21, %v646_v19 }
  0x98   :  { %v3950_v21 = vld [vmem:[%s6068_s1 + $0x46c] ss:$20 sps:$4 sm:$0xff]  }
  0x9c   :  { %1865 = vmatmul.mubr.bf16.gmra.mxu0 %v3808_v0  ;;  %v634_v0 = vadd.f32 %v559_v25, %v406_v27  ;;  %v3920_v25 = vld [vmem:[%s6068_s1 + $0x3c4] ss:$20 sps:$4 sm:$0xff]   ;;  %v3919_v27 = vld [vmem:[%s6068_s1 + $0x3a0] ss:$20 sps:$4 sm:$0xff]  }
  0x9d   :  { %1872 = vmatprep.mubr.bf16.mxu0 %v3812_v30  ;;  %v3854_v30 = vld [vmem:[%s6068_s1 + $0x20c] ss:$20 sps:$4 sm:$0xff]  }
  0x9e   :  { %2154 = vmatmul.mubr.bf16.gmra.mxu1 %v3811_v31  ;;  %v635_v31 = vadd.f32 %v560_v26, %v407_v28  ;;  %v887_v26 = vshrl.u32 %v886_v22, 7  ;;  %v3923_v28 = vld [vmem:[%s6068_s1 + $0x3cc] ss:$20 sps:$4 sm:$0xff]  }
  0x9f   :  { %2161 = vmatprep.mubr.bf16.mxu1 %v3815_v32  ;;  %v3853_v32 = vld [vmem:[%s6068_s1 + $0x1e8] ss:$20 sps:$4 sm:$0xff]  }
  0xa0   :  { %v879_v34 = vpack.c.bf16 %v635_v31, %v634_v0  ;;  %v888_v0 = vsub.s32 0, %v887_v26  ;;  %v3926_v31 = vld [vmem:[%s6068_s1 + $0x3ec] ss:$20 sps:$4 sm:$0xff]  }
  0xa2   :  { %3627 = vmatprep.subr.bf16.mxu0 %v879_v34 }
  0xa3   :  { %3628 = vmatpush3.bf16.msra.mxu0 %v879_v34 }
  0xa4   :  { %1873 = vmatmul.mubr.bf16.gmra.mxu0 %v3814_v33  ;;  %v3857_v33 = vld [vmem:[%s6068_s1 + $0x214] ss:$20 sps:$4 sm:$0xff]  }
  0xa5   :  { %1880 = vmatprep.mubr.bf16.mxu0 %v3818_v44  ;;  %v3868_v44 = vld [vmem:[%s6068_s1 + $0x258] ss:$20 sps:$4 sm:$0xff]  }
  0xa6   :  { %2162 = vmatmul.mubr.bf16.gmra.mxu1 %v3817_v43  ;;  %v3957_v43 = vld [vmem:[%s6071_s4 + $0x30] sm:$0xff]  }
  0xa7   :  { %2169 = vmatprep.mubr.bf16.mxu1 %v3821_v50  ;;  %3695 = vmatprep.subr.bf16.mxu1 %v3957_v43  ;;  %v3877_v50 = vld [vmem:[%s6068_s1 + $0x288] ss:$20 sps:$4 sm:$0xff]  }
  0xa8   :  { %3696 = vmatpush3.bf16.msra.mxu1 %v3957_v43  ;;  %v3933_v43 = vld [vmem:[%s6068_s1 + $0x414] ss:$20 sps:$4 sm:$0xff]  }
  0xac   :  { %1881 = vmatmul.mubr.bf16.gmra.mxu0 %v3820_v53  ;;  %v3884_v53 = vld [vmem:[%s6068_s1 + $0x2d4] ss:$20 sps:$4 sm:$0xff]  }
  0xad   :  { %1888 = vmatprep.mubr.bf16.mxu0 %v3824_v55  ;;  %v3887_v55 = vld [vmem:[%s6068_s1 + $0x2dc] ss:$20 sps:$4 sm:$0xff]  }
  0xae   :  { %2170 = vmatmul.mubr.bf16.gmra.mxu1 %v3823_v56  ;;  %v3886_v56 = vld [vmem:[%s6068_s1 + $0x2d0] ss:$20 sps:$4 sm:$0xff]  }
  0xaf   :  { %2177 = vmatprep.mubr.bf16.mxu1 %v3827_v57  ;;  %v3890_v57 = vld [vmem:[%s6068_s1 + $0x2fc] ss:$20 sps:$4 sm:$0xff]  }
  0xb4   :  { %1889 = vmatmul.mubr.bf16.gmra.mxu0 %v3826_v58  ;;  %v3889_v58 = vld [vmem:[%s6068_s1 + $0x2d8] ss:$20 sps:$4 sm:$0xff]  }
  0xb5   :  { %1896 = vmatprep.mubr.bf16.mxu0 %v3830_v59  ;;  %v3893_v59 = vld [vmem:[%s6068_s1 + $0x304] ss:$20 sps:$4 sm:$0xff]  }
  0xb6   :  { %2178 = vmatmul.mubr.bf16.gmra.mxu1 %v3829_v60  ;;  %v3974_v60 = vld [vmem:[%s6071_s4 + $0x28] sm:$0xff]  }
  0xb7   :  { %2185 = vmatprep.mubr.bf16.mxu1 %v3833_v61  ;;  %3697 = vmatprep.subr.bf16.mxu1 %v3974_v60  ;;  %v3892_v61 = vld [vmem:[%s6068_s1 + $0x2f8] ss:$20 sps:$4 sm:$0xff]  }
  0xb8   :  { %3698 = vmatpush3.bf16.msra.mxu1 %v3974_v60 }
  0xb9   :  { %3699 = vmatprep.subr.bf16.mxu1 %v3983_v18 }
  0xbc   :  { %1897 = vmatmul.mubr.bf16.gmra.mxu0 %v3832_v62  ;;  %v3896_v62 = vld [vmem:[%s6068_s1 + $0x324] ss:$20 sps:$4 sm:$0xff]   ;;  %3700 = vmatpush3.bf16.msra.mxu1 %v3983_v18  ;;  %v3944_v18 = vld [vmem:[%s6068_s1 + $0x440] ss:$20 sps:$4 sm:$0xff]  }
  0xbd   :  { %1904 = vmatprep.mubr.bf16.mxu0 %v3836_v63  ;;  %v3895_v63 = vld [vmem:[%s6068_s1 + $0x300] ss:$20 sps:$4 sm:$0xff]  }
  0xbe   :  { %2186 = vmatmul.mubr.bf16.gmra.mxu1 %v3835_v1  ;;  %v3899_v1 = vld [vmem:[%s6068_s1 + $0x32c] ss:$20 sps:$4 sm:$0xff]  }
  0xbf   :  { %2193 = vmatprep.mubr.bf16.mxu1 %v3839_v2  ;;  %v3898_v2 = vld [vmem:[%s6068_s1 + $0x320] ss:$20 sps:$4 sm:$0xff]  }
  0xc4   :  { %1905 = vmatmul.mubr.bf16.gmra.mxu0 %v3838_v3  ;;  %v3902_v3 = vld [vmem:[%s6068_s1 + $0x34c] ss:$20 sps:$4 sm:$0xff]  }
  0xc5   :  { %1912 = vmatprep.mubr.bf16.mxu0 %v3842_v4  ;;  %v3901_v4 = vld [vmem:[%s6068_s1 + $0x328] ss:$20 sps:$4 sm:$0xff]  }
  0xc6   :  { %2194 = vmatmul.mubr.bf16.gmra.mxu1 %v3841_v5  ;;  %v3905_v5 = vld [vmem:[%s6068_s1 + $0x354] ss:$20 sps:$4 sm:$0xff]  }
  0xc7   :  { %2201 = vmatprep.mubr.bf16.mxu1 %v3845_v6  ;;  %v3904_v6 = vld [vmem:[%s6068_s1 + $0x348] ss:$20 sps:$4 sm:$0xff]  }
  0xcc   :  { %1913 = vmatmul.mubr.bf16.gmra.mxu0 %v3844_v9  ;;  %v3907_v9 = vld [vmem:[%s6068_s1 + $0x350] ss:$20 sps:$4 sm:$0xff]  }
  0xcd   :  { %1920 = vmatprep.mubr.bf16.mxu0 %v3848_v10  ;;  %v3911_v10 = vld [vmem:[%s6068_s1 + $0x37c] ss:$20 sps:$4 sm:$0xff]  }
  0xce   :  { %2202 = vmatmul.mubr.bf16.gmra.mxu1 %v3847_v11  ;;  %v3910_v11 = vld [vmem:[%s6068_s1 + $0x370] ss:$20 sps:$4 sm:$0xff]  }
  0xcf   :  { %2209 = vmatprep.mubr.bf16.mxu1 %v3851_v12  ;;  %v3914_v12 = vld [vmem:[%s6068_s1 + $0x39c] ss:$20 sps:$4 sm:$0xff]  }
  0xd4   :  { %1921 = vmatmul.mubr.bf16.gmra.mxu0 %v3850_v29  ;;  %v654_v29 = vadd.f32 %v653_v14, %v650_v8 }
  0xd5   :  { %1928 = vmatprep.mubr.bf16.mxu0 %v3854_v30  ;;  %v3922_v30 = vld [vmem:[%s6068_s1 + $0x3c0] ss:$20 sps:$4 sm:$0xff]  }
  0xd6   :  { %2210 = vmatmul.mubr.bf16.gmra.mxu1 %v3853_v32  ;;  %v5321_v20 = vrot.slane %v654_v29, %v888_v0  ;;  %v3925_v32 = vld [vmem:[%s6068_s1 + $0x3c8] ss:$20 sps:$4 sm:$0xff]   ;;  %v3953_v0 = vld [vmem:[%s6068_s1 + $0x48c] ss:$20 sps:$4 sm:$0xff]  }
  0xd7   :  { %2217 = vmatprep.mubr.bf16.mxu1 %v3857_v33  ;;  %v3929_v33 = vld [vmem:[%s6068_s1 + $0x3f4] ss:$20 sps:$4 sm:$0xff]  }
  0xdc   :  { %1929 = vmatmul.mubr.bf16.gmra.mxu0 %v3856_v35 }
  0xdd   :  { %1936 = vmatprep.mubr.bf16.mxu0 %v3860_v36 }
  0xde   :  { %2218 = vmatmul.mubr.bf16.gmra.mxu1 %v3859_v37 }
  0xdf   :  { %2225 = vmatprep.mubr.bf16.mxu1 %v3863_v38 }
  0xe4   :  { %1937 = vmatmul.mubr.bf16.gmra.mxu0 %v3862_v39 }
  0xe5   :  { %1944 = vmatprep.mubr.bf16.mxu0 %v3866_v40 }
  0xe6   :  { %2226 = vmatmul.mubr.bf16.gmra.mxu1 %v3865_v41  ;;  %v3928_v41 = vld [vmem:[%s6068_s1 + $0x3e8] ss:$20 sps:$4 sm:$0xff]  }
  0xe7   :  { %2233 = vmatprep.mubr.bf16.mxu1 %v3869_v42 }
  0xec   :  { %1945 = vmatmul.mubr.bf16.gmra.mxu0 %v3868_v44 }
  0xed   :  { %1952 = vmatprep.mubr.bf16.mxu0 %v3872_v45 }
  0xee   :  { %2234 = vmatmul.mubr.bf16.gmra.mxu1 %v3871_v46  ;;  %v3931_v46 = vld [vmem:[%s6068_s1 + $0x3f0] ss:$20 sps:$4 sm:$0xff]  }
  0xef   :  { %2241 = vmatprep.mubr.bf16.mxu1 %v3875_v47 }
  0xf4   :  { %1953 = vmatmul.mubr.bf16.gmra.mxu0 %v3874_v48  ;;  %v3936_v48 = vld [vmem:[%s6068_s1 + $0x41c] ss:$20 sps:$4 sm:$0xff]  }
  0xf5   :  { %1960 = vmatprep.mubr.bf16.mxu0 %v3878_v49 }
  0xf6   :  { %2242 = vmatmul.mubr.bf16.gmra.mxu1 %v3877_v50 }
  0xf7   :  { %2249 = vmatprep.mubr.bf16.mxu1 %v3881_v51 }
  0xfc   :  { %1961 = vmatmul.mubr.bf16.gmra.mxu0 %v3880_v52 }
  0xfd   :  { %1968 = vmatprep.mubr.bf16.mxu0 %v3884_v53 }
  0xfe   :  { %2250 = vmatmul.mubr.bf16.gmra.mxu1 %v3883_v54 }
  0xff   :  { %2257 = vmatprep.mubr.bf16.mxu1 %v3887_v55 }
 0x104   :  { %1969 = vmatmul.mubr.bf16.gmra.mxu0 %v3886_v56 }
 0x105   :  { %1976 = vmatprep.mubr.bf16.mxu0 %v3890_v57  ;;  %v3935_v57 = vld [vmem:[%s6068_s1 + $0x410] ss:$20 sps:$4 sm:$0xff]  }
 0x106   :  { %2258 = vmatmul.mubr.bf16.gmra.mxu1 %v3889_v58 }
 0x107   :  { %2265 = vmatprep.mubr.bf16.mxu1 %v3893_v59  ;;  %v3939_v59 = vld [vmem:[%s6068_s1 + $0x43c] ss:$20 sps:$4 sm:$0xff]  }
 0x10c   :  { %1977 = vmatmul.mubr.bf16.gmra.mxu0 %v3892_v61 }
 0x10d   :  { %1984 = vmatprep.mubr.bf16.mxu0 %v3896_v62  ;;  %v3938_v62 = vld [vmem:[%s6068_s1 + $0x418] ss:$20 sps:$4 sm:$0xff]  }
 0x10e   :  { %2266 = vmatmul.mubr.bf16.gmra.mxu1 %v3895_v63 }
 0x10f   :  { %2273 = vmatprep.mubr.bf16.mxu1 %v3899_v1  ;;  %v3942_v1 = vld [vmem:[%s6068_s1 + $0x444] ss:$20 sps:$4 sm:$0xff]  }
 0x114   :  { %1985 = vmatmul.mubr.bf16.gmra.mxu0 %v3898_v2  ;;  %v3992_v2 = vld [vmem:[%s6071_s4 + $0x18] sm:$0xff]  }
 0x115   :  { %1992 = vmatprep.mubr.bf16.mxu0 %v3902_v3  ;;  %3701 = vmatprep.subr.bf16.mxu1 %v3992_v2 }
 0x116   :  { %2274 = vmatmul.mubr.bf16.gmra.mxu1 %v3901_v4 }
 0x117   :  { %2281 = vmatprep.mubr.bf16.mxu1 %v3905_v5  ;;  %3702 = vmatpush3.bf16.msra.mxu1 %v3992_v2  ;;  %v3966_v2 = vld [vmem:[%s6068_s1 + $0x4dc] ss:$20 sps:$4 sm:$0xff]  }
 0x11c   :  { %1993 = vmatmul.mubr.bf16.gmra.mxu0 %v3904_v6 }
 0x11d   :  { %2000 = vmatprep.mubr.bf16.mxu0 %v3908_v7 }
 0x11e   :  { %2282 = vmatmul.mubr.bf16.gmra.mxu1 %v3907_v9 }
 0x11f   :  { %2289 = vmatprep.mubr.bf16.mxu1 %v3911_v10 }
 0x124   :  { %2001 = vmatmul.mubr.bf16.gmra.mxu0 %v3910_v11 }
 0x125   :  { %2008 = vmatprep.mubr.bf16.mxu0 %v3914_v12  ;;  %v3941_v12 = vld [vmem:[%s6068_s1 + $0x438] ss:$20 sps:$4 sm:$0xff]  }
 0x126   :  { %2290 = vmatmul.mubr.bf16.gmra.mxu1 %v3913_v13 }
 0x127   :  { %2297 = vmatprep.mubr.bf16.mxu1 %v3917_v17 }
 0x12c   :  { %2009 = vmatmul.mubr.bf16.gmra.mxu0 %v3916_v24 }
 0x12d   :  { %2016 = vmatprep.mubr.bf16.mxu0 %v3920_v25 }
 0x12e   :  { %2298 = vmatmul.mubr.bf16.gmra.mxu1 %v3919_v27 }
 0x12f   :  { %2305 = vmatprep.mubr.bf16.mxu1 %v3923_v28  ;;  %v3945_v28 = vld [vmem:[%s6068_s1 + $0x460] ss:$20 sps:$4 sm:$0xff]  }
 0x134   :  { %v1826_v34 = vpop.f32.mrf.mxu0  ;;  %2017 = vmatmul.mubr.bf16.gmra.mxu0 %v3922_v30 }
 0x135   :  { %v1827_v35 = vadd.f32 %v1826_v34, %v5321_v20  ;;  %2024 = vmatprep.mubr.bf16.mxu0 %v3926_v31  ;;  %v3956_v34 = vld [vmem:[%s6068_s1 + $0x494] ss:$20 sps:$4 sm:$0xff]  }
 0x136   :  { %v1828_v36 = vpop.f32.mrf.mxu0  ;;  %v2115_v37 = vpop.f32.mrf.mxu1  ;;  %2306 = vmatmul.mubr.bf16.gmra.mxu1 %v3925_v32  ;;  %v3948_v32 = vld [vmem:[%s6068_s1 + $0x468] ss:$20 sps:$4 sm:$0xff]  }
 0x137   :  { %v5333_v38 = vadd.f32 %v2115_v37, %v1827_v35  ;;  %2313 = vmatprep.mubr.bf16.mxu1 %v3929_v33 }
 0x138   :  { %v1829_v39 = vpop.f32.mrf.mxu0  ;;  %v2117_v40 = vpop.f32.mrf.mxu1 }
 0x139   :  { %v1830_v42 = vadd.f32 %v1829_v39, %v5321_v20 }
 0x13a   :  { %v1831_v44 = vpop.f32.mrf.mxu0  ;;  %v2118_v45 = vpop.f32.mrf.mxu1 }
 0x13b   :  { %v5345_v47 = vadd.f32 %v2118_v45, %v1830_v42  ;;  %v3951_v44 = vld [vmem:[%s6068_s1 + $0x488] ss:$20 sps:$4 sm:$0xff]  }
 0x13c   :  { %v1834_v49 = vpop.f32.mrf.mxu0  ;;  %2025 = vmatmul.mubr.bf16.gmra.mxu0 %v3928_v41  ;;  %v2120_v50 = vpop.f32.mrf.mxu1 }
 0x13d   :  { %v1835_v51 = vadd.f32 %v1834_v49, %v5321_v20  ;;  %2032 = vmatprep.mubr.bf16.mxu0 %v3933_v43  ;;  %v3954_v50 = vld [vmem:[%s6068_s1 + $0x490] ss:$20 sps:$4 sm:$0xff]  }
 0x13e   :  { %v1836_v52 = vpop.f32.mrf.mxu0  ;;  %v2123_v53 = vpop.f32.mrf.mxu1  ;;  %2314 = vmatmul.mubr.bf16.gmra.mxu1 %v3931_v46  ;;  %v3960_v46 = vld [vmem:[%s6068_s1 + $0x4b4] ss:$20 sps:$4 sm:$0xff]  }
 0x13f   :  { %v5351_v54 = vadd.f32 %v2123_v53, %v1835_v51  ;;  %2321 = vmatprep.mubr.bf16.mxu1 %v3936_v48  ;;  %v3963_v52 = vld [vmem:[%s6068_s1 + $0x4bc] ss:$20 sps:$4 sm:$0xff]  }
 0x140   :  { %v1837_v55 = vpop.f32.mrf.mxu0  ;;  %v2125_v56 = vpop.f32.mrf.mxu1 }
 0x141   :  { %v1838_v58 = vadd.f32 %v1837_v55, %v5321_v20 }
 0x142   :  { %v1839_v60 = vpop.f32.mrf.mxu0  ;;  %v2126_v61 = vpop.f32.mrf.mxu1 }
 0x143   :  { %v5363_v63 = vadd.f32 %v2126_v61, %v1838_v58 }
 0x144   :  { %v1842_v3 = vpop.f32.mrf.mxu0  ;;  %2033 = vmatmul.mubr.bf16.gmra.mxu0 %v3935_v57  ;;  %v2128_v4 = vpop.f32.mrf.mxu1 }
 0x145   :  { %v1843_v5 = vadd.f32 %v1842_v3, %v5321_v20  ;;  %2040 = vmatprep.mubr.bf16.mxu0 %v3939_v59 }
 0x146   :  { %v1844_v6 = vpop.f32.mrf.mxu0  ;;  %v2131_v7 = vpop.f32.mrf.mxu1  ;;  %2322 = vmatmul.mubr.bf16.gmra.mxu1 %v3938_v62  ;;  %v3958_v62 = vld [vmem:[%s6068_s1 + $0x4b0] ss:$20 sps:$4 sm:$0xff]  }
 0x147   :  { %v5372_v9 = vadd.f32 %v2131_v7, %v1843_v5  ;;  %2329 = vmatprep.mubr.bf16.mxu1 %v3942_v1  ;;  %v3961_v5 = vld [vmem:[%s6068_s1 + $0x4b8] ss:$20 sps:$4 sm:$0xff]  }
 0x148   :  { %v1845_v10 = vpop.f32.mrf.mxu0  ;;  %v2133_v11 = vpop.f32.mrf.mxu1  ;;  %v3969_v7 = vld [vmem:[%s6068_s1 + $0x4e4] ss:$20 sps:$4 sm:$0xff]  }
 0x149   :  { %v1846_v13 = vadd.f32 %v1845_v10, %v5321_v20  ;;  %v4001_v10 = vld [vmem:[%s6071_s4 + $0x10] sm:$0xff]  }
 0x14a   :  { %v1847_v16 = vpop.f32.mrf.mxu0  ;;  %v2134_v17 = vpop.f32.mrf.mxu1  ;;  %3703 = vmatprep.subr.bf16.mxu1 %v4001_v10 }
 0x14b   :  { %v5384_v19 = vadd.f32 %v2134_v17, %v1846_v13  ;;  %3704 = vmatpush3.bf16.msra.mxu1 %v4001_v10 }
 0x14c   :  { %v1850_v22 = vpop.f32.mrf.mxu0  ;;  %2041 = vmatmul.mubr.bf16.gmra.mxu0 %v3941_v12  ;;  %v2136_v23 = vpop.f32.mrf.mxu1 }
 0x14d   :  { %v1851_v24 = vadd.f32 %v1850_v22, %v5321_v20  ;;  %2048 = vmatprep.mubr.bf16.mxu0 %v3947_v15  ;;  %v3964_v22 = vld [vmem:[%s6068_s1 + $0x4d8] ss:$20 sps:$4 sm:$0xff]  }
 0x14e   :  { %v1852_v25 = vpop.f32.mrf.mxu0  ;;  %v2139_v8 = vpop.f32.mrf.mxu1  ;;  %2330 = vmatmul.mubr.bf16.gmra.mxu1 %v3944_v18 }
 0x14f   :  { %v5390_v14 = vadd.f32 %v2139_v8, %v1851_v24  ;;  %2337 = vmatprep.mubr.bf16.mxu1 %v3950_v21  ;;  %v3970_v24 = vld [vmem:[%s6068_s1 + $0x10] ss:$20 sps:$4 sm:$0xff]  }
 0x150   :  { %v1853_v26 = vpop.f32.mrf.mxu0  ;;  %v2141_v27 = vpop.f32.mrf.mxu1 }
 0x151   :  { %v1854_v29 = vadd.f32 %v1853_v26, %v5321_v20  ;;  %v3967_v26 = vld [vmem:[%s6068_s1 + $0x4e0] ss:$20 sps:$4 sm:$0xff]  }
 0x152   :  { %v1855_v30 = vpop.f32.mrf.mxu0  ;;  %v2142_v31 = vpop.f32.mrf.mxu1 }
 0x153   :  { %v5402_v33 = vadd.f32 %v2142_v31, %v1854_v29 }
 0x154   :  { %v1858_v35 = vpop.f32.mrf.mxu0  ;;  %2049 = vmatmul.mubr.bf16.gmra.mxu0 %v3945_v28  ;;  %v2144_v36 = vpop.f32.mrf.mxu1 }
 0x155   :  { %v1859_v37 = vadd.f32 %v1858_v35, %v5321_v20  ;;  %2056 = vmatprep.mubr.bf16.mxu0 %v3953_v0  ;;  %v3971_v36 = vld [vmem:[%s6068_s1 + $0x38] ss:$20 sps:$4 sm:$0xff]  }
 0x156   :  { %v1860_v39 = vpop.f32.mrf.mxu0  ;;  %v2147_v40 = vpop.f32.mrf.mxu1  ;;  %2338 = vmatmul.mubr.bf16.gmra.mxu1 %v3948_v32 }
 0x157   :  { %v5408_v41 = vadd.f32 %v2147_v40, %v1859_v37  ;;  %2345 = vmatprep.mubr.bf16.mxu1 %v3956_v34  ;;  %v3972_v39 = vld [vmem:[%s6068_s1 + $0x60] ss:$20 sps:$4 sm:$0xff]  }
 0x158   :  { %v1861_v42 = vpop.f32.mrf.mxu0  ;;  %v2149_v43 = vpop.f32.mrf.mxu1 }
 0x159   :  { %v1862_v45 = vadd.f32 %v1861_v42, %v5321_v20 }
 0x15a   :  { %v1863_v48 = vpop.f32.mrf.mxu0  ;;  %v2150_v49 = vpop.f32.mrf.mxu1 }
 0x15b   :  { %v5420_v51 = vadd.f32 %v2150_v49, %v1862_v45 }
 0x15c   :  { %v1866_v53 = vpop.f32.mrf.mxu0  ;;  %2057 = vmatmul.mubr.bf16.gmra.mxu0 %v3951_v44  ;;  %v2152_v55 = vpop.f32.mrf.mxu1 }
 0x15d   :  { %v1867_v56 = vadd.f32 %v1866_v53, %v5321_v20  ;;  %2064 = vmatprep.mubr.bf16.mxu0 %v3960_v46  ;;  %v3973_v55 = vld [vmem:[%s6068_s1 + $0x88] ss:$20 sps:$4 sm:$0xff]  }
 0x15e   :  { %v1868_v57 = vpop.f32.mrf.mxu0  ;;  %v2155_v58 = vpop.f32.mrf.mxu1  ;;  %2346 = vmatmul.mubr.bf16.gmra.mxu1 %v3954_v50 }
 0x15f   :  { %v5426_v59 = vadd.f32 %v2155_v58, %v1867_v56  ;;  %2353 = vmatprep.mubr.bf16.mxu1 %v3963_v52  ;;  %v3975_v57 = vld [vmem:[%s6068_s1 + $0xb0] ss:$20 sps:$4 sm:$0xff]  }
 0x160   :  { %v1869_v60 = vpop.f32.mrf.mxu0  ;;  %v2157_v61 = vpop.f32.mrf.mxu1 }
 0x161   :  { %v1870_v1 = vadd.f32 %v1869_v60, %v5321_v20 }
 0x162   :  { %v1871_v3 = vpop.f32.mrf.mxu0  ;;  %v2158_v4 = vpop.f32.mrf.mxu1 }
 0x163   :  { %v5438_v6 = vadd.f32 %v2158_v4, %v1870_v1 }
 0x164   :  { %v1874_v11 = vpop.f32.mrf.mxu0  ;;  %2065 = vmatmul.mubr.bf16.gmra.mxu0 %v3958_v62  ;;  %v2160_v12 = vpop.f32.mrf.mxu1 }
 0x165   :  { %v1875_v13 = vadd.f32 %v1874_v11, %v5321_v20  ;;  %2072 = vmatprep.mubr.bf16.mxu0 %v3966_v2  ;;  %v3976_v11 = vld [vmem:[%s6068_s1 + $0xd8] ss:$20 sps:$4 sm:$0xff]  }
 0x166   :  { %v1876_v15 = vpop.f32.mrf.mxu0  ;;  %v2163_v16 = vpop.f32.mrf.mxu1  ;;  %2354 = vmatmul.mubr.bf16.gmra.mxu1 %v3961_v5 }
 0x167   :  { %v5447_v17 = vadd.f32 %v2163_v16, %v1875_v13  ;;  %2361 = vmatprep.mubr.bf16.mxu1 %v3969_v7  ;;  %v3977_v13 = vld [vmem:[%s6068_s1 + $0x100] ss:$20 sps:$4 sm:$0xff]  }
 0x168   :  { %v1877_v18 = vpop.f32.mrf.mxu0  ;;  %v2165_v21 = vpop.f32.mrf.mxu1 }
 0x169   :  { %v1878_v23 = vadd.f32 %v1877_v18, %v5321_v20  ;;  %v4006_v21 = vld [vmem:[%s6071_s4 + $0x8] sm:$0xff]  }
 0x16a   :  { %v1879_v25 = vpop.f32.mrf.mxu0  ;;  %v2166_v8 = vpop.f32.mrf.mxu1  ;;  %3705 = vmatprep.subr.bf16.mxu1 %v4006_v21 }
 0x16b   :  { %v5459_v27 = vadd.f32 %v2166_v8, %v1878_v23  ;;  %3706 = vmatpush3.bf16.msra.mxu1 %v4006_v21 }
 0x16c   :  { %v1882_v28 = vpop.f32.mrf.mxu0  ;;  %2073 = vmatmul.mubr.bf16.gmra.mxu0 %v3964_v22  ;;  %v2168_v29 = vpop.f32.mrf.mxu1 }
 0x16d   :  { %v1883_v0 = vadd.f32 %v1882_v28, %v5321_v20  ;;  %3629 = vmatprep.mubr.msk.bf16.mxu0 %vm1691_vm1, %v3970_v24 }
 0x16e   :  { %v1884_v30 = vpop.f32.mrf.mxu0  ;;  %v2171_v31 = vpop.f32.mrf.mxu1  ;;  %2362 = vmatmul.mubr.bf16.gmra.mxu1 %v3967_v26 }
 0x16f   :  { %v5463_v32 = vadd.f32 %v2171_v31, %v1883_v0  ;;  %v3978_v0 = vld [vmem:[%s6068_s1 + $0x128] ss:$20 sps:$4 sm:$0xff]   ;;  %v3979_v31 = vld [vmem:[%s6068_s1 + $0x150] ss:$20 sps:$4 sm:$0xff]  }
 0x170   :  { %v1885_v34 = vpop.f32.mrf.mxu0  ;;  %v2173_v35 = vpop.f32.mrf.mxu1 }
 0x171   :  { %v1886_v37 = vadd.f32 %v1885_v34, %v5321_v20 }
 0x172   :  { %v1887_v40 = vpop.f32.mrf.mxu0  ;;  %v2174_v42 = vpop.f32.mrf.mxu1 }
 0x173   :  { %v5472_v43 = vadd.f32 %v2174_v42, %v1886_v37 }
 0x174   :  { %v1890_v44 = vpop.f32.mrf.mxu0  ;;  %v2176_v45 = vpop.f32.mrf.mxu1  ;;  %3630 = vmatmul.mubr.msk.bf16.vlgmr.msra.gmra.mxu0 %vm1691_vm1, %v3971_v36 }
 0x175   :  { %v1891_v46 = vadd.f32 %v1890_v44, %v5321_v20  ;;  %3633 = vmatprep.mubr.msk.bf16.mxu0 %vm1691_vm1, %v3972_v39 }
 0x176   :  { %v1892_v48 = vpop.f32.mrf.mxu0  ;;  %v2179_v49 = vpop.f32.mrf.mxu1 }
 0x177   :  { %v5477_v50 = vadd.f32 %v2179_v49, %v1891_v46  ;;  %v3980_v49 = vld [vmem:[%s6068_s1 + $0x178] ss:$20 sps:$4 sm:$0xff]  }
 0x178   :  { %v1893_v52 = vpop.f32.mrf.mxu0  ;;  %v2181_v53 = vpop.f32.mrf.mxu1 }
 0x179   :  { %v1894_v56 = vadd.f32 %v1893_v52, %v5321_v20  ;;  %v3981_v53 = vld [vmem:[%s6068_s1 + $0x1a0] ss:$20 sps:$4 sm:$0xff]  }
 0x17a   :  { %v1895_v58 = vpop.f32.mrf.mxu0  ;;  %v2182_v60 = vpop.f32.mrf.mxu1 }
 0x17b   :  { %v5486_v61 = vadd.f32 %v2182_v60, %v1894_v56 }
 0x17c   :  { %v1898_v62 = vpop.f32.mrf.mxu0  ;;  %v2184_v1 = vpop.f32.mrf.mxu1  ;;  %3634 = vmatmul.mubr.msk.bf16.gmra.mxu0 %vm1691_vm1, %v3973_v55 }
 0x17d   :  { %v1899_v2 = vadd.f32 %v1898_v62, %v5321_v20  ;;  %3637 = vmatprep.mubr.msk.bf16.mxu0 %vm1691_vm1, %v3975_v57 }
 0x17e   :  { %v1900_v3 = vpop.f32.mrf.mxu0  ;;  %v2187_v4 = vpop.f32.mrf.mxu1 }
 0x17f   :  { %v5491_v5 = vadd.f32 %v2187_v4, %v1899_v2 }
 0x180   :  { %v1901_v7 = vpop.f32.mrf.mxu0  ;;  %v2189_v10 = vpop.f32.mrf.mxu1 }
 0x181   :  { %v1902_v12 = vadd.f32 %v1901_v7, %v5321_v20  ;;  %v3982_v10 = vld [vmem:[%s6068_s1 + $0x1c8] ss:$20 sps:$4 sm:$0xff]  }
 0x182   :  { %v1903_v15 = vpop.f32.mrf.mxu0  ;;  %v2190_v16 = vpop.f32.mrf.mxu1 }
 0x183   :  { %v5500_v18 = vadd.f32 %v2190_v16, %v1902_v12  ;;  %v3984_v12 = vld [vmem:[%s6068_s1 + $0x1f0] ss:$20 sps:$4 sm:$0xff]  }
 0x184   :  { %v1906_v22 = vpop.f32.mrf.mxu0  ;;  %v2192_v23 = vpop.f32.mrf.mxu1  ;;  %3638 = vmatmul.mubr.msk.bf16.gmra.mxu0 %vm1691_vm1, %v3976_v11 }
 0x185   :  { %v1907_v24 = vadd.f32 %v1906_v22, %v5321_v20  ;;  %3641 = vmatprep.mubr.msk.bf16.mxu0 %vm1691_vm1, %v3977_v13 }
 0x186   :  { %v1908_v25 = vpop.f32.mrf.mxu0  ;;  %v2195_v8 = vpop.f32.mrf.mxu1 }
 0x187   :  { %v5508_v26 = vadd.f32 %v2195_v8, %v1907_v24 }
 0x188   :  { %v1909_v28 = vpop.f32.mrf.mxu0  ;;  %v2197_v29 = vpop.f32.mrf.mxu1 }
 0x189   :  { %v1910_v30 = vadd.f32 %v1909_v28, %v5321_v20 }
 0x18a   :  { %v1911_v34 = vpop.f32.mrf.mxu0  ;;  %v2198_v35 = vpop.f32.mrf.mxu1 }
 0x18b   :  { %v5517_v36 = vadd.f32 %v2198_v35, %v1910_v30 }
 0x18c   :  { %v1914_v37 = vpop.f32.mrf.mxu0  ;;  %v2200_v39 = vpop.f32.mrf.mxu1  ;;  %3642 = vmatmul.mubr.msk.bf16.gmra.mxu0 %vm1691_vm1, %v3978_v0  ;;  %v3985_v0 = vld [vmem:[%s6068_s1 + $0x218] ss:$20 sps:$4 sm:$0xff]  }
 0x18d   :  { %v1915_v40 = vadd.f32 %v1914_v37, %v5321_v20  ;;  %3645 = vmatprep.mubr.msk.bf16.mxu0 %vm1691_vm1, %v3979_v31  ;;  %v3986_v31 = vld [vmem:[%s6068_s1 + $0x240] ss:$20 sps:$4 sm:$0xff]  }
 0x18e   :  { %v1916_v42 = vpop.f32.mrf.mxu0  ;;  %v2203_v44 = vpop.f32.mrf.mxu1  ;;  %v4007_v39 = vld [vmem:[%s6071_s4] sm:$0xff]  }
 0x18f   :  { %v5522_v45 = vadd.f32 %v2203_v44, %v1915_v40  ;;  %3707 = vmatprep.subr.bf16.mxu1 %v4007_v39 }
 0x190   :  { %v1917_v46 = vpop.f32.mrf.mxu0  ;;  %v2205_v48 = vpop.f32.mrf.mxu1  ;;  %3708 = vmatpush3.bf16.msra.mxu1 %v4007_v39 }
 0x191   :  { %v1918_v52 = vadd.f32 %v1917_v46, %v5321_v20 }
 0x192   :  { %v1919_v55 = vpop.f32.mrf.mxu0  ;;  %v2206_v56 = vpop.f32.mrf.mxu1 }
 0x193   :  { %v5531_v57 = vadd.f32 %v2206_v56, %v1918_v52  ;;  %v3987_v55 = vld [vmem:[%s6068_s1 + $0x268] ss:$20 sps:$4 sm:$0xff]  }
 0x194   :  { %v1922_v58 = vpop.f32.mrf.mxu0  ;;  %v2208_v60 = vpop.f32.mrf.mxu1  ;;  %3646 = vmatmul.mubr.msk.bf16.gmra.mxu0 %vm1691_vm1, %v3980_v49 }
 0x195   :  { %v1923_v62 = vadd.f32 %v1922_v58, %v5321_v20  ;;  %3649 = vmatprep.mubr.msk.bf16.mxu0 %vm1691_vm1, %v3981_v53  ;;  %v3988_v58 = vld [vmem:[%s6068_s1 + $0x290] ss:$20 sps:$4 sm:$0xff]  }
 0x196   :  { %v1924_v1 = vpop.f32.mrf.mxu0  ;;  %v2211_v2 = vpop.f32.mrf.mxu1 }
 0x197   :  { %v5536_v3 = vadd.f32 %v2211_v2, %v1923_v62 }
 0x198   :  { %v1925_v4 = vpop.f32.mrf.mxu0  ;;  %v2213_v7 = vpop.f32.mrf.mxu1 }
 0x199   :  { %v1926_v11 = vadd.f32 %v1925_v4, %v5321_v20 }
 0x19a   :  { %v1927_v13 = vpop.f32.mrf.mxu0  ;;  %v2214_v15 = vpop.f32.mrf.mxu1 }
 0x19b   :  { %v5545_v16 = vadd.f32 %v2214_v15, %v1926_v11 }
 0x19c   :  { %v1930_v21 = vpop.f32.mrf.mxu0  ;;  %v2216_v22 = vpop.f32.mrf.mxu1  ;;  %3650 = vmatmul.mubr.msk.bf16.gmra.mxu0 %vm1691_vm1, %v3982_v10 }
 0x19d   :  { %v1931_v23 = vadd.f32 %v1930_v21, %v5321_v20  ;;  %3653 = vmatprep.mubr.msk.bf16.mxu0 %vm1691_vm1, %v3984_v12  ;;  %v3989_v21 = vld [vmem:[%s6068_s1 + $0x2b8] ss:$20 sps:$4 sm:$0xff]  }
 0x19e   :  { %v1932_v24 = vpop.f32.mrf.mxu0  ;;  %v2219_v25 = vpop.f32.mrf.mxu1 }
 0x19f   :  { %v5550_v8 = vadd.f32 %v2219_v25, %v1931_v23  ;;  %v3990_v23 = vld [vmem:[%s6068_s1 + $0x2e0] ss:$20 sps:$4 sm:$0xff]  }
 0x1a0   :  { %v1933_v28 = vpop.f32.mrf.mxu0  ;;  %v2221_v29 = vpop.f32.mrf.mxu1 }
 0x1a1   :  { %v1934_v30 = vadd.f32 %v1933_v28, %v5321_v20 }
 0x1a2   :  { %v1935_v34 = vpop.f32.mrf.mxu0  ;;  %v2222_v35 = vpop.f32.mrf.mxu1 }
 0x1a3   :  { %v5559_v37 = vadd.f32 %v2222_v35, %v1934_v30 }
 0x1a4   :  { %v1938_v40 = vpop.f32.mrf.mxu0  ;;  %v2224_v42 = vpop.f32.mrf.mxu1  ;;  %3654 = vmatmul.mubr.msk.bf16.gmra.mxu0 %vm1691_vm1, %v3985_v0 }
 0x1a5   :  { %v1939_v44 = vadd.f32 %v1938_v40, %v5321_v20  ;;  %3657 = vmatprep.mubr.msk.bf16.mxu0 %vm1691_vm1, %v3986_v31  ;;  %v3991_v42 = vld [vmem:[%s6068_s1 + $0x308] ss:$20 sps:$4 sm:$0xff]  }
 0x1a6   :  { %v1940_v46 = vpop.f32.mrf.mxu0  ;;  %v2227_v48 = vpop.f32.mrf.mxu1 }
 0x1a7   :  { %v5567_v49 = vadd.f32 %v2227_v48, %v1939_v44  ;;  %v3993_v46 = vld [vmem:[%s6068_s1 + $0x330] ss:$20 sps:$4 sm:$0xff]  }
 0x1a8   :  { %v1941_v52 = vpop.f32.mrf.mxu0  ;;  %v2229_v53 = vpop.f32.mrf.mxu1 }
 0x1a9   :  { %v1942_v56 = vadd.f32 %v1941_v52, %v5321_v20 }
 0x1aa   :  { %v1943_v60 = vpop.f32.mrf.mxu0  ;;  %v2230_v62 = vpop.f32.mrf.mxu1 }
 0x1ab   :  { %v5576_v1 = vadd.f32 %v2230_v62, %v1942_v56 }
 0x1ac   :  { %v1946_v2 = vpop.f32.mrf.mxu0  ;;  %v2232_v4 = vpop.f32.mrf.mxu1  ;;  %3658 = vmatmul.mubr.msk.bf16.gmra.mxu0 %vm1691_vm1, %v3987_v55 }
 0x1ad   :  { %v1947_v7 = vadd.f32 %v1946_v2, %v5321_v20  ;;  %3661 = vmatprep.mubr.msk.bf16.mxu0 %vm1691_vm1, %v3988_v58 }
 0x1ae   :  { %v1948_v10 = vpop.f32.mrf.mxu0  ;;  %v2235_v11 = vpop.f32.mrf.mxu1 }
 0x1af   :  { %v5581_v12 = vadd.f32 %v2235_v11, %v1947_v7  ;;  %v3994_v10 = vld [vmem:[%s6068_s1 + $0x358] ss:$20 sps:$4 sm:$0xff]  }
 0x1b0   :  { %v1949_v13 = vpop.f32.mrf.mxu0  ;;  %v2237_v15 = vpop.f32.mrf.mxu1 }
 0x1b1   :  { %v1950_v22 = vadd.f32 %v1949_v13, %v5321_v20  ;;  %v3995_v13 = vld [vmem:[%s6068_s1 + $0x380] ss:$20 sps:$4 sm:$0xff]  }
 0x1b2   :  { %v1951_v24 = vpop.f32.mrf.mxu0  ;;  %v2238_v25 = vpop.f32.mrf.mxu1 }
 0x1b3   :  { %v5590_v28 = vadd.f32 %v2238_v25, %v1950_v22 }
 0x1b4   :  { %v1954_v29 = vpop.f32.mrf.mxu0  ;;  %v2240_v0 = vpop.f32.mrf.mxu1  ;;  %3662 = vmatmul.mubr.msk.bf16.gmra.mxu0 %vm1691_vm1, %v3989_v21 }
 0x1b5   :  { %v1955_v30 = vadd.f32 %v1954_v29, %v5321_v20  ;;  %3665 = vmatprep.mubr.msk.bf16.mxu0 %vm1691_vm1, %v3990_v23 }
 0x1b6   :  { %v1956_v31 = vpop.f32.mrf.mxu0  ;;  %v2243_v34 = vpop.f32.mrf.mxu1 }
 0x1b7   :  { %v5595_v35 = vadd.f32 %v2243_v34, %v1955_v30 }
 0x1b8   :  { %v1957_v39 = vpop.f32.mrf.mxu0  ;;  %v2245_v40 = vpop.f32.mrf.mxu1 }
 0x1b9   :  { %v1958_v44 = vadd.f32 %v1957_v39, %v5321_v20  ;;  %v3996_v39 = vld [vmem:[%s6068_s1 + $0x3a8] ss:$20 sps:$4 sm:$0xff]  }
 0x1ba   :  { %v1959_v48 = vpop.f32.mrf.mxu0  ;;  %v2246_v52 = vpop.f32.mrf.mxu1 }
 0x1bb   :  { %v5604_v53 = vadd.f32 %v2246_v52, %v1958_v44 }
 0x1bc   :  { %v1962_v55 = vpop.f32.mrf.mxu0  ;;  %v2248_v56 = vpop.f32.mrf.mxu1  ;;  %3666 = vmatmul.mubr.msk.bf16.gmra.mxu0 %vm1691_vm1, %v3991_v42  ;;  %v3997_v42 = vld [vmem:[%s6068_s1 + $0x3d0] ss:$20 sps:$4 sm:$0xff]  }
 0x1bd   :  { %v1963_v58 = vadd.f32 %v1962_v55, %v5321_v20  ;;  %3669 = vmatprep.mubr.msk.bf16.mxu0 %vm1691_vm1, %v3993_v46 }
 0x1be   :  { %v1964_v60 = vpop.f32.mrf.mxu0  ;;  %v2251_v62 = vpop.f32.mrf.mxu1 }
 0x1bf   :  { %v5609_v2 = vadd.f32 %v2251_v62, %v1963_v58 }
 0x1c0   :  { %v1965_v4 = vpop.f32.mrf.mxu0  ;;  %v2253_v7 = vpop.f32.mrf.mxu1 }
 0x1c1   :  { %v1966_v11 = vadd.f32 %v1965_v4, %v5321_v20 }
 0x1c2   :  { %v1967_v15 = vpop.f32.mrf.mxu0  ;;  %v2254_v21 = vpop.f32.mrf.mxu1 }
 0x1c3   :  { %v5618_v22 = vadd.f32 %v2254_v21, %v1966_v11 }
 0x1c4   :  { %v1970_v23 = vpop.f32.mrf.mxu0  ;;  %v2256_v24 = vpop.f32.mrf.mxu1  ;;  %3670 = vmatmul.mubr.msk.bf16.gmra.mxu0 %vm1691_vm1, %v3994_v10  ;;  %v3998_v10 = vld [vmem:[%s6068_s1 + $0x3f8] ss:$20 sps:$4 sm:$0xff]  }
 0x1c5   :  { %v1971_v25 = vadd.f32 %v1970_v23, %v5321_v20  ;;  %3673 = vmatprep.mubr.msk.bf16.mxu0 %vm1691_vm1, %v3995_v13  ;;  %v3999_v13 = vld [vmem:[%s6068_s1 + $0x420] ss:$20 sps:$4 sm:$0xff]  }
 0x1c6   :  { %v1972_v29 = vpop.f32.mrf.mxu0  ;;  %v2259_v0 = vpop.f32.mrf.mxu1 }
 0x1c7   :  { %v5623_v30 = vadd.f32 %v2259_v0, %v1971_v25 }
 0x1c8   :  { %v1973_v31 = vpop.f32.mrf.mxu0  ;;  %v2261_v34 = vpop.f32.mrf.mxu1 }
 0x1c9   :  { %v1974_v40 = vadd.f32 %v1973_v31, %v5321_v20 }
 0x1ca   :  { %v1975_v44 = vpop.f32.mrf.mxu0  ;;  %v2262_v46 = vpop.f32.mrf.mxu1 }
 0x1cb   :  { %v5632_v48 = vadd.f32 %v2262_v46, %v1974_v40  ;;  %v4002_v46 = vld [vmem:[%s6068_s1 + $0x470] ss:$20 sps:$4 sm:$0xff]  }
 0x1cc   :  { %v1978_v52 = vpop.f32.mrf.mxu0  ;;  %v2264_v55 = vpop.f32.mrf.mxu1  ;;  %3674 = vmatmul.mubr.msk.bf16.gmra.mxu0 %vm1691_vm1, %v3996_v39 }
 0x1cd   :  { %v1979_v56 = vadd.f32 %v1978_v52, %v5321_v20  ;;  %3677 = vmatprep.mubr.msk.bf16.mxu0 %vm1691_vm1, %v3997_v42  ;;  %v4000_v42 = vld [vmem:[%s6068_s1 + $0x448] ss:$20 sps:$4 sm:$0xff]  }
 0x1ce   :  { %v1980_v58 = vpop.f32.mrf.mxu0  ;;  %v2267_v60 = vpop.f32.mrf.mxu1 }
 0x1cf   :  { %v5637_v62 = vadd.f32 %v2267_v60, %v1979_v56 }
 0x1d0   :  { %v1981_v4 = vpop.f32.mrf.mxu0  ;;  %v2269_v7 = vpop.f32.mrf.mxu1 }
 0x1d1   :  { %v1982_v11 = vadd.f32 %v1981_v4, %v5321_v20 }
 0x1d2   :  { %v1983_v15 = vpop.f32.mrf.mxu0  ;;  %v2270_v21 = vpop.f32.mrf.mxu1 }
 0x1d3   :  { %v5646_v23 = vadd.f32 %v2270_v21, %v1982_v11  ;;  %v4003_v21 = vld [vmem:[%s6068_s1 + $0x498] ss:$20 sps:$4 sm:$0xff]  }
 0x1d4   :  { %v1986_v24 = vpop.f32.mrf.mxu0  ;;  %v2272_v25 = vpop.f32.mrf.mxu1  ;;  %3678 = vmatmul.mubr.msk.bf16.gmra.mxu0 %vm1691_vm1, %v3998_v10 }
 0x1d5   :  { %v1987_v29 = vadd.f32 %v1986_v24, %v5321_v20  ;;  %3681 = vmatprep.mubr.msk.bf16.mxu0 %vm1691_vm1, %v3999_v13  ;;  %v4004_v25 = vld [vmem:[%s6068_s1 + $0x4c0] ss:$20 sps:$4 sm:$0xff]  }
 0x1d6   :  { %v1988_v0 = vpop.f32.mrf.mxu0  ;;  %v2275_v31 = vpop.f32.mrf.mxu1 }
 0x1d7   :  { %v5651_v34 = vadd.f32 %v2275_v31, %v1987_v29 }
 0x1d8   :  { %v1989_v39 = vpop.f32.mrf.mxu0  ;;  %v2277_v40 = vpop.f32.mrf.mxu1 }
 0x1d9   :  { %v1990_v44 = vadd.f32 %v1989_v39, %v5321_v20 }
 0x1da   :  { %v1991_v52 = vpop.f32.mrf.mxu0  ;;  %v2278_v55 = vpop.f32.mrf.mxu1 }
 0x1db   :  { %v5660_v56 = vadd.f32 %v2278_v55, %v1990_v44 }
 0x1dc   :  { %v1994_v58 = vpop.f32.mrf.mxu0  ;;  %v2280_v60 = vpop.f32.mrf.mxu1  ;;  %3682 = vmatmul.mubr.msk.bf16.gmra.mxu0 %vm1691_vm1, %v4000_v42 }
 0x1dd   :  { %v1995_v4 = vadd.f32 %v1994_v58, %v5321_v20  ;;  %3685 = vmatprep.mubr.msk.bf16.mxu0 %vm1691_vm1, %v4002_v46  ;;  %v4005_v60 = vld [vmem:[%s6068_s1 + $0x4e8] ss:$20 sps:$4 sm:$0xff]  }
 0x1de   :  { %v1996_v7 = vpop.f32.mrf.mxu0  ;;  %v2283_v10 = vpop.f32.mrf.mxu1 }
 0x1df   :  { %v5665_v11 = vadd.f32 %v2283_v10, %v1995_v4 }
 0x1e0   :  { %v1997_v13 = vpop.f32.mrf.mxu0  ;;  %v2285_v15 = vpop.f32.mrf.mxu1 }
 0x1e1   :  { %v1998_v24 = vadd.f32 %v1997_v13, %v5321_v20 }
 0x1e2   :  { %v1999_v29 = vpop.f32.mrf.mxu0  ;;  %v2286_v0 = vpop.f32.mrf.mxu1 }
 0x1e3   :  { %v5674_v31 = vadd.f32 %v2286_v0, %v1998_v24 }
 0x1e4   :  { %v2002_v39 = vpop.f32.mrf.mxu0  ;;  %v2288_v40 = vpop.f32.mrf.mxu1  ;;  %3686 = vmatmul.mubr.msk.bf16.gmra.mxu0 %vm1691_vm1, %v4003_v21 }
 0x1e5   :  { %v2003_v42 = vadd.f32 %v2002_v39, %v5321_v20  ;;  %3689 = vmatprep.mubr.msk.bf16.mxu0 %vm1691_vm1, %v4004_v25 }
 0x1e6   :  { %v2004_v44 = vpop.f32.mrf.mxu0  ;;  %v2291_v46 = vpop.f32.mrf.mxu1 }
 0x1e7   :  { %v5679_v52 = vadd.f32 %v2291_v46, %v2003_v42 }
 0x1e8   :  { %v2005_v55 = vpop.f32.mrf.mxu0  ;;  %v2293_v58 = vpop.f32.mrf.mxu1 }
 0x1e9   :  { %v2006_v4 = vadd.f32 %v2005_v55, %v5321_v20 }
 0x1ea   :  { %v2007_v7 = vpop.f32.mrf.mxu0  ;;  %v2294_v10 = vpop.f32.mrf.mxu1 }
 0x1eb   :  { %v5685_v13 = vadd.f32 %v2294_v10, %v2006_v4 }
 0x1ec   :  { %v2010_v15 = vpop.f32.mrf.mxu0  ;;  %v2296_v21 = vpop.f32.mrf.mxu1  ;;  %3690 = vmatmul.mubr.msk.bf16.gmra.mxu0 %vm1691_vm1, %v4005_v60 }
 0x1ed   :  { %6074 = vst [vmem:[#allocation5_spill] sm:$0xff] %v5685_v13  ;;  %v2011_v24 = vadd.f32 %v2010_v15, %v5321_v20 }
 0x1ee   :  { %v2012_v25 = vpop.f32.mrf.mxu0  ;;  %v2299_v29 = vpop.f32.mrf.mxu1 }
 0x1ef   :  { %v5689_v0 = vadd.f32 %v2299_v29, %v2011_v24 }
 0x1f0   :  { %v2013_v39 = vpop.f32.mrf.mxu0  ;;  %v2301_v40 = vpop.f32.mrf.mxu1 }
 0x1f1   :  { %v2014_v42 = vadd.f32 %v2013_v39, %v5321_v20 }
 0x1f2   :  { %v2015_v44 = vpop.f32.mrf.mxu0  ;;  %v2302_v46 = vpop.f32.mrf.mxu1 }
 0x1f3   :  { %v5692_v55 = vadd.f32 %v2302_v46, %v2014_v42 }
 0x1f4   :  { %v2018_v58 = vpop.f32.mrf.mxu0  ;;  %v2304_v4 = vpop.f32.mrf.mxu1 }
 0x1f5   :  { %6075 = vst [vmem:[#allocation6_spill] sm:$0xff] %v5692_v55  ;;  %v2019_v7 = vadd.f32 %v2018_v58, %v5321_v20 }
 0x1f6   :  { %v2020_v10 = vpop.f32.mrf.mxu0  ;;  %v2307_v60 = vpop.f32.mrf.mxu1 }
 0x1f7   :  { %v5695_v21 = vadd.f32 %v2307_v60, %v2019_v7 }
 0x1f8   :  { %v2021_v15 = vpop.f32.mrf.mxu0  ;;  %v2309_v25 = vpop.f32.mrf.mxu1 }
 0x1f9   :  { %6076 = vst [vmem:[#allocation7_spill] sm:$0xff] %v5695_v21  ;;  %v2022_v24 = vadd.f32 %v2021_v15, %v5321_v20 }
 0x1fa   :  { %v2023_v29 = vpop.f32.mrf.mxu0  ;;  %v2310_v40 = vpop.f32.mrf.mxu1 }
 0x1fb   :  { %v5698_v13 = vadd.f32 %v2310_v40, %v2022_v24 }
 0x1fc   :  { %v2026_v39 = vpop.f32.mrf.mxu0  ;;  %v2312_v44 = vpop.f32.mrf.mxu1 }
 0x1fd   :  { %6077 = vst [vmem:[#allocation8_spill] sm:$0xff] %v5698_v13  ;;  %v2027_v42 = vadd.f32 %v2026_v39, %v5321_v20 }
 0x1fe   :  { %v2028_v46 = vpop.f32.mrf.mxu0  ;;  %v2315_v4 = vpop.f32.mrf.mxu1 }
 0x1ff   :  { %v5701_v55 = vadd.f32 %v2315_v4, %v2027_v42 }
 0x200   :  { %v2029_v58 = vpop.f32.mrf.mxu0  ;;  %v2317_v10 = vpop.f32.mrf.mxu1 }
 0x201   :  { %6078 = vst [vmem:[#allocation9_spill] sm:$0xff] %v5701_v55  ;;  %v2030_v7 = vadd.f32 %v2029_v58, %v5321_v20 }
 0x202   :  { %v2031_v60 = vpop.f32.mrf.mxu0  ;;  %v2318_v25 = vpop.f32.mrf.mxu1 }
 0x203   :  { %v5704_v21 = vadd.f32 %v2318_v25, %v2030_v7 }
 0x204   :  { %v2034_v15 = vpop.f32.mrf.mxu0  ;;  %v2320_v29 = vpop.f32.mrf.mxu1 }
 0x205   :  { %6079 = vst [vmem:[#allocation10_spill] sm:$0xff] %v5704_v21  ;;  %v2035_v24 = vadd.f32 %v2034_v15, %v5321_v20 }
 0x206   :  { %v2036_v40 = vpop.f32.mrf.mxu0  ;;  %v2323_v44 = vpop.f32.mrf.mxu1 }
 0x207   :  { %v5707_v13 = vadd.f32 %v2323_v44, %v2035_v24 }
 0x208   :  { %v2037_v39 = vpop.f32.mrf.mxu0  ;;  %v2325_v46 = vpop.f32.mrf.mxu1 }
 0x209   :  { %6080 = vst [vmem:[#allocation11_spill] sm:$0xff] %v5707_v13  ;;  %v2038_v42 = vadd.f32 %v2037_v39, %v5321_v20 }
 0x20a   :  { %v2039_v4 = vpop.f32.mrf.mxu0  ;;  %v2326_v10 = vpop.f32.mrf.mxu1 }
 0x20b   :  { %v5710_v55 = vadd.f32 %v2326_v10, %v2038_v42 }
 0x20c   :  { %v2042_v58 = vpop.f32.mrf.mxu0  ;;  %v2328_v60 = vpop.f32.mrf.mxu1 }
 0x20d   :  { %6081 = vst [vmem:[#allocation12_spill] sm:$0xff] %v5710_v55  ;;  %v2043_v7 = vadd.f32 %v2042_v58, %v5321_v20 }
 0x20e   :  { %v2044_v25 = vpop.f32.mrf.mxu0  ;;  %v2331_v29 = vpop.f32.mrf.mxu1 }
 0x20f   :  { %v5713_v21 = vadd.f32 %v2331_v29, %v2043_v7 }
 0x210   :  { %v2045_v15 = vpop.f32.mrf.mxu0  ;;  %v2333_v40 = vpop.f32.mrf.mxu1 }
 0x211   :  { %6082 = vst [vmem:[#allocation13_spill] sm:$0xff] %v5713_v21  ;;  %v2046_v24 = vadd.f32 %v2045_v15, %v5321_v20 }
 0x212   :  { %v2047_v44 = vpop.f32.mrf.mxu0  ;;  %v2334_v46 = vpop.f32.mrf.mxu1 }
 0x213   :  { %v5716_v13 = vadd.f32 %v2334_v46, %v2046_v24 }
 0x214   :  { %v2050_v39 = vpop.f32.mrf.mxu0  ;;  %v2336_v4 = vpop.f32.mrf.mxu1 }
 0x215   :  { %6083 = vst [vmem:[#allocation14_spill] sm:$0xff] %v5716_v13  ;;  %v2051_v42 = vadd.f32 %v2050_v39, %v5321_v20 }
 0x216   :  { %v2052_v10 = vpop.f32.mrf.mxu0  ;;  %v2339_v60 = vpop.f32.mrf.mxu1 }
 0x217   :  { %v5719_v55 = vadd.f32 %v2339_v60, %v2051_v42 }
 0x218   :  { %v2053_v58 = vpop.f32.mrf.mxu0  ;;  %v2341_v25 = vpop.f32.mrf.mxu1 }
 0x219   :  { %6084 = vst [vmem:[#allocation15_spill] sm:$0xff] %v5719_v55  ;;  %v2054_v7 = vadd.f32 %v2053_v58, %v5321_v20 }
 0x21a   :  { %v2055_v29 = vpop.f32.mrf.mxu0  ;;  %v2342_v40 = vpop.f32.mrf.mxu1 }
 0x21b   :  { %v5722_v21 = vadd.f32 %v2342_v40, %v2054_v7 }
 0x21c   :  { %v2058_v15 = vpop.f32.mrf.mxu0  ;;  %v2344_v44 = vpop.f32.mrf.mxu1 }
 0x21d   :  { %6085 = vst [vmem:[#allocation16_spill] sm:$0xff] %v5722_v21  ;;  %v2059_v24 = vadd.f32 %v2058_v15, %v5321_v20 }
 0x21e   :  { %v2060_v46 = vpop.f32.mrf.mxu0  ;;  %v2347_v4 = vpop.f32.mrf.mxu1 }
 0x21f   :  { %v5725_v13 = vadd.f32 %v2347_v4, %v2059_v24 }
 0x220   :  { %v2061_v39 = vpop.f32.mrf.mxu0  ;;  %v2349_v10 = vpop.f32.mrf.mxu1 }
 0x221   :  { %6086 = vst [vmem:[#allocation17_spill] sm:$0xff] %v5725_v13  ;;  %v2062_v42 = vadd.f32 %v2061_v39, %v5321_v20 }
 0x222   :  { %v2063_v60 = vpop.f32.mrf.mxu0  ;;  %v2350_v25 = vpop.f32.mrf.mxu1 }
 0x223   :  { %v5728_v55 = vadd.f32 %v2350_v25, %v2062_v42 }
 0x224   :  { %v2066_v58 = vpop.f32.mrf.mxu0  ;;  %v2352_v29 = vpop.f32.mrf.mxu1 }
 0x225   :  { %6087 = vst [vmem:[#allocation18_spill] sm:$0xff] %v5728_v55  ;;  %v2067_v7 = vadd.f32 %v2066_v58, %v5321_v20 }
 0x226   :  { %v2068_v40 = vpop.f32.mrf.mxu0  ;;  %v2355_v44 = vpop.f32.mrf.mxu1 }
 0x227   :  { %v5731_v21 = vadd.f32 %v2355_v44, %v2067_v7 }
 0x228   :  { %v2069_v15 = vpop.f32.mrf.mxu0  ;;  %v2357_v46 = vpop.f32.mrf.mxu1 }
 0x229   :  { %6088 = vst [vmem:[#allocation19_spill] sm:$0xff] %v5731_v21  ;;  %v2070_v24 = vadd.f32 %v2069_v15, %v5321_v20 }
 0x22a   :  { %v2071_v4 = vpop.f32.mrf.mxu0  ;;  %v2358_v10 = vpop.f32.mrf.mxu1 }
 0x22b   :  { %v5734_v13 = vadd.f32 %v2358_v10, %v2070_v24 }
 0x22c   :  { %v2074_v39 = vpop.f32.mrf.mxu0  ;;  %v2360_v60 = vpop.f32.mrf.mxu1 }
 0x22d   :  { %6089 = vst [vmem:[#allocation20_spill] sm:$0xff] %v5734_v13  ;;  %v2075_v42 = vadd.f32 %v2074_v39, %v5321_v20 }
 0x22e   :  { %v2076_v25 = vpop.f32.mrf.mxu0  ;;  %v2363_v29 = vpop.f32.mrf.mxu1 }
 0x22f   :  { %v5737_v55 = vadd.f32 %v2363_v29, %v2075_v42 }
 0x230   :  { %v2077_v58 = vpop.f32.mrf.mxu0  ;;  %v2365_v40 = vpop.f32.mrf.mxu1 }
 0x231   :  { %6090 = vst [vmem:[#allocation21_spill] sm:$0xff] %v5737_v55  ;;  %v2078_v7 = vadd.f32 %v2077_v58, %v5321_v20 }
 0x232   :  { %v2079_v44 = vpop.f32.mrf.mxu0  ;;  %v2366_v46 = vpop.f32.mrf.mxu1 }
 0x233   :  { %v5740_v21 = vadd.f32 %v2366_v46, %v2078_v7 }
 0x234   :  { %v3631_v15 = vpop.f32.mrf.mxu0  ;;  %v2368_v4 = vpop.f32.mrf.mxu1 }
 0x235   :  { %6091 = vst [vmem:[#allocation22_spill] sm:$0xff] %v5740_v21  ;;  %v2413_v10 = vadd.f32 %v3631_v15, %v5351_v54 }
 0x236   :  { %v2404_v24 = vpop.f32.mrf.mxu0 }
 0x237   :  { %v2405_v39 = vadd.f32 %v2404_v24, %v5333_v38  ;;  %v2661_v29 = vmax.f32 %v2413_v10, 0.0 }
 0x238   :  { %v3632_v60 = vpop.f32.mrf.mxu0 }
 0x239   :  { %v2416_v25 = vadd.f32 %v3632_v60, %v5363_v63  ;;  %v2659_v58 = vmax.f32 %v2405_v39, 0.0 }
 0x23a   :  { %v2407_v42 = vpop.f32.mrf.mxu0 }
 0x23b   :  { %v2662_v13 = vmax.f32 %v2416_v25, 0.0  ;;  %v2408_v40 = vadd.f32 %v2407_v42, %v5345_v47 }
 0x23c   :  { %v3635_v20 = vpop.f32.mrf.mxu0 }
 0x23d   :  { %v2724_v44 = vpack.c.bf16 %v2662_v13, %v2661_v29  ;;  %v2660_v7 = vmax.f32 %v2408_v40, 0.0  ;;  %v2429_v4 = vadd.f32 %v3635_v20, %v5390_v14 }
 0x23e   :  { %v2420_v46 = vpop.f32.mrf.mxu0 }
 0x23f   :  { %v2723_v21 = vpack.c.bf16 %v2660_v7, %v2659_v58  ;;  %v2421_v54 = vadd.f32 %v2420_v46, %v5372_v9  ;;  %v2665_v15 = vmax.f32 %v2429_v4, 0.0 }
 0x240   :  { %v3636_v55 = vpop.f32.mrf.mxu0 }
 0x241   :  { %v2432_v38 = vadd.f32 %v3636_v55, %v5402_v33  ;;  %3709 = vmatprep.mubr.bf16.mxu1 %v2723_v21  ;;  %v2663_v60 = vmax.f32 %v2421_v54, 0.0 }
 0x242   :  { %v2423_v63 = vpop.f32.mrf.mxu0  ;;  %3710 = vmatmul.mubr.bf16.vlgmr.msra.gmra.mxu1 %v2724_v44 }
 0x243   :  { %v2666_v24 = vmax.f32 %v2432_v38, 0.0  ;;  %v2424_v47 = vadd.f32 %v2423_v63, %v5384_v19 }
 0x244   :  { %v3639_v10 = vpop.f32.mrf.mxu0 }
 0x245   :  { %v2726_v13 = vpack.c.bf16 %v2666_v24, %v2665_v15  ;;  %v2664_v39 = vmax.f32 %v2424_v47, 0.0  ;;  %v2445_v14 = vadd.f32 %v3639_v10, %v5426_v59 }
 0x246   :  { %v2436_v25 = vpop.f32.mrf.mxu0 }
 0x247   :  { %v2725_v42 = vpack.c.bf16 %v2664_v39, %v2663_v60  ;;  %v2437_v9 = vadd.f32 %v2436_v25, %v5408_v41  ;;  %v2669_v21 = vmax.f32 %v2445_v14, 0.0 }
 0x248   :  { %v3640_v29 = vpop.f32.mrf.mxu0 }
 0x249   :  { %v2448_v33 = vadd.f32 %v3640_v29, %v5438_v6  ;;  %3713 = vmatprep.mubr.bf16.mxu1 %v2725_v42  ;;  %v2667_v58 = vmax.f32 %v2437_v9, 0.0 }
 0x24a   :  { %v2439_v55 = vpop.f32.mrf.mxu0  ;;  %3714 = vmatmul.mubr.bf16.gmra.mxu1 %v2726_v13 }
 0x24b   :  { %v2670_v40 = vmax.f32 %v2448_v33, 0.0  ;;  %v2440_v19 = vadd.f32 %v2439_v55, %v5420_v51 }
 0x24c   :  { %v3643_v20 = vpop.f32.mrf.mxu0 }
 0x24d   :  { %v2728_v44 = vpack.c.bf16 %v2670_v40, %v2669_v21  ;;  %v2668_v7 = vmax.f32 %v2440_v19, 0.0  ;;  %v2461_v59 = vadd.f32 %v3643_v20, %v5463_v32 }
 0x24e   :  { %v2452_v46 = vpop.f32.mrf.mxu0 }
 0x24f   :  { %v2727_v4 = vpack.c.bf16 %v2668_v7, %v2667_v58  ;;  %v2453_v41 = vadd.f32 %v2452_v46, %v5447_v17  ;;  %v2673_v63 = vmax.f32 %v2461_v59, 0.0 }
 0x250   :  { %v3644_v54 = vpop.f32.mrf.mxu0 }
 0x251   :  { %v2464_v6 = vadd.f32 %v3644_v54, %v5472_v43  ;;  %3717 = vmatprep.mubr.bf16.mxu1 %v2727_v4  ;;  %v2671_v47 = vmax.f32 %v2453_v41, 0.0 }
 0x252   :  { %v2455_v38 = vpop.f32.mrf.mxu0  ;;  %3718 = vmatmul.mubr.bf16.gmra.mxu1 %v2728_v44 }
 0x253   :  { %v2674_v15 = vmax.f32 %v2464_v6, 0.0  ;;  %v2456_v51 = vadd.f32 %v2455_v38, %v5459_v27 }
 0x254   :  { %v3647_v24 = vpop.f32.mrf.mxu0 }
 0x255   :  { %v2730_v10 = vpack.c.bf16 %v2674_v15, %v2673_v63  ;;  %v2672_v60 = vmax.f32 %v2456_v51, 0.0  ;;  %v2477_v32 = vadd.f32 %v3647_v24, %v5491_v5 }
 0x256   :  { %v2468_v13 = vpop.f32.mrf.mxu0 }
 0x257   :  { %v2729_v39 = vpack.c.bf16 %v2672_v60, %v2671_v47  ;;  %v2469_v17 = vadd.f32 %v2468_v13, %v5477_v50  ;;  %v2677_v14 = vmax.f32 %v2477_v32, 0.0 }
 0x258   :  { %v3648_v25 = vpop.f32.mrf.mxu0 }
 0x259   :  { %v2480_v43 = vadd.f32 %v3648_v25, %v5500_v18  ;;  %3721 = vmatprep.mubr.bf16.mxu1 %v2729_v39  ;;  %v2675_v33 = vmax.f32 %v2469_v17, 0.0 }
 0x25a   :  { %v2471_v42 = vpop.f32.mrf.mxu0  ;;  %3722 = vmatmul.mubr.bf16.gmra.mxu1 %v2730_v10 }
 0x25b   :  { %v2678_v29 = vmax.f32 %v2480_v43, 0.0  ;;  %v2472_v27 = vadd.f32 %v2471_v42, %v5486_v61 }
 0x25c   :  { %v3651_v9 = vpop.f32.mrf.mxu0 }
 0x25d   :  { %v2732_v55 = vpack.c.bf16 %v2678_v29, %v2677_v14  ;;  %v2676_v21 = vmax.f32 %v2472_v27, 0.0  ;;  %v2493_v5 = vadd.f32 %v3651_v9, %v5522_v45 }
 0x25e   :  { %v2484_v40 = vpop.f32.mrf.mxu0 }
 0x25f   :  { %v2731_v19 = vpack.c.bf16 %v2676_v21, %v2675_v33  ;;  %v2485_v50 = vadd.f32 %v2484_v40, %v5508_v26  ;;  %v2681_v44 = vmax.f32 %v2493_v5, 0.0 }
 0x260   :  { %v3652_v20 = vpop.f32.mrf.mxu0 }
 0x261   :  { %v2496_v18 = vadd.f32 %v3652_v20, %v5531_v57  ;;  %3725 = vmatprep.mubr.bf16.mxu1 %v2731_v19  ;;  %v2679_v4 = vmax.f32 %v2485_v50, 0.0 }
 0x262   :  { %v2487_v58 = vpop.f32.mrf.mxu0  ;;  %3726 = vmatmul.mubr.bf16.gmra.mxu1 %v2732_v55 }
 0x263   :  { %v2682_v7 = vmax.f32 %v2496_v18, 0.0  ;;  %v2488_v61 = vadd.f32 %v2487_v58, %v5517_v36 }
 0x264   :  { %v3655_v46 = vpop.f32.mrf.mxu0 }
 0x265   :  { %v2734_v59 = vpack.c.bf16 %v2682_v7, %v2681_v44  ;;  %v2680_v54 = vmax.f32 %v2488_v61, 0.0  ;;  %v2509_v45 = vadd.f32 %v3655_v46, %v5550_v8 }
 0x266   :  { %v2500_v41 = vpop.f32.mrf.mxu0 }
 0x267   :  { %v2733_v6 = vpack.c.bf16 %v2680_v54, %v2679_v4  ;;  %v2501_v26 = vadd.f32 %v2500_v41, %v5536_v3  ;;  %v2685_v15 = vmax.f32 %v2509_v45, 0.0 }
 0x268   :  { %v3656_v38 = vpop.f32.mrf.mxu0 }
 0x269   :  { %v2512_v57 = vadd.f32 %v3656_v38, %v5559_v37  ;;  %3729 = vmatprep.mubr.bf16.mxu1 %v2733_v6  ;;  %v2683_v47 = vmax.f32 %v2501_v26, 0.0 }
 0x26a   :  { %v2503_v63 = vpop.f32.mrf.mxu0  ;;  %3730 = vmatmul.mubr.bf16.gmra.mxu1 %v2734_v59 }
 0x26b   :  { %v2686_v51 = vmax.f32 %v2512_v57, 0.0  ;;  %v2504_v36 = vadd.f32 %v2503_v63, %v5545_v16 }
 0x26c   :  { %v3659_v24 = vpop.f32.mrf.mxu0 }
 0x26d   :  { %v2736_v10 = vpack.c.bf16 %v2686_v51, %v2685_v15  ;;  %v2684_v60 = vmax.f32 %v2504_v36, 0.0  ;;  %v2525_v8 = vadd.f32 %v3659_v24, %v5581_v12 }
 0x26e   :  { %v2516_v13 = vpop.f32.mrf.mxu0 }
 0x26f   :  { %v2735_v39 = vpack.c.bf16 %v2684_v60, %v2683_v47  ;;  %v2517_v3 = vadd.f32 %v2516_v13, %v5567_v49  ;;  %v2689_v17 = vmax.f32 %v2525_v8, 0.0 }
 0x270   :  { %v3660_v32 = vpop.f32.mrf.mxu0 }
 0x271   :  { %v2528_v37 = vadd.f32 %v3660_v32, %v5590_v28  ;;  %3733 = vmatprep.mubr.bf16.mxu1 %v2735_v39  ;;  %v2687_v14 = vmax.f32 %v2517_v3, 0.0  ;;  %v6092_v39 = vld [vmem:[#allocation6_spill] sm:$0xff] }
 0x272   :  { %v2519_v25 = vpop.f32.mrf.mxu0  ;;  %3734 = vmatmul.mubr.bf16.gmra.mxu1 %v2736_v10 }
 0x273   :  { %v2690_v43 = vmax.f32 %v2528_v37, 0.0  ;;  %v2520_v16 = vadd.f32 %v2519_v25, %v5576_v1  ;;  %v6093_v37 = vld [vmem:[#allocation5_spill] sm:$0xff] }
 0x274   :  { %v3663_v42 = vpop.f32.mrf.mxu0 }
 0x275   :  { %v2738_v29 = vpack.c.bf16 %v2690_v43, %v2689_v17  ;;  %v2688_v27 = vmax.f32 %v2520_v16, 0.0  ;;  %v2541_v12 = vadd.f32 %v3663_v42, %v5609_v2 }
 0x276   :  { %v2532_v9 = vpop.f32.mrf.mxu0 }
 0x277   :  { %v2737_v33 = vpack.c.bf16 %v2688_v27, %v2687_v14  ;;  %v2533_v49 = vadd.f32 %v2532_v9, %v5595_v35  ;;  %v2693_v40 = vmax.f32 %v2541_v12, 0.0  ;;  %v6095_v9 = vld [vmem:[#allocation7_spill] sm:$0xff] }
 0x278   :  { %v3664_v55 = vpop.f32.mrf.mxu0 }
 0x279   :  { %v2544_v28 = vadd.f32 %v3664_v55, %v5618_v22  ;;  %3737 = vmatprep.mubr.bf16.mxu1 %v2737_v33  ;;  %v2691_v20 = vmax.f32 %v2533_v49, 0.0  ;;  %v6096_v33 = vld [vmem:[#allocation10_spill] sm:$0xff] }
 0x27a   :  { %v2535_v21 = vpop.f32.mrf.mxu0  ;;  %3738 = vmatmul.mubr.bf16.gmra.mxu1 %v2738_v29  ;;  %v6094_v29 = vld [vmem:[#allocation9_spill] sm:$0xff] }
 0x27b   :  { %v2694_v19 = vmax.f32 %v2544_v28, 0.0  ;;  %v2536_v1 = vadd.f32 %v2535_v21, %v5604_v53  ;;  %v6097_v21 = vld [vmem:[#allocation8_spill] sm:$0xff] }
 0x27c   :  { %v3667_v5 = vpop.f32.mrf.mxu0 }
 0x27d   :  { %v2740_v50 = vpack.c.bf16 %v2694_v19, %v2693_v40  ;;  %v2692_v18 = vmax.f32 %v2536_v1, 0.0  ;;  %v2557_v2 = vadd.f32 %v3667_v5, %v5637_v62 }
 0x27e   :  { %v2548_v58 = vpop.f32.mrf.mxu0 }
 0x27f   :  { %v2739_v44 = vpack.c.bf16 %v2692_v18, %v2691_v20  ;;  %v2549_v35 = vadd.f32 %v2548_v58, %v5623_v30  ;;  %v2697_v46 = vmax.f32 %v2557_v2, 0.0  ;;  %v6098_v58 = vld [vmem:[#allocation13_spill] sm:$0xff] }
 0x280   :  { %v3668_v7 = vpop.f32.mrf.mxu0 }
 0x281   :  { %v2560_v22 = vadd.f32 %v3668_v7, %v5646_v23  ;;  %3741 = vmatprep.mubr.bf16.mxu1 %v2739_v44  ;;  %v2695_v54 = vmax.f32 %v2549_v35, 0.0  ;;  %v6099_v7 = vld [vmem:[#allocation11_spill] sm:$0xff] }
 0x282   :  { %v2551_v61 = vpop.f32.mrf.mxu0  ;;  %3742 = vmatmul.mubr.bf16.gmra.mxu1 %v2740_v50 }
 0x283   :  { %v2698_v4 = vmax.f32 %v2560_v22, 0.0  ;;  %v2552_v53 = vadd.f32 %v2551_v61, %v5632_v48  ;;  %v6100_v22 = vld [vmem:[#allocation14_spill] sm:$0xff] }
 0x284   :  { %v3671_v59 = vpop.f32.mrf.mxu0 }
 0x285   :  { %v2742_v41 = vpack.c.bf16 %v2698_v4, %v2697_v46  ;;  %v2696_v6 = vmax.f32 %v2552_v53, 0.0  ;;  %v2573_v62 = vadd.f32 %v3671_v59, %v5665_v11  ;;  %v6101_v59 = vld [vmem:[#allocation12_spill] sm:$0xff] }
 0x286   :  { %v2564_v45 = vpop.f32.mrf.mxu0 }
 0x287   :  { %v2741_v38 = vpack.c.bf16 %v2696_v6, %v2695_v54  ;;  %v2565_v30 = vadd.f32 %v2564_v45, %v5651_v34  ;;  %v2701_v63 = vmax.f32 %v2573_v62, 0.0 }
 0x288   :  { %v3672_v26 = vpop.f32.mrf.mxu0 }
 0x289   :  { %v2576_v23 = vadd.f32 %v3672_v26, %v5674_v31  ;;  %3745 = vmatprep.mubr.bf16.mxu1 %v2741_v38  ;;  %v2699_v36 = vmax.f32 %v2565_v30, 0.0  ;;  %v6102_v30 = vld [vmem:[#allocation17_spill] sm:$0xff] }
 0x28a   :  { %v2567_v57 = vpop.f32.mrf.mxu0  ;;  %3746 = vmatmul.mubr.bf16.gmra.mxu1 %v2742_v41 }
 0x28b   :  { %v2702_v15 = vmax.f32 %v2576_v23, 0.0  ;;  %v2568_v48 = vadd.f32 %v2567_v57, %v5660_v56 }
 0x28c   :  { %v3675_v51 = vpop.f32.mrf.mxu0 }
 0x28d   :  { %v2744_v24 = vpack.c.bf16 %v2702_v15, %v2701_v63  ;;  %v2700_v47 = vmax.f32 %v2568_v48, 0.0  ;;  %v2589_v11 = vadd.f32 %v3675_v51, %v5689_v0  ;;  %v6103_v63 = vld [vmem:[#allocation15_spill] sm:$0xff]  ;;  %v6104_v48 = vld [vmem:[#allocation18_spill] sm:$0xff] }
 0x28e   :  { %v2580_v10 = vpop.f32.mrf.mxu0 }
 0x28f   :  { %v2743_v60 = vpack.c.bf16 %v2700_v47, %v2699_v36  ;;  %v2581_v34 = vadd.f32 %v2580_v10, %v5679_v52  ;;  %v2705_v32 = vmax.f32 %v2589_v11, 0.0  ;;  %v6105_v10 = vld [vmem:[#allocation16_spill] sm:$0xff] }
 0x290   :  { %v3676_v13 = vpop.f32.mrf.mxu0 }
 0x291   :  { %v2592_v31 = vadd.f32 %v3676_v13, %v6092_v39  ;;  %3749 = vmatprep.mubr.bf16.mxu1 %v2743_v60  ;;  %v2703_v17 = vmax.f32 %v2581_v34, 0.0 }
 0x292   :  { %v2583_v8 = vpop.f32.mrf.mxu0  ;;  %3750 = vmatmul.mubr.bf16.gmra.mxu1 %v2744_v24 }
 0x293   :  { %v2706_v3 = vmax.f32 %v2592_v31, 0.0  ;;  %v2584_v56 = vadd.f32 %v2583_v8, %v6093_v37 }
 0x294   :  { %v3679_v25 = vpop.f32.mrf.mxu0 }
 0x295   :  { %v2746_v43 = vpack.c.bf16 %v2706_v3, %v2705_v32  ;;  %v2704_v16 = vmax.f32 %v2584_v56, 0.0  ;;  %v2605_v0 = vadd.f32 %v3679_v25, %v6094_v29  ;;  %v6106_v32 = vld [vmem:[#allocation21_spill] sm:$0xff]  ;;  %v6107_v56 = vld [vmem:[#allocation19_spill] sm:$0xff]  ;;  %v6109_v29 = vld [vmem:[#allocation20_spill] sm:$0xff] }
 0x296   :  { %v2596_v42 = vpop.f32.mrf.mxu0 }
 0x297   :  { %v2745_v14 = vpack.c.bf16 %v2704_v16, %v2703_v17  ;;  %v2597_v52 = vadd.f32 %v2596_v42, %v6095_v9  ;;  %v2709_v49 = vmax.f32 %v2605_v0, 0.0  ;;  %v6108_v17 = vld [vmem:[#allocation22_spill] sm:$0xff] }
 0x298   :  { %v3680_v27 = vpop.f32.mrf.mxu0 }
 0x299   :  { %v2608_v12 = vadd.f32 %v3680_v27, %v6096_v33  ;;  %3753 = vmatprep.mubr.bf16.mxu1 %v2745_v14  ;;  %v2707_v1 = vmax.f32 %v2597_v52, 0.0 }
 0x29a   :  { %v2599_v55 = vpop.f32.mrf.mxu0  ;;  %3754 = vmatmul.mubr.bf16.gmra.mxu1 %v2746_v43 }
 0x29b   :  { %v2710_v28 = vmax.f32 %v2608_v12, 0.0  ;;  %v2600_v40 = vadd.f32 %v2599_v55, %v6097_v21  ;;  %v5809_v12 = vld [vmem:[%s6072_s5] ss:$0 sm:$0xff] }
 0x29c   :  { %v3683_v19 = vpop.f32.mrf.mxu0 }
 0x29d   :  { %v2748_v5 = vpack.c.bf16 %v2710_v28, %v2709_v49  ;;  %v2708_v20 = vmax.f32 %v2600_v40, 0.0  ;;  %v2621_v44 = vadd.f32 %v3683_v19, %v6098_v58 }
 0x29e   :  { %v2612_v50 = vpop.f32.mrf.mxu0 }
 0x29f   :  { %v2747_v18 = vpack.c.bf16 %v2708_v20, %v2707_v1  ;;  %v2613_v35 = vadd.f32 %v2612_v50, %v6099_v7  ;;  %v2713_v4 = vmax.f32 %v2621_v44, 0.0 }
 0x2a0   :  { %v3684_v2 = vpop.f32.mrf.mxu0 }
 0x2a1   :  { %v2624_v61 = vadd.f32 %v3684_v2, %v6100_v22  ;;  %3757 = vmatprep.mubr.bf16.mxu1 %v2747_v18  ;;  %v2711_v6 = vmax.f32 %v2613_v35, 0.0 }
 0x2a2   :  { %v2615_v46 = vpop.f32.mrf.mxu0  ;;  %3758 = vmatmul.mubr.bf16.gmra.mxu1 %v2748_v5 }
 0x2a3   :  { %v2714_v53 = vmax.f32 %v2624_v61, 0.0  ;;  %v2616_v54 = vadd.f32 %v2615_v46, %v6101_v59 }
 0x2a4   :  { %v3687_v41 = vpop.f32.mrf.mxu0 }
 0x2a5   :  { %v2750_v45 = vpack.c.bf16 %v2714_v53, %v2713_v4  ;;  %v2712_v38 = vmax.f32 %v2616_v54, 0.0  ;;  %v2637_v23 = vadd.f32 %v3687_v41, %v6102_v30 }
 0x2a6   :  { %v2628_v62 = vpop.f32.mrf.mxu0 }
 0x2a7   :  { %v2749_v26 = vpack.c.bf16 %v2712_v38, %v2711_v6  ;;  %v2629_v15 = vadd.f32 %v2628_v62, %v6103_v63  ;;  %v2717_v24 = vmax.f32 %v2637_v23, 0.0 }
 0x2a8   :  { %v3688_v57 = vpop.f32.mrf.mxu0 }
 0x2a9   :  { %v2640_v51 = vadd.f32 %v3688_v57, %v6104_v48  ;;  %3761 = vmatprep.mubr.bf16.mxu1 %v2749_v26  ;;  %v2715_v13 = vmax.f32 %v2629_v15, 0.0 }
 0x2aa   :  { %v2631_v36 = vpop.f32.mrf.mxu0  ;;  %3762 = vmatmul.mubr.bf16.gmra.mxu1 %v2750_v45 }
 0x2ab   :  { %v2718_v47 = vmax.f32 %v2640_v51, 0.0  ;;  %v2632_v60 = vadd.f32 %v2631_v36, %v6105_v10 }
 0x2ac   :  { %v3691_v11 = vpop.f32.mrf.mxu0 }
 0x2ad   :  { %v2752_v34 = vpack.c.bf16 %v2718_v47, %v2717_v24  ;;  %v2716_v39 = vmax.f32 %v2632_v60, 0.0  ;;  %v2653_v3 = vadd.f32 %v3691_v11, %v6106_v32 }
 0x2ae   :  { %v2644_v31 = vpop.f32.mrf.mxu0 }
 0x2af   :  { %v2751_v8 = vpack.c.bf16 %v2716_v39, %v2715_v13  ;;  %v2645_v25 = vadd.f32 %v2644_v31, %v6107_v56  ;;  %v2721_v42 = vmax.f32 %v2653_v3, 0.0 }
 0x2b0   :  { %v3692_v37 = vpop.f32.mrf.mxu0 }
 0x2b1   :  { %v2656_v43 = vadd.f32 %v3692_v37, %v6108_v17  ;;  %3765 = vmatprep.mubr.bf16.mxu1 %v2751_v8  ;;  %v2719_v27 = vmax.f32 %v2645_v25, 0.0 }
 0x2b2   :  { %v2647_v16 = vpop.f32.mrf.mxu0  ;;  %3766 = vmatmul.mubr.bf16.gmra.mxu1 %v2752_v34 }
 0x2b3   :  { %v2722_v14 = vmax.f32 %v2656_v43, 0.0  ;;  %v2648_v0 = vadd.f32 %v2647_v16, %v6109_v29 }
 0x2b5   :  { %v2754_v9 = vpack.c.bf16 %v2722_v14, %v2721_v42  ;;  %v2720_v52 = vmax.f32 %v2648_v0, 0.0 }
 0x2b7   :  { %v2753_v33 = vpack.c.bf16 %v2720_v52, %v2719_v27 }
 0x2b9   :  { %3769 = vmatprep.mubr.bf16.mxu1 %v2753_v33 }
 0x2ba   :  { %3770 = vmatmul.mubr.bf16.gmra.mxu1 %v2754_v9 }
 0x302   :  { %v3711_v55 = vpop.f32.mrf.mxu1 }
 0x303   :  { %v2869_v49 = vadd.f32 %v3711_v55, %v5809_v12 }
 0x304   :  { %v2860_v28 = vpop.f32.mrf.mxu1 }
 0x305   :  { %3117 = vst [vmem:[%s6073_s6 + $0x10] sm:$0xff] %v2869_v49  ;;  %v2861_v21 = vadd.f32 %v5809_v12, %v2860_v28 }
 0x306   :  { %v3712_v40 = vpop.f32.mrf.mxu1 }
 0x307   :  { %3115 = vst [vmem:[%s6073_s6] sm:$0xff] %v2861_v21  ;;  %v2872_v19 = vadd.f32 %v3712_v40, %v5809_v12 }
 0x308   :  { %v2863_v1 = vpop.f32.mrf.mxu1 }
 0x309   :  { %3118 = vst [vmem:[%s6073_s6 + $0x18] sm:$0xff] %v2872_v19  ;;  %v2864_v5 = vadd.f32 %v5809_v12, %v2863_v1 }
 0x30a   :  { %v3715_v20 = vpop.f32.mrf.mxu1 }
 0x30b   :  { %3116 = vst [vmem:[%s6073_s6 + $0x8] sm:$0xff] %v2864_v5  ;;  %v2885_v50 = vadd.f32 %v3715_v20, %v5809_v12 }
 0x30c   :  { %v2876_v18 = vpop.f32.mrf.mxu1 }
 0x30d   :  { %3121 = vst [vmem:[%s6073_s6 + $0x30] sm:$0xff] %v2885_v50  ;;  %v2877_v58 = vadd.f32 %v5809_v12, %v2876_v18 }
 0x30e   :  { %v3716_v44 = vpop.f32.mrf.mxu1 }
 0x30f   :  { %3119 = vst [vmem:[%s6073_s6 + $0x20] sm:$0xff] %v2877_v58  ;;  %v2888_v2 = vadd.f32 %v3716_v44, %v5809_v12 }
 0x310   :  { %v2879_v7 = vpop.f32.mrf.mxu1 }
 0x311   :  { %3122 = vst [vmem:[%s6073_s6 + $0x38] sm:$0xff] %v2888_v2  ;;  %v2880_v35 = vadd.f32 %v5809_v12, %v2879_v7 }
 0x312   :  { %v3719_v22 = vpop.f32.mrf.mxu1 }
 0x313   :  { %3120 = vst [vmem:[%s6073_s6 + $0x28] sm:$0xff] %v2880_v35  ;;  %v2901_v61 = vadd.f32 %v3719_v22, %v5809_v12 }
 0x314   :  { %v2892_v46 = vpop.f32.mrf.mxu1 }
 0x315   :  { %3125 = vst [vmem:[%s6073_s6 + $0x50] sm:$0xff] %v2901_v61  ;;  %v2893_v4 = vadd.f32 %v5809_v12, %v2892_v46 }
 0x316   :  { %v3720_v53 = vpop.f32.mrf.mxu1 }
 0x317   :  { %3123 = vst [vmem:[%s6073_s6 + $0x40] sm:$0xff] %v2893_v4  ;;  %v2904_v59 = vadd.f32 %v3720_v53, %v5809_v12 }
 0x318   :  { %v2895_v54 = vpop.f32.mrf.mxu1 }
 0x319   :  { %3126 = vst [vmem:[%s6073_s6 + $0x58] sm:$0xff] %v2904_v59  ;;  %v2896_v41 = vadd.f32 %v5809_v12, %v2895_v54 }
 0x31a   :  { %v3723_v6 = vpop.f32.mrf.mxu1 }
 0x31b   :  { %3124 = vst [vmem:[%s6073_s6 + $0x48] sm:$0xff] %v2896_v41  ;;  %v2917_v45 = vadd.f32 %v3723_v6, %v5809_v12 }
 0x31c   :  { %v2908_v38 = vpop.f32.mrf.mxu1 }
 0x31d   :  { %3129 = vst [vmem:[%s6073_s6 + $0x70] sm:$0xff] %v2917_v45  ;;  %v2909_v62 = vadd.f32 %v5809_v12, %v2908_v38 }
 0x31e   :  { %v3724_v26 = vpop.f32.mrf.mxu1 }
 0x31f   :  { %3127 = vst [vmem:[%s6073_s6 + $0x60] sm:$0xff] %v2909_v62  ;;  %v2920_v30 = vadd.f32 %v3724_v26, %v5809_v12 }
 0x320   :  { %v2911_v23 = vpop.f32.mrf.mxu1 }
 0x321   :  { %3130 = vst [vmem:[%s6073_s6 + $0x78] sm:$0xff] %v2920_v30  ;;  %v2912_v57 = vadd.f32 %v5809_v12, %v2911_v23 }
 0x322   :  { %v3727_v63 = vpop.f32.mrf.mxu1 }
 0x323   :  { %3128 = vst [vmem:[%s6073_s6 + $0x68] sm:$0xff] %v2912_v57  ;;  %v2933_v15 = vadd.f32 %v3727_v63, %v5809_v12 }
 0x324   :  { %v2924_v48 = vpop.f32.mrf.mxu1 }
 0x325   :  { %3133 = vst [vmem:[%s6073_s6 + $0x90] sm:$0xff] %v2933_v15  ;;  %v2925_v51 = vadd.f32 %v5809_v12, %v2924_v48 }
 0x326   :  { %v3728_v36 = vpop.f32.mrf.mxu1 }
 0x327   :  { %3131 = vst [vmem:[%s6073_s6 + $0x80] sm:$0xff] %v2925_v51  ;;  %v2936_v24 = vadd.f32 %v3728_v36, %v5809_v12 }
 0x328   :  { %v2927_v47 = vpop.f32.mrf.mxu1 }
 0x329   :  { %3134 = vst [vmem:[%s6073_s6 + $0x98] sm:$0xff] %v2936_v24  ;;  %v2928_v10 = vadd.f32 %v5809_v12, %v2927_v47 }
 0x32a   :  { %v3731_v60 = vpop.f32.mrf.mxu1 }
 0x32b   :  { %3132 = vst [vmem:[%s6073_s6 + $0x88] sm:$0xff] %v2928_v10  ;;  %v2949_v11 = vadd.f32 %v3731_v60, %v5809_v12 }
 0x32c   :  { %v2940_v13 = vpop.f32.mrf.mxu1 }
 0x32d   :  { %3137 = vst [vmem:[%s6073_s6 + $0xb0] sm:$0xff] %v2949_v11  ;;  %v2941_v34 = vadd.f32 %v5809_v12, %v2940_v13 }
 0x32e   :  { %v3732_v39 = vpop.f32.mrf.mxu1 }
 0x32f   :  { %3135 = vst [vmem:[%s6073_s6 + $0xa0] sm:$0xff] %v2941_v34  ;;  %v2952_v31 = vadd.f32 %v3732_v39, %v5809_v12 }
 0x330   :  { %v2943_v8 = vpop.f32.mrf.mxu1 }
 0x331   :  { %3138 = vst [vmem:[%s6073_s6 + $0xb8] sm:$0xff] %v2952_v31  ;;  %v2944_v32 = vadd.f32 %v5809_v12, %v2943_v8 }
 0x332   :  { %v3735_v3 = vpop.f32.mrf.mxu1 }
 0x333   :  { %3136 = vst [vmem:[%s6073_s6 + $0xa8] sm:$0xff] %v2944_v32  ;;  %v2965_v37 = vadd.f32 %v3735_v3, %v5809_v12 }
 0x334   :  { %v2956_v56 = vpop.f32.mrf.mxu1 }
 0x335   :  { %3141 = vst [vmem:[%s6073_s6 + $0xd0] sm:$0xff] %v2965_v37  ;;  %v2957_v25 = vadd.f32 %v5809_v12, %v2956_v56 }
 0x336   :  { %v3736_v17 = vpop.f32.mrf.mxu1 }
 0x337   :  { %3139 = vst [vmem:[%s6073_s6 + $0xc0] sm:$0xff] %v2957_v25  ;;  %v2968_v43 = vadd.f32 %v3736_v17, %v5809_v12 }
 0x338   :  { %v2959_v16 = vpop.f32.mrf.mxu1 }
 0x339   :  { %3142 = vst [vmem:[%s6073_s6 + $0xd8] sm:$0xff] %v2968_v43  ;;  %v2960_v42 = vadd.f32 %v5809_v12, %v2959_v16 }
 0x33a   :  { %v3739_v14 = vpop.f32.mrf.mxu1 }
 0x33b   :  { %3140 = vst [vmem:[%s6073_s6 + $0xc8] sm:$0xff] %v2960_v42  ;;  %v2981_v29 = vadd.f32 %v3739_v14, %v5809_v12 }
 0x33c   :  { %v2972_v0 = vpop.f32.mrf.mxu1 }
 0x33d   :  { %3145 = vst [vmem:[%s6073_s6 + $0xf0] sm:$0xff] %v2981_v29  ;;  %v2973_v27 = vadd.f32 %v5809_v12, %v2972_v0 }
 0x33e   :  { %v3740_v9 = vpop.f32.mrf.mxu1 }
 0x33f   :  { %3143 = vst [vmem:[%s6073_s6 + $0xe0] sm:$0xff] %v2973_v27  ;;  %v2984_v52 = vadd.f32 %v3740_v9, %v5809_v12 }
 0x340   :  { %v2975_v33 = vpop.f32.mrf.mxu1 }
 0x341   :  { %3146 = vst [vmem:[%s6073_s6 + $0xf8] sm:$0xff] %v2984_v52  ;;  %v2976_v55 = vadd.f32 %v5809_v12, %v2975_v33 }
 0x342   :  { %v3743_v49 = vpop.f32.mrf.mxu1 }
 0x343   :  { %3144 = vst [vmem:[%s6073_s6 + $0xe8] sm:$0xff] %v2976_v55  ;;  %v2997_v28 = vadd.f32 %v3743_v49, %v5809_v12 }
 0x344   :  { %v2988_v21 = vpop.f32.mrf.mxu1 }
 0x345   :  { %3149 = vst [vmem:[%s6073_s6 + $0x110] sm:$0xff] %v2997_v28  ;;  %v2989_v40 = vadd.f32 %v5809_v12, %v2988_v21 }
 0x346   :  { %v3744_v19 = vpop.f32.mrf.mxu1 }
 0x347   :  { %3147 = vst [vmem:[%s6073_s6 + $0x100] sm:$0xff] %v2989_v40  ;;  %v3000_v1 = vadd.f32 %v3744_v19, %v5809_v12 }
 0x348   :  { %v2991_v5 = vpop.f32.mrf.mxu1 }
 0x349   :  { %3150 = vst [vmem:[%s6073_s6 + $0x118] sm:$0xff] %v3000_v1  ;;  %v2992_v20 = vadd.f32 %v5809_v12, %v2991_v5 }
 0x34a   :  { %v3747_v50 = vpop.f32.mrf.mxu1 }
 0x34b   :  { %3148 = vst [vmem:[%s6073_s6 + $0x108] sm:$0xff] %v2992_v20  ;;  %v3013_v18 = vadd.f32 %v3747_v50, %v5809_v12 }
 0x34c   :  { %v3004_v58 = vpop.f32.mrf.mxu1 }
 0x34d   :  { %3153 = vst [vmem:[%s6073_s6 + $0x130] sm:$0xff] %v3013_v18  ;;  %v3005_v44 = vadd.f32 %v5809_v12, %v3004_v58 }
 0x34e   :  { %v3748_v2 = vpop.f32.mrf.mxu1 }
 0x34f   :  { %3151 = vst [vmem:[%s6073_s6 + $0x120] sm:$0xff] %v3005_v44  ;;  %v3016_v7 = vadd.f32 %v3748_v2, %v5809_v12 }
 0x350   :  { %v3007_v35 = vpop.f32.mrf.mxu1 }
 0x351   :  { %3154 = vst [vmem:[%s6073_s6 + $0x138] sm:$0xff] %v3016_v7  ;;  %v3008_v22 = vadd.f32 %v5809_v12, %v3007_v35 }
 0x352   :  { %v3751_v61 = vpop.f32.mrf.mxu1 }
 0x353   :  { %3152 = vst [vmem:[%s6073_s6 + $0x128] sm:$0xff] %v3008_v22  ;;  %v3029_v46 = vadd.f32 %v3751_v61, %v5809_v12 }
 0x354   :  { %v3020_v4 = vpop.f32.mrf.mxu1 }
 0x355   :  { %3157 = vst [vmem:[%s6073_s6 + $0x150] sm:$0xff] %v3029_v46  ;;  %v3021_v53 = vadd.f32 %v5809_v12, %v3020_v4 }
 0x356   :  { %v3752_v59 = vpop.f32.mrf.mxu1 }
 0x357   :  { %3155 = vst [vmem:[%s6073_s6 + $0x140] sm:$0xff] %v3021_v53  ;;  %v3032_v54 = vadd.f32 %v3752_v59, %v5809_v12 }
 0x358   :  { %v3023_v41 = vpop.f32.mrf.mxu1 }
 0x359   :  { %3158 = vst [vmem:[%s6073_s6 + $0x158] sm:$0xff] %v3032_v54  ;;  %v3024_v6 = vadd.f32 %v5809_v12, %v3023_v41 }
 0x35a   :  { %v3755_v45 = vpop.f32.mrf.mxu1 }
 0x35b   :  { %3156 = vst [vmem:[%s6073_s6 + $0x148] sm:$0xff] %v3024_v6  ;;  %v3045_v38 = vadd.f32 %v3755_v45, %v5809_v12 }
 0x35c   :  { %v3036_v62 = vpop.f32.mrf.mxu1 }
 0x35d   :  { %3161 = vst [vmem:[%s6073_s6 + $0x170] sm:$0xff] %v3045_v38  ;;  %v3037_v26 = vadd.f32 %v5809_v12, %v3036_v62 }
 0x35e   :  { %v3756_v30 = vpop.f32.mrf.mxu1 }
 0x35f   :  { %3159 = vst [vmem:[%s6073_s6 + $0x160] sm:$0xff] %v3037_v26  ;;  %v3048_v23 = vadd.f32 %v3756_v30, %v5809_v12 }
 0x360   :  { %v3039_v57 = vpop.f32.mrf.mxu1 }
 0x361   :  { %3162 = vst [vmem:[%s6073_s6 + $0x178] sm:$0xff] %v3048_v23  ;;  %v3040_v63 = vadd.f32 %v5809_v12, %v3039_v57 }
 0x362   :  { %v3759_v15 = vpop.f32.mrf.mxu1 }
 0x363   :  { %3160 = vst [vmem:[%s6073_s6 + $0x168] sm:$0xff] %v3040_v63  ;;  %v3061_v48 = vadd.f32 %v3759_v15, %v5809_v12 }
 0x364   :  { %v3052_v51 = vpop.f32.mrf.mxu1 }
 0x365   :  { %3165 = vst [vmem:[%s6073_s6 + $0x190] sm:$0xff] %v3061_v48  ;;  %v3053_v36 = vadd.f32 %v5809_v12, %v3052_v51 }
 0x366   :  { %v3760_v24 = vpop.f32.mrf.mxu1 }
 0x367   :  { %3163 = vst [vmem:[%s6073_s6 + $0x180] sm:$0xff] %v3053_v36  ;;  %v3064_v47 = vadd.f32 %v3760_v24, %v5809_v12 }
 0x368   :  { %v3055_v10 = vpop.f32.mrf.mxu1 }
 0x369   :  { %3166 = vst [vmem:[%s6073_s6 + $0x198] sm:$0xff] %v3064_v47  ;;  %v3056_v60 = vadd.f32 %v5809_v12, %v3055_v10 }
 0x36a   :  { %v3763_v11 = vpop.f32.mrf.mxu1 }
 0x36b   :  { %3164 = vst [vmem:[%s6073_s6 + $0x188] sm:$0xff] %v3056_v60  ;;  %v3077_v13 = vadd.f32 %v3763_v11, %v5809_v12 }
 0x36c   :  { %v3068_v34 = vpop.f32.mrf.mxu1 }
 0x36d   :  { %3169 = vst [vmem:[%s6073_s6 + $0x1b0] sm:$0xff] %v3077_v13  ;;  %v3069_v39 = vadd.f32 %v5809_v12, %v3068_v34 }
 0x36e   :  { %v3764_v31 = vpop.f32.mrf.mxu1 }
 0x36f   :  { %3167 = vst [vmem:[%s6073_s6 + $0x1a0] sm:$0xff] %v3069_v39  ;;  %v3080_v8 = vadd.f32 %v3764_v31, %v5809_v12 }
 0x370   :  { %v3071_v32 = vpop.f32.mrf.mxu1 }
 0x371   :  { %3170 = vst [vmem:[%s6073_s6 + $0x1b8] sm:$0xff] %v3080_v8  ;;  %v3072_v3 = vadd.f32 %v5809_v12, %v3071_v32 }
 0x372   :  { %v3767_v37 = vpop.f32.mrf.mxu1 }
 0x373   :  { %3168 = vst [vmem:[%s6073_s6 + $0x1a8] sm:$0xff] %v3072_v3  ;;  %v3093_v56 = vadd.f32 %v3767_v37, %v5809_v12 }
 0x374   :  { %v3084_v25 = vpop.f32.mrf.mxu1 }
 0x375   :  { %3173 = vst [vmem:[%s6073_s6 + $0x1d0] sm:$0xff] %v3093_v56  ;;  %v3085_v17 = vadd.f32 %v5809_v12, %v3084_v25 }
 0x376   :  { %v3768_v43 = vpop.f32.mrf.mxu1 }
 0x377   :  { %3171 = vst [vmem:[%s6073_s6 + $0x1c0] sm:$0xff] %v3085_v17  ;;  %v3096_v16 = vadd.f32 %v3768_v43, %v5809_v12 }
 0x378   :  { %v3087_v42 = vpop.f32.mrf.mxu1 }
 0x379   :  { %3174 = vst [vmem:[%s6073_s6 + $0x1d8] sm:$0xff] %v3096_v16  ;;  %v3088_v14 = vadd.f32 %v5809_v12, %v3087_v42 }
 0x37a   :  { %v3771_v29 = vpop.f32.mrf.mxu1 }
 0x37b   :  { %3172 = vst [vmem:[%s6073_s6 + $0x1c8] sm:$0xff] %v3088_v14  ;;  %v3109_v0 = vadd.f32 %v3771_v29, %v5809_v12 }
 0x37c   :  { %v3100_v27 = vpop.f32.mrf.mxu1 }
 0x37d   :  { %3177 = vst [vmem:[%s6073_s6 + $0x1f0] sm:$0xff] %v3109_v0  ;;  %v3101_v9 = vadd.f32 %v5809_v12, %v3100_v27 }
 0x37e   :  { %v3772_v52 = vpop.f32.mrf.mxu1 }
 0x37f   :  { %3175 = vst [vmem:[%s6073_s6 + $0x1e0] sm:$0xff] %v3101_v9  ;;  %v3112_v33 = vadd.f32 %v3772_v52, %v5809_v12 }
 0x380   :  { %v3103_v55 = vpop.f32.mrf.mxu1 }
 0x381   :  { %3178 = vst [vmem:[%s6073_s6 + $0x1f8] sm:$0xff] %v3112_v33  ;;  %v3104_v49 = vadd.f32 %v5809_v12, %v3103_v55 }
 0x383   :  { %3176 = vst [vmem:[%s6073_s6 + $0x1e8] sm:$0xff] %v3104_v49 }
 0x384   :  { %3183 = vsyncpa [#allocation3], 1 }

</bundles_post_ra>
